<compile_context>
chip_gen: v7x
topology: tpu7x:2x2x1
jax: 0.10.0
libtpu: 0.0.40
codegen_flags: <defaults>
</compile_context>

<pallas_src>
import numpy as np
import jax
import jax.numpy as jnp
from jax.experimental import pallas as pl
from jax.experimental.pallas import tpu as pltpu

# ---- model hyperparameters (Net defaults) -----------------------------------
INPUT_SIZE = 6
HIDDEN = 20
OUTPUT = 1
LAYERS = 3
NUM_DIR = 2                      # bidirectional
IN_PAD = 2 * HIDDEN              # common (padded) per-layer input width = 40
GW = 8 * HIDDEN                  # fused gate width: 4 gates x 2 directions = 160

# Recurrent (serial-chain) dots: default MXU precision.
_MM_FAST = dict(preferred_element_type=jnp.float32)
# Hoisted / one-shot dots (off the serial chain): keep full f32 precision.
_MM_EXACT = dict(preferred_element_type=jnp.float32,
                 precision=jax.lax.Precision.HIGHEST)


# ---- Pallas kernel -----------------------------------------------------------
def net_kernel(x_ref, wxf_ref, wxb_ref, whh_ref, bias_ref, wlin_ref, blin_ref,
               out_ref, xpf_ref, xpb_ref, hf_ref, hb_ref):
    """Whole network in one kernel invocation (everything fits in VMEM).

    x_ref    : (T, B, 40)            padded, time-major input
    wxf_ref  : (LAYERS, 40, 160)     input->gate weights, fwd-direction columns
    wxb_ref  : (LAYERS, 40, 160)     input->gate weights, bwd-direction columns
    whh_ref  : (LAYERS, 40, 160)     block-diagonal hidden->gate weights
    bias_ref : (LAYERS, 1, 160)      b_ih + b_hh, both directions
    wlin_ref : (40, 1), blin_ref : (1, 1)
    out_ref  : (B, 1)
    xpf_ref / xpb_ref : (T, B, 160)  VMEM scratch, hoisted x-projections
    hf_ref / hb_ref   : (T, B, 20)   VMEM scratch, per-direction outputs
    """
    T, B, _ = x_ref.shape
    H = HIDDEN
    D2 = 2 * HIDDEN                       # 40: state width / per-gate block

    seq = x_ref[...]                      # (T, B, 40) current layer input

    for layer in range(LAYERS):           # static unroll over layers
        # ---- hoisted input->gate projection (one matmul, off serial chain) --
        seq_flat = seq.reshape(T * B, D2)
        xpf = jnp.dot(seq_flat, wxf_ref[layer], **_MM_EXACT) + bias_ref[layer]
        xpb = jnp.dot(seq_flat, wxb_ref[layer], **_MM_EXACT)
        xpf_ref[...] = xpf.reshape(T, B, GW)
        xpb_ref[...] = xpb.reshape(T, B, GW)

        whh = whh_ref[layer]              # (40, 160) block-diag fwd/bwd

        h = jnp.zeros((B, D2), jnp.float32)   # [h_fwd | h_bwd]
        c = jnp.zeros((B, D2), jnp.float32)   # [c_fwd | c_bwd]
        for t in range(T):                # static unroll of the time loop
            # fwd direction reads time t, bwd direction reads time T-1-t
            gates = (jnp.dot(h, whh, **_MM_FAST)
                     + xpf_ref[t] + xpb_ref[T - 1 - t])        # (B, 160)
            sig = jax.nn.sigmoid(gates[:, :3 * D2])            # i | f | o
            i_g = sig[:, 0 * D2:1 * D2]
            f_g = sig[:, 1 * D2:2 * D2]
            o_g = sig[:, 2 * D2:3 * D2]
            g_g = jnp.tanh(gates[:, 3 * D2:4 * D2])
            c = f_g * c + i_g * g_g
            h = o_g * jnp.tanh(c)
            hf_ref[t] = h[:, :H]               # fwd output for time t
            hb_ref[T - 1 - t] = h[:, H:]       # bwd output for time T-1-t

        if layer + 1 < LAYERS:
            # bulk fwd/bwd concat once per layer -> next layer's input
            seq = jnp.concatenate([hf_ref[...], hb_ref[...]], axis=-1)

    # X[:, -1, :] of the final layer = [fwd_out[T-1] | bwd_out[T-1]]
    last = jnp.concatenate([hf_ref[T - 1], hb_ref[T - 1]], axis=-1)   # (B, 40)
    logits = jnp.dot(last, wlin_ref[...], **_MM_EXACT) + blin_ref[...]
    out_ref[...] = jax.nn.sigmoid(logits)


# ---- wrapper -----------------------------------------------------------------
def net_forward(x, params):
    """x: (B, T, INPUT_SIZE) float32 -> (B, OUTPUT) float32."""
    wxf, wxb, whh, bias, w_lin, b_lin = params
    B, T, _ = x.shape
    x_pad = jnp.zeros((B, T, IN_PAD), jnp.float32).at[:, :, :INPUT_SIZE].set(x)
    x_tm = jnp.transpose(x_pad, (1, 0, 2))            # (T, B, IN_PAD), time-major

    vmem = lambda: pl.BlockSpec(memory_space=pltpu.MemorySpace.VMEM)
    # TODO(synk): if B grows beyond toy sizes, add a batch-block grid with
    # dimension_semantics=("parallel",) so both v7x TensorCores are used.
    return pl.pallas_call(
        net_kernel,
        out_shape=jax.ShapeDtypeStruct((B, OUTPUT), jnp.float32),
        in_specs=[vmem() for _ in range(7)],
        out_specs=vmem(),
        scratch_shapes=[pltpu.VMEM((T, B, GW), jnp.float32),      # xpf
                        pltpu.VMEM((T, B, GW), jnp.float32),      # xpb
                        pltpu.VMEM((T, B, HIDDEN), jnp.float32),  # fwd outputs
                        pltpu.VMEM((T, B, HIDDEN), jnp.float32)], # bwd outputs
    )(x_tm, wxf, wxb, whh, bias, w_lin, b_lin)


# ---- deterministic parameter construction (PyTorch-style uniform init) -------
def init_params(key):
    bound = 1.0 / np.sqrt(HIDDEN)
    keys = iter(jax.random.split(key, LAYERS * NUM_DIR * 4 + 2))
    raw = []
    for l in range(LAYERS):
        in_l = INPUT_SIZE if l == 0 else 2 * HIDDEN
        dirs = []
        for _ in range(NUM_DIR):
            Wih = jax.random.uniform(next(keys), (4 * HIDDEN, in_l), jnp.float32, -bound, bound)
            Whh = jax.random.uniform(next(keys), (4 * HIDDEN, HIDDEN), jnp.float32, -bound, bound)
            bih = jax.random.uniform(next(keys), (4 * HIDDEN,), jnp.float32, -bound, bound)
            bhh = jax.random.uniform(next(keys), (4 * HIDDEN,), jnp.float32, -bound, bound)
            dirs.append(tuple(np.asarray(a) for a in (Wih, Whh, bih, bhh)))
        raw.append(dirs)
    kb = 1.0 / np.sqrt(2 * HIDDEN)
    Wlin = np.asarray(jax.random.uniform(next(keys), (OUTPUT, 2 * HIDDEN), jnp.float32, -kb, kb))
    blin = np.asarray(jax.random.uniform(next(keys), (OUTPUT,), jnp.float32, -kb, kb))
    return raw, Wlin, blin


# torch gate order is (i, f, g, o); fused column blocks are (i, f, o, g) so
# sigmoid covers one contiguous 120-lane slice and tanh the trailing 40 lanes.
_GATE_BLOCK = {0: 0, 1: 1, 2: 3, 3: 2}


def pack_params(raw, Wlin, blin):
    D2 = 2 * HIDDEN
    wxf = np.zeros((LAYERS, IN_PAD, GW), np.float32)   # fwd-direction columns
    wxb = np.zeros((LAYERS, IN_PAD, GW), np.float32)   # bwd-direction columns
    whh = np.zeros((LAYERS, D2, GW), np.float32)       # block-diagonal
    bias = np.zeros((LAYERS, 1, GW), np.float32)
    for l in range(LAYERS):
        in_l = INPUT_SIZE if l == 0 else 2 * HIDDEN
        for d in range(NUM_DIR):
            Wih, Whh, bih, bhh = raw[l][d]
            bsum = (np.asarray(bih) + np.asarray(bhh)).astype(np.float32)
            wx_dst = wxf if d == 0 else wxb
            for tg in range(4):                        # torch gate index
                blk = _GATE_BLOCK[tg]
                c0 = blk * D2 + d * HIDDEN             # column start (gate, dir)
                rows = slice(tg * HIDDEN, (tg + 1) * HIDDEN)
                wx_dst[l, :in_l, c0:c0 + HIDDEN] = np.asarray(Wih)[rows, :].T
                whh[l, d * HIDDEN:(d + 1) * HIDDEN, c0:c0 + HIDDEN] = \
                    np.asarray(Whh)[rows, :].T
                bias[l, 0, c0:c0 + HIDDEN] = bsum[rows]
    w_lin = np.asarray(Wlin).T.astype(np.float32)      # (2H, OUTPUT)
    b_lin = np.asarray(blin).reshape(1, OUTPUT).astype(np.float32)
    return tuple(jnp.asarray(a) for a in (wxf, wxb, whh, bias, w_lin, b_lin))


# ---- pure-numpy reference (mirrors torch.nn.LSTM semantics) -------------------
def _sigmoid(x):
    return 1.0 / (1.0 + np.exp(-x))


def ref_forward(x, raw, Wlin, blin):
    x = np.asarray(x, np.float64)
    B, T, _ = x.shape
    inp = x
    for l in range(LAYERS):
        outs = np.zeros((B, T, 2 * HIDDEN))
        for d in range(NUM_DIR):
            Wih, Whh, bih, bhh = [np.asarray(a, np.float64) for a in raw[l][d]]
            h = np.zeros((B, HIDDEN)); c = np.zeros((B, HIDDEN))
            order = range(T) if d == 0 else range(T - 1, -1, -1)
            for t in order:
                g = inp[:, t, :] @ Wih.T + h @ Whh.T + bih + bhh
                i = _sigmoid(g[:, :HIDDEN])
                f = _sigmoid(g[:, HIDDEN:2 * HIDDEN])
                gg = np.tanh(g[:, 2 * HIDDEN:3 * HIDDEN])
                o = _sigmoid(g[:, 3 * HIDDEN:])
                c = f * c + i * gg
                h = o * np.tanh(c)
                outs[:, t, d * HIDDEN:(d + 1) * HIDDEN] = h
        inp = outs
    last = inp[:, -1, :]
    return _sigmoid(last @ np.asarray(Wlin, np.float64).T + np.asarray(blin, np.float64))


if __name__ == "__main__":
    key = jax.random.PRNGKey(0)
    kx, kp = jax.random.split(key)

    B, T = 4, 8                                       # small batch / sequence
    x = jax.random.normal(kx, (B, T, INPUT_SIZE), jnp.float32)

    raw, Wlin, blin = init_params(kp)
    params = pack_params(raw, Wlin, blin)

    out = net_forward(x, params)
    out = jax.block_until_ready(out)

    ref = ref_forward(np.asarray(x), raw, Wlin, blin)
    assert out.shape == (B, OUTPUT)
    # recurrent matmul runs at default MXU precision (bf16 passes); output is
    # sigmoid-bounded so a few-1e-3 tolerance still validates correctness.
    np.testing.assert_allclose(np.asarray(out), ref, atol=3e-3, rtol=3e-3)
    print("KERNEL_OK")
</pallas_src>

<mosaic_0001>
module attributes {stable_mosaic.version = 11 : i64} {
  func.func @net_kernel(%arg0: memref<8x4x40xf32, #tpu.memory_space<vmem>>, %arg1: memref<3x40x160xf32, #tpu.memory_space<vmem>>, %arg2: memref<3x40x160xf32, #tpu.memory_space<vmem>>, %arg3: memref<3x40x160xf32, #tpu.memory_space<vmem>>, %arg4: memref<3x1x160xf32, #tpu.memory_space<vmem>>, %arg5: memref<40x1xf32, #tpu.memory_space<vmem>>, %arg6: memref<1x1xf32, #tpu.memory_space<vmem>>, %arg7: memref<4x1xf32, #tpu.memory_space<vmem>>, %arg8: memref<8x4x160xf32, #tpu.memory_space<vmem>>, %arg9: memref<8x4x160xf32, #tpu.memory_space<vmem>>, %arg10: memref<8x4x20xf32, #tpu.memory_space<vmem>>, %arg11: memref<8x4x20xf32, #tpu.memory_space<vmem>>) attributes {dimension_semantics = [], scalar_prefetch = 0 : i64, scratch_operands = 4 : i64, tpu.core_type = #tpu.core_type<tc>} {
    %c0 = arith.constant 0 : index
    %c0_0 = arith.constant 0 : index
    %c0_1 = arith.constant 0 : index
    %0 = vector.load %arg0[%c0, %c0_0, %c0_1] : memref<8x4x40xf32, #tpu.memory_space<vmem>>, vector<8x4x40xf32>
    %1 = vector.shape_cast %0 : vector<8x4x40xf32> to vector<32x40xf32>
    %c0_2 = arith.constant 0 : index
    %c0_3 = arith.constant 0 : index
    %c0_4 = arith.constant 0 : index
    %2 = vector.load %arg1[%c0_2, %c0_3, %c0_4] : memref<3x40x160xf32, #tpu.memory_space<vmem>>, vector<1x40x160xf32>
    %3 = vector.shape_cast %2 : vector<1x40x160xf32> to vector<40x160xf32>
    %cst = arith.constant dense<0.000000e+00> : vector<32x160xf32>
    %4 = tpu.matmul %1, %3, %cst {dimension_numbers = #tpu.dot_dimension_numbers<[1], [0], [0], [1], [0, 0, 1, 1], [], []>, precision = #tpu.contract_precision<fp32>} : vector<32x40xf32>, vector<40x160xf32>, vector<32x160xf32> -> vector<32x160xf32>
    %c0_5 = arith.constant 0 : index
    %c0_6 = arith.constant 0 : index
    %c0_7 = arith.constant 0 : index
    %5 = vector.load %arg4[%c0_5, %c0_6, %c0_7] : memref<3x1x160xf32, #tpu.memory_space<vmem>>, vector<1x1x160xf32>
    %6 = vector.shape_cast %5 : vector<1x1x160xf32> to vector<1x160xf32>
    %7 = vector.broadcast %6 : vector<1x160xf32> to vector<32x160xf32>
    %8 = arith.addf %4, %7 : vector<32x160xf32>
    %c0_8 = arith.constant 0 : index
    %c0_9 = arith.constant 0 : index
    %c0_10 = arith.constant 0 : index
    %9 = vector.load %arg2[%c0_8, %c0_9, %c0_10] : memref<3x40x160xf32, #tpu.memory_space<vmem>>, vector<1x40x160xf32>
    %10 = vector.shape_cast %9 : vector<1x40x160xf32> to vector<40x160xf32>
    %cst_11 = arith.constant dense<0.000000e+00> : vector<32x160xf32>
    %11 = tpu.matmul %1, %10, %cst_11 {dimension_numbers = #tpu.dot_dimension_numbers<[1], [0], [0], [1], [0, 0, 1, 1], [], []>, precision = #tpu.contract_precision<fp32>} : vector<32x40xf32>, vector<40x160xf32>, vector<32x160xf32> -> vector<32x160xf32>
    %12 = vector.shape_cast %8 : vector<32x160xf32> to vector<8x4x160xf32>
    %c0_12 = arith.constant 0 : index
    %c0_13 = arith.constant 0 : index
    %c0_14 = arith.constant 0 : index
    %13 = vector.load %arg8[%c0_12, %c0_13, %c0_14] : memref<8x4x160xf32, #tpu.memory_space<vmem>>, vector<8x4x160xf32>
    tpu.vector_store %arg8[%c0_12, %c0_13, %c0_14], %12 {strides = array<i32>} : memref<8x4x160xf32, #tpu.memory_space<vmem>>, vector<8x4x160xf32>,
    %14 = vector.shape_cast %11 : vector<32x160xf32> to vector<8x4x160xf32>
    %c0_15 = arith.constant 0 : index
    %c0_16 = arith.constant 0 : index
    %c0_17 = arith.constant 0 : index
    %15 = vector.load %arg9[%c0_15, %c0_16, %c0_17] : memref<8x4x160xf32, #tpu.memory_space<vmem>>, vector<8x4x160xf32>
    tpu.vector_store %arg9[%c0_15, %c0_16, %c0_17], %14 {strides = array<i32>} : memref<8x4x160xf32, #tpu.memory_space<vmem>>, vector<8x4x160xf32>,
    %c0_18 = arith.constant 0 : index
    %c0_19 = arith.constant 0 : index
    %c0_20 = arith.constant 0 : index
    %16 = vector.load %arg3[%c0_18, %c0_19, %c0_20] : memref<3x40x160xf32, #tpu.memory_space<vmem>>, vector<1x40x160xf32>
    %17 = vector.shape_cast %16 : vector<1x40x160xf32> to vector<40x160xf32>
    %cst_21 = arith.constant 0.000000e+00 : f32
    %18 = vector.broadcast %cst_21 : f32 to vector<4x40xf32>
    %cst_22 = arith.constant 0.000000e+00 : f32
    %19 = vector.broadcast %cst_22 : f32 to vector<4x40xf32>
    %cst_23 = arith.constant dense<0.000000e+00> : vector<4x160xf32>
    %20 = tpu.matmul %18, %17, %cst_23 {dimension_numbers = #tpu.dot_dimension_numbers<[1], [0], [0], [1], [0, 0, 1, 1], [], []>} : vector<4x40xf32>, vector<40x160xf32>, vector<4x160xf32> -> vector<4x160xf32>
    %c0_24 = arith.constant 0 : index
    %c0_25 = arith.constant 0 : index
    %c0_26 = arith.constant 0 : index
    %21 = vector.load %arg8[%c0_24, %c0_25, %c0_26] : memref<8x4x160xf32, #tpu.memory_space<vmem>>, vector<1x4x160xf32>
    %22 = vector.shape_cast %21 : vector<1x4x160xf32> to vector<4x160xf32>
    %23 = arith.addf %20, %22 : vector<4x160xf32>
    %c7 = arith.constant 7 : index
    %c0_27 = arith.constant 0 : index
    %c0_28 = arith.constant 0 : index
    %24 = vector.load %arg9[%c7, %c0_27, %c0_28] : memref<8x4x160xf32, #tpu.memory_space<vmem>>, vector<1x4x160xf32>
    %25 = vector.shape_cast %24 : vector<1x4x160xf32> to vector<4x160xf32>
    %26 = arith.addf %23, %25 : vector<4x160xf32>
    %27 = vector.extract_strided_slice %26 {offsets = [0, 0], sizes = [4, 120], strides = [1, 1]} : vector<4x160xf32> to vector<4x120xf32>
    %28 = arith.negf %27 : vector<4x120xf32>
    %29 = math.exp %28 : vector<4x120xf32>
    %cst_29 = arith.constant 1.000000e+00 : f32
    %30 = vector.broadcast %cst_29 : f32 to vector<4x120xf32>
    %31 = arith.addf %30, %29 : vector<4x120xf32>
    %32 = arith.divf %30, %31 : vector<4x120xf32>
    %33 = vector.extract_strided_slice %32 {offsets = [0, 0], sizes = [4, 40], strides = [1, 1]} : vector<4x120xf32> to vector<4x40xf32>
    %34 = vector.extract_strided_slice %32 {offsets = [0, 40], sizes = [4, 40], strides = [1, 1]} : vector<4x120xf32> to vector<4x40xf32>
    %35 = vector.extract_strided_slice %32 {offsets = [0, 80], sizes = [4, 40], strides = [1, 1]} : vector<4x120xf32> to vector<4x40xf32>
    %36 = vector.extract_strided_slice %26 {offsets = [0, 120], sizes = [4, 40], strides = [1, 1]} : vector<4x160xf32> to vector<4x40xf32>
    %37 = math.tanh %36 : vector<4x40xf32>
    %38 = arith.mulf %34, %19 : vector<4x40xf32>
    %39 = arith.mulf %33, %37 : vector<4x40xf32>
    %40 = arith.addf %38, %39 : vector<4x40xf32>
    %41 = math.tanh %40 : vector<4x40xf32>
    %42 = arith.mulf %35, %41 : vector<4x40xf32>
    %43 = vector.extract_strided_slice %42 {offsets = [0, 0], sizes = [4, 20], strides = [1, 1]} : vector<4x40xf32> to vector<4x20xf32>
    %c0_30 = arith.constant 0 : index
    %c0_31 = arith.constant 0 : index
    %c0_32 = arith.constant 0 : index
    %44 = vector.load %arg10[%c0_30, %c0_31, %c0_32] : memref<8x4x20xf32, #tpu.memory_space<vmem>>, vector<1x4x20xf32>
    %45 = vector.shape_cast %44 : vector<1x4x20xf32> to vector<4x20xf32>
    %46 = vector.shape_cast %43 : vector<4x20xf32> to vector<1x4x20xf32>
    tpu.vector_store %arg10[%c0_30, %c0_31, %c0_32], %46 {strides = array<i32>} : memref<8x4x20xf32, #tpu.memory_space<vmem>>, vector<1x4x20xf32>,
    %47 = vector.extract_strided_slice %42 {offsets = [0, 20], sizes = [4, 20], strides = [1, 1]} : vector<4x40xf32> to vector<4x20xf32>
    %c7_33 = arith.constant 7 : index
    %c0_34 = arith.constant 0 : index
    %c0_35 = arith.constant 0 : index
    %48 = vector.load %arg11[%c7_33, %c0_34, %c0_35] : memref<8x4x20xf32, #tpu.memory_space<vmem>>, vector<1x4x20xf32>
    %49 = vector.shape_cast %48 : vector<1x4x20xf32> to vector<4x20xf32>
    %50 = vector.shape_cast %47 : vector<4x20xf32> to vector<1x4x20xf32>
    tpu.vector_store %arg11[%c7_33, %c0_34, %c0_35], %50 {strides = array<i32>} : memref<8x4x20xf32, #tpu.memory_space<vmem>>, vector<1x4x20xf32>,
    %cst_36 = arith.constant dense<0.000000e+00> : vector<4x160xf32>
    %51 = tpu.matmul %42, %17, %cst_36 {dimension_numbers = #tpu.dot_dimension_numbers<[1], [0], [0], [1], [0, 0, 1, 1], [], []>} : vector<4x40xf32>, vector<40x160xf32>, vector<4x160xf32> -> vector<4x160xf32>
    %c1 = arith.constant 1 : index
    %c0_37 = arith.constant 0 : index
    %c0_38 = arith.constant 0 : index
    %52 = vector.load %arg8[%c1, %c0_37, %c0_38] : memref<8x4x160xf32, #tpu.memory_space<vmem>>, vector<1x4x160xf32>
    %53 = vector.shape_cast %52 : vector<1x4x160xf32> to vector<4x160xf32>
    %54 = arith.addf %51, %53 : vector<4x160xf32>
    %c6 = arith.constant 6 : index
    %c0_39 = arith.constant 0 : index
    %c0_40 = arith.constant 0 : index
    %55 = vector.load %arg9[%c6, %c0_39, %c0_40] : memref<8x4x160xf32, #tpu.memory_space<vmem>>, vector<1x4x160xf32>
    %56 = vector.shape_cast %55 : vector<1x4x160xf32> to vector<4x160xf32>
    %57 = arith.addf %54, %56 : vector<4x160xf32>
    %58 = vector.extract_strided_slice %57 {offsets = [0, 0], sizes = [4, 120], strides = [1, 1]} : vector<4x160xf32> to vector<4x120xf32>
    %59 = arith.negf %58 : vector<4x120xf32>
    %60 = math.exp %59 : vector<4x120xf32>
    %cst_41 = arith.constant 1.000000e+00 : f32
    %61 = vector.broadcast %cst_41 : f32 to vector<4x120xf32>
    %62 = arith.addf %61, %60 : vector<4x120xf32>
    %63 = arith.divf %61, %62 : vector<4x120xf32>
    %64 = vector.extract_strided_slice %63 {offsets = [0, 0], sizes = [4, 40], strides = [1, 1]} : vector<4x120xf32> to vector<4x40xf32>
    %65 = vector.extract_strided_slice %63 {offsets = [0, 40], sizes = [4, 40], strides = [1, 1]} : vector<4x120xf32> to vector<4x40xf32>
    %66 = vector.extract_strided_slice %63 {offsets = [0, 80], sizes = [4, 40], strides = [1, 1]} : vector<4x120xf32> to vector<4x40xf32>
    %67 = vector.extract_strided_slice %57 {offsets = [0, 120], sizes = [4, 40], strides = [1, 1]} : vector<4x160xf32> to vector<4x40xf32>
    %68 = math.tanh %67 : vector<4x40xf32>
    %69 = arith.mulf %65, %40 : vector<4x40xf32>
    %70 = arith.mulf %64, %68 : vector<4x40xf32>
    %71 = arith.addf %69, %70 : vector<4x40xf32>
    %72 = math.tanh %71 : vector<4x40xf32>
    %73 = arith.mulf %66, %72 : vector<4x40xf32>
    %74 = vector.extract_strided_slice %73 {offsets = [0, 0], sizes = [4, 20], strides = [1, 1]} : vector<4x40xf32> to vector<4x20xf32>
    %c1_42 = arith.constant 1 : index
    %c0_43 = arith.constant 0 : index
    %c0_44 = arith.constant 0 : index
    %75 = vector.load %arg10[%c1_42, %c0_43, %c0_44] : memref<8x4x20xf32, #tpu.memory_space<vmem>>, vector<1x4x20xf32>
    %76 = vector.shape_cast %75 : vector<1x4x20xf32> to vector<4x20xf32>
    %77 = vector.shape_cast %74 : vector<4x20xf32> to vector<1x4x20xf32>
    tpu.vector_store %arg10[%c1_42, %c0_43, %c0_44], %77 {strides = array<i32>} : memref<8x4x20xf32, #tpu.memory_space<vmem>>, vector<1x4x20xf32>,
    %78 = vector.extract_strided_slice %73 {offsets = [0, 20], sizes = [4, 20], strides = [1, 1]} : vector<4x40xf32> to vector<4x20xf32>
    %c6_45 = arith.constant 6 : index
    %c0_46 = arith.constant 0 : index
    %c0_47 = arith.constant 0 : index
    %79 = vector.load %arg11[%c6_45, %c0_46, %c0_47] : memref<8x4x20xf32, #tpu.memory_space<vmem>>, vector<1x4x20xf32>
    %80 = vector.shape_cast %79 : vector<1x4x20xf32> to vector<4x20xf32>
    %81 = vector.shape_cast %78 : vector<4x20xf32> to vector<1x4x20xf32>
    tpu.vector_store %arg11[%c6_45, %c0_46, %c0_47], %81 {strides = array<i32>} : memref<8x4x20xf32, #tpu.memory_space<vmem>>, vector<1x4x20xf32>,
    %cst_48 = arith.constant dense<0.000000e+00> : vector<4x160xf32>
    %82 = tpu.matmul %73, %17, %cst_48 {dimension_numbers = #tpu.dot_dimension_numbers<[1], [0], [0], [1], [0, 0, 1, 1], [], []>} : vector<4x40xf32>, vector<40x160xf32>, vector<4x160xf32> -> vector<4x160xf32>
    %c2 = arith.constant 2 : index
    %c0_49 = arith.constant 0 : index
    %c0_50 = arith.constant 0 : index
    %83 = vector.load %arg8[%c2, %c0_49, %c0_50] : memref<8x4x160xf32, #tpu.memory_space<vmem>>, vector<1x4x160xf32>
    %84 = vector.shape_cast %83 : vector<1x4x160xf32> to vector<4x160xf32>
    %85 = arith.addf %82, %84 : vector<4x160xf32>
    %c5 = arith.constant 5 : index
    %c0_51 = arith.constant 0 : index
    %c0_52 = arith.constant 0 : index
    %86 = vector.load %arg9[%c5, %c0_51, %c0_52] : memref<8x4x160xf32, #tpu.memory_space<vmem>>, vector<1x4x160xf32>
    %87 = vector.shape_cast %86 : vector<1x4x160xf32> to vector<4x160xf32>
    %88 = arith.addf %85, %87 : vector<4x160xf32>
    %89 = vector.extract_strided_slice %88 {offsets = [0, 0], sizes = [4, 120], strides = [1, 1]} : vector<4x160xf32> to vector<4x120xf32>
    %90 = arith.negf %89 : vector<4x120xf32>
    %91 = math.exp %90 : vector<4x120xf32>
    %cst_53 = arith.constant 1.000000e+00 : f32
    %92 = vector.broadcast %cst_53 : f32 to vector<4x120xf32>
    %93 = arith.addf %92, %91 : vector<4x120xf32>
    %94 = arith.divf %92, %93 : vector<4x120xf32>
    %95 = vector.extract_strided_slice %94 {offsets = [0, 0], sizes = [4, 40], strides = [1, 1]} : vector<4x120xf32> to vector<4x40xf32>
    %96 = vector.extract_strided_slice %94 {offsets = [0, 40], sizes = [4, 40], strides = [1, 1]} : vector<4x120xf32> to vector<4x40xf32>
    %97 = vector.extract_strided_slice %94 {offsets = [0, 80], sizes = [4, 40], strides = [1, 1]} : vector<4x120xf32> to vector<4x40xf32>
    %98 = vector.extract_strided_slice %88 {offsets = [0, 120], sizes = [4, 40], strides = [1, 1]} : vector<4x160xf32> to vector<4x40xf32>
    %99 = math.tanh %98 : vector<4x40xf32>
    %100 = arith.mulf %96, %71 : vector<4x40xf32>
    %101 = arith.mulf %95, %99 : vector<4x40xf32>
    %102 = arith.addf %100, %101 : vector<4x40xf32>
    %103 = math.tanh %102 : vector<4x40xf32>
    %104 = arith.mulf %97, %103 : vector<4x40xf32>
    %105 = vector.extract_strided_slice %104 {offsets = [0, 0], sizes = [4, 20], strides = [1, 1]} : vector<4x40xf32> to vector<4x20xf32>
    %c2_54 = arith.constant 2 : index
    %c0_55 = arith.constant 0 : index
    %c0_56 = arith.constant 0 : index
    %106 = vector.load %arg10[%c2_54, %c0_55, %c0_56] : memref<8x4x20xf32, #tpu.memory_space<vmem>>, vector<1x4x20xf32>
    %107 = vector.shape_cast %106 : vector<1x4x20xf32> to vector<4x20xf32>
    %108 = vector.shape_cast %105 : vector<4x20xf32> to vector<1x4x20xf32>
    tpu.vector_store %arg10[%c2_54, %c0_55, %c0_56], %108 {strides = array<i32>} : memref<8x4x20xf32, #tpu.memory_space<vmem>>, vector<1x4x20xf32>,
    %109 = vector.extract_strided_slice %104 {offsets = [0, 20], sizes = [4, 20], strides = [1, 1]} : vector<4x40xf32> to vector<4x20xf32>
    %c5_57 = arith.constant 5 : index
    %c0_58 = arith.constant 0 : index
    %c0_59 = arith.constant 0 : index
    %110 = vector.load %arg11[%c5_57, %c0_58, %c0_59] : memref<8x4x20xf32, #tpu.memory_space<vmem>>, vector<1x4x20xf32>
    %111 = vector.shape_cast %110 : vector<1x4x20xf32> to vector<4x20xf32>
    %112 = vector.shape_cast %109 : vector<4x20xf32> to vector<1x4x20xf32>
    tpu.vector_store %arg11[%c5_57, %c0_58, %c0_59], %112 {strides = array<i32>} : memref<8x4x20xf32, #tpu.memory_space<vmem>>, vector<1x4x20xf32>,
    %cst_60 = arith.constant dense<0.000000e+00> : vector<4x160xf32>
    %113 = tpu.matmul %104, %17, %cst_60 {dimension_numbers = #tpu.dot_dimension_numbers<[1], [0], [0], [1], [0, 0, 1, 1], [], []>} : vector<4x40xf32>, vector<40x160xf32>, vector<4x160xf32> -> vector<4x160xf32>
    %c3 = arith.constant 3 : index
    %c0_61 = arith.constant 0 : index
    %c0_62 = arith.constant 0 : index
    %114 = vector.load %arg8[%c3, %c0_61, %c0_62] : memref<8x4x160xf32, #tpu.memory_space<vmem>>, vector<1x4x160xf32>
    %115 = vector.shape_cast %114 : vector<1x4x160xf32> to vector<4x160xf32>
    %116 = arith.addf %113, %115 : vector<4x160xf32>
    %c4 = arith.constant 4 : index
    %c0_63 = arith.constant 0 : index
    %c0_64 = arith.constant 0 : index
    %117 = vector.load %arg9[%c4, %c0_63, %c0_64] : memref<8x4x160xf32, #tpu.memory_space<vmem>>, vector<1x4x160xf32>
    %118 = vector.shape_cast %117 : vector<1x4x160xf32> to vector<4x160xf32>
    %119 = arith.addf %116, %118 : vector<4x160xf32>
    %120 = vector.extract_strided_slice %119 {offsets = [0, 0], sizes = [4, 120], strides = [1, 1]} : vector<4x160xf32> to vector<4x120xf32>
    %121 = arith.negf %120 : vector<4x120xf32>
    %122 = math.exp %121 : vector<4x120xf32>
    %cst_65 = arith.constant 1.000000e+00 : f32
    %123 = vector.broadcast %cst_65 : f32 to vector<4x120xf32>
    %124 = arith.addf %123, %122 : vector<4x120xf32>
    %125 = arith.divf %123, %124 : vector<4x120xf32>
    %126 = vector.extract_strided_slice %125 {offsets = [0, 0], sizes = [4, 40], strides = [1, 1]} : vector<4x120xf32> to vector<4x40xf32>
    %127 = vector.extract_strided_slice %125 {offsets = [0, 40], sizes = [4, 40], strides = [1, 1]} : vector<4x120xf32> to vector<4x40xf32>
    %128 = vector.extract_strided_slice %125 {offsets = [0, 80], sizes = [4, 40], strides = [1, 1]} : vector<4x120xf32> to vector<4x40xf32>
    %129 = vector.extract_strided_slice %119 {offsets = [0, 120], sizes = [4, 40], strides = [1, 1]} : vector<4x160xf32> to vector<4x40xf32>
    %130 = math.tanh %129 : vector<4x40xf32>
    %131 = arith.mulf %127, %102 : vector<4x40xf32>
    %132 = arith.mulf %126, %130 : vector<4x40xf32>
    %133 = arith.addf %131, %132 : vector<4x40xf32>
    %134 = math.tanh %133 : vector<4x40xf32>
    %135 = arith.mulf %128, %134 : vector<4x40xf32>
    %136 = vector.extract_strided_slice %135 {offsets = [0, 0], sizes = [4, 20], strides = [1, 1]} : vector<4x40xf32> to vector<4x20xf32>
    %c3_66 = arith.constant 3 : index
    %c0_67 = arith.constant 0 : index
    %c0_68 = arith.constant 0 : index
    %137 = vector.load %arg10[%c3_66, %c0_67, %c0_68] : memref<8x4x20xf32, #tpu.memory_space<vmem>>, vector<1x4x20xf32>
    %138 = vector.shape_cast %137 : vector<1x4x20xf32> to vector<4x20xf32>
    %139 = vector.shape_cast %136 : vector<4x20xf32> to vector<1x4x20xf32>
    tpu.vector_store %arg10[%c3_66, %c0_67, %c0_68], %139 {strides = array<i32>} : memref<8x4x20xf32, #tpu.memory_space<vmem>>, vector<1x4x20xf32>,
    %140 = vector.extract_strided_slice %135 {offsets = [0, 20], sizes = [4, 20], strides = [1, 1]} : vector<4x40xf32> to vector<4x20xf32>
    %c4_69 = arith.constant 4 : index
    %c0_70 = arith.constant 0 : index
    %c0_71 = arith.constant 0 : index
    %141 = vector.load %arg11[%c4_69, %c0_70, %c0_71] : memref<8x4x20xf32, #tpu.memory_space<vmem>>, vector<1x4x20xf32>
    %142 = vector.shape_cast %141 : vector<1x4x20xf32> to vector<4x20xf32>
    %143 = vector.shape_cast %140 : vector<4x20xf32> to vector<1x4x20xf32>
    tpu.vector_store %arg11[%c4_69, %c0_70, %c0_71], %143 {strides = array<i32>} : memref<8x4x20xf32, #tpu.memory_space<vmem>>, vector<1x4x20xf32>,
    %cst_72 = arith.constant dense<0.000000e+00> : vector<4x160xf32>
    %144 = tpu.matmul %135, %17, %cst_72 {dimension_numbers = #tpu.dot_dimension_numbers<[1], [0], [0], [1], [0, 0, 1, 1], [], []>} : vector<4x40xf32>, vector<40x160xf32>, vector<4x160xf32> -> vector<4x160xf32>
    %c4_73 = arith.constant 4 : index
    %c0_74 = arith.constant 0 : index
    %c0_75 = arith.constant 0 : index
    %145 = vector.load %arg8[%c4_73, %c0_74, %c0_75] : memref<8x4x160xf32, #tpu.memory_space<vmem>>, vector<1x4x160xf32>
    %146 = vector.shape_cast %145 : vector<1x4x160xf32> to vector<4x160xf32>
    %147 = arith.addf %144, %146 : vector<4x160xf32>
    %c3_76 = arith.constant 3 : index
    %c0_77 = arith.constant 0 : index
    %c0_78 = arith.constant 0 : index
    %148 = vector.load %arg9[%c3_76, %c0_77, %c0_78] : memref<8x4x160xf32, #tpu.memory_space<vmem>>, vector<1x4x160xf32>
    %149 = vector.shape_cast %148 : vector<1x4x160xf32> to vector<4x160xf32>
    %150 = arith.addf %147, %149 : vector<4x160xf32>
    %151 = vector.extract_strided_slice %150 {offsets = [0, 0], sizes = [4, 120], strides = [1, 1]} : vector<4x160xf32> to vector<4x120xf32>
    %152 = arith.negf %151 : vector<4x120xf32>
    %153 = math.exp %152 : vector<4x120xf32>
    %cst_79 = arith.constant 1.000000e+00 : f32
    %154 = vector.broadcast %cst_79 : f32 to vector<4x120xf32>
    %155 = arith.addf %154, %153 : vector<4x120xf32>
    %156 = arith.divf %154, %155 : vector<4x120xf32>
    %157 = vector.extract_strided_slice %156 {offsets = [0, 0], sizes = [4, 40], strides = [1, 1]} : vector<4x120xf32> to vector<4x40xf32>
    %158 = vector.extract_strided_slice %156 {offsets = [0, 40], sizes = [4, 40], strides = [1, 1]} : vector<4x120xf32> to vector<4x40xf32>
    %159 = vector.extract_strided_slice %156 {offsets = [0, 80], sizes = [4, 40], strides = [1, 1]} : vector<4x120xf32> to vector<4x40xf32>
    %160 = vector.extract_strided_slice %150 {offsets = [0, 120], sizes = [4, 40], strides = [1, 1]} : vector<4x160xf32> to vector<4x40xf32>
    %161 = math.tanh %160 : vector<4x40xf32>
    %162 = arith.mulf %158, %133 : vector<4x40xf32>
    %163 = arith.mulf %157, %161 : vector<4x40xf32>
    %164 = arith.addf %162, %163 : vector<4x40xf32>
    %165 = math.tanh %164 : vector<4x40xf32>
    %166 = arith.mulf %159, %165 : vector<4x40xf32>
    %167 = vector.extract_strided_slice %166 {offsets = [0, 0], sizes = [4, 20], strides = [1, 1]} : vector<4x40xf32> to vector<4x20xf32>
    %c4_80 = arith.constant 4 : index
    %c0_81 = arith.constant 0 : index
    %c0_82 = arith.constant 0 : index
    %168 = vector.load %arg10[%c4_80, %c0_81, %c0_82] : memref<8x4x20xf32, #tpu.memory_space<vmem>>, vector<1x4x20xf32>
    %169 = vector.shape_cast %168 : vector<1x4x20xf32> to vector<4x20xf32>
    %170 = vector.shape_cast %167 : vector<4x20xf32> to vector<1x4x20xf32>
    tpu.vector_store %arg10[%c4_80, %c0_81, %c0_82], %170 {strides = array<i32>} : memref<8x4x20xf32, #tpu.memory_space<vmem>>, vector<1x4x20xf32>,
    %171 = vector.extract_strided_slice %166 {offsets = [0, 20], sizes = [4, 20], strides = [1, 1]} : vector<4x40xf32> to vector<4x20xf32>
    %c3_83 = arith.constant 3 : index
    %c0_84 = arith.constant 0 : index
    %c0_85 = arith.constant 0 : index
    %172 = vector.load %arg11[%c3_83, %c0_84, %c0_85] : memref<8x4x20xf32, #tpu.memory_space<vmem>>, vector<1x4x20xf32>
    %173 = vector.shape_cast %172 : vector<1x4x20xf32> to vector<4x20xf32>
    %174 = vector.shape_cast %171 : vector<4x20xf32> to vector<1x4x20xf32>
    tpu.vector_store %arg11[%c3_83, %c0_84, %c0_85], %174 {strides = array<i32>} : memref<8x4x20xf32, #tpu.memory_space<vmem>>, vector<1x4x20xf32>,
    %cst_86 = arith.constant dense<0.000000e+00> : vector<4x160xf32>
    %175 = tpu.matmul %166, %17, %cst_86 {dimension_numbers = #tpu.dot_dimension_numbers<[1], [0], [0], [1], [0, 0, 1, 1], [], []>} : vector<4x40xf32>, vector<40x160xf32>, vector<4x160xf32> -> vector<4x160xf32>
    %c5_87 = arith.constant 5 : index
    %c0_88 = arith.constant 0 : index
    %c0_89 = arith.constant 0 : index
    %176 = vector.load %arg8[%c5_87, %c0_88, %c0_89] : memref<8x4x160xf32, #tpu.memory_space<vmem>>, vector<1x4x160xf32>
    %177 = vector.shape_cast %176 : vector<1x4x160xf32> to vector<4x160xf32>
    %178 = arith.addf %175, %177 : vector<4x160xf32>
    %c2_90 = arith.constant 2 : index
    %c0_91 = arith.constant 0 : index
    %c0_92 = arith.constant 0 : index
    %179 = vector.load %arg9[%c2_90, %c0_91, %c0_92] : memref<8x4x160xf32, #tpu.memory_space<vmem>>, vector<1x4x160xf32>
    %180 = vector.shape_cast %179 : vector<1x4x160xf32> to vector<4x160xf32>
    %181 = arith.addf %178, %180 : vector<4x160xf32>
    %182 = vector.extract_strided_slice %181 {offsets = [0, 0], sizes = [4, 120], strides = [1, 1]} : vector<4x160xf32> to vector<4x120xf32>
    %183 = arith.negf %182 : vector<4x120xf32>
    %184 = math.exp %183 : vector<4x120xf32>
    %cst_93 = arith.constant 1.000000e+00 : f32
    %185 = vector.broadcast %cst_93 : f32 to vector<4x120xf32>
    %186 = arith.addf %185, %184 : vector<4x120xf32>
    %187 = arith.divf %185, %186 : vector<4x120xf32>
    %188 = vector.extract_strided_slice %187 {offsets = [0, 0], sizes = [4, 40], strides = [1, 1]} : vector<4x120xf32> to vector<4x40xf32>
    %189 = vector.extract_strided_slice %187 {offsets = [0, 40], sizes = [4, 40], strides = [1, 1]} : vector<4x120xf32> to vector<4x40xf32>
    %190 = vector.extract_strided_slice %187 {offsets = [0, 80], sizes = [4, 40], strides = [1, 1]} : vector<4x120xf32> to vector<4x40xf32>
    %191 = vector.extract_strided_slice %181 {offsets = [0, 120], sizes = [4, 40], strides = [1, 1]} : vector<4x160xf32> to vector<4x40xf32>
    %192 = math.tanh %191 : vector<4x40xf32>
    %193 = arith.mulf %189, %164 : vector<4x40xf32>
    %194 = arith.mulf %188, %192 : vector<4x40xf32>
    %195 = arith.addf %193, %194 : vector<4x40xf32>
    %196 = math.tanh %195 : vector<4x40xf32>
    %197 = arith.mulf %190, %196 : vector<4x40xf32>
    %198 = vector.extract_strided_slice %197 {offsets = [0, 0], sizes = [4, 20], strides = [1, 1]} : vector<4x40xf32> to vector<4x20xf32>
    %c5_94 = arith.constant 5 : index
    %c0_95 = arith.constant 0 : index
    %c0_96 = arith.constant 0 : index
    %199 = vector.load %arg10[%c5_94, %c0_95, %c0_96] : memref<8x4x20xf32, #tpu.memory_space<vmem>>, vector<1x4x20xf32>
    %200 = vector.shape_cast %199 : vector<1x4x20xf32> to vector<4x20xf32>
    %201 = vector.shape_cast %198 : vector<4x20xf32> to vector<1x4x20xf32>
    tpu.vector_store %arg10[%c5_94, %c0_95, %c0_96], %201 {strides = array<i32>} : memref<8x4x20xf32, #tpu.memory_space<vmem>>, vector<1x4x20xf32>,
    %202 = vector.extract_strided_slice %197 {offsets = [0, 20], sizes = [4, 20], strides = [1, 1]} : vector<4x40xf32> to vector<4x20xf32>
    %c2_97 = arith.constant 2 : index
    %c0_98 = arith.constant 0 : index
    %c0_99 = arith.constant 0 : index
    %203 = vector.load %arg11[%c2_97, %c0_98, %c0_99] : memref<8x4x20xf32, #tpu.memory_space<vmem>>, vector<1x4x20xf32>
    %204 = vector.shape_cast %203 : vector<1x4x20xf32> to vector<4x20xf32>
    %205 = vector.shape_cast %202 : vector<4x20xf32> to vector<1x4x20xf32>
    tpu.vector_store %arg11[%c2_97, %c0_98, %c0_99], %205 {strides = array<i32>} : memref<8x4x20xf32, #tpu.memory_space<vmem>>, vector<1x4x20xf32>,
    %cst_100 = arith.constant dense<0.000000e+00> : vector<4x160xf32>
    %206 = tpu.matmul %197, %17, %cst_100 {dimension_numbers = #tpu.dot_dimension_numbers<[1], [0], [0], [1], [0, 0, 1, 1], [], []>} : vector<4x40xf32>, vector<40x160xf32>, vector<4x160xf32> -> vector<4x160xf32>
    %c6_101 = arith.constant 6 : index
    %c0_102 = arith.constant 0 : index
    %c0_103 = arith.constant 0 : index
    %207 = vector.load %arg8[%c6_101, %c0_102, %c0_103] : memref<8x4x160xf32, #tpu.memory_space<vmem>>, vector<1x4x160xf32>
    %208 = vector.shape_cast %207 : vector<1x4x160xf32> to vector<4x160xf32>
    %209 = arith.addf %206, %208 : vector<4x160xf32>
    %c1_104 = arith.constant 1 : index
    %c0_105 = arith.constant 0 : index
    %c0_106 = arith.constant 0 : index
    %210 = vector.load %arg9[%c1_104, %c0_105, %c0_106] : memref<8x4x160xf32, #tpu.memory_space<vmem>>, vector<1x4x160xf32>
    %211 = vector.shape_cast %210 : vector<1x4x160xf32> to vector<4x160xf32>
    %212 = arith.addf %209, %211 : vector<4x160xf32>
    %213 = vector.extract_strided_slice %212 {offsets = [0, 0], sizes = [4, 120], strides = [1, 1]} : vector<4x160xf32> to vector<4x120xf32>
    %214 = arith.negf %213 : vector<4x120xf32>
    %215 = math.exp %214 : vector<4x120xf32>
    %cst_107 = arith.constant 1.000000e+00 : f32
    %216 = vector.broadcast %cst_107 : f32 to vector<4x120xf32>
    %217 = arith.addf %216, %215 : vector<4x120xf32>
    %218 = arith.divf %216, %217 : vector<4x120xf32>
    %219 = vector.extract_strided_slice %218 {offsets = [0, 0], sizes = [4, 40], strides = [1, 1]} : vector<4x120xf32> to vector<4x40xf32>
    %220 = vector.extract_strided_slice %218 {offsets = [0, 40], sizes = [4, 40], strides = [1, 1]} : vector<4x120xf32> to vector<4x40xf32>
    %221 = vector.extract_strided_slice %218 {offsets = [0, 80], sizes = [4, 40], strides = [1, 1]} : vector<4x120xf32> to vector<4x40xf32>
    %222 = vector.extract_strided_slice %212 {offsets = [0, 120], sizes = [4, 40], strides = [1, 1]} : vector<4x160xf32> to vector<4x40xf32>
    %223 = math.tanh %222 : vector<4x40xf32>
    %224 = arith.mulf %220, %195 : vector<4x40xf32>
    %225 = arith.mulf %219, %223 : vector<4x40xf32>
    %226 = arith.addf %224, %225 : vector<4x40xf32>
    %227 = math.tanh %226 : vector<4x40xf32>
    %228 = arith.mulf %221, %227 : vector<4x40xf32>
    %229 = vector.extract_strided_slice %228 {offsets = [0, 0], sizes = [4, 20], strides = [1, 1]} : vector<4x40xf32> to vector<4x20xf32>
    %c6_108 = arith.constant 6 : index
    %c0_109 = arith.constant 0 : index
    %c0_110 = arith.constant 0 : index
    %230 = vector.load %arg10[%c6_108, %c0_109, %c0_110] : memref<8x4x20xf32, #tpu.memory_space<vmem>>, vector<1x4x20xf32>
    %231 = vector.shape_cast %230 : vector<1x4x20xf32> to vector<4x20xf32>
    %232 = vector.shape_cast %229 : vector<4x20xf32> to vector<1x4x20xf32>
    tpu.vector_store %arg10[%c6_108, %c0_109, %c0_110], %232 {strides = array<i32>} : memref<8x4x20xf32, #tpu.memory_space<vmem>>, vector<1x4x20xf32>,
    %233 = vector.extract_strided_slice %228 {offsets = [0, 20], sizes = [4, 20], strides = [1, 1]} : vector<4x40xf32> to vector<4x20xf32>
    %c1_111 = arith.constant 1 : index
    %c0_112 = arith.constant 0 : index
    %c0_113 = arith.constant 0 : index
    %234 = vector.load %arg11[%c1_111, %c0_112, %c0_113] : memref<8x4x20xf32, #tpu.memory_space<vmem>>, vector<1x4x20xf32>
    %235 = vector.shape_cast %234 : vector<1x4x20xf32> to vector<4x20xf32>
    %236 = vector.shape_cast %233 : vector<4x20xf32> to vector<1x4x20xf32>
    tpu.vector_store %arg11[%c1_111, %c0_112, %c0_113], %236 {strides = array<i32>} : memref<8x4x20xf32, #tpu.memory_space<vmem>>, vector<1x4x20xf32>,
    %cst_114 = arith.constant dense<0.000000e+00> : vector<4x160xf32>
    %237 = tpu.matmul %228, %17, %cst_114 {dimension_numbers = #tpu.dot_dimension_numbers<[1], [0], [0], [1], [0, 0, 1, 1], [], []>} : vector<4x40xf32>, vector<40x160xf32>, vector<4x160xf32> -> vector<4x160xf32>
    %c7_115 = arith.constant 7 : index
    %c0_116 = arith.constant 0 : index
    %c0_117 = arith.constant 0 : index
    %238 = vector.load %arg8[%c7_115, %c0_116, %c0_117] : memref<8x4x160xf32, #tpu.memory_space<vmem>>, vector<1x4x160xf32>
    %239 = vector.shape_cast %238 : vector<1x4x160xf32> to vector<4x160xf32>
    %240 = arith.addf %237, %239 : vector<4x160xf32>
    %c0_118 = arith.constant 0 : index
    %c0_119 = arith.constant 0 : index
    %c0_120 = arith.constant 0 : index
    %241 = vector.load %arg9[%c0_118, %c0_119, %c0_120] : memref<8x4x160xf32, #tpu.memory_space<vmem>>, vector<1x4x160xf32>
    %242 = vector.shape_cast %241 : vector<1x4x160xf32> to vector<4x160xf32>
    %243 = arith.addf %240, %242 : vector<4x160xf32>
    %244 = vector.extract_strided_slice %243 {offsets = [0, 0], sizes = [4, 120], strides = [1, 1]} : vector<4x160xf32> to vector<4x120xf32>
    %245 = arith.negf %244 : vector<4x120xf32>
    %246 = math.exp %245 : vector<4x120xf32>
    %cst_121 = arith.constant 1.000000e+00 : f32
    %247 = vector.broadcast %cst_121 : f32 to vector<4x120xf32>
    %248 = arith.addf %247, %246 : vector<4x120xf32>
    %249 = arith.divf %247, %248 : vector<4x120xf32>
    %250 = vector.extract_strided_slice %249 {offsets = [0, 0], sizes = [4, 40], strides = [1, 1]} : vector<4x120xf32> to vector<4x40xf32>
    %251 = vector.extract_strided_slice %249 {offsets = [0, 40], sizes = [4, 40], strides = [1, 1]} : vector<4x120xf32> to vector<4x40xf32>
    %252 = vector.extract_strided_slice %249 {offsets = [0, 80], sizes = [4, 40], strides = [1, 1]} : vector<4x120xf32> to vector<4x40xf32>
    %253 = vector.extract_strided_slice %243 {offsets = [0, 120], sizes = [4, 40], strides = [1, 1]} : vector<4x160xf32> to vector<4x40xf32>
    %254 = math.tanh %253 : vector<4x40xf32>
    %255 = arith.mulf %251, %226 : vector<4x40xf32>
    %256 = arith.mulf %250, %254 : vector<4x40xf32>
    %257 = arith.addf %255, %256 : vector<4x40xf32>
    %258 = math.tanh %257 : vector<4x40xf32>
    %259 = arith.mulf %252, %258 : vector<4x40xf32>
    %260 = vector.extract_strided_slice %259 {offsets = [0, 0], sizes = [4, 20], strides = [1, 1]} : vector<4x40xf32> to vector<4x20xf32>
    %c7_122 = arith.constant 7 : index
    %c0_123 = arith.constant 0 : index
    %c0_124 = arith.constant 0 : index
    %261 = vector.load %arg10[%c7_122, %c0_123, %c0_124] : memref<8x4x20xf32, #tpu.memory_space<vmem>>, vector<1x4x20xf32>
    %262 = vector.shape_cast %261 : vector<1x4x20xf32> to vector<4x20xf32>
    %263 = vector.shape_cast %260 : vector<4x20xf32> to vector<1x4x20xf32>
    tpu.vector_store %arg10[%c7_122, %c0_123, %c0_124], %263 {strides = array<i32>} : memref<8x4x20xf32, #tpu.memory_space<vmem>>, vector<1x4x20xf32>,
    %264 = vector.extract_strided_slice %259 {offsets = [0, 20], sizes = [4, 20], strides = [1, 1]} : vector<4x40xf32> to vector<4x20xf32>
    %c0_125 = arith.constant 0 : index
    %c0_126 = arith.constant 0 : index
    %c0_127 = arith.constant 0 : index
    %265 = vector.load %arg11[%c0_125, %c0_126, %c0_127] : memref<8x4x20xf32, #tpu.memory_space<vmem>>, vector<1x4x20xf32>
    %266 = vector.shape_cast %265 : vector<1x4x20xf32> to vector<4x20xf32>
    %267 = vector.shape_cast %264 : vector<4x20xf32> to vector<1x4x20xf32>
    tpu.vector_store %arg11[%c0_125, %c0_126, %c0_127], %267 {strides = array<i32>} : memref<8x4x20xf32, #tpu.memory_space<vmem>>, vector<1x4x20xf32>,
    %c0_128 = arith.constant 0 : index
    %c0_129 = arith.constant 0 : index
    %c0_130 = arith.constant 0 : index
    %268 = vector.load %arg10[%c0_128, %c0_129, %c0_130] : memref<8x4x20xf32, #tpu.memory_space<vmem>>, vector<8x4x20xf32>
    %c0_131 = arith.constant 0 : index
    %c0_132 = arith.constant 0 : index
    %c0_133 = arith.constant 0 : index
    %269 = vector.load %arg11[%c0_131, %c0_132, %c0_133] : memref<8x4x20xf32, #tpu.memory_space<vmem>>, vector<8x4x20xf32>
    %270 = tpu.concatenate %268, %269 in 2 : vector<8x4x20xf32>, vector<8x4x20xf32> -> vector<8x4x40xf32>
    %271 = vector.shape_cast %270 : vector<8x4x40xf32> to vector<32x40xf32>
    %c1_134 = arith.constant 1 : index
    %c0_135 = arith.constant 0 : index
    %c0_136 = arith.constant 0 : index
    %272 = vector.load %arg1[%c1_134, %c0_135, %c0_136] : memref<3x40x160xf32, #tpu.memory_space<vmem>>, vector<1x40x160xf32>
    %273 = vector.shape_cast %272 : vector<1x40x160xf32> to vector<40x160xf32>
    %cst_137 = arith.constant dense<0.000000e+00> : vector<32x160xf32>
    %274 = tpu.matmul %271, %273, %cst_137 {dimension_numbers = #tpu.dot_dimension_numbers<[1], [0], [0], [1], [0, 0, 1, 1], [], []>, precision = #tpu.contract_precision<fp32>} : vector<32x40xf32>, vector<40x160xf32>, vector<32x160xf32> -> vector<32x160xf32>
    %c1_138 = arith.constant 1 : index
    %c0_139 = arith.constant 0 : index
    %c0_140 = arith.constant 0 : index
    %275 = vector.load %arg4[%c1_138, %c0_139, %c0_140] : memref<3x1x160xf32, #tpu.memory_space<vmem>>, vector<1x1x160xf32>
    %276 = vector.shape_cast %275 : vector<1x1x160xf32> to vector<1x160xf32>
    %277 = vector.broadcast %276 : vector<1x160xf32> to vector<32x160xf32>
    %278 = arith.addf %274, %277 : vector<32x160xf32>
    %c1_141 = arith.constant 1 : index
    %c0_142 = arith.constant 0 : index
    %c0_143 = arith.constant 0 : index
    %279 = vector.load %arg2[%c1_141, %c0_142, %c0_143] : memref<3x40x160xf32, #tpu.memory_space<vmem>>, vector<1x40x160xf32>
    %280 = vector.shape_cast %279 : vector<1x40x160xf32> to vector<40x160xf32>
    %cst_144 = arith.constant dense<0.000000e+00> : vector<32x160xf32>
    %281 = tpu.matmul %271, %280, %cst_144 {dimension_numbers = #tpu.dot_dimension_numbers<[1], [0], [0], [1], [0, 0, 1, 1], [], []>, precision = #tpu.contract_precision<fp32>} : vector<32x40xf32>, vector<40x160xf32>, vector<32x160xf32> -> vector<32x160xf32>
    %282 = vector.shape_cast %278 : vector<32x160xf32> to vector<8x4x160xf32>
    %c0_145 = arith.constant 0 : index
    %c0_146 = arith.constant 0 : index
    %c0_147 = arith.constant 0 : index
    %283 = vector.load %arg8[%c0_145, %c0_146, %c0_147] : memref<8x4x160xf32, #tpu.memory_space<vmem>>, vector<8x4x160xf32>
    tpu.vector_store %arg8[%c0_145, %c0_146, %c0_147], %282 {strides = array<i32>} : memref<8x4x160xf32, #tpu.memory_space<vmem>>, vector<8x4x160xf32>,
    %284 = vector.shape_cast %281 : vector<32x160xf32> to vector<8x4x160xf32>
    %c0_148 = arith.constant 0 : index
    %c0_149 = arith.constant 0 : index
    %c0_150 = arith.constant 0 : index
    %285 = vector.load %arg9[%c0_148, %c0_149, %c0_150] : memref<8x4x160xf32, #tpu.memory_space<vmem>>, vector<8x4x160xf32>
    tpu.vector_store %arg9[%c0_148, %c0_149, %c0_150], %284 {strides = array<i32>} : memref<8x4x160xf32, #tpu.memory_space<vmem>>, vector<8x4x160xf32>,
    %c1_151 = arith.constant 1 : index
    %c0_152 = arith.constant 0 : index
    %c0_153 = arith.constant 0 : index
    %286 = vector.load %arg3[%c1_151, %c0_152, %c0_153] : memref<3x40x160xf32, #tpu.memory_space<vmem>>, vector<1x40x160xf32>
    %287 = vector.shape_cast %286 : vector<1x40x160xf32> to vector<40x160xf32>
    %cst_154 = arith.constant 0.000000e+00 : f32
    %288 = vector.broadcast %cst_154 : f32 to vector<4x40xf32>
    %cst_155 = arith.constant 0.000000e+00 : f32
    %289 = vector.broadcast %cst_155 : f32 to vector<4x40xf32>
    %cst_156 = arith.constant dense<0.000000e+00> : vector<4x160xf32>
    %290 = tpu.matmul %288, %287, %cst_156 {dimension_numbers = #tpu.dot_dimension_numbers<[1], [0], [0], [1], [0, 0, 1, 1], [], []>} : vector<4x40xf32>, vector<40x160xf32>, vector<4x160xf32> -> vector<4x160xf32>
    %c0_157 = arith.constant 0 : index
    %c0_158 = arith.constant 0 : index
    %c0_159 = arith.constant 0 : index
    %291 = vector.load %arg8[%c0_157, %c0_158, %c0_159] : memref<8x4x160xf32, #tpu.memory_space<vmem>>, vector<1x4x160xf32>
    %292 = vector.shape_cast %291 : vector<1x4x160xf32> to vector<4x160xf32>
    %293 = arith.addf %290, %292 : vector<4x160xf32>
    %c7_160 = arith.constant 7 : index
    %c0_161 = arith.constant 0 : index
    %c0_162 = arith.constant 0 : index
    %294 = vector.load %arg9[%c7_160, %c0_161, %c0_162] : memref<8x4x160xf32, #tpu.memory_space<vmem>>, vector<1x4x160xf32>
    %295 = vector.shape_cast %294 : vector<1x4x160xf32> to vector<4x160xf32>
    %296 = arith.addf %293, %295 : vector<4x160xf32>
    %297 = vector.extract_strided_slice %296 {offsets = [0, 0], sizes = [4, 120], strides = [1, 1]} : vector<4x160xf32> to vector<4x120xf32>
    %298 = arith.negf %297 : vector<4x120xf32>
    %299 = math.exp %298 : vector<4x120xf32>
    %cst_163 = arith.constant 1.000000e+00 : f32
    %300 = vector.broadcast %cst_163 : f32 to vector<4x120xf32>
    %301 = arith.addf %300, %299 : vector<4x120xf32>
    %302 = arith.divf %300, %301 : vector<4x120xf32>
    %303 = vector.extract_strided_slice %302 {offsets = [0, 0], sizes = [4, 40], strides = [1, 1]} : vector<4x120xf32> to vector<4x40xf32>
    %304 = vector.extract_strided_slice %302 {offsets = [0, 40], sizes = [4, 40], strides = [1, 1]} : vector<4x120xf32> to vector<4x40xf32>
    %305 = vector.extract_strided_slice %302 {offsets = [0, 80], sizes = [4, 40], strides = [1, 1]} : vector<4x120xf32> to vector<4x40xf32>
    %306 = vector.extract_strided_slice %296 {offsets = [0, 120], sizes = [4, 40], strides = [1, 1]} : vector<4x160xf32> to vector<4x40xf32>
    %307 = math.tanh %306 : vector<4x40xf32>
    %308 = arith.mulf %304, %289 : vector<4x40xf32>
    %309 = arith.mulf %303, %307 : vector<4x40xf32>
    %310 = arith.addf %308, %309 : vector<4x40xf32>
    %311 = math.tanh %310 : vector<4x40xf32>
    %312 = arith.mulf %305, %311 : vector<4x40xf32>
    %313 = vector.extract_strided_slice %312 {offsets = [0, 0], sizes = [4, 20], strides = [1, 1]} : vector<4x40xf32> to vector<4x20xf32>
    %c0_164 = arith.constant 0 : index
    %c0_165 = arith.constant 0 : index
    %c0_166 = arith.constant 0 : index
    %314 = vector.load %arg10[%c0_164, %c0_165, %c0_166] : memref<8x4x20xf32, #tpu.memory_space<vmem>>, vector<1x4x20xf32>
    %315 = vector.shape_cast %314 : vector<1x4x20xf32> to vector<4x20xf32>
    %316 = vector.shape_cast %313 : vector<4x20xf32> to vector<1x4x20xf32>
    tpu.vector_store %arg10[%c0_164, %c0_165, %c0_166], %316 {strides = array<i32>} : memref<8x4x20xf32, #tpu.memory_space<vmem>>, vector<1x4x20xf32>,
    %317 = vector.extract_strided_slice %312 {offsets = [0, 20], sizes = [4, 20], strides = [1, 1]} : vector<4x40xf32> to vector<4x20xf32>
    %c7_167 = arith.constant 7 : index
    %c0_168 = arith.constant 0 : index
    %c0_169 = arith.constant 0 : index
    %318 = vector.load %arg11[%c7_167, %c0_168, %c0_169] : memref<8x4x20xf32, #tpu.memory_space<vmem>>, vector<1x4x20xf32>
    %319 = vector.shape_cast %318 : vector<1x4x20xf32> to vector<4x20xf32>
    %320 = vector.shape_cast %317 : vector<4x20xf32> to vector<1x4x20xf32>
    tpu.vector_store %arg11[%c7_167, %c0_168, %c0_169], %320 {strides = array<i32>} : memref<8x4x20xf32, #tpu.memory_space<vmem>>, vector<1x4x20xf32>,
    %cst_170 = arith.constant dense<0.000000e+00> : vector<4x160xf32>
    %321 = tpu.matmul %312, %287, %cst_170 {dimension_numbers = #tpu.dot_dimension_numbers<[1], [0], [0], [1], [0, 0, 1, 1], [], []>} : vector<4x40xf32>, vector<40x160xf32>, vector<4x160xf32> -> vector<4x160xf32>
    %c1_171 = arith.constant 1 : index
    %c0_172 = arith.constant 0 : index
    %c0_173 = arith.constant 0 : index
    %322 = vector.load %arg8[%c1_171, %c0_172, %c0_173] : memref<8x4x160xf32, #tpu.memory_space<vmem>>, vector<1x4x160xf32>
    %323 = vector.shape_cast %322 : vector<1x4x160xf32> to vector<4x160xf32>
    %324 = arith.addf %321, %323 : vector<4x160xf32>
    %c6_174 = arith.constant 6 : index
    %c0_175 = arith.constant 0 : index
    %c0_176 = arith.constant 0 : index
    %325 = vector.load %arg9[%c6_174, %c0_175, %c0_176] : memref<8x4x160xf32, #tpu.memory_space<vmem>>, vector<1x4x160xf32>
    %326 = vector.shape_cast %325 : vector<1x4x160xf32> to vector<4x160xf32>
    %327 = arith.addf %324, %326 : vector<4x160xf32>
    %328 = vector.extract_strided_slice %327 {offsets = [0, 0], sizes = [4, 120], strides = [1, 1]} : vector<4x160xf32> to vector<4x120xf32>
    %329 = arith.negf %328 : vector<4x120xf32>
    %330 = math.exp %329 : vector<4x120xf32>
    %cst_177 = arith.constant 1.000000e+00 : f32
    %331 = vector.broadcast %cst_177 : f32 to vector<4x120xf32>
    %332 = arith.addf %331, %330 : vector<4x120xf32>
    %333 = arith.divf %331, %332 : vector<4x120xf32>
    %334 = vector.extract_strided_slice %333 {offsets = [0, 0], sizes = [4, 40], strides = [1, 1]} : vector<4x120xf32> to vector<4x40xf32>
    %335 = vector.extract_strided_slice %333 {offsets = [0, 40], sizes = [4, 40], strides = [1, 1]} : vector<4x120xf32> to vector<4x40xf32>
    %336 = vector.extract_strided_slice %333 {offsets = [0, 80], sizes = [4, 40], strides = [1, 1]} : vector<4x120xf32> to vector<4x40xf32>
    %337 = vector.extract_strided_slice %327 {offsets = [0, 120], sizes = [4, 40], strides = [1, 1]} : vector<4x160xf32> to vector<4x40xf32>
    %338 = math.tanh %337 : vector<4x40xf32>
    %339 = arith.mulf %335, %310 : vector<4x40xf32>
    %340 = arith.mulf %334, %338 : vector<4x40xf32>
    %341 = arith.addf %339, %340 : vector<4x40xf32>
    %342 = math.tanh %341 : vector<4x40xf32>
    %343 = arith.mulf %336, %342 : vector<4x40xf32>
    %344 = vector.extract_strided_slice %343 {offsets = [0, 0], sizes = [4, 20], strides = [1, 1]} : vector<4x40xf32> to vector<4x20xf32>
    %c1_178 = arith.constant 1 : index
    %c0_179 = arith.constant 0 : index
    %c0_180 = arith.constant 0 : index
    %345 = vector.load %arg10[%c1_178, %c0_179, %c0_180] : memref<8x4x20xf32, #tpu.memory_space<vmem>>, vector<1x4x20xf32>
    %346 = vector.shape_cast %345 : vector<1x4x20xf32> to vector<4x20xf32>
    %347 = vector.shape_cast %344 : vector<4x20xf32> to vector<1x4x20xf32>
    tpu.vector_store %arg10[%c1_178, %c0_179, %c0_180], %347 {strides = array<i32>} : memref<8x4x20xf32, #tpu.memory_space<vmem>>, vector<1x4x20xf32>,
    %348 = vector.extract_strided_slice %343 {offsets = [0, 20], sizes = [4, 20], strides = [1, 1]} : vector<4x40xf32> to vector<4x20xf32>
    %c6_181 = arith.constant 6 : index
    %c0_182 = arith.constant 0 : index
    %c0_183 = arith.constant 0 : index
    %349 = vector.load %arg11[%c6_181, %c0_182, %c0_183] : memref<8x4x20xf32, #tpu.memory_space<vmem>>, vector<1x4x20xf32>
    %350 = vector.shape_cast %349 : vector<1x4x20xf32> to vector<4x20xf32>
    %351 = vector.shape_cast %348 : vector<4x20xf32> to vector<1x4x20xf32>
    tpu.vector_store %arg11[%c6_181, %c0_182, %c0_183], %351 {strides = array<i32>} : memref<8x4x20xf32, #tpu.memory_space<vmem>>, vector<1x4x20xf32>,
    %cst_184 = arith.constant dense<0.000000e+00> : vector<4x160xf32>
    %352 = tpu.matmul %343, %287, %cst_184 {dimension_numbers = #tpu.dot_dimension_numbers<[1], [0], [0], [1], [0, 0, 1, 1], [], []>} : vector<4x40xf32>, vector<40x160xf32>, vector<4x160xf32> -> vector<4x160xf32>
    %c2_185 = arith.constant 2 : index
    %c0_186 = arith.constant 0 : index
    %c0_187 = arith.constant 0 : index
    %353 = vector.load %arg8[%c2_185, %c0_186, %c0_187] : memref<8x4x160xf32, #tpu.memory_space<vmem>>, vector<1x4x160xf32>
    %354 = vector.shape_cast %353 : vector<1x4x160xf32> to vector<4x160xf32>
    %355 = arith.addf %352, %354 : vector<4x160xf32>
    %c5_188 = arith.constant 5 : index
    %c0_189 = arith.constant 0 : index
    %c0_190 = arith.constant 0 : index
    %356 = vector.load %arg9[%c5_188, %c0_189, %c0_190] : memref<8x4x160xf32, #tpu.memory_space<vmem>>, vector<1x4x160xf32>
    %357 = vector.shape_cast %356 : vector<1x4x160xf32> to vector<4x160xf32>
    %358 = arith.addf %355, %357 : vector<4x160xf32>
    %359 = vector.extract_strided_slice %358 {offsets = [0, 0], sizes = [4, 120], strides = [1, 1]} : vector<4x160xf32> to vector<4x120xf32>
    %360 = arith.negf %359 : vector<4x120xf32>
    %361 = math.exp %360 : vector<4x120xf32>
    %cst_191 = arith.constant 1.000000e+00 : f32
    %362 = vector.broadcast %cst_191 : f32 to vector<4x120xf32>
    %363 = arith.addf %362, %361 : vector<4x120xf32>
    %364 = arith.divf %362, %363 : vector<4x120xf32>
    %365 = vector.extract_strided_slice %364 {offsets = [0, 0], sizes = [4, 40], strides = [1, 1]} : vector<4x120xf32> to vector<4x40xf32>
    %366 = vector.extract_strided_slice %364 {offsets = [0, 40], sizes = [4, 40], strides = [1, 1]} : vector<4x120xf32> to vector<4x40xf32>
    %367 = vector.extract_strided_slice %364 {offsets = [0, 80], sizes = [4, 40], strides = [1, 1]} : vector<4x120xf32> to vector<4x40xf32>
    %368 = vector.extract_strided_slice %358 {offsets = [0, 120], sizes = [4, 40], strides = [1, 1]} : vector<4x160xf32> to vector<4x40xf32>
    %369 = math.tanh %368 : vector<4x40xf32>
    %370 = arith.mulf %366, %341 : vector<4x40xf32>
    %371 = arith.mulf %365, %369 : vector<4x40xf32>
    %372 = arith.addf %370, %371 : vector<4x40xf32>
    %373 = math.tanh %372 : vector<4x40xf32>
    %374 = arith.mulf %367, %373 : vector<4x40xf32>
    %375 = vector.extract_strided_slice %374 {offsets = [0, 0], sizes = [4, 20], strides = [1, 1]} : vector<4x40xf32> to vector<4x20xf32>
    %c2_192 = arith.constant 2 : index
    %c0_193 = arith.constant 0 : index
    %c0_194 = arith.constant 0 : index
    %376 = vector.load %arg10[%c2_192, %c0_193, %c0_194] : memref<8x4x20xf32, #tpu.memory_space<vmem>>, vector<1x4x20xf32>
    %377 = vector.shape_cast %376 : vector<1x4x20xf32> to vector<4x20xf32>
    %378 = vector.shape_cast %375 : vector<4x20xf32> to vector<1x4x20xf32>
    tpu.vector_store %arg10[%c2_192, %c0_193, %c0_194], %378 {strides = array<i32>} : memref<8x4x20xf32, #tpu.memory_space<vmem>>, vector<1x4x20xf32>,
    %379 = vector.extract_strided_slice %374 {offsets = [0, 20], sizes = [4, 20], strides = [1, 1]} : vector<4x40xf32> to vector<4x20xf32>
    %c5_195 = arith.constant 5 : index
    %c0_196 = arith.constant 0 : index
    %c0_197 = arith.constant 0 : index
    %380 = vector.load %arg11[%c5_195, %c0_196, %c0_197] : memref<8x4x20xf32, #tpu.memory_space<vmem>>, vector<1x4x20xf32>
    %381 = vector.shape_cast %380 : vector<1x4x20xf32> to vector<4x20xf32>
    %382 = vector.shape_cast %379 : vector<4x20xf32> to vector<1x4x20xf32>
    tpu.vector_store %arg11[%c5_195, %c0_196, %c0_197], %382 {strides = array<i32>} : memref<8x4x20xf32, #tpu.memory_space<vmem>>, vector<1x4x20xf32>,
    %cst_198 = arith.constant dense<0.000000e+00> : vector<4x160xf32>
    %383 = tpu.matmul %374, %287, %cst_198 {dimension_numbers = #tpu.dot_dimension_numbers<[1], [0], [0], [1], [0, 0, 1, 1], [], []>} : vector<4x40xf32>, vector<40x160xf32>, vector<4x160xf32> -> vector<4x160xf32>
    %c3_199 = arith.constant 3 : index
    %c0_200 = arith.constant 0 : index
    %c0_201 = arith.constant 0 : index
    %384 = vector.load %arg8[%c3_199, %c0_200, %c0_201] : memref<8x4x160xf32, #tpu.memory_space<vmem>>, vector<1x4x160xf32>
    %385 = vector.shape_cast %384 : vector<1x4x160xf32> to vector<4x160xf32>
    %386 = arith.addf %383, %385 : vector<4x160xf32>
    %c4_202 = arith.constant 4 : index
    %c0_203 = arith.constant 0 : index
    %c0_204 = arith.constant 0 : index
    %387 = vector.load %arg9[%c4_202, %c0_203, %c0_204] : memref<8x4x160xf32, #tpu.memory_space<vmem>>, vector<1x4x160xf32>
    %388 = vector.shape_cast %387 : vector<1x4x160xf32> to vector<4x160xf32>
    %389 = arith.addf %386, %388 : vector<4x160xf32>
    %390 = vector.extract_strided_slice %389 {offsets = [0, 0], sizes = [4, 120], strides = [1, 1]} : vector<4x160xf32> to vector<4x120xf32>
    %391 = arith.negf %390 : vector<4x120xf32>
    %392 = math.exp %391 : vector<4x120xf32>
    %cst_205 = arith.constant 1.000000e+00 : f32
    %393 = vector.broadcast %cst_205 : f32 to vector<4x120xf32>
    %394 = arith.addf %393, %392 : vector<4x120xf32>
    %395 = arith.divf %393, %394 : vector<4x120xf32>
    %396 = vector.extract_strided_slice %395 {offsets = [0, 0], sizes = [4, 40], strides = [1, 1]} : vector<4x120xf32> to vector<4x40xf32>
    %397 = vector.extract_strided_slice %395 {offsets = [0, 40], sizes = [4, 40], strides = [1, 1]} : vector<4x120xf32> to vector<4x40xf32>
    %398 = vector.extract_strided_slice %395 {offsets = [0, 80], sizes = [4, 40], strides = [1, 1]} : vector<4x120xf32> to vector<4x40xf32>
    %399 = vector.extract_strided_slice %389 {offsets = [0, 120], sizes = [4, 40], strides = [1, 1]} : vector<4x160xf32> to vector<4x40xf32>
    %400 = math.tanh %399 : vector<4x40xf32>
    %401 = arith.mulf %397, %372 : vector<4x40xf32>
    %402 = arith.mulf %396, %400 : vector<4x40xf32>
    %403 = arith.addf %401, %402 : vector<4x40xf32>
    %404 = math.tanh %403 : vector<4x40xf32>
    %405 = arith.mulf %398, %404 : vector<4x40xf32>
    %406 = vector.extract_strided_slice %405 {offsets = [0, 0], sizes = [4, 20], strides = [1, 1]} : vector<4x40xf32> to vector<4x20xf32>
    %c3_206 = arith.constant 3 : index
    %c0_207 = arith.constant 0 : index
    %c0_208 = arith.constant 0 : index
    %407 = vector.load %arg10[%c3_206, %c0_207, %c0_208] : memref<8x4x20xf32, #tpu.memory_space<vmem>>, vector<1x4x20xf32>
    %408 = vector.shape_cast %407 : vector<1x4x20xf32> to vector<4x20xf32>
    %409 = vector.shape_cast %406 : vector<4x20xf32> to vector<1x4x20xf32>
    tpu.vector_store %arg10[%c3_206, %c0_207, %c0_208], %409 {strides = array<i32>} : memref<8x4x20xf32, #tpu.memory_space<vmem>>, vector<1x4x20xf32>,
    %410 = vector.extract_strided_slice %405 {offsets = [0, 20], sizes = [4, 20], strides = [1, 1]} : vector<4x40xf32> to vector<4x20xf32>
    %c4_209 = arith.constant 4 : index
    %c0_210 = arith.constant 0 : index
    %c0_211 = arith.constant 0 : index
    %411 = vector.load %arg11[%c4_209, %c0_210, %c0_211] : memref<8x4x20xf32, #tpu.memory_space<vmem>>, vector<1x4x20xf32>
    %412 = vector.shape_cast %411 : vector<1x4x20xf32> to vector<4x20xf32>
    %413 = vector.shape_cast %410 : vector<4x20xf32> to vector<1x4x20xf32>
    tpu.vector_store %arg11[%c4_209, %c0_210, %c0_211], %413 {strides = array<i32>} : memref<8x4x20xf32, #tpu.memory_space<vmem>>, vector<1x4x20xf32>,
    %cst_212 = arith.constant dense<0.000000e+00> : vector<4x160xf32>
    %414 = tpu.matmul %405, %287, %cst_212 {dimension_numbers = #tpu.dot_dimension_numbers<[1], [0], [0], [1], [0, 0, 1, 1], [], []>} : vector<4x40xf32>, vector<40x160xf32>, vector<4x160xf32> -> vector<4x160xf32>
    %c4_213 = arith.constant 4 : index
    %c0_214 = arith.constant 0 : index
    %c0_215 = arith.constant 0 : index
    %415 = vector.load %arg8[%c4_213, %c0_214, %c0_215] : memref<8x4x160xf32, #tpu.memory_space<vmem>>, vector<1x4x160xf32>
    %416 = vector.shape_cast %415 : vector<1x4x160xf32> to vector<4x160xf32>
    %417 = arith.addf %414, %416 : vector<4x160xf32>
    %c3_216 = arith.constant 3 : index
    %c0_217 = arith.constant 0 : index
    %c0_218 = arith.constant 0 : index
    %418 = vector.load %arg9[%c3_216, %c0_217, %c0_218] : memref<8x4x160xf32, #tpu.memory_space<vmem>>, vector<1x4x160xf32>
    %419 = vector.shape_cast %418 : vector<1x4x160xf32> to vector<4x160xf32>
    %420 = arith.addf %417, %419 : vector<4x160xf32>
    %421 = vector.extract_strided_slice %420 {offsets = [0, 0], sizes = [4, 120], strides = [1, 1]} : vector<4x160xf32> to vector<4x120xf32>
    %422 = arith.negf %421 : vector<4x120xf32>
    %423 = math.exp %422 : vector<4x120xf32>
    %cst_219 = arith.constant 1.000000e+00 : f32
    %424 = vector.broadcast %cst_219 : f32 to vector<4x120xf32>
    %425 = arith.addf %424, %423 : vector<4x120xf32>
    %426 = arith.divf %424, %425 : vector<4x120xf32>
    %427 = vector.extract_strided_slice %426 {offsets = [0, 0], sizes = [4, 40], strides = [1, 1]} : vector<4x120xf32> to vector<4x40xf32>
    %428 = vector.extract_strided_slice %426 {offsets = [0, 40], sizes = [4, 40], strides = [1, 1]} : vector<4x120xf32> to vector<4x40xf32>
    %429 = vector.extract_strided_slice %426 {offsets = [0, 80], sizes = [4, 40], strides = [1, 1]} : vector<4x120xf32> to vector<4x40xf32>
    %430 = vector.extract_strided_slice %420 {offsets = [0, 120], sizes = [4, 40], strides = [1, 1]} : vector<4x160xf32> to vector<4x40xf32>
    %431 = math.tanh %430 : vector<4x40xf32>
    %432 = arith.mulf %428, %403 : vector<4x40xf32>
    %433 = arith.mulf %427, %431 : vector<4x40xf32>
    %434 = arith.addf %432, %433 : vector<4x40xf32>
    %435 = math.tanh %434 : vector<4x40xf32>
    %436 = arith.mulf %429, %435 : vector<4x40xf32>
    %437 = vector.extract_strided_slice %436 {offsets = [0, 0], sizes = [4, 20], strides = [1, 1]} : vector<4x40xf32> to vector<4x20xf32>
    %c4_220 = arith.constant 4 : index
    %c0_221 = arith.constant 0 : index
    %c0_222 = arith.constant 0 : index
    %438 = vector.load %arg10[%c4_220, %c0_221, %c0_222] : memref<8x4x20xf32, #tpu.memory_space<vmem>>, vector<1x4x20xf32>
    %439 = vector.shape_cast %438 : vector<1x4x20xf32> to vector<4x20xf32>
    %440 = vector.shape_cast %437 : vector<4x20xf32> to vector<1x4x20xf32>
    tpu.vector_store %arg10[%c4_220, %c0_221, %c0_222], %440 {strides = array<i32>} : memref<8x4x20xf32, #tpu.memory_space<vmem>>, vector<1x4x20xf32>,
    %441 = vector.extract_strided_slice %436 {offsets = [0, 20], sizes = [4, 20], strides = [1, 1]} : vector<4x40xf32> to vector<4x20xf32>
    %c3_223 = arith.constant 3 : index
    %c0_224 = arith.constant 0 : index
    %c0_225 = arith.constant 0 : index
    %442 = vector.load %arg11[%c3_223, %c0_224, %c0_225] : memref<8x4x20xf32, #tpu.memory_space<vmem>>, vector<1x4x20xf32>
    %443 = vector.shape_cast %442 : vector<1x4x20xf32> to vector<4x20xf32>
    %444 = vector.shape_cast %441 : vector<4x20xf32> to vector<1x4x20xf32>
    tpu.vector_store %arg11[%c3_223, %c0_224, %c0_225], %444 {strides = array<i32>} : memref<8x4x20xf32, #tpu.memory_space<vmem>>, vector<1x4x20xf32>,
    %cst_226 = arith.constant dense<0.000000e+00> : vector<4x160xf32>
    %445 = tpu.matmul %436, %287, %cst_226 {dimension_numbers = #tpu.dot_dimension_numbers<[1], [0], [0], [1], [0, 0, 1, 1], [], []>} : vector<4x40xf32>, vector<40x160xf32>, vector<4x160xf32> -> vector<4x160xf32>
    %c5_227 = arith.constant 5 : index
    %c0_228 = arith.constant 0 : index
    %c0_229 = arith.constant 0 : index
    %446 = vector.load %arg8[%c5_227, %c0_228, %c0_229] : memref<8x4x160xf32, #tpu.memory_space<vmem>>, vector<1x4x160xf32>
    %447 = vector.shape_cast %446 : vector<1x4x160xf32> to vector<4x160xf32>
    %448 = arith.addf %445, %447 : vector<4x160xf32>
    %c2_230 = arith.constant 2 : index
    %c0_231 = arith.constant 0 : index
    %c0_232 = arith.constant 0 : index
    %449 = vector.load %arg9[%c2_230, %c0_231, %c0_232] : memref<8x4x160xf32, #tpu.memory_space<vmem>>, vector<1x4x160xf32>
    %450 = vector.shape_cast %449 : vector<1x4x160xf32> to vector<4x160xf32>
    %451 = arith.addf %448, %450 : vector<4x160xf32>
    %452 = vector.extract_strided_slice %451 {offsets = [0, 0], sizes = [4, 120], strides = [1, 1]} : vector<4x160xf32> to vector<4x120xf32>
    %453 = arith.negf %452 : vector<4x120xf32>
    %454 = math.exp %453 : vector<4x120xf32>
    %cst_233 = arith.constant 1.000000e+00 : f32
    %455 = vector.broadcast %cst_233 : f32 to vector<4x120xf32>
    %456 = arith.addf %455, %454 : vector<4x120xf32>
    %457 = arith.divf %455, %456 : vector<4x120xf32>
    %458 = vector.extract_strided_slice %457 {offsets = [0, 0], sizes = [4, 40], strides = [1, 1]} : vector<4x120xf32> to vector<4x40xf32>
    %459 = vector.extract_strided_slice %457 {offsets = [0, 40], sizes = [4, 40], strides = [1, 1]} : vector<4x120xf32> to vector<4x40xf32>
    %460 = vector.extract_strided_slice %457 {offsets = [0, 80], sizes = [4, 40], strides = [1, 1]} : vector<4x120xf32> to vector<4x40xf32>
    %461 = vector.extract_strided_slice %451 {offsets = [0, 120], sizes = [4, 40], strides = [1, 1]} : vector<4x160xf32> to vector<4x40xf32>
    %462 = math.tanh %461 : vector<4x40xf32>
    %463 = arith.mulf %459, %434 : vector<4x40xf32>
    %464 = arith.mulf %458, %462 : vector<4x40xf32>
    %465 = arith.addf %463, %464 : vector<4x40xf32>
    %466 = math.tanh %465 : vector<4x40xf32>
    %467 = arith.mulf %460, %466 : vector<4x40xf32>
    %468 = vector.extract_strided_slice %467 {offsets = [0, 0], sizes = [4, 20], strides = [1, 1]} : vector<4x40xf32> to vector<4x20xf32>
    %c5_234 = arith.constant 5 : index
    %c0_235 = arith.constant 0 : index
    %c0_236 = arith.constant 0 : index
    %469 = vector.load %arg10[%c5_234, %c0_235, %c0_236] : memref<8x4x20xf32, #tpu.memory_space<vmem>>, vector<1x4x20xf32>
    %470 = vector.shape_cast %469 : vector<1x4x20xf32> to vector<4x20xf32>
    %471 = vector.shape_cast %468 : vector<4x20xf32> to vector<1x4x20xf32>
    tpu.vector_store %arg10[%c5_234, %c0_235, %c0_236], %471 {strides = array<i32>} : memref<8x4x20xf32, #tpu.memory_space<vmem>>, vector<1x4x20xf32>,
    %472 = vector.extract_strided_slice %467 {offsets = [0, 20], sizes = [4, 20], strides = [1, 1]} : vector<4x40xf32> to vector<4x20xf32>
    %c2_237 = arith.constant 2 : index
    %c0_238 = arith.constant 0 : index
    %c0_239 = arith.constant 0 : index
    %473 = vector.load %arg11[%c2_237, %c0_238, %c0_239] : memref<8x4x20xf32, #tpu.memory_space<vmem>>, vector<1x4x20xf32>
    %474 = vector.shape_cast %473 : vector<1x4x20xf32> to vector<4x20xf32>
    %475 = vector.shape_cast %472 : vector<4x20xf32> to vector<1x4x20xf32>
    tpu.vector_store %arg11[%c2_237, %c0_238, %c0_239], %475 {strides = array<i32>} : memref<8x4x20xf32, #tpu.memory_space<vmem>>, vector<1x4x20xf32>,
    %cst_240 = arith.constant dense<0.000000e+00> : vector<4x160xf32>
    %476 = tpu.matmul %467, %287, %cst_240 {dimension_numbers = #tpu.dot_dimension_numbers<[1], [0], [0], [1], [0, 0, 1, 1], [], []>} : vector<4x40xf32>, vector<40x160xf32>, vector<4x160xf32> -> vector<4x160xf32>
    %c6_241 = arith.constant 6 : index
    %c0_242 = arith.constant 0 : index
    %c0_243 = arith.constant 0 : index
    %477 = vector.load %arg8[%c6_241, %c0_242, %c0_243] : memref<8x4x160xf32, #tpu.memory_space<vmem>>, vector<1x4x160xf32>
    %478 = vector.shape_cast %477 : vector<1x4x160xf32> to vector<4x160xf32>
    %479 = arith.addf %476, %478 : vector<4x160xf32>
    %c1_244 = arith.constant 1 : index
    %c0_245 = arith.constant 0 : index
    %c0_246 = arith.constant 0 : index
    %480 = vector.load %arg9[%c1_244, %c0_245, %c0_246] : memref<8x4x160xf32, #tpu.memory_space<vmem>>, vector<1x4x160xf32>
    %481 = vector.shape_cast %480 : vector<1x4x160xf32> to vector<4x160xf32>
    %482 = arith.addf %479, %481 : vector<4x160xf32>
    %483 = vector.extract_strided_slice %482 {offsets = [0, 0], sizes = [4, 120], strides = [1, 1]} : vector<4x160xf32> to vector<4x120xf32>
    %484 = arith.negf %483 : vector<4x120xf32>
    %485 = math.exp %484 : vector<4x120xf32>
    %cst_247 = arith.constant 1.000000e+00 : f32
    %486 = vector.broadcast %cst_247 : f32 to vector<4x120xf32>
    %487 = arith.addf %486, %485 : vector<4x120xf32>
    %488 = arith.divf %486, %487 : vector<4x120xf32>
    %489 = vector.extract_strided_slice %488 {offsets = [0, 0], sizes = [4, 40], strides = [1, 1]} : vector<4x120xf32> to vector<4x40xf32>
    %490 = vector.extract_strided_slice %488 {offsets = [0, 40], sizes = [4, 40], strides = [1, 1]} : vector<4x120xf32> to vector<4x40xf32>
    %491 = vector.extract_strided_slice %488 {offsets = [0, 80], sizes = [4, 40], strides = [1, 1]} : vector<4x120xf32> to vector<4x40xf32>
    %492 = vector.extract_strided_slice %482 {offsets = [0, 120], sizes = [4, 40], strides = [1, 1]} : vector<4x160xf32> to vector<4x40xf32>
    %493 = math.tanh %492 : vector<4x40xf32>
    %494 = arith.mulf %490, %465 : vector<4x40xf32>
    %495 = arith.mulf %489, %493 : vector<4x40xf32>
    %496 = arith.addf %494, %495 : vector<4x40xf32>
    %497 = math.tanh %496 : vector<4x40xf32>
    %498 = arith.mulf %491, %497 : vector<4x40xf32>
    %499 = vector.extract_strided_slice %498 {offsets = [0, 0], sizes = [4, 20], strides = [1, 1]} : vector<4x40xf32> to vector<4x20xf32>
    %c6_248 = arith.constant 6 : index
    %c0_249 = arith.constant 0 : index
    %c0_250 = arith.constant 0 : index
    %500 = vector.load %arg10[%c6_248, %c0_249, %c0_250] : memref<8x4x20xf32, #tpu.memory_space<vmem>>, vector<1x4x20xf32>
    %501 = vector.shape_cast %500 : vector<1x4x20xf32> to vector<4x20xf32>
    %502 = vector.shape_cast %499 : vector<4x20xf32> to vector<1x4x20xf32>
    tpu.vector_store %arg10[%c6_248, %c0_249, %c0_250], %502 {strides = array<i32>} : memref<8x4x20xf32, #tpu.memory_space<vmem>>, vector<1x4x20xf32>,
    %503 = vector.extract_strided_slice %498 {offsets = [0, 20], sizes = [4, 20], strides = [1, 1]} : vector<4x40xf32> to vector<4x20xf32>
    %c1_251 = arith.constant 1 : index
    %c0_252 = arith.constant 0 : index
    %c0_253 = arith.constant 0 : index
    %504 = vector.load %arg11[%c1_251, %c0_252, %c0_253] : memref<8x4x20xf32, #tpu.memory_space<vmem>>, vector<1x4x20xf32>
    %505 = vector.shape_cast %504 : vector<1x4x20xf32> to vector<4x20xf32>
    %506 = vector.shape_cast %503 : vector<4x20xf32> to vector<1x4x20xf32>
    tpu.vector_store %arg11[%c1_251, %c0_252, %c0_253], %506 {strides = array<i32>} : memref<8x4x20xf32, #tpu.memory_space<vmem>>, vector<1x4x20xf32>,
    %cst_254 = arith.constant dense<0.000000e+00> : vector<4x160xf32>
    %507 = tpu.matmul %498, %287, %cst_254 {dimension_numbers = #tpu.dot_dimension_numbers<[1], [0], [0], [1], [0, 0, 1, 1], [], []>} : vector<4x40xf32>, vector<40x160xf32>, vector<4x160xf32> -> vector<4x160xf32>
    %c7_255 = arith.constant 7 : index
    %c0_256 = arith.constant 0 : index
    %c0_257 = arith.constant 0 : index
    %508 = vector.load %arg8[%c7_255, %c0_256, %c0_257] : memref<8x4x160xf32, #tpu.memory_space<vmem>>, vector<1x4x160xf32>
    %509 = vector.shape_cast %508 : vector<1x4x160xf32> to vector<4x160xf32>
    %510 = arith.addf %507, %509 : vector<4x160xf32>
    %c0_258 = arith.constant 0 : index
    %c0_259 = arith.constant 0 : index
    %c0_260 = arith.constant 0 : index
    %511 = vector.load %arg9[%c0_258, %c0_259, %c0_260] : memref<8x4x160xf32, #tpu.memory_space<vmem>>, vector<1x4x160xf32>
    %512 = vector.shape_cast %511 : vector<1x4x160xf32> to vector<4x160xf32>
    %513 = arith.addf %510, %512 : vector<4x160xf32>
    %514 = vector.extract_strided_slice %513 {offsets = [0, 0], sizes = [4, 120], strides = [1, 1]} : vector<4x160xf32> to vector<4x120xf32>
    %515 = arith.negf %514 : vector<4x120xf32>
    %516 = math.exp %515 : vector<4x120xf32>
    %cst_261 = arith.constant 1.000000e+00 : f32
    %517 = vector.broadcast %cst_261 : f32 to vector<4x120xf32>
    %518 = arith.addf %517, %516 : vector<4x120xf32>
    %519 = arith.divf %517, %518 : vector<4x120xf32>
    %520 = vector.extract_strided_slice %519 {offsets = [0, 0], sizes = [4, 40], strides = [1, 1]} : vector<4x120xf32> to vector<4x40xf32>
    %521 = vector.extract_strided_slice %519 {offsets = [0, 40], sizes = [4, 40], strides = [1, 1]} : vector<4x120xf32> to vector<4x40xf32>
    %522 = vector.extract_strided_slice %519 {offsets = [0, 80], sizes = [4, 40], strides = [1, 1]} : vector<4x120xf32> to vector<4x40xf32>
    %523 = vector.extract_strided_slice %513 {offsets = [0, 120], sizes = [4, 40], strides = [1, 1]} : vector<4x160xf32> to vector<4x40xf32>
    %524 = math.tanh %523 : vector<4x40xf32>
    %525 = arith.mulf %521, %496 : vector<4x40xf32>
    %526 = arith.mulf %520, %524 : vector<4x40xf32>
    %527 = arith.addf %525, %526 : vector<4x40xf32>
    %528 = math.tanh %527 : vector<4x40xf32>
    %529 = arith.mulf %522, %528 : vector<4x40xf32>
    %530 = vector.extract_strided_slice %529 {offsets = [0, 0], sizes = [4, 20], strides = [1, 1]} : vector<4x40xf32> to vector<4x20xf32>
    %c7_262 = arith.constant 7 : index
    %c0_263 = arith.constant 0 : index
    %c0_264 = arith.constant 0 : index
    %531 = vector.load %arg10[%c7_262, %c0_263, %c0_264] : memref<8x4x20xf32, #tpu.memory_space<vmem>>, vector<1x4x20xf32>
    %532 = vector.shape_cast %531 : vector<1x4x20xf32> to vector<4x20xf32>
    %533 = vector.shape_cast %530 : vector<4x20xf32> to vector<1x4x20xf32>
    tpu.vector_store %arg10[%c7_262, %c0_263, %c0_264], %533 {strides = array<i32>} : memref<8x4x20xf32, #tpu.memory_space<vmem>>, vector<1x4x20xf32>,
    %534 = vector.extract_strided_slice %529 {offsets = [0, 20], sizes = [4, 20], strides = [1, 1]} : vector<4x40xf32> to vector<4x20xf32>
    %c0_265 = arith.constant 0 : index
    %c0_266 = arith.constant 0 : index
    %c0_267 = arith.constant 0 : index
    %535 = vector.load %arg11[%c0_265, %c0_266, %c0_267] : memref<8x4x20xf32, #tpu.memory_space<vmem>>, vector<1x4x20xf32>
    %536 = vector.shape_cast %535 : vector<1x4x20xf32> to vector<4x20xf32>
    %537 = vector.shape_cast %534 : vector<4x20xf32> to vector<1x4x20xf32>
    tpu.vector_store %arg11[%c0_265, %c0_266, %c0_267], %537 {strides = array<i32>} : memref<8x4x20xf32, #tpu.memory_space<vmem>>, vector<1x4x20xf32>,
    %c0_268 = arith.constant 0 : index
    %c0_269 = arith.constant 0 : index
    %c0_270 = arith.constant 0 : index
    %538 = vector.load %arg10[%c0_268, %c0_269, %c0_270] : memref<8x4x20xf32, #tpu.memory_space<vmem>>, vector<8x4x20xf32>
    %c0_271 = arith.constant 0 : index
    %c0_272 = arith.constant 0 : index
    %c0_273 = arith.constant 0 : index
    %539 = vector.load %arg11[%c0_271, %c0_272, %c0_273] : memref<8x4x20xf32, #tpu.memory_space<vmem>>, vector<8x4x20xf32>
    %540 = tpu.concatenate %538, %539 in 2 : vector<8x4x20xf32>, vector<8x4x20xf32> -> vector<8x4x40xf32>
    %541 = vector.shape_cast %540 : vector<8x4x40xf32> to vector<32x40xf32>
    %c2_274 = arith.constant 2 : index
    %c0_275 = arith.constant 0 : index
    %c0_276 = arith.constant 0 : index
    %542 = vector.load %arg1[%c2_274, %c0_275, %c0_276] : memref<3x40x160xf32, #tpu.memory_space<vmem>>, vector<1x40x160xf32>
    %543 = vector.shape_cast %542 : vector<1x40x160xf32> to vector<40x160xf32>
    %cst_277 = arith.constant dense<0.000000e+00> : vector<32x160xf32>
    %544 = tpu.matmul %541, %543, %cst_277 {dimension_numbers = #tpu.dot_dimension_numbers<[1], [0], [0], [1], [0, 0, 1, 1], [], []>, precision = #tpu.contract_precision<fp32>} : vector<32x40xf32>, vector<40x160xf32>, vector<32x160xf32> -> vector<32x160xf32>
    %c2_278 = arith.constant 2 : index
    %c0_279 = arith.constant 0 : index
    %c0_280 = arith.constant 0 : index
    %545 = vector.load %arg4[%c2_278, %c0_279, %c0_280] : memref<3x1x160xf32, #tpu.memory_space<vmem>>, vector<1x1x160xf32>
    %546 = vector.shape_cast %545 : vector<1x1x160xf32> to vector<1x160xf32>
    %547 = vector.broadcast %546 : vector<1x160xf32> to vector<32x160xf32>
    %548 = arith.addf %544, %547 : vector<32x160xf32>
    %c2_281 = arith.constant 2 : index
    %c0_282 = arith.constant 0 : index
    %c0_283 = arith.constant 0 : index
    %549 = vector.load %arg2[%c2_281, %c0_282, %c0_283] : memref<3x40x160xf32, #tpu.memory_space<vmem>>, vector<1x40x160xf32>
    %550 = vector.shape_cast %549 : vector<1x40x160xf32> to vector<40x160xf32>
    %cst_284 = arith.constant dense<0.000000e+00> : vector<32x160xf32>
    %551 = tpu.matmul %541, %550, %cst_284 {dimension_numbers = #tpu.dot_dimension_numbers<[1], [0], [0], [1], [0, 0, 1, 1], [], []>, precision = #tpu.contract_precision<fp32>} : vector<32x40xf32>, vector<40x160xf32>, vector<32x160xf32> -> vector<32x160xf32>
    %552 = vector.shape_cast %548 : vector<32x160xf32> to vector<8x4x160xf32>
    %c0_285 = arith.constant 0 : index
    %c0_286 = arith.constant 0 : index
    %c0_287 = arith.constant 0 : index
    %553 = vector.load %arg8[%c0_285, %c0_286, %c0_287] : memref<8x4x160xf32, #tpu.memory_space<vmem>>, vector<8x4x160xf32>
    tpu.vector_store %arg8[%c0_285, %c0_286, %c0_287], %552 {strides = array<i32>} : memref<8x4x160xf32, #tpu.memory_space<vmem>>, vector<8x4x160xf32>,
    %554 = vector.shape_cast %551 : vector<32x160xf32> to vector<8x4x160xf32>
    %c0_288 = arith.constant 0 : index
    %c0_289 = arith.constant 0 : index
    %c0_290 = arith.constant 0 : index
    %555 = vector.load %arg9[%c0_288, %c0_289, %c0_290] : memref<8x4x160xf32, #tpu.memory_space<vmem>>, vector<8x4x160xf32>
    tpu.vector_store %arg9[%c0_288, %c0_289, %c0_290], %554 {strides = array<i32>} : memref<8x4x160xf32, #tpu.memory_space<vmem>>, vector<8x4x160xf32>,
    %c2_291 = arith.constant 2 : index
    %c0_292 = arith.constant 0 : index
    %c0_293 = arith.constant 0 : index
    %556 = vector.load %arg3[%c2_291, %c0_292, %c0_293] : memref<3x40x160xf32, #tpu.memory_space<vmem>>, vector<1x40x160xf32>
    %557 = vector.shape_cast %556 : vector<1x40x160xf32> to vector<40x160xf32>
    %cst_294 = arith.constant 0.000000e+00 : f32
    %558 = vector.broadcast %cst_294 : f32 to vector<4x40xf32>
    %cst_295 = arith.constant 0.000000e+00 : f32
    %559 = vector.broadcast %cst_295 : f32 to vector<4x40xf32>
    %cst_296 = arith.constant dense<0.000000e+00> : vector<4x160xf32>
    %560 = tpu.matmul %558, %557, %cst_296 {dimension_numbers = #tpu.dot_dimension_numbers<[1], [0], [0], [1], [0, 0, 1, 1], [], []>} : vector<4x40xf32>, vector<40x160xf32>, vector<4x160xf32> -> vector<4x160xf32>
    %c0_297 = arith.constant 0 : index
    %c0_298 = arith.constant 0 : index
    %c0_299 = arith.constant 0 : index
    %561 = vector.load %arg8[%c0_297, %c0_298, %c0_299] : memref<8x4x160xf32, #tpu.memory_space<vmem>>, vector<1x4x160xf32>
    %562 = vector.shape_cast %561 : vector<1x4x160xf32> to vector<4x160xf32>
    %563 = arith.addf %560, %562 : vector<4x160xf32>
    %c7_300 = arith.constant 7 : index
    %c0_301 = arith.constant 0 : index
    %c0_302 = arith.constant 0 : index
    %564 = vector.load %arg9[%c7_300, %c0_301, %c0_302] : memref<8x4x160xf32, #tpu.memory_space<vmem>>, vector<1x4x160xf32>
    %565 = vector.shape_cast %564 : vector<1x4x160xf32> to vector<4x160xf32>
    %566 = arith.addf %563, %565 : vector<4x160xf32>
    %567 = vector.extract_strided_slice %566 {offsets = [0, 0], sizes = [4, 120], strides = [1, 1]} : vector<4x160xf32> to vector<4x120xf32>
    %568 = arith.negf %567 : vector<4x120xf32>
    %569 = math.exp %568 : vector<4x120xf32>
    %cst_303 = arith.constant 1.000000e+00 : f32
    %570 = vector.broadcast %cst_303 : f32 to vector<4x120xf32>
    %571 = arith.addf %570, %569 : vector<4x120xf32>
    %572 = arith.divf %570, %571 : vector<4x120xf32>
    %573 = vector.extract_strided_slice %572 {offsets = [0, 0], sizes = [4, 40], strides = [1, 1]} : vector<4x120xf32> to vector<4x40xf32>
    %574 = vector.extract_strided_slice %572 {offsets = [0, 40], sizes = [4, 40], strides = [1, 1]} : vector<4x120xf32> to vector<4x40xf32>
    %575 = vector.extract_strided_slice %572 {offsets = [0, 80], sizes = [4, 40], strides = [1, 1]} : vector<4x120xf32> to vector<4x40xf32>
    %576 = vector.extract_strided_slice %566 {offsets = [0, 120], sizes = [4, 40], strides = [1, 1]} : vector<4x160xf32> to vector<4x40xf32>
    %577 = math.tanh %576 : vector<4x40xf32>
    %578 = arith.mulf %574, %559 : vector<4x40xf32>
    %579 = arith.mulf %573, %577 : vector<4x40xf32>
    %580 = arith.addf %578, %579 : vector<4x40xf32>
    %581 = math.tanh %580 : vector<4x40xf32>
    %582 = arith.mulf %575, %581 : vector<4x40xf32>
    %583 = vector.extract_strided_slice %582 {offsets = [0, 0], sizes = [4, 20], strides = [1, 1]} : vector<4x40xf32> to vector<4x20xf32>
    %c0_304 = arith.constant 0 : index
    %c0_305 = arith.constant 0 : index
    %c0_306 = arith.constant 0 : index
    %584 = vector.load %arg10[%c0_304, %c0_305, %c0_306] : memref<8x4x20xf32, #tpu.memory_space<vmem>>, vector<1x4x20xf32>
    %585 = vector.shape_cast %584 : vector<1x4x20xf32> to vector<4x20xf32>
    %586 = vector.shape_cast %583 : vector<4x20xf32> to vector<1x4x20xf32>
    tpu.vector_store %arg10[%c0_304, %c0_305, %c0_306], %586 {strides = array<i32>} : memref<8x4x20xf32, #tpu.memory_space<vmem>>, vector<1x4x20xf32>,
    %587 = vector.extract_strided_slice %582 {offsets = [0, 20], sizes = [4, 20], strides = [1, 1]} : vector<4x40xf32> to vector<4x20xf32>
    %c7_307 = arith.constant 7 : index
    %c0_308 = arith.constant 0 : index
    %c0_309 = arith.constant 0 : index
    %588 = vector.load %arg11[%c7_307, %c0_308, %c0_309] : memref<8x4x20xf32, #tpu.memory_space<vmem>>, vector<1x4x20xf32>
    %589 = vector.shape_cast %588 : vector<1x4x20xf32> to vector<4x20xf32>
    %590 = vector.shape_cast %587 : vector<4x20xf32> to vector<1x4x20xf32>
    tpu.vector_store %arg11[%c7_307, %c0_308, %c0_309], %590 {strides = array<i32>} : memref<8x4x20xf32, #tpu.memory_space<vmem>>, vector<1x4x20xf32>,
    %cst_310 = arith.constant dense<0.000000e+00> : vector<4x160xf32>
    %591 = tpu.matmul %582, %557, %cst_310 {dimension_numbers = #tpu.dot_dimension_numbers<[1], [0], [0], [1], [0, 0, 1, 1], [], []>} : vector<4x40xf32>, vector<40x160xf32>, vector<4x160xf32> -> vector<4x160xf32>
    %c1_311 = arith.constant 1 : index
    %c0_312 = arith.constant 0 : index
    %c0_313 = arith.constant 0 : index
    %592 = vector.load %arg8[%c1_311, %c0_312, %c0_313] : memref<8x4x160xf32, #tpu.memory_space<vmem>>, vector<1x4x160xf32>
    %593 = vector.shape_cast %592 : vector<1x4x160xf32> to vector<4x160xf32>
    %594 = arith.addf %591, %593 : vector<4x160xf32>
    %c6_314 = arith.constant 6 : index
    %c0_315 = arith.constant 0 : index
    %c0_316 = arith.constant 0 : index
    %595 = vector.load %arg9[%c6_314, %c0_315, %c0_316] : memref<8x4x160xf32, #tpu.memory_space<vmem>>, vector<1x4x160xf32>
    %596 = vector.shape_cast %595 : vector<1x4x160xf32> to vector<4x160xf32>
    %597 = arith.addf %594, %596 : vector<4x160xf32>
    %598 = vector.extract_strided_slice %597 {offsets = [0, 0], sizes = [4, 120], strides = [1, 1]} : vector<4x160xf32> to vector<4x120xf32>
    %599 = arith.negf %598 : vector<4x120xf32>
    %600 = math.exp %599 : vector<4x120xf32>
    %cst_317 = arith.constant 1.000000e+00 : f32
    %601 = vector.broadcast %cst_317 : f32 to vector<4x120xf32>
    %602 = arith.addf %601, %600 : vector<4x120xf32>
    %603 = arith.divf %601, %602 : vector<4x120xf32>
    %604 = vector.extract_strided_slice %603 {offsets = [0, 0], sizes = [4, 40], strides = [1, 1]} : vector<4x120xf32> to vector<4x40xf32>
    %605 = vector.extract_strided_slice %603 {offsets = [0, 40], sizes = [4, 40], strides = [1, 1]} : vector<4x120xf32> to vector<4x40xf32>
    %606 = vector.extract_strided_slice %603 {offsets = [0, 80], sizes = [4, 40], strides = [1, 1]} : vector<4x120xf32> to vector<4x40xf32>
    %607 = vector.extract_strided_slice %597 {offsets = [0, 120], sizes = [4, 40], strides = [1, 1]} : vector<4x160xf32> to vector<4x40xf32>
    %608 = math.tanh %607 : vector<4x40xf32>
    %609 = arith.mulf %605, %580 : vector<4x40xf32>
    %610 = arith.mulf %604, %608 : vector<4x40xf32>
    %611 = arith.addf %609, %610 : vector<4x40xf32>
    %612 = math.tanh %611 : vector<4x40xf32>
    %613 = arith.mulf %606, %612 : vector<4x40xf32>
    %614 = vector.extract_strided_slice %613 {offsets = [0, 0], sizes = [4, 20], strides = [1, 1]} : vector<4x40xf32> to vector<4x20xf32>
    %c1_318 = arith.constant 1 : index
    %c0_319 = arith.constant 0 : index
    %c0_320 = arith.constant 0 : index
    %615 = vector.load %arg10[%c1_318, %c0_319, %c0_320] : memref<8x4x20xf32, #tpu.memory_space<vmem>>, vector<1x4x20xf32>
    %616 = vector.shape_cast %615 : vector<1x4x20xf32> to vector<4x20xf32>
    %617 = vector.shape_cast %614 : vector<4x20xf32> to vector<1x4x20xf32>
    tpu.vector_store %arg10[%c1_318, %c0_319, %c0_320], %617 {strides = array<i32>} : memref<8x4x20xf32, #tpu.memory_space<vmem>>, vector<1x4x20xf32>,
    %618 = vector.extract_strided_slice %613 {offsets = [0, 20], sizes = [4, 20], strides = [1, 1]} : vector<4x40xf32> to vector<4x20xf32>
    %c6_321 = arith.constant 6 : index
    %c0_322 = arith.constant 0 : index
    %c0_323 = arith.constant 0 : index
    %619 = vector.load %arg11[%c6_321, %c0_322, %c0_323] : memref<8x4x20xf32, #tpu.memory_space<vmem>>, vector<1x4x20xf32>
    %620 = vector.shape_cast %619 : vector<1x4x20xf32> to vector<4x20xf32>
    %621 = vector.shape_cast %618 : vector<4x20xf32> to vector<1x4x20xf32>
    tpu.vector_store %arg11[%c6_321, %c0_322, %c0_323], %621 {strides = array<i32>} : memref<8x4x20xf32, #tpu.memory_space<vmem>>, vector<1x4x20xf32>,
    %cst_324 = arith.constant dense<0.000000e+00> : vector<4x160xf32>
    %622 = tpu.matmul %613, %557, %cst_324 {dimension_numbers = #tpu.dot_dimension_numbers<[1], [0], [0], [1], [0, 0, 1, 1], [], []>} : vector<4x40xf32>, vector<40x160xf32>, vector<4x160xf32> -> vector<4x160xf32>
    %c2_325 = arith.constant 2 : index
    %c0_326 = arith.constant 0 : index
    %c0_327 = arith.constant 0 : index
    %623 = vector.load %arg8[%c2_325, %c0_326, %c0_327] : memref<8x4x160xf32, #tpu.memory_space<vmem>>, vector<1x4x160xf32>
    %624 = vector.shape_cast %623 : vector<1x4x160xf32> to vector<4x160xf32>
    %625 = arith.addf %622, %624 : vector<4x160xf32>
    %c5_328 = arith.constant 5 : index
    %c0_329 = arith.constant 0 : index
    %c0_330 = arith.constant 0 : index
    %626 = vector.load %arg9[%c5_328, %c0_329, %c0_330] : memref<8x4x160xf32, #tpu.memory_space<vmem>>, vector<1x4x160xf32>
    %627 = vector.shape_cast %626 : vector<1x4x160xf32> to vector<4x160xf32>
    %628 = arith.addf %625, %627 : vector<4x160xf32>
    %629 = vector.extract_strided_slice %628 {offsets = [0, 0], sizes = [4, 120], strides = [1, 1]} : vector<4x160xf32> to vector<4x120xf32>
    %630 = arith.negf %629 : vector<4x120xf32>
    %631 = math.exp %630 : vector<4x120xf32>
    %cst_331 = arith.constant 1.000000e+00 : f32
    %632 = vector.broadcast %cst_331 : f32 to vector<4x120xf32>
    %633 = arith.addf %632, %631 : vector<4x120xf32>
    %634 = arith.divf %632, %633 : vector<4x120xf32>
    %635 = vector.extract_strided_slice %634 {offsets = [0, 0], sizes = [4, 40], strides = [1, 1]} : vector<4x120xf32> to vector<4x40xf32>
    %636 = vector.extract_strided_slice %634 {offsets = [0, 40], sizes = [4, 40], strides = [1, 1]} : vector<4x120xf32> to vector<4x40xf32>
    %637 = vector.extract_strided_slice %634 {offsets = [0, 80], sizes = [4, 40], strides = [1, 1]} : vector<4x120xf32> to vector<4x40xf32>
    %638 = vector.extract_strided_slice %628 {offsets = [0, 120], sizes = [4, 40], strides = [1, 1]} : vector<4x160xf32> to vector<4x40xf32>
    %639 = math.tanh %638 : vector<4x40xf32>
    %640 = arith.mulf %636, %611 : vector<4x40xf32>
    %641 = arith.mulf %635, %639 : vector<4x40xf32>
    %642 = arith.addf %640, %641 : vector<4x40xf32>
    %643 = math.tanh %642 : vector<4x40xf32>
    %644 = arith.mulf %637, %643 : vector<4x40xf32>
    %645 = vector.extract_strided_slice %644 {offsets = [0, 0], sizes = [4, 20], strides = [1, 1]} : vector<4x40xf32> to vector<4x20xf32>
    %c2_332 = arith.constant 2 : index
    %c0_333 = arith.constant 0 : index
    %c0_334 = arith.constant 0 : index
    %646 = vector.load %arg10[%c2_332, %c0_333, %c0_334] : memref<8x4x20xf32, #tpu.memory_space<vmem>>, vector<1x4x20xf32>
    %647 = vector.shape_cast %646 : vector<1x4x20xf32> to vector<4x20xf32>
    %648 = vector.shape_cast %645 : vector<4x20xf32> to vector<1x4x20xf32>
    tpu.vector_store %arg10[%c2_332, %c0_333, %c0_334], %648 {strides = array<i32>} : memref<8x4x20xf32, #tpu.memory_space<vmem>>, vector<1x4x20xf32>,
    %649 = vector.extract_strided_slice %644 {offsets = [0, 20], sizes = [4, 20], strides = [1, 1]} : vector<4x40xf32> to vector<4x20xf32>
    %c5_335 = arith.constant 5 : index
    %c0_336 = arith.constant 0 : index
    %c0_337 = arith.constant 0 : index
    %650 = vector.load %arg11[%c5_335, %c0_336, %c0_337] : memref<8x4x20xf32, #tpu.memory_space<vmem>>, vector<1x4x20xf32>
    %651 = vector.shape_cast %650 : vector<1x4x20xf32> to vector<4x20xf32>
    %652 = vector.shape_cast %649 : vector<4x20xf32> to vector<1x4x20xf32>
    tpu.vector_store %arg11[%c5_335, %c0_336, %c0_337], %652 {strides = array<i32>} : memref<8x4x20xf32, #tpu.memory_space<vmem>>, vector<1x4x20xf32>,
    %cst_338 = arith.constant dense<0.000000e+00> : vector<4x160xf32>
    %653 = tpu.matmul %644, %557, %cst_338 {dimension_numbers = #tpu.dot_dimension_numbers<[1], [0], [0], [1], [0, 0, 1, 1], [], []>} : vector<4x40xf32>, vector<40x160xf32>, vector<4x160xf32> -> vector<4x160xf32>
    %c3_339 = arith.constant 3 : index
    %c0_340 = arith.constant 0 : index
    %c0_341 = arith.constant 0 : index
    %654 = vector.load %arg8[%c3_339, %c0_340, %c0_341] : memref<8x4x160xf32, #tpu.memory_space<vmem>>, vector<1x4x160xf32>
    %655 = vector.shape_cast %654 : vector<1x4x160xf32> to vector<4x160xf32>
    %656 = arith.addf %653, %655 : vector<4x160xf32>
    %c4_342 = arith.constant 4 : index
    %c0_343 = arith.constant 0 : index
    %c0_344 = arith.constant 0 : index
    %657 = vector.load %arg9[%c4_342, %c0_343, %c0_344] : memref<8x4x160xf32, #tpu.memory_space<vmem>>, vector<1x4x160xf32>
    %658 = vector.shape_cast %657 : vector<1x4x160xf32> to vector<4x160xf32>
    %659 = arith.addf %656, %658 : vector<4x160xf32>
    %660 = vector.extract_strided_slice %659 {offsets = [0, 0], sizes = [4, 120], strides = [1, 1]} : vector<4x160xf32> to vector<4x120xf32>
    %661 = arith.negf %660 : vector<4x120xf32>
    %662 = math.exp %661 : vector<4x120xf32>
    %cst_345 = arith.constant 1.000000e+00 : f32
    %663 = vector.broadcast %cst_345 : f32 to vector<4x120xf32>
    %664 = arith.addf %663, %662 : vector<4x120xf32>
    %665 = arith.divf %663, %664 : vector<4x120xf32>
    %666 = vector.extract_strided_slice %665 {offsets = [0, 0], sizes = [4, 40], strides = [1, 1]} : vector<4x120xf32> to vector<4x40xf32>
    %667 = vector.extract_strided_slice %665 {offsets = [0, 40], sizes = [4, 40], strides = [1, 1]} : vector<4x120xf32> to vector<4x40xf32>
    %668 = vector.extract_strided_slice %665 {offsets = [0, 80], sizes = [4, 40], strides = [1, 1]} : vector<4x120xf32> to vector<4x40xf32>
    %669 = vector.extract_strided_slice %659 {offsets = [0, 120], sizes = [4, 40], strides = [1, 1]} : vector<4x160xf32> to vector<4x40xf32>
    %670 = math.tanh %669 : vector<4x40xf32>
    %671 = arith.mulf %667, %642 : vector<4x40xf32>
    %672 = arith.mulf %666, %670 : vector<4x40xf32>
    %673 = arith.addf %671, %672 : vector<4x40xf32>
    %674 = math.tanh %673 : vector<4x40xf32>
    %675 = arith.mulf %668, %674 : vector<4x40xf32>
    %676 = vector.extract_strided_slice %675 {offsets = [0, 0], sizes = [4, 20], strides = [1, 1]} : vector<4x40xf32> to vector<4x20xf32>
    %c3_346 = arith.constant 3 : index
    %c0_347 = arith.constant 0 : index
    %c0_348 = arith.constant 0 : index
    %677 = vector.load %arg10[%c3_346, %c0_347, %c0_348] : memref<8x4x20xf32, #tpu.memory_space<vmem>>, vector<1x4x20xf32>
    %678 = vector.shape_cast %677 : vector<1x4x20xf32> to vector<4x20xf32>
    %679 = vector.shape_cast %676 : vector<4x20xf32> to vector<1x4x20xf32>
    tpu.vector_store %arg10[%c3_346, %c0_347, %c0_348], %679 {strides = array<i32>} : memref<8x4x20xf32, #tpu.memory_space<vmem>>, vector<1x4x20xf32>,
    %680 = vector.extract_strided_slice %675 {offsets = [0, 20], sizes = [4, 20], strides = [1, 1]} : vector<4x40xf32> to vector<4x20xf32>
    %c4_349 = arith.constant 4 : index
    %c0_350 = arith.constant 0 : index
    %c0_351 = arith.constant 0 : index
    %681 = vector.load %arg11[%c4_349, %c0_350, %c0_351] : memref<8x4x20xf32, #tpu.memory_space<vmem>>, vector<1x4x20xf32>
    %682 = vector.shape_cast %681 : vector<1x4x20xf32> to vector<4x20xf32>
    %683 = vector.shape_cast %680 : vector<4x20xf32> to vector<1x4x20xf32>
    tpu.vector_store %arg11[%c4_349, %c0_350, %c0_351], %683 {strides = array<i32>} : memref<8x4x20xf32, #tpu.memory_space<vmem>>, vector<1x4x20xf32>,
    %cst_352 = arith.constant dense<0.000000e+00> : vector<4x160xf32>
    %684 = tpu.matmul %675, %557, %cst_352 {dimension_numbers = #tpu.dot_dimension_numbers<[1], [0], [0], [1], [0, 0, 1, 1], [], []>} : vector<4x40xf32>, vector<40x160xf32>, vector<4x160xf32> -> vector<4x160xf32>
    %c4_353 = arith.constant 4 : index
    %c0_354 = arith.constant 0 : index
    %c0_355 = arith.constant 0 : index
    %685 = vector.load %arg8[%c4_353, %c0_354, %c0_355] : memref<8x4x160xf32, #tpu.memory_space<vmem>>, vector<1x4x160xf32>
    %686 = vector.shape_cast %685 : vector<1x4x160xf32> to vector<4x160xf32>
    %687 = arith.addf %684, %686 : vector<4x160xf32>
    %c3_356 = arith.constant 3 : index
    %c0_357 = arith.constant 0 : index
    %c0_358 = arith.constant 0 : index
    %688 = vector.load %arg9[%c3_356, %c0_357, %c0_358] : memref<8x4x160xf32, #tpu.memory_space<vmem>>, vector<1x4x160xf32>
    %689 = vector.shape_cast %688 : vector<1x4x160xf32> to vector<4x160xf32>
    %690 = arith.addf %687, %689 : vector<4x160xf32>
    %691 = vector.extract_strided_slice %690 {offsets = [0, 0], sizes = [4, 120], strides = [1, 1]} : vector<4x160xf32> to vector<4x120xf32>
    %692 = arith.negf %691 : vector<4x120xf32>
    %693 = math.exp %692 : vector<4x120xf32>
    %cst_359 = arith.constant 1.000000e+00 : f32
    %694 = vector.broadcast %cst_359 : f32 to vector<4x120xf32>
    %695 = arith.addf %694, %693 : vector<4x120xf32>
    %696 = arith.divf %694, %695 : vector<4x120xf32>
    %697 = vector.extract_strided_slice %696 {offsets = [0, 0], sizes = [4, 40], strides = [1, 1]} : vector<4x120xf32> to vector<4x40xf32>
    %698 = vector.extract_strided_slice %696 {offsets = [0, 40], sizes = [4, 40], strides = [1, 1]} : vector<4x120xf32> to vector<4x40xf32>
    %699 = vector.extract_strided_slice %696 {offsets = [0, 80], sizes = [4, 40], strides = [1, 1]} : vector<4x120xf32> to vector<4x40xf32>
    %700 = vector.extract_strided_slice %690 {offsets = [0, 120], sizes = [4, 40], strides = [1, 1]} : vector<4x160xf32> to vector<4x40xf32>
    %701 = math.tanh %700 : vector<4x40xf32>
    %702 = arith.mulf %698, %673 : vector<4x40xf32>
    %703 = arith.mulf %697, %701 : vector<4x40xf32>
    %704 = arith.addf %702, %703 : vector<4x40xf32>
    %705 = math.tanh %704 : vector<4x40xf32>
    %706 = arith.mulf %699, %705 : vector<4x40xf32>
    %707 = vector.extract_strided_slice %706 {offsets = [0, 0], sizes = [4, 20], strides = [1, 1]} : vector<4x40xf32> to vector<4x20xf32>
    %c4_360 = arith.constant 4 : index
    %c0_361 = arith.constant 0 : index
    %c0_362 = arith.constant 0 : index
    %708 = vector.load %arg10[%c4_360, %c0_361, %c0_362] : memref<8x4x20xf32, #tpu.memory_space<vmem>>, vector<1x4x20xf32>
    %709 = vector.shape_cast %708 : vector<1x4x20xf32> to vector<4x20xf32>
    %710 = vector.shape_cast %707 : vector<4x20xf32> to vector<1x4x20xf32>
    tpu.vector_store %arg10[%c4_360, %c0_361, %c0_362], %710 {strides = array<i32>} : memref<8x4x20xf32, #tpu.memory_space<vmem>>, vector<1x4x20xf32>,
    %711 = vector.extract_strided_slice %706 {offsets = [0, 20], sizes = [4, 20], strides = [1, 1]} : vector<4x40xf32> to vector<4x20xf32>
    %c3_363 = arith.constant 3 : index
    %c0_364 = arith.constant 0 : index
    %c0_365 = arith.constant 0 : index
    %712 = vector.load %arg11[%c3_363, %c0_364, %c0_365] : memref<8x4x20xf32, #tpu.memory_space<vmem>>, vector<1x4x20xf32>
    %713 = vector.shape_cast %712 : vector<1x4x20xf32> to vector<4x20xf32>
    %714 = vector.shape_cast %711 : vector<4x20xf32> to vector<1x4x20xf32>
    tpu.vector_store %arg11[%c3_363, %c0_364, %c0_365], %714 {strides = array<i32>} : memref<8x4x20xf32, #tpu.memory_space<vmem>>, vector<1x4x20xf32>,
    %cst_366 = arith.constant dense<0.000000e+00> : vector<4x160xf32>
    %715 = tpu.matmul %706, %557, %cst_366 {dimension_numbers = #tpu.dot_dimension_numbers<[1], [0], [0], [1], [0, 0, 1, 1], [], []>} : vector<4x40xf32>, vector<40x160xf32>, vector<4x160xf32> -> vector<4x160xf32>
    %c5_367 = arith.constant 5 : index
    %c0_368 = arith.constant 0 : index
    %c0_369 = arith.constant 0 : index
    %716 = vector.load %arg8[%c5_367, %c0_368, %c0_369] : memref<8x4x160xf32, #tpu.memory_space<vmem>>, vector<1x4x160xf32>
    %717 = vector.shape_cast %716 : vector<1x4x160xf32> to vector<4x160xf32>
    %718 = arith.addf %715, %717 : vector<4x160xf32>
    %c2_370 = arith.constant 2 : index
    %c0_371 = arith.constant 0 : index
    %c0_372 = arith.constant 0 : index
    %719 = vector.load %arg9[%c2_370, %c0_371, %c0_372] : memref<8x4x160xf32, #tpu.memory_space<vmem>>, vector<1x4x160xf32>
    %720 = vector.shape_cast %719 : vector<1x4x160xf32> to vector<4x160xf32>
    %721 = arith.addf %718, %720 : vector<4x160xf32>
    %722 = vector.extract_strided_slice %721 {offsets = [0, 0], sizes = [4, 120], strides = [1, 1]} : vector<4x160xf32> to vector<4x120xf32>
    %723 = arith.negf %722 : vector<4x120xf32>
    %724 = math.exp %723 : vector<4x120xf32>
    %cst_373 = arith.constant 1.000000e+00 : f32
    %725 = vector.broadcast %cst_373 : f32 to vector<4x120xf32>
    %726 = arith.addf %725, %724 : vector<4x120xf32>
    %727 = arith.divf %725, %726 : vector<4x120xf32>
    %728 = vector.extract_strided_slice %727 {offsets = [0, 0], sizes = [4, 40], strides = [1, 1]} : vector<4x120xf32> to vector<4x40xf32>
    %729 = vector.extract_strided_slice %727 {offsets = [0, 40], sizes = [4, 40], strides = [1, 1]} : vector<4x120xf32> to vector<4x40xf32>
    %730 = vector.extract_strided_slice %727 {offsets = [0, 80], sizes = [4, 40], strides = [1, 1]} : vector<4x120xf32> to vector<4x40xf32>
    %731 = vector.extract_strided_slice %721 {offsets = [0, 120], sizes = [4, 40], strides = [1, 1]} : vector<4x160xf32> to vector<4x40xf32>
    %732 = math.tanh %731 : vector<4x40xf32>
    %733 = arith.mulf %729, %704 : vector<4x40xf32>
    %734 = arith.mulf %728, %732 : vector<4x40xf32>
    %735 = arith.addf %733, %734 : vector<4x40xf32>
    %736 = math.tanh %735 : vector<4x40xf32>
    %737 = arith.mulf %730, %736 : vector<4x40xf32>
    %738 = vector.extract_strided_slice %737 {offsets = [0, 0], sizes = [4, 20], strides = [1, 1]} : vector<4x40xf32> to vector<4x20xf32>
    %c5_374 = arith.constant 5 : index
    %c0_375 = arith.constant 0 : index
    %c0_376 = arith.constant 0 : index
    %739 = vector.load %arg10[%c5_374, %c0_375, %c0_376] : memref<8x4x20xf32, #tpu.memory_space<vmem>>, vector<1x4x20xf32>
    %740 = vector.shape_cast %739 : vector<1x4x20xf32> to vector<4x20xf32>
    %741 = vector.shape_cast %738 : vector<4x20xf32> to vector<1x4x20xf32>
    tpu.vector_store %arg10[%c5_374, %c0_375, %c0_376], %741 {strides = array<i32>} : memref<8x4x20xf32, #tpu.memory_space<vmem>>, vector<1x4x20xf32>,
    %742 = vector.extract_strided_slice %737 {offsets = [0, 20], sizes = [4, 20], strides = [1, 1]} : vector<4x40xf32> to vector<4x20xf32>
    %c2_377 = arith.constant 2 : index
    %c0_378 = arith.constant 0 : index
    %c0_379 = arith.constant 0 : index
    %743 = vector.load %arg11[%c2_377, %c0_378, %c0_379] : memref<8x4x20xf32, #tpu.memory_space<vmem>>, vector<1x4x20xf32>
    %744 = vector.shape_cast %743 : vector<1x4x20xf32> to vector<4x20xf32>
    %745 = vector.shape_cast %742 : vector<4x20xf32> to vector<1x4x20xf32>
    tpu.vector_store %arg11[%c2_377, %c0_378, %c0_379], %745 {strides = array<i32>} : memref<8x4x20xf32, #tpu.memory_space<vmem>>, vector<1x4x20xf32>,
    %cst_380 = arith.constant dense<0.000000e+00> : vector<4x160xf32>
    %746 = tpu.matmul %737, %557, %cst_380 {dimension_numbers = #tpu.dot_dimension_numbers<[1], [0], [0], [1], [0, 0, 1, 1], [], []>} : vector<4x40xf32>, vector<40x160xf32>, vector<4x160xf32> -> vector<4x160xf32>
    %c6_381 = arith.constant 6 : index
    %c0_382 = arith.constant 0 : index
    %c0_383 = arith.constant 0 : index
    %747 = vector.load %arg8[%c6_381, %c0_382, %c0_383] : memref<8x4x160xf32, #tpu.memory_space<vmem>>, vector<1x4x160xf32>
    %748 = vector.shape_cast %747 : vector<1x4x160xf32> to vector<4x160xf32>
    %749 = arith.addf %746, %748 : vector<4x160xf32>
    %c1_384 = arith.constant 1 : index
    %c0_385 = arith.constant 0 : index
    %c0_386 = arith.constant 0 : index
    %750 = vector.load %arg9[%c1_384, %c0_385, %c0_386] : memref<8x4x160xf32, #tpu.memory_space<vmem>>, vector<1x4x160xf32>
    %751 = vector.shape_cast %750 : vector<1x4x160xf32> to vector<4x160xf32>
    %752 = arith.addf %749, %751 : vector<4x160xf32>
    %753 = vector.extract_strided_slice %752 {offsets = [0, 0], sizes = [4, 120], strides = [1, 1]} : vector<4x160xf32> to vector<4x120xf32>
    %754 = arith.negf %753 : vector<4x120xf32>
    %755 = math.exp %754 : vector<4x120xf32>
    %cst_387 = arith.constant 1.000000e+00 : f32
    %756 = vector.broadcast %cst_387 : f32 to vector<4x120xf32>
    %757 = arith.addf %756, %755 : vector<4x120xf32>
    %758 = arith.divf %756, %757 : vector<4x120xf32>
    %759 = vector.extract_strided_slice %758 {offsets = [0, 0], sizes = [4, 40], strides = [1, 1]} : vector<4x120xf32> to vector<4x40xf32>
    %760 = vector.extract_strided_slice %758 {offsets = [0, 40], sizes = [4, 40], strides = [1, 1]} : vector<4x120xf32> to vector<4x40xf32>
    %761 = vector.extract_strided_slice %758 {offsets = [0, 80], sizes = [4, 40], strides = [1, 1]} : vector<4x120xf32> to vector<4x40xf32>
    %762 = vector.extract_strided_slice %752 {offsets = [0, 120], sizes = [4, 40], strides = [1, 1]} : vector<4x160xf32> to vector<4x40xf32>
    %763 = math.tanh %762 : vector<4x40xf32>
    %764 = arith.mulf %760, %735 : vector<4x40xf32>
    %765 = arith.mulf %759, %763 : vector<4x40xf32>
    %766 = arith.addf %764, %765 : vector<4x40xf32>
    %767 = math.tanh %766 : vector<4x40xf32>
    %768 = arith.mulf %761, %767 : vector<4x40xf32>
    %769 = vector.extract_strided_slice %768 {offsets = [0, 0], sizes = [4, 20], strides = [1, 1]} : vector<4x40xf32> to vector<4x20xf32>
    %c6_388 = arith.constant 6 : index
    %c0_389 = arith.constant 0 : index
    %c0_390 = arith.constant 0 : index
    %770 = vector.load %arg10[%c6_388, %c0_389, %c0_390] : memref<8x4x20xf32, #tpu.memory_space<vmem>>, vector<1x4x20xf32>
    %771 = vector.shape_cast %770 : vector<1x4x20xf32> to vector<4x20xf32>
    %772 = vector.shape_cast %769 : vector<4x20xf32> to vector<1x4x20xf32>
    tpu.vector_store %arg10[%c6_388, %c0_389, %c0_390], %772 {strides = array<i32>} : memref<8x4x20xf32, #tpu.memory_space<vmem>>, vector<1x4x20xf32>,
    %773 = vector.extract_strided_slice %768 {offsets = [0, 20], sizes = [4, 20], strides = [1, 1]} : vector<4x40xf32> to vector<4x20xf32>
    %c1_391 = arith.constant 1 : index
    %c0_392 = arith.constant 0 : index
    %c0_393 = arith.constant 0 : index
    %774 = vector.load %arg11[%c1_391, %c0_392, %c0_393] : memref<8x4x20xf32, #tpu.memory_space<vmem>>, vector<1x4x20xf32>
    %775 = vector.shape_cast %774 : vector<1x4x20xf32> to vector<4x20xf32>
    %776 = vector.shape_cast %773 : vector<4x20xf32> to vector<1x4x20xf32>
    tpu.vector_store %arg11[%c1_391, %c0_392, %c0_393], %776 {strides = array<i32>} : memref<8x4x20xf32, #tpu.memory_space<vmem>>, vector<1x4x20xf32>,
    %cst_394 = arith.constant dense<0.000000e+00> : vector<4x160xf32>
    %777 = tpu.matmul %768, %557, %cst_394 {dimension_numbers = #tpu.dot_dimension_numbers<[1], [0], [0], [1], [0, 0, 1, 1], [], []>} : vector<4x40xf32>, vector<40x160xf32>, vector<4x160xf32> -> vector<4x160xf32>
    %c7_395 = arith.constant 7 : index
    %c0_396 = arith.constant 0 : index
    %c0_397 = arith.constant 0 : index
    %778 = vector.load %arg8[%c7_395, %c0_396, %c0_397] : memref<8x4x160xf32, #tpu.memory_space<vmem>>, vector<1x4x160xf32>
    %779 = vector.shape_cast %778 : vector<1x4x160xf32> to vector<4x160xf32>
    %780 = arith.addf %777, %779 : vector<4x160xf32>
    %c0_398 = arith.constant 0 : index
    %c0_399 = arith.constant 0 : index
    %c0_400 = arith.constant 0 : index
    %781 = vector.load %arg9[%c0_398, %c0_399, %c0_400] : memref<8x4x160xf32, #tpu.memory_space<vmem>>, vector<1x4x160xf32>
    %782 = vector.shape_cast %781 : vector<1x4x160xf32> to vector<4x160xf32>
    %783 = arith.addf %780, %782 : vector<4x160xf32>
    %784 = vector.extract_strided_slice %783 {offsets = [0, 0], sizes = [4, 120], strides = [1, 1]} : vector<4x160xf32> to vector<4x120xf32>
    %785 = arith.negf %784 : vector<4x120xf32>
    %786 = math.exp %785 : vector<4x120xf32>
    %cst_401 = arith.constant 1.000000e+00 : f32
    %787 = vector.broadcast %cst_401 : f32 to vector<4x120xf32>
    %788 = arith.addf %787, %786 : vector<4x120xf32>
    %789 = arith.divf %787, %788 : vector<4x120xf32>
    %790 = vector.extract_strided_slice %789 {offsets = [0, 0], sizes = [4, 40], strides = [1, 1]} : vector<4x120xf32> to vector<4x40xf32>
    %791 = vector.extract_strided_slice %789 {offsets = [0, 40], sizes = [4, 40], strides = [1, 1]} : vector<4x120xf32> to vector<4x40xf32>
    %792 = vector.extract_strided_slice %789 {offsets = [0, 80], sizes = [4, 40], strides = [1, 1]} : vector<4x120xf32> to vector<4x40xf32>
    %793 = vector.extract_strided_slice %783 {offsets = [0, 120], sizes = [4, 40], strides = [1, 1]} : vector<4x160xf32> to vector<4x40xf32>
    %794 = math.tanh %793 : vector<4x40xf32>
    %795 = arith.mulf %791, %766 : vector<4x40xf32>
    %796 = arith.mulf %790, %794 : vector<4x40xf32>
    %797 = arith.addf %795, %796 : vector<4x40xf32>
    %798 = math.tanh %797 : vector<4x40xf32>
    %799 = arith.mulf %792, %798 : vector<4x40xf32>
    %800 = vector.extract_strided_slice %799 {offsets = [0, 0], sizes = [4, 20], strides = [1, 1]} : vector<4x40xf32> to vector<4x20xf32>
    %c7_402 = arith.constant 7 : index
    %c0_403 = arith.constant 0 : index
    %c0_404 = arith.constant 0 : index
    %801 = vector.load %arg10[%c7_402, %c0_403, %c0_404] : memref<8x4x20xf32, #tpu.memory_space<vmem>>, vector<1x4x20xf32>
    %802 = vector.shape_cast %801 : vector<1x4x20xf32> to vector<4x20xf32>
    %803 = vector.shape_cast %800 : vector<4x20xf32> to vector<1x4x20xf32>
    tpu.vector_store %arg10[%c7_402, %c0_403, %c0_404], %803 {strides = array<i32>} : memref<8x4x20xf32, #tpu.memory_space<vmem>>, vector<1x4x20xf32>,
    %804 = vector.extract_strided_slice %799 {offsets = [0, 20], sizes = [4, 20], strides = [1, 1]} : vector<4x40xf32> to vector<4x20xf32>
    %c0_405 = arith.constant 0 : index
    %c0_406 = arith.constant 0 : index
    %c0_407 = arith.constant 0 : index
    %805 = vector.load %arg11[%c0_405, %c0_406, %c0_407] : memref<8x4x20xf32, #tpu.memory_space<vmem>>, vector<1x4x20xf32>
    %806 = vector.shape_cast %805 : vector<1x4x20xf32> to vector<4x20xf32>
    %807 = vector.shape_cast %804 : vector<4x20xf32> to vector<1x4x20xf32>
    tpu.vector_store %arg11[%c0_405, %c0_406, %c0_407], %807 {strides = array<i32>} : memref<8x4x20xf32, #tpu.memory_space<vmem>>, vector<1x4x20xf32>,
    %c7_408 = arith.constant 7 : index
    %c0_409 = arith.constant 0 : index
    %c0_410 = arith.constant 0 : index
    %808 = vector.load %arg10[%c7_408, %c0_409, %c0_410] : memref<8x4x20xf32, #tpu.memory_space<vmem>>, vector<1x4x20xf32>
    %809 = vector.shape_cast %808 : vector<1x4x20xf32> to vector<4x20xf32>
    %c7_411 = arith.constant 7 : index
    %c0_412 = arith.constant 0 : index
    %c0_413 = arith.constant 0 : index
    %810 = vector.load %arg11[%c7_411, %c0_412, %c0_413] : memref<8x4x20xf32, #tpu.memory_space<vmem>>, vector<1x4x20xf32>
    %811 = vector.shape_cast %810 : vector<1x4x20xf32> to vector<4x20xf32>
    %812 = tpu.concatenate %809, %811 in 1 : vector<4x20xf32>, vector<4x20xf32> -> vector<4x40xf32>
    %c0_414 = arith.constant 0 : index
    %c0_415 = arith.constant 0 : index
    %813 = vector.load %arg5[%c0_414, %c0_415] : memref<40x1xf32, #tpu.memory_space<vmem>>, vector<40x1xf32>
    %cst_416 = arith.constant dense<0.000000e+00> : vector<4x1xf32>
    %814 = tpu.matmul %812, %813, %cst_416 {dimension_numbers = #tpu.dot_dimension_numbers<[1], [0], [0], [1], [0, 0, 1, 1], [], []>, precision = #tpu.contract_precision<fp32>} : vector<4x40xf32>, vector<40x1xf32>, vector<4x1xf32> -> vector<4x1xf32>
    %c0_417 = arith.constant 0 : index
    %c0_418 = arith.constant 0 : index
    %815 = vector.load %arg6[%c0_417, %c0_418] : memref<1x1xf32, #tpu.memory_space<vmem>>, vector<1x1xf32>
    %816 = vector.broadcast %815 : vector<1x1xf32> to vector<4x1xf32>
    %817 = arith.addf %814, %816 : vector<4x1xf32>
    %818 = arith.negf %817 : vector<4x1xf32>
    %819 = math.exp %818 : vector<4x1xf32>
    %cst_419 = arith.constant 1.000000e+00 : f32
    %820 = vector.broadcast %cst_419 : f32 to vector<4x1xf32>
    %821 = arith.addf %820, %819 : vector<4x1xf32>
    %822 = arith.divf %820, %821 : vector<4x1xf32>
    %c0_420 = arith.constant 0 : index
    %c0_421 = arith.constant 0 : index
    %823 = vector.load %arg7[%c0_420, %c0_421] : memref<4x1xf32, #tpu.memory_space<vmem>>, vector<4x1xf32>
    tpu.vector_store %arg7[%c0_420, %c0_421], %822 {strides = array<i32>} : memref<4x1xf32, #tpu.memory_space<vmem>>, vector<4x1xf32>,
    return
  }
}

</mosaic_0001>

<bundles_post_ra>
// kernel: tpu_custom_call.1
= control target key start
LH: loop header
LB: loop body
LE: loop exit
PB: predicated region body
PF: predicated region fallthrough
CT: control target
= control target key end

     0   :  { %s11816_s0 = inlined_call_operand.vmem [shape: f32[8,4,40], index: 0, kind: input, shape index: {}]   ;;  %s11817_s1 = inlined_call_operand.hbm [shape: f32[3,40,160], index: 1, kind: input, shape index: {}]   ;;  %s11818_s2 = inlined_call_operand.hbm [shape: f32[3,40,160], index: 2, kind: input, shape index: {}]   ;;  %s11819_s3 = inlined_call_operand.hbm [shape: f32[3,40,160], index: 3, kind: input, shape index: {}]   ;;  %s11820_s4 = inlined_call_operand.vmem [shape: f32[3,1,160], index: 4, kind: input, shape index: {}]   ;;  %s11821_s5 = inlined_call_operand.vmem [shape: f32[40,1], index: 5, kind: input, shape index: {}]   ;;  %s11822_s6 = inlined_call_operand.<no memory space> [shape: f32[1,1], index: 6, kind: input, shape index: {}]   ;;  %s11823_s7 = inlined_call_operand.vmem [shape: f32[4,1], index: 7, kind: output, shape index: {}]  }
   0x1   :  { %v12_v0 = vstv %s11822_s6 }
   0x2   :  { %13 = vst [vmem:[#allocation6] sm:$0x1] %v12_v0 }
   0x3   :  { %14 = vsyncpa [#allocation8], 0 }
   0x4   :  { %15 = vsyncpa [#allocation10], 0  ;;  %s9674_s26 = smov [#allocation9]   ;;  %s9675_s28 = smov [#allocation7]  }
   0x5   :  { %s35_s27 = sshll.u32 %s9674_s26, 4  ;;  %s23_s29 = sshll.u32 %s9675_s28, 4  ;;  %s36_s27 = int_to_ptr.vmem [resolvable:$true] %s35_s27  ;;  %s9730_s29 = int_to_ptr.vmem [resolvable:$true] %s23_s29 }
   0x6   :  { %s9604_s9 = scalar_lea.hbm %s11818_s2, 3840 }
   0x7   :  { %p9605_p0 = scmp.ne.s32.totalorder %s11818_s2, %s9604_s9  ;;  %p9608_p1 = scmp.lt.u32.totalorder %s9604_s9, %s11818_s2 }
   0x9   :  { %p9610_p2 = pnand %p9608_p1, %p9605_p0 }
   0xb   :  { %9613 = shalt.err (!%p9610_p2)
}
   0xc   :  { %s9614_s13 = scalar_lea.vmem %s36_s27, 3840  ;;  %p9619_p4 = scmp.lt.s32.totalorder %s36_s27, %s36_s27 }
   0xd   :  { %p9615_p3 = scmp.ne.s32.totalorder %s36_s27, %s9614_s13  ;;  %p9620_p5 = scmp.lt.s32.totalorder %s9614_s13, %s9614_s13 }
   0xf   :  { %p9621_p6 = por %p9620_p5, %p9619_p4 }
  0x11   :  { %p9622_p7 = pnand %p9621_p6, %p9615_p3 }
  0x13   :  { %9625 = shalt.err (!%p9622_p7)
}
  0x14   :  { %s9676_s14 = smov 256   ;;  %s9677_s15 = smov 16  }
  0x15   :  { %41 = dma.hbm_to_vmem [thread:$0]  %s11818_s2, 3840, %s36_s27, [#allocation10], %s9676_s14, %s9676_s14, %s9677_s15  }
  0x16   :  { %s9626_s20 = scalar_lea.hbm %s11817_s1, 3840 }
  0x17   :  { %p9627_p8 = scmp.ne.s32.totalorder %s11817_s1, %s9626_s20  ;;  %p9630_p9 = scmp.lt.u32.totalorder %s9626_s20, %s11817_s1 }
  0x19   :  { %p9632_p10 = pnand %p9630_p9, %p9627_p8 }
  0x1b   :  { %9635 = shalt.err (!%p9632_p10)
}
  0x1c   :  { %s9636_s25 = scalar_lea.vmem %s9730_s29, 3840  ;;  %p9641_p12 = scmp.lt.s32.totalorder %s9730_s29, %s9730_s29 }
  0x1d   :  { %p9637_p11 = scmp.ne.s32.totalorder %s9730_s29, %s9636_s25  ;;  %p9642_p13 = scmp.lt.s32.totalorder %s9636_s25, %s9636_s25 }
  0x1f   :  { %p9643_p0 = por %p9642_p13, %p9641_p12 }
  0x21   :  { %p9644_p1 = pnand %p9643_p0, %p9637_p11 }
  0x23   :  { %9647 = shalt.err (!%p9644_p1)
}
  0x24   :  { %29 = dma.hbm_to_vmem [thread:$0]  %s11817_s1, 3840, %s9730_s29, [#allocation8], %s9676_s14, %s9676_s14, %s9677_s15  }
  0x25   :  { %s9678_s27 = smov [#allocation11]   ;;  %s9648_s9 = scalar_lea.hbm %s11819_s3, 3840 }
  0x26   :  { %s47_s28 = sshll.u32 %s9678_s27, 4  ;;  %p9649_p2 = scmp.ne.s32.totalorder %s11819_s3, %s9648_s9  ;;  %s48_s28 = int_to_ptr.vmem [resolvable:$true] %s47_s28 }
  0x27   :  { %p9652_p3 = scmp.lt.u32.totalorder %s9648_s9, %s11819_s3 }
  0x29   :  { %p9654_p4 = pnand %p9652_p3, %p9649_p2 }
  0x2b   :  { %9657 = shalt.err (!%p9654_p4)
}
  0x2c   :  { %s9658_s13 = scalar_lea.vmem %s48_s28, 3840  ;;  %p9663_p6 = scmp.lt.s32.totalorder %s48_s28, %s48_s28 }
  0x2d   :  { %p9659_p5 = scmp.ne.s32.totalorder %s48_s28, %s9658_s13  ;;  %p9664_p7 = scmp.lt.s32.totalorder %s9658_s13, %s9658_s13 }
  0x2f   :  { %p9665_p8 = por %p9664_p7, %p9663_p6 }
  0x31   :  { %p9666_p9 = pnand %p9665_p8, %p9659_p5 }
  0x33   :  { %9669 = shalt.err (!%p9666_p9)
}
  0x34   :  { %53 = dma.hbm_to_vmem [thread:$0]  %s11819_s3, 3840, %s48_s28, [#allocation10], %s9676_s14, %s9676_s14, %s9677_s15  }
  0x35   :  { %9670 = dma.done.wait [#allocation8], 3840  }
  0x36   :  { %9671 = vsyncadd [#allocation8], 4294963456 }
  0x37   :  { %9672 = dma.done.wait [#allocation10], 7680  }
  0x38   :  { %9673 = vsyncadd [#allocation10], 4294959616  ;;  %v11825_v1 = vmov 0.0   ;;  %v78_v2 = vld [vmem:[#allocation7 + $0x8] sm:$0xff]  ;;  %v80_v3 = vld [vmem:[#allocation7 + $0x18] sm:$0xff]  ;;  %vm111_vm0 = vcmask 326656  }
  0x39   :  { %194 = vmatprep.mubr.f32.mxu1 %v11825_v1  ;;  %466 = vmatprep.mubr.f32.mxu0 %v11825_v1  ;;  %v77_v4 = vld [vmem:[#allocation7] sm:$0xff]  ;;  %v120_v5 = vand.u32 4294901760, %v78_v2  ;;  %v124_v6 = vand.u32 4294901760, %v80_v3  ;;  %v79_v7 = vld [vmem:[#allocation7 + $0x10] sm:$0xff]  ;;  %v82_v9 = vld [vmem:[#allocation7 + $0x28] sm:$0xff]  ;;  %vm1586_vm1 = vcmask 1043456  }
  0x3a   :  { %v122_v8 = vand.u32 4294901760, %v77_v4  ;;  %v84_v10 = vld [vmem:[#allocation7 + $0x38] sm:$0xff]  ;;  %v126_v11 = vand.u32 4294901760, %v79_v7  ;;  %v128_v12 = vand.u32 4294901760, %v82_v9  ;;  %v81_v14 = vld [vmem:[#allocation7 + $0x20] sm:$0xff]  ;;  %v83_v15 = vld [vmem:[#allocation7 + $0x30] sm:$0xff] }
  0x3b   :  { %v132_v13 = vand.u32 4294901760, %v84_v10  ;;  %v86_v16 = vld [vmem:[#allocation7 + $0x48] sm:$0xff]  ;;  %v9784_v17 = vpack.c.bf16 %v124_v6, %v120_v5  ;;  %v9786_v18 = vsub.f32 %v78_v2, %v120_v5  ;;  %v9788_v19 = vsub.f32 %v80_v3, %v124_v6  ;;  %v85_v21 = vld [vmem:[#allocation7 + $0x40] sm:$0xff]  ;;  %v9311_v6 = vld [vmem:[%s11816_s0 + $0x18] sm:$0xff]   ;;  %s9680_s22 = smov 8   ;;  %s9681_s23 = smov 40  }
  0x3c   :  { %v9790_v20 = vsub.f32 %v77_v4, %v122_v8  ;;  %v9792_v22 = vpack.c.bf16 %v126_v11, %v122_v8  ;;  %v9794_v23 = vsub.f32 %v79_v7, %v126_v11  ;;  %v9798_v25 = vsub.f32 %v82_v9, %v128_v12  ;;  %v9308_v26 = vld [vmem:[%s11816_s0] sm:$0xff]   ;;  %v9309_v35 = vld [vmem:[%s11816_s0 + $0x8] sm:$0xff]   ;;  %v9310_v56 = vld [vmem:[%s11816_s0 + $0x10] sm:$0xff]   ;;  %s9682_s24 = smov 48   ;;  %s9683_s25 = smov 28  }
  0x3d   :  { %v9796_v24 = vpack.c.bf16 %v132_v13, %v128_v12  ;;  %8505 = vmatprep.subr.bf16.mxu1 %v9784_v17  ;;  %v8520_v27 = vpack.c.bf16 %v9788_v19, %v9786_v18  ;;  %v9807_v29 = vsub.f32 %v84_v10, %v132_v13  ;;  %v130_v30 = vand.u32 4294901760, %v81_v14  ;;  %s9684_s2 = smov 20  }
  0x3e   :  { %v247_v28 = vand.u32 4294901760, %v9790_v20  ;;  %8507 = vmatpush1.bf16.msra.mxu1 %v9792_v22  ;;  %v259_v31 = vand.u32 4294901760, %v9794_v23  ;;  %v8522_v32 = vpack.c.bf16 %v9794_v23, %v9790_v20  ;;  %v134_v33 = vand.u32 4294901760, %v83_v15 }
  0x3f   :  { %v9813_v34 = vand.u32 4294901760, %v86_v16  ;;  %8521 = vmatprep.subr.bf16.mxu0 %v8520_v27  ;;  %8509 = vmatprep.subr.bf16.mxu1 %v9796_v24  ;;  %v9819_v36 = vsub.f32 %v81_v14, %v130_v30  ;;  %v8524_v37 = vpack.c.bf16 %v9807_v29, %v9798_v25  ;;  %v9823_v38 = vand.u32 4294901760, %v85_v21  ;;  %v837_v27 = vld [vmem:[#allocation9 + $0x8] sm:$0xff] }
  0x40   :  { %v112_v39 = vsel %vm111_vm0, %v9308_v26, 0  ;;  %8523 = vmatpush1.bf16.msra.mxu0 %v8522_v32  ;;  %v9826_v40 = vpack.c.bf16 %v134_v33, %v130_v30  ;;  %v9828_v41 = vsub.f32 %v83_v15, %v134_v33  ;;  %v241_v43 = vand.u32 4294901760, %v9786_v18 }
  0x41   :  { %v9830_v42 = vand.u32 4294901760, %v112_v39  ;;  %8525 = vmatprep.subr.bf16.mxu0 %v8524_v37  ;;  %v253_v44 = vand.u32 4294901760, %v9788_v19  ;;  %v9835_v45 = vsub.f32 %v86_v16, %v9813_v34  ;;  %v248_v46 = vsub.f32 %v9790_v20, %v247_v28  ;;  %v839_v37 = vld [vmem:[#allocation9 + $0x18] sm:$0xff] }
  0x42   :  { %v260_v47 = vsub.f32 %v9794_v23, %v259_v31  ;;  %8511 = vmatpush1.bf16.msra.mxu1 %v9826_v40  ;;  %v8526_v48 = vpack.c.bf16 %v9828_v41, %v9819_v36  ;;  %v242_v50 = vsub.f32 %v9786_v18, %v241_v43  ;;  %v9853_v51 = vsub.f32 %v85_v21, %v9823_v38 }
  0x43   :  { %v9847_v49 = vsub.f32 %v112_v39, %v9830_v42  ;;  %137 = vmatprep.subr.mxu1 %v9813_v34  ;;  %v254_v52 = vsub.f32 %v9788_v19, %v253_v44  ;;  %v249_v53 = vand.u32 4294901760, %v248_v46  ;;  %v114_v55 = vsel %vm111_vm0, %v9309_v35, 0 }
  0x44   :  { %v261_v54 = vand.u32 4294901760, %v260_v47  ;;  %8527 = vmatpush1.bf16.msra.mxu0 %v8526_v48  ;;  %v243_v58 = vand.u32 4294901760, %v242_v50  ;;  %v11824_v59 = vand.u32 4294901760, %v9853_v51  ;;  %v9867_v60 = vand.u32 4294901760, %v114_v55 }
  0x45   :  { %v9864_v57 = vand.u32 4294901760, %v9847_v49  ;;  %v255_v61 = vand.u32 4294901760, %v254_v52  ;;  %408 = vmatprep.subr.mxu0 %v9835_v45  ;;  %v265_v63 = vand.u32 4294901760, %v9798_v25  ;;  %v277_v0 = vand.u32 4294901760, %v9807_v29 }
  0x46   :  { %v8514_v62 = vpack.c.bf16 %v261_v54, %v249_v53  ;;  %139 = vmatpush1.msra.mxu1 %v9823_v38  ;;  %v9876_v3 = vsub.f32 %v114_v55, %v9867_v60  ;;  %v271_v4 = vand.u32 4294901760, %v9819_v36  ;;  %v283_v5 = vand.u32 4294901760, %v9828_v41 }
  0x47   :  { %v198_v2 = vsub.f32 %v9847_v49, %v9864_v57  ;;  %v8512_v7 = vpack.c.bf16 %v255_v61, %v243_v58  ;;  %v266_v8 = vsub.f32 %v9798_v25, %v265_v63  ;;  %v278_v9 = vsub.f32 %v9807_v29, %v277_v0  ;;  %v844_v25 = vld [vmem:[#allocation9 + $0x40] sm:$0xff] }
  0x48   :  { %v116_v10 = vsel %vm111_vm0, %v9310_v56, 0  ;;  %411 = vmatpush1.msra.mxu0 %v9853_v51  ;;  %v9894_v12 = vand.u32 4294901760, %v9876_v3  ;;  %v272_v13 = vsub.f32 %v9819_v36, %v271_v4  ;;  %v284_v14 = vsub.f32 %v9828_v41, %v283_v5 }
  0x49   :  { %v9890_v11 = vand.u32 4294901760, %v198_v2  ;;  %8513 = vmatprep.subr.bf16.mxu1 %v8512_v7  ;;  %469 = vmatmul.mubr.f32.vlgmr.msra.gmra.mrb[0].mxu0 %v9847_v49  ;;  %v267_v15 = vand.u32 4294901760, %v266_v8  ;;  %v279_v16 = vand.u32 4294901760, %v278_v9  ;;  %v9903_v21 = vand.u32 4294901760, %v116_v10  ;;  %v836_v8 = vld [vmem:[#allocation9] sm:$0xff]  ;;  %v838_v9 = vld [vmem:[#allocation9 + $0x10] sm:$0xff] }
  0x4a   :  { %v289_v26 = vand.u32 4294901760, %v9835_v45  ;;  %v209_v30 = vsub.f32 %v9876_v3, %v9894_v12  ;;  %474 = vmatprep.mubr.f32.mxu0 %v11825_v1  ;;  %v273_v32 = vand.u32 4294901760, %v272_v13  ;;  %v285_v33 = vand.u32 4294901760, %v284_v14  ;;  %8529 = vmatprep.subr.bf16.mxu0 %v9784_v17 }
  0x4b   :  { %200 = vmatmul.mubr.f32.vlgmr.msra.gmra.mrb[0].mxu1 %v9890_v11  ;;  %v118_v35 = vsel %vm111_vm0, %v9311_v6, 0  ;;  %v8516_v39 = vpack.c.bf16 %v279_v16, %v267_v15  ;;  %v9913_v46 = vsub.f32 %v116_v10, %v9903_v21  ;;  %v296_v53 = vsub.f32 %v9853_v51, %v11824_v59  ;;  %8531 = vmatpush1.bf16.msra.mxu0 %v9792_v22  ;;  %v841_v16 = vld [vmem:[#allocation9 + $0x28] sm:$0xff] }
  0x4c   :  { %8515 = vmatpush1.bf16.msra.mxu1 %v8514_v62  ;;  %205 = vmatprep.mubr.f32.mxu1 %v11825_v1  ;;  %v290_v47 = vsub.f32 %v9835_v45, %v289_v26  ;;  %v9918_v48 = vand.u32 4294901760, %v118_v35  ;;  %v9920_v50 = vand.u32 4294901760, %v209_v30  ;;  %v8518_v52 = vpack.c.bf16 %v285_v33, %v273_v32 }
  0x4d   :  { %v846_v54 = vand.u32 4294901760, %v837_v27  ;;  %8517 = vmatprep.subr.bf16.mxu1 %v8516_v39  ;;  %477 = vmatmul.mubr.f32.gmra.mrb[2].mxu0 %v9876_v3  ;;  %v9928_v55 = vand.u32 4294901760, %v9913_v46  ;;  %v850_v61 = vand.u32 4294901760, %v839_v37  ;;  %v297_v6 = vand.u32 4294901760, %v296_v53  ;;  %v842_v39 = vld [vmem:[#allocation9 + $0x30] sm:$0xff] }
  0x4e   :  { %v291_v56 = vand.u32 4294901760, %v290_v47  ;;  %v9931_v58 = vsub.f32 %v118_v35, %v9918_v48  ;;  %482 = vmatprep.mubr.f32.mxu0 %v11825_v1  ;;  %8533 = vmatprep.subr.bf16.mxu0 %v9796_v24  ;;  %v848_v32 = vand.u32 4294901760, %v836_v8  ;;  %v852_v33 = vand.u32 4294901760, %v838_v9  ;;  %v840_v35 = vld [vmem:[#allocation9 + $0x20] sm:$0xff] }
  0x4f   :  { %211 = vmatmul.mubr.f32.gmra.mrb[2].mxu1 %v9920_v50  ;;  %v220_v62 = vsub.f32 %v9913_v46, %v9928_v55  ;;  %v9942_v7 = vsub.f32 %v837_v27, %v846_v54  ;;  %v9950_v14 = vpack.c.bf16 %v850_v61, %v846_v54  ;;  %v9952_v15 = vsub.f32 %v839_v37, %v850_v61  ;;  %v843_v27 = vld [vmem:[#allocation9 + $0x38] sm:$0xff] }
  0x50   :  { %216 = vmatprep.mubr.f32.mxu1 %v11825_v1  ;;  %8519 = vmatpush1.bf16.msra.mxu1 %v8518_v52  ;;  %v9939_v2 = vand.u32 4294901760, %v9931_v58  ;;  %v854_v37 = vand.u32 4294901760, %v841_v16  ;;  %v858_v47 = vand.u32 4294901760, %v843_v27  ;;  %v8536_v54 = vpack.c.bf16 %v253_v44, %v241_v43  ;;  %v845_v44 = vld [vmem:[#allocation9 + $0x48] sm:$0xff] }
  0x51   :  { %292 = vmatprep.subr.mxu1 %v291_v56  ;;  %v9944_v10 = vand.u32 4294901760, %v220_v62  ;;  %485 = vmatmul.mubr.f32.gmra.mrb[4].mxu0 %v9913_v46  ;;  %v967_v52 = vand.u32 4294901760, %v9942_v7  ;;  %v979_v53 = vand.u32 4294901760, %v9952_v15  ;;  %v9971_v56 = vpack.c.bf16 %v852_v33, %v848_v32 }
  0x52   :  { %v231_v13 = vsub.f32 %v9931_v58, %v9939_v2  ;;  %490 = vmatprep.mubr.f32.mxu0 %v11825_v1  ;;  %8535 = vmatpush1.bf16.msra.mxu0 %v9826_v40  ;;  %v856_v61 = vand.u32 4294901760, %v840_v35  ;;  %v860_v62 = vand.u32 4294901760, %v842_v39  ;;  %v9978_v59 = vsub.f32 %v841_v16, %v854_v37 }
  0x53   :  { %222 = vmatmul.mubr.f32.gmra.mrb[4].mxu1 %v9944_v10  ;;  %516 = vmatprep.subr.mxu0 %v9813_v34  ;;  %v8538_v18 = vpack.c.bf16 %v259_v31, %v247_v28  ;;  %v9985_v19 = vpack.c.bf16 %v858_v47, %v854_v37  ;;  %v9987_v43 = vsub.f32 %v843_v27, %v858_v47  ;;  %v10010_v16 = vand.u32 4294901760, %v845_v44 }
  0x54   :  { %v9956_v30 = vand.u32 4294901760, %v231_v13  ;;  %227 = vmatprep.mubr.f32.mxu1 %v11825_v1  ;;  %298 = vmatpush1.msra.mxu1 %v297_v6  ;;  %v9974_v6 = vsub.f32 %v836_v8, %v848_v32  ;;  %v9976_v13 = vsub.f32 %v838_v9, %v852_v33  ;;  %v968_v8 = vsub.f32 %v9942_v7, %v967_v52 }
  0x55   :  { %8553 = vmatprep.subr.bf16.mxu1 %v9950_v14  ;;  %493 = vmatmul.mubr.f32.gmra.mrb[6].mxu0 %v9931_v58  ;;  %v980_v9 = vsub.f32 %v9952_v15, %v979_v53  ;;  %v8540_v20 = vpack.c.bf16 %v277_v0, %v265_v63  ;;  %v10002_v23 = vpack.c.bf16 %v860_v62, %v856_v61  ;;  %v991_v0 = vand.u32 4294901760, %v9978_v59 }
  0x56   :  { %573 = vmatprep.mubr.f32.mxu0 %v11825_v1  ;;  %518 = vmatpush1.msra.mxu0 %v9823_v38  ;;  %v10004_v28 = vsub.f32 %v840_v35, %v856_v61  ;;  %v10006_v31 = vsub.f32 %v842_v39, %v860_v62  ;;  %v973_v29 = vand.u32 4294901760, %v9974_v6  ;;  %v985_v63 = vand.u32 4294901760, %v9976_v13 }
  0x57   :  { %233 = vmatmul.mubr.f32.gmra.mrb[6].mxu1 %v9956_v30  ;;  %8537 = vmatprep.subr.bf16.mxu0 %v8536_v54  ;;  %v8542_v27 = vpack.c.bf16 %v283_v5, %v271_v4  ;;  %v969_v32 = vand.u32 4294901760, %v968_v8  ;;  %v981_v33 = vand.u32 4294901760, %v980_v9  ;;  %v1003_v35 = vand.u32 4294901760, %v9987_v43 }
  0x58   :  { %353 = vmatprep.mubr.f32.mxu1 %v11825_v1  ;;  %v10024_v39 = vand.u32 4294901760, %v844_v25  ;;  %v997_v37 = vand.u32 4294901760, %v10004_v28  ;;  %v974_v36 = vsub.f32 %v9974_v6, %v973_v29  ;;  %v986_v41 = vsub.f32 %v9976_v13, %v985_v63 }
  0x59   :  { %577 = vmatmul.mubr.f32.vlgmr.msra.gmra.mrb[0].mxu0 %v9864_v57  ;;  %v992_v4 = vsub.f32 %v9978_v59, %v991_v0  ;;  %v1009_v5 = vand.u32 4294901760, %v10006_v31  ;;  %v8560_v47 = vpack.c.bf16 %v981_v33, %v969_v32  ;;  %v1004_v54 = vsub.f32 %v9987_v43, %v1003_v35 }
  0x5a   :  { %582 = vmatprep.mubr.f32.mxu0 %v11825_v1  ;;  %8539 = vmatpush1.bf16.msra.mxu0 %v8538_v18  ;;  %v10044_v61 = vsub.f32 %v845_v44, %v10010_v16  ;;  %v10051_v62 = vsub.f32 %v844_v25, %v10024_v39  ;;  %v975_v18 = vand.u32 4294901760, %v974_v36  ;;  %v987_v8 = vand.u32 4294901760, %v986_v41 }
  0x5b   :  { %355 = vmatmul.mubr.f32.vlgmr.msra.gmra.mrb[0].mxu1 %v9830_v42  ;;  %8541 = vmatprep.subr.bf16.mxu0 %v8540_v20  ;;  %v998_v44 = vsub.f32 %v10004_v28, %v997_v37  ;;  %v1010_v45 = vsub.f32 %v10006_v31, %v1009_v5  ;;  %v993_v9 = vand.u32 4294901760, %v992_v4  ;;  %v1005_v20 = vand.u32 4294901760, %v1004_v54  ;;  %v1632_v54 = vld [vmem:[#allocation11 + $0x18] sm:$0xff] }
  0x5c   :  { %8555 = vmatpush1.bf16.msra.mxu1 %v9971_v56  ;;  %360 = vmatprep.mubr.f32.mxu1 %v11825_v1  ;;  %v1015_v25 = vand.u32 4294901760, %v10044_v61  ;;  %vm1587_vm2 = vcmask 261124   ;;  %vm1739_vm4 = vcmask 64512   ;;  %vm1758_vm5 = vcmask 158720  }
  0x5d   :  { %8557 = vmatprep.subr.bf16.mxu1 %v9985_v19  ;;  %586 = vmatmul.mubr.f32.gmra.mrb[2].mxu0 %v9894_v12  ;;  %v999_v32 = vand.u32 4294901760, %v998_v44  ;;  %v1011_v33 = vand.u32 4294901760, %v1010_v45  ;;  %v8564_v36 = vpack.c.bf16 %v1005_v20, %v993_v9  ;;  %v8574_v9 = vpack.c.bf16 %v10006_v31, %v10004_v28  ;;  %vm10231_vm3 = vmor %vm1587_vm2, %vm1586_vm1 }
  0x5e   :  { %591 = vmatprep.mubr.f32.mxu0 %v11825_v1  ;;  %8543 = vmatpush1.bf16.msra.mxu0 %v8542_v27  ;;  %v8562_v27 = vpack.c.bf16 %v987_v8, %v975_v18  ;;  %v1016_v41 = vsub.f32 %v10044_v61, %v1015_v25  ;;  %v8570_v8 = vpack.c.bf16 %v9976_v13, %v9974_v6  ;;  %vm2686_vm6 = vcmask 162816  }
  0x5f   :  { %362 = vmatmul.mubr.f32.gmra.mrb[2].mxu1 %v9867_v60  ;;  %645 = vmatprep.subr.mxu0 %v289_v26  ;;  %v11852_v26 = vand.u32 4294901760, %v9853_v51  ;;  %v1021_v51 = vand.u32 4294901760, %v10051_v62  ;;  %vm9686_vm7 = vmmov 0   ;;  %vm8333_vm8 = vcmask 3072  }
  0x60   :  { %367 = vmatprep.mubr.f32.mxu1 %v11825_v1  ;;  %8559 = vmatpush1.bf16.msra.mxu1 %v10002_v23 }
  0x61   :  { %863 = vmatprep.subr.mxu1 %v10010_v16  ;;  %595 = vmatmul.mubr.f32.gmra.mrb[4].mxu0 %v9928_v55  ;;  %v1022_v4 = vsub.f32 %v10051_v62, %v1021_v51 }
  0x62   :  { %600 = vmatprep.mubr.f32.mxu0 %v11825_v1  ;;  %649 = vmatpush1.msra.mxu0 %v11852_v26  ;;  %v1633_v26 = vld [vmem:[#allocation11 + $0x20] sm:$0xff] }
  0x63   :  { %369 = vmatmul.mubr.f32.gmra.mrb[4].mxu1 %v9903_v21  ;;  %8545 = vmatprep.subr.bf16.mxu0 %v9784_v17  ;;  %v8566_v17 = vpack.c.bf16 %v1011_v33, %v999_v32  ;;  %v1023_v18 = vand.u32 4294901760, %v1022_v4  ;;  %v10131_v32 = vld [vmem:[#allocation11 + $0x40] sm:$0xff] }
  0x64   :  { %374 = vmatprep.mubr.f32.mxu1 %v11825_v1  ;;  %865 = vmatpush1.msra.mxu1 %v10024_v39 }
  0x65   :  { %8561 = vmatprep.subr.bf16.mxu1 %v8560_v47  ;;  %604 = vmatmul.mubr.f32.gmra.mrb[6].mxu0 %v9939_v2  ;;  %v1017_v47 = vand.u32 4294901760, %v1016_v41 }
  0x66   :  { %704 = vmatprep.mubr.f32.mxu0 %v11825_v1 }
  0x67   :  { %376 = vmatmul.mubr.f32.gmra.mrb[6].mxu1 %v9918_v48 }
  0x68   :  { %920 = vmatprep.mubr.f32.mxu1 %v11825_v1 }
  0x69   :  { %706 = vmatmul.mubr.f32.vlgmr.msra.gmra.mrb[0].mxu0 %v9830_v42 }
  0x6a   :  { %711 = vmatprep.mubr.f32.mxu0 %v11825_v1  ;;  %8547 = vmatpush1.bf16.msra.mxu0 %v9792_v22  ;;  %v8568_v22 = vpack.c.bf16 %v9952_v15, %v9942_v7 }
  0x6b   :  { %926 = vmatmul.mubr.f32.vlgmr.msra.gmra.mrb[8].mxu1 %v9890_v11  ;;  %8549 = vmatprep.subr.bf16.mxu0 %v9796_v24  ;;  %v1630_v11 = vld [vmem:[#allocation11 + $0x8] sm:$0xff] }
  0x6c   :  { %8563 = vmatpush1.bf16.msra.mxu1 %v8562_v27  ;;  %931 = vmatprep.mubr.f32.mxu1 %v11825_v1  ;;  %v10092_v24 = vpack.c.bf16 %v1632_v54, %v1630_v11  ;;  %v10124_v27 = vld [vmem:[#allocation11 + $0x48] sm:$0xff] }
  0x6d   :  { %8565 = vmatprep.subr.bf16.mxu1 %v8564_v36  ;;  %713 = vmatmul.mubr.f32.gmra.mrb[2].mxu0 %v9867_v60 }
  0x6e   :  { %718 = vmatprep.mubr.f32.mxu0 %v11825_v1  ;;  %8551 = vmatpush1.bf16.msra.mxu0 %v9826_v40  ;;  %v1629_v40 = vld [vmem:[#allocation11] sm:$0xff] }
  0x6f   :  { %937 = vmatmul.mubr.f32.gmra.mrb[10].mxu1 %v9920_v50  ;;  %750 = vmatprep.subr.mxu0 %v9813_v34  ;;  %v1631_v50 = vld [vmem:[#allocation11 + $0x10] sm:$0xff]  ;;  %v1634_v34 = vld [vmem:[#allocation11 + $0x28] sm:$0xff] }
  0x70   :  { %942 = vmatprep.mubr.f32.mxu1 %v11825_v1  ;;  %8567 = vmatpush1.bf16.msra.mxu1 %v8566_v17  ;;  %v10107_v44 = vpack.c.bf16 %v1631_v50, %v1629_v40 }
  0x71   :  { %1018 = vmatprep.subr.mxu1 %v1017_v47  ;;  %720 = vmatmul.mubr.f32.gmra.mrb[4].mxu0 %v9903_v21 }
  0x72   :  { %725 = vmatprep.mubr.f32.mxu0 %v11825_v1  ;;  %752 = vmatpush1.msra.mxu0 %v9823_v38  ;;  %v8572_v38 = vpack.c.bf16 %v9987_v43, %v9978_v59 }
  0x73   :  { %948 = vmatmul.mubr.f32.gmra.mrb[12].mxu1 %v9944_v10  ;;  %8601 = vmatprep.subr.bf16.mxu0 %v10092_v24  ;;  %v1636_v10 = vld [vmem:[#allocation11 + $0x38] sm:$0xff] }
  0x74   :  { %953 = vmatprep.mubr.f32.mxu1 %v11825_v1  ;;  %1024 = vmatpush1.msra.mxu1 %v1023_v18  ;;  %v10110_v45 = vpack.c.bf16 %v1636_v10, %v1634_v34 }
  0x75   :  { %8569 = vmatprep.subr.bf16.mxu1 %v8568_v22  ;;  %727 = vmatmul.mubr.f32.gmra.mrb[6].mxu0 %v9918_v48 }
  0x76   :  { %807 = vmatprep.mubr.f32.mxu0 %v11825_v1 }
  0x77   :  { %959 = vmatmul.mubr.f32.gmra.mrb[14].mxu1 %v9956_v30  ;;  %v1635_v30 = vld [vmem:[#allocation11 + $0x30] sm:$0xff] }
  0x78   :  { %1079 = vmatprep.mubr.f32.mxu1 %v11825_v1  ;;  %v10118_v20 = vpack.c.bf16 %v1635_v30, %v1633_v26 }
  0x79   :  { %809 = vmatmul.mubr.f32.vlgmr.msra.gmra.mrb[0].mxu0 %v9830_v42 }
  0x7a   :  { %814 = vmatprep.mubr.f32.mxu0 %v11825_v1  ;;  %8603 = vmatpush1.bf16.msra.mxu0 %v10107_v44 }
  0x7b   :  { %1081 = vmatmul.mubr.f32.vlgmr.msra.gmra.mrb[8].mxu1 %v9830_v42  ;;  %8605 = vmatprep.subr.bf16.mxu0 %v10110_v45 }
  0x7c   :  { %8571 = vmatpush1.bf16.msra.mxu1 %v8570_v8  ;;  %1086 = vmatprep.mubr.f32.mxu1 %v11825_v1 }
  0x7d   :  { %8573 = vmatprep.subr.bf16.mxu1 %v8572_v38  ;;  %816 = vmatmul.mubr.f32.gmra.mrb[2].mxu0 %v9867_v60 }
  0x7e   :  { %821 = vmatprep.mubr.f32.mxu0 %v11825_v1  ;;  %8607 = vmatpush1.bf16.msra.mxu0 %v10118_v20 }
  0x7f   :  { %1088 = vmatmul.mubr.f32.gmra.mrb[10].mxu1 %v9867_v60  ;;  %1654 = vmatprep.subr.mxu0 %v10124_v27 }
  0x80   :  { %1093 = vmatprep.mubr.f32.mxu1 %v11825_v1  ;;  %8575 = vmatpush1.bf16.msra.mxu1 %v8574_v9 }
  0x81   :  { %1134 = vmatprep.subr.mxu1 %v10044_v61  ;;  %823 = vmatmul.mubr.f32.gmra.mrb[4].mxu0 %v9903_v21 }
  0x82   :  { %828 = vmatprep.mubr.f32.mxu0 %v11825_v1  ;;  %1655 = vmatpush1.msra.mxu0 %v10131_v32 }
  0x83   :  { %1095 = vmatmul.mubr.f32.gmra.mrb[12].mxu1 %v9903_v21  ;;  %8617 = vmatprep.subr.bf16.mxu0 %v10092_v24 }
  0x84   :  { %1100 = vmatprep.mubr.f32.mxu1 %v11825_v1  ;;  %1137 = vmatpush1.msra.mxu1 %v10051_v62 }
  0x85   :  { %8577 = vmatprep.subr.bf16.mxu1 %v9950_v14  ;;  %830 = vmatmul.mubr.f32.gmra.mrb[6].mxu0 %v9918_v48 }
  0x86   :  { %1710 = vmatprep.mubr.f32.mxu0 %v11825_v1 }
  0x87   :  { %1102 = vmatmul.mubr.f32.gmra.mrb[14].mxu1 %v9918_v48 }
  0x88   :  { %1192 = vmatprep.mubr.f32.mxu1 %v11825_v1 }
  0x89   :  { %1711 = vmatmul.mubr.f32.vlgmr.msra.gmra.mrb[8].mxu0 %v11825_v1 }
  0x8a   :  { %8619 = vmatpush1.bf16.msra.mxu0 %v10107_v44  ;;  %1961 = vmatprep.mubr.f32.mxu0 %v11825_v1 }
  0x8b   :  { %1195 = vmatmul.mubr.f32.vlgmr.msra.gmra.mrb[8].mxu1 %v9847_v49  ;;  %8621 = vmatprep.subr.bf16.mxu0 %v10110_v45  ;;  %v8584_v49 = vpack.c.bf16 %v979_v53, %v967_v52  ;;  %v87_v52 = vld [vmem:[%s11820_s4] sm:$0x3] }
  0x8c   :  { %8579 = vmatpush1.bf16.msra.mxu1 %v9971_v56  ;;  %1200 = vmatprep.mubr.f32.mxu1 %v11825_v1 }
  0x8d   :  { %8581 = vmatprep.subr.bf16.mxu1 %v9985_v19 }
  0x8e   :  { %8623 = vmatpush1.bf16.msra.mxu0 %v10118_v20 }
  0x8f   :  { %1203 = vmatmul.mubr.f32.gmra.mrb[10].mxu1 %v9876_v3  ;;  %1905 = vmatprep.subr.mxu0 %v10124_v27  ;;  %v8586_v3 = vpack.c.bf16 %v985_v63, %v973_v29 }
  0x90   :  { %1208 = vmatprep.mubr.f32.mxu1 %v11825_v1  ;;  %8583 = vmatpush1.bf16.msra.mxu1 %v10002_v23 }
  0x91   :  { %1242 = vmatprep.subr.mxu1 %v10010_v16 }
  0x92   :  { %1906 = vmatpush1.msra.mxu0 %v10131_v32 }
  0x93   :  { %1211 = vmatmul.mubr.f32.gmra.mrb[12].mxu1 %v9913_v46  ;;  %8633 = vmatprep.subr.bf16.mxu0 %v10092_v24  ;;  %v8588_v46 = vpack.c.bf16 %v1003_v35, %v991_v0 }
  0x94   :  { %1216 = vmatprep.mubr.f32.mxu1 %v11825_v1  ;;  %1244 = vmatpush1.msra.mxu1 %v10024_v39 }
  0x95   :  { %8585 = vmatprep.subr.bf16.mxu1 %v8584_v49 }
  0x97   :  { %1219 = vmatmul.mubr.f32.gmra.mrb[14].mxu1 %v9931_v58  ;;  %v8590_v58 = vpack.c.bf16 %v1009_v5, %v997_v37 }
  0x98   :  { %1299 = vmatprep.mubr.f32.mxu1 %v11825_v1 }
  0x9b   :  { %1303 = vmatmul.mubr.f32.vlgmr.msra.gmra.mrb[8].mxu1 %v9864_v57 }
  0x9c   :  { %8587 = vmatpush1.bf16.msra.mxu1 %v8586_v3  ;;  %1308 = vmatprep.mubr.f32.mxu1 %v11825_v1 }
  0x9d   :  { %8589 = vmatprep.subr.bf16.mxu1 %v8588_v46 }
  0x9f   :  { %1312 = vmatmul.mubr.f32.gmra.mrb[10].mxu1 %v9894_v12 }
  0xa0   :  { %1317 = vmatprep.mubr.f32.mxu1 %v11825_v1  ;;  %8591 = vmatpush1.bf16.msra.mxu1 %v8590_v58 }
  0xa1   :  { %1371 = vmatprep.subr.mxu1 %v1015_v25 }
  0xa3   :  { %1321 = vmatmul.mubr.f32.gmra.mrb[12].mxu1 %v9928_v55 }
  0xa4   :  { %1326 = vmatprep.mubr.f32.mxu1 %v11825_v1  ;;  %1375 = vmatpush1.msra.mxu1 %v1021_v51 }
  0xa5   :  { %8593 = vmatprep.subr.bf16.mxu1 %v9950_v14  ;;  %v89_v14 = vlaneseq }
  0xa7   :  { %1330 = vmatmul.mubr.f32.gmra.mrb[14].mxu1 %v9939_v2 }
  0xa8   :  { %1430 = vmatprep.mubr.f32.mxu1 %v11825_v1 }
  0xab   :  { %1432 = vmatmul.mubr.f32.vlgmr.msra.gmra.mrb[8].mxu1 %v9830_v42 }
  0xac   :  { %8595 = vmatpush1.bf16.msra.mxu1 %v9971_v56  ;;  %1437 = vmatprep.mubr.f32.mxu1 %v11825_v1 }
  0xad   :  { %8597 = vmatprep.subr.bf16.mxu1 %v9985_v19 }
  0xaf   :  { %1439 = vmatmul.mubr.f32.gmra.mrb[10].mxu1 %v9867_v60 }
  0xb0   :  { %1444 = vmatprep.mubr.f32.mxu1 %v11825_v1  ;;  %8599 = vmatpush1.bf16.msra.mxu1 %v10002_v23 }
  0xb1   :  { %1476 = vmatprep.subr.mxu1 %v10010_v16  ;;  %v11855_v16 = vmov 0 }
  0xb2   :  { %v11856_v16 = vsel %vm10231_vm3, 4294967295, %v11855_v16 }
  0xb3   :  { %1446 = vmatmul.mubr.f32.gmra.mrb[12].mxu1 %v9903_v21  ;;  %11857 = vst [vmem:[#allocation16_spill] sm:$0xff] %v11856_v16 }
  0xb4   :  { %1451 = vmatprep.mubr.f32.mxu1 %v11825_v1  ;;  %1478 = vmatpush1.msra.mxu1 %v10024_v39 }
  0xb5   :  { %8609 = vmatprep.subr.bf16.mxu1 %v10092_v24 }
  0xb7   :  { %1453 = vmatmul.mubr.f32.gmra.mrb[14].mxu1 %v9918_v48 }
  0xb8   :  { %1533 = vmatprep.mubr.f32.mxu1 %v11825_v1 }
  0xbb   :  { %1535 = vmatmul.mubr.f32.vlgmr.msra.gmra.mrb[8].mxu1 %v9830_v42 }
  0xbc   :  { %1540 = vmatprep.mubr.f32.mxu1 %v11825_v1  ;;  %8611 = vmatpush1.bf16.msra.mxu1 %v10107_v44 }
  0xbd   :  { %8613 = vmatprep.subr.bf16.mxu1 %v10110_v45 }
  0xbf   :  { %1542 = vmatmul.mubr.f32.gmra.mrb[10].mxu1 %v9867_v60 }
  0xc0   :  { %1547 = vmatprep.mubr.f32.mxu1 %v11825_v1  ;;  %8615 = vmatpush1.bf16.msra.mxu1 %v10118_v20 }
  0xc1   :  { %1780 = vmatprep.subr.mxu1 %v10124_v27 }
  0xc3   :  { %1549 = vmatmul.mubr.f32.gmra.mrb[12].mxu1 %v9903_v21  ;;  %v90_v21 = vshrl.u32 %v89_v14, 7 }
  0xc4   :  { %1554 = vmatprep.mubr.f32.mxu1 %v11825_v1  ;;  %1781 = vmatpush1.msra.mxu1 %v10131_v32 }
  0xc5   :  { %8625 = vmatprep.subr.bf16.mxu1 %v10092_v24  ;;  %v10222_v15 = vsub.s32 0, %v90_v21  ;;  %v10227_v53 = vsub.s32 1, %v90_v21 }
  0xc7   :  { %1556 = vmatmul.mubr.f32.gmra.mrb[14].mxu1 %v9918_v48  ;;  %11853 = vst [vmem:[#allocation14_spill] sm:$0xff] %v10222_v15  ;;  %11854 = vst [vmem:[#allocation15_spill] sm:$0xff] %v10227_v53  ;;  %v92_v48 = vrot.slane %v87_v52, %v10222_v15  ;;  %v96_v56 = vrot.slane %v87_v52, %v10227_v53 }
  0xc8   :  { %1836 = vmatprep.mubr.f32.mxu1 %v11825_v1 }
 0x12e   :  { %v356_v42 = vpop.f32.mrb[0].mxu1 }
 0x12f   :  { %v358_v57 = vpop.f32.mrb[1].mxu1  ;;  %v9020_v6 = vadd.f32 %v356_v42, %v92_v48 }
 0x130   :  { %v9022_v13 = vadd.f32 %v358_v57, %v96_v56 }
 0x132   :  { %v363_v59 = vpop.f32.mrb[2].mxu1 }
 0x133   :  { %v365_v60 = vpop.f32.mrb[3].mxu1  ;;  %v9024_v31 = vadd.f32 %v363_v59, %v92_v48 }
 0x134   :  { %v9026_v29 = vadd.f32 %v365_v60, %v96_v56 }
 0x136   :  { %v370_v12 = vpop.f32.mrb[4].mxu1 }
 0x137   :  { %v372_v55 = vpop.f32.mrb[5].mxu1  ;;  %v9028_v61 = vadd.f32 %v370_v12, %v92_v48 }
 0x138   :  { %v9030_v62 = vadd.f32 %v372_v55, %v96_v56 }
 0x13a   :  { %v377_v2 = vpop.f32.mrb[6].mxu1 }
 0x13b   :  { %v379_v7 = vpop.f32.mrb[7].mxu1  ;;  %v9032_v4 = vadd.f32 %v377_v2, %v92_v48 }
 0x13c   :  { %v9034_v47 = vadd.f32 %v379_v7, %v96_v56 }
 0x14c   :  { %v810_v19 = vpop.f32.mrb[0].mxu0 }
 0x14d   :  { %v9021_v43 = vadd.f32 %v9020_v6, %v810_v19  ;;  %v812_v23 = vpop.f32.mrb[1].mxu0 }
 0x14e   :  { %v9023_v28 = vadd.f32 %v9022_v13, %v812_v23 }
 0x150   :  { %v1570_v63 = vcombine.low %v9021_v43, %v9023_v28  ;;  %v1571_v0 = vcombine.high %v9021_v43, %v9023_v28  ;;  %v817_v35 = vpop.f32.mrb[2].mxu0 }
 0x151   :  { %v9025_v39 = vadd.f32 %v9024_v31, %v817_v35  ;;  %v819_v37 = vpop.f32.mrb[3].mxu0 }
 0x152   :  { %1589 = vst.msk [vmem:[#allocation2] sm:$0xff] %vm10231_vm3, %v1570_v63  ;;  %1590 = vst.msk [vmem:[#allocation2 + $0x8] sm:$0xff] %vm10231_vm3, %v1571_v0  ;;  %v9027_v5 = vadd.f32 %v9026_v29, %v819_v37 }
 0x154   :  { %v1572_v25 = vcombine.low %v9025_v39, %v9027_v5  ;;  %v1573_v33 = vcombine.high %v9025_v39, %v9027_v5  ;;  %v824_v51 = vpop.f32.mrb[4].mxu0 }
 0x155   :  { %v9029_v36 = vadd.f32 %v9028_v61, %v824_v51  ;;  %v826_v41 = vpop.f32.mrb[5].mxu0 }
 0x156   :  { %1591 = vst.msk [vmem:[#allocation2 + $0x10] sm:$0xff] %vm10231_vm3, %v1572_v25  ;;  %1592 = vst.msk [vmem:[#allocation2 + $0x18] sm:$0xff] %vm10231_vm3, %v1573_v33  ;;  %v9031_v17 = vadd.f32 %v9030_v62, %v826_v41 }
 0x158   :  { %v1574_v11 = vcombine.low %v9029_v36, %v9031_v17  ;;  %v1575_v54 = vcombine.high %v9029_v36, %v9031_v17  ;;  %v831_v18 = vpop.f32.mrb[6].mxu0 }
 0x159   :  { %v9033_v22 = vadd.f32 %v9032_v4, %v831_v18  ;;  %v833_v40 = vpop.f32.mrb[7].mxu0  ;;  %v1639_v21 = vld [vmem:[#allocation2] sm:$0xff]  ;;  %v1766_v17 = vld [vmem:[#allocation2 + $0x8] sm:$0xff] }
 0x15a   :  { %1593 = vst.msk [vmem:[#allocation2 + $0x20] sm:$0xff] %vm10231_vm3, %v1574_v11  ;;  %1594 = vst.msk [vmem:[#allocation2 + $0x28] sm:$0xff] %vm10231_vm3, %v1575_v54  ;;  %v9035_v50 = vadd.f32 %v9034_v47, %v833_v40  ;;  %v1641_v48 = vcombine.high %v1639_v21, %v1639_v21  ;;  %v1768_v11 = vcombine.high %v1766_v17, %v1766_v17 }
 0x15c   :  { %v1576_v34 = vcombine.low %v9033_v22, %v9035_v50  ;;  %v1577_v10 = vcombine.high %v9033_v22, %v9035_v50  ;;  %v1712_v8 = vpop.f32.mrb[8].mxu0 }
 0x15d   :  { %v1714_v38 = vpop.f32.mrb[9].mxu0  ;;  %v1713_v52 = vadd.f32 %v1712_v8, %v1639_v21 }
 0x15e   :  { %1595 = vst.msk [vmem:[#allocation2 + $0x30] sm:$0xff] %vm10231_vm3, %v1576_v34  ;;  %1596 = vst.msk [vmem:[#allocation2 + $0x38] sm:$0xff] %vm10231_vm3, %v1577_v10  ;;  %v1715_v6 = vadd.f32 %v1714_v38, %v1641_v48 }
 0x18e   :  { %v1536_v26 = vpop.f32.mrb[8].mxu1 }
 0x18f   :  { %v1538_v30 = vpop.f32.mrb[9].mxu1 }
 0x190   :  { %v1605_v9 = vcombine.low %v1536_v26, %v1538_v30  ;;  %v1606_v49 = vcombine.high %v1536_v26, %v1538_v30 }
 0x192   :  { %1621 = vst.msk [vmem:[#allocation3] sm:$0xff] %vm10231_vm3, %v1605_v9  ;;  %1622 = vst.msk [vmem:[#allocation3 + $0x8] sm:$0xff] %vm10231_vm3, %v1606_v49  ;;  %v1543_v3 = vpop.f32.mrb[10].mxu1 }
 0x193   :  { %v1545_v46 = vpop.f32.mrb[11].mxu1 }
 0x194   :  { %v1607_v58 = vcombine.low %v1543_v3, %v1545_v46  ;;  %v1608_v42 = vcombine.high %v1543_v3, %v1545_v46 }
 0x196   :  { %1623 = vst.msk [vmem:[#allocation3 + $0x10] sm:$0xff] %vm10231_vm3, %v1607_v58  ;;  %1624 = vst.msk [vmem:[#allocation3 + $0x18] sm:$0xff] %vm10231_vm3, %v1608_v42  ;;  %v1550_v57 = vpop.f32.mrb[12].mxu1 }
 0x197   :  { %v1552_v59 = vpop.f32.mrb[13].mxu1 }
 0x198   :  { %v1609_v60 = vcombine.low %v1550_v57, %v1552_v59  ;;  %v1610_v12 = vcombine.high %v1550_v57, %v1552_v59 }
 0x19a   :  { %1625 = vst.msk [vmem:[#allocation3 + $0x20] sm:$0xff] %vm10231_vm3, %v1609_v60  ;;  %1626 = vst.msk [vmem:[#allocation3 + $0x28] sm:$0xff] %vm10231_vm3, %v1610_v12  ;;  %v1557_v55 = vpop.f32.mrb[14].mxu1 }
 0x19b   :  { %v1559_v2 = vpop.f32.mrb[15].mxu1 }
 0x19c   :  { %v1611_v7 = vcombine.low %v1557_v55, %v1559_v2  ;;  %v1612_v14 = vcombine.high %v1557_v55, %v1559_v2 }
 0x19e   :  { %1627 = vst.msk [vmem:[#allocation3 + $0x30] sm:$0xff] %vm10231_vm3, %v1611_v7  ;;  %1628 = vst.msk [vmem:[#allocation3 + $0x38] sm:$0xff] %vm10231_vm3, %v1612_v14  ;;  %v1891_v7 = vld [vmem:[#allocation2 + $0x10] sm:$0xff] }
 0x1a1   :  { %v1969_v14 = vld [vmem:[#allocation3 + $0x28] sm:$0xff] }
 0x1a5   :  { %v1718_v56 = vld [vmem:[#allocation3 + $0x38] sm:$0xff]  ;;  %v1844_v4 = vld [vmem:[#allocation3 + $0x30] sm:$0xff] }
 0x1a6   :  { %v1722_v13 = vadd.f32 %v1718_v56, %v1713_v52  ;;  %v1720_v19 = vcombine.high %v1718_v56, %v1718_v56  ;;  %v1846_v40 = vcombine.high %v1844_v4, %v1844_v4  ;;  %v1893_v52 = vcombine.high %v1891_v7, %v1891_v7 }
 0x1a8   :  { %9360 = vtanh.f32 %v1722_v13  ;;  %v1723_v43 = vadd.f32 %v1720_v19, %v1715_v6  ;;  %v8341_v31 = vmul.f32 -1.442695, %v1722_v13  ;;  %v1971_v13 = vcombine.high %v1969_v14, %v1969_v14 }
 0x1aa   :  { %9362 = vtanh.f32 %v1723_v43 }
 0x1ab   :  { %9364 = vpow2.f32 %v8341_v31 }
 0x1b2   :  { %v9361_v23 = vpop.eup %9360 }
 0x1b3   :  { %1735 = vrot.lane.b32.xlu0 %v9361_v23, %s9680_s22 }
 0x1b4   :  { %v9363_v28 = vpop.eup %9362 }
 0x1b5   :  { %v9365_v29 = vpop.eup %9364 }
 0x1b6   :  { %v1727_v63 = vadd.f32 1.0, %v9365_v29 }
 0x1b7   :  { %1737 = vrot.lane.b32.xlu0 %v9363_v28, %s9680_s22 }
 0x1b8   :  { %9366 = vrcp.f32 %v1727_v63 }
 0x1c2   :  { %v9367_v39 = vpop.eup %9366 }
 0x1c3   :  { %v1732_v61 = vmul.f32 0.0, %v9367_v39 }
 0x225   :  { %v1736_v0 = vpop.permute.xlu0 %1735 }
 0x229   :  { %v1738_v35 = vpop.permute.xlu0 %1737 }
 0x22a   :  { %v1740_v37 = vsel %vm1739_vm4, %v1736_v0, %v1738_v35 }
 0x22b   :  { %v1742_v5 = vmul.f32 %v9367_v39, %v1740_v37 }
 0x22d   :  { %1744 = vrot.lane.b32.xlu1 %v1742_v5, %s9681_s23 }
 0x29f   :  { %v1745_v62 = vpop.permute.xlu1 %1744 }
 0x2a0   :  { %v1747_v25 = vadd.f32 %v1745_v62, %v1732_v61 }
 0x2a2   :  { %9368 = vtanh.f32 %v1747_v25 }
 0x2ac   :  { %v9369_v33 = vpop.eup %9368 }
 0x2ad   :  { %1750 = vrot.lane.b32.xlu1 %v9369_v33, %s9681_s23 }
 0x31f   :  { %v1751_v51 = vpop.permute.xlu1 %1750 }
 0x320   :  { %v10272_v36 = vmul.f32 %v9367_v39, %v1751_v51 }
 0x322   :  { %1755 = vrot.lane.b32.xlu0 %v10272_v36, %s9682_s24 }
 0x394   :  { %v1756_v41 = vpop.permute.xlu0 %1755 }
 0x395   :  { %1759 = vst.msk [vmem:[#allocation4] sm:$0xf] %vm1758_vm5, %v1756_v41  ;;  %8342 = vmatmul.mubr.msk.f32.vlgmr.msra.gmra.mrb[16].mxu1 %vm111_vm0, %v1756_v41 }
 0x396   :  { %8627 = vmatpush1.bf16.msra.mxu1 %v10107_v44  ;;  %2086 = vmatprep.mubr.f32.mxu1 %v11825_v1 }
 0x397   :  { %8629 = vmatprep.subr.bf16.mxu1 %v10110_v45 }
 0x39a   :  { %8631 = vmatpush1.bf16.msra.mxu1 %v10118_v20 }
 0x39b   :  { %2030 = vmatprep.subr.mxu1 %v10124_v27 }
 0x39e   :  { %2031 = vmatpush1.msra.mxu1 %v10131_v32 }
 0x39f   :  { %8641 = vmatprep.subr.bf16.mxu1 %v10092_v24 }
 0x468   :  { %v1838_v47 = vpop.f32.mrb[16].mxu1 }
 0x469   :  { %v1839_v54 = vadd.f32 %v1838_v47, %v1766_v17  ;;  %v1840_v18 = vpop.f32.mrb[17].mxu1  ;;  %v2094_v47 = vld [vmem:[#allocation3 + $0x20] sm:$0xff] }
 0x46a   :  { %v1841_v22 = vadd.f32 %v1840_v18, %v1768_v11 }
 0x46b   :  { %v1848_v50 = vadd.f32 %v1844_v4, %v1839_v54  ;;  %v2016_v4 = vld [vmem:[#allocation2 + $0x18] sm:$0xff] }
 0x46c   :  { %v1849_v34 = vadd.f32 %v1846_v40, %v1841_v22  ;;  %v2018_v54 = vcombine.high %v2016_v4, %v2016_v4 }
 0x46d   :  { %9370 = vtanh.f32 %v1848_v50  ;;  %v8343_v38 = vmul.f32 -1.442695, %v1848_v50  ;;  %v2096_v50 = vcombine.high %v2094_v47, %v2094_v47 }
 0x46e   :  { %9372 = vtanh.f32 %v1849_v34 }
 0x46f   :  { %9374 = vpow2.f32 %v8343_v38 }
 0x477   :  { %v9371_v10 = vpop.eup %9370 }
 0x478   :  { %v9373_v8 = vpop.eup %9372  ;;  %1861 = vrot.lane.b32.xlu1 %v9371_v10, %s9680_s22 }
 0x479   :  { %1863 = vrot.lane.b32.xlu0 %v9373_v8, %s9680_s22  ;;  %v9375_v26 = vpop.eup %9374 }
 0x47a   :  { %v1853_v30 = vadd.f32 1.0, %v9375_v26 }
 0x47c   :  { %9376 = vrcp.f32 %v1853_v30 }
 0x486   :  { %v9377_v3 = vpop.eup %9376 }
 0x487   :  { %v1858_v42 = vmul.f32 %v9377_v3, %v1747_v25 }
 0x4ea   :  { %v1862_v9 = vpop.permute.xlu1 %1861 }
 0x4eb   :  { %v1864_v49 = vpop.permute.xlu0 %1863 }
 0x4ec   :  { %v1865_v46 = vsel %vm1739_vm4, %v1862_v9, %v1864_v49 }
 0x4ed   :  { %v1867_v58 = vmul.f32 %v9377_v3, %v1865_v46 }
 0x4ef   :  { %1869 = vrot.lane.b32.xlu1 %v1867_v58, %s9681_s23 }
 0x561   :  { %v1870_v57 = vpop.permute.xlu1 %1869 }
 0x562   :  { %v1872_v59 = vadd.f32 %v1870_v57, %v1858_v42 }
 0x564   :  { %9378 = vtanh.f32 %v1872_v59 }
 0x56e   :  { %v9379_v60 = vpop.eup %9378 }
 0x56f   :  { %1875 = vrot.lane.b32.xlu0 %v9379_v60, %s9681_s23 }
 0x5e1   :  { %v1876_v12 = vpop.permute.xlu0 %1875 }
 0x5e2   :  { %v10290_v55 = vmul.f32 %v9377_v3, %v1876_v12 }
 0x5e4   :  { %1880 = vrot.lane.b32.xlu1 %v10290_v55, %s9682_s24 }
 0x656   :  { %v1881_v2 = vpop.permute.xlu1 %1880 }
 0x657   :  { %1884 = vst.msk [vmem:[#allocation4 + $0x4] sm:$0xf] %vm1758_vm5, %v1881_v2  ;;  %8344 = vmatmul.mubr.msk.f32.vlgmr.msra.gmra.mrb[10].mxu0 %vm111_vm0, %v1881_v2 }
 0x658   :  { %8635 = vmatpush1.bf16.msra.mxu0 %v10107_v44  ;;  %2211 = vmatprep.mubr.f32.mxu0 %v11825_v1 }
 0x659   :  { %8637 = vmatprep.subr.bf16.mxu0 %v10110_v45 }
 0x65c   :  { %8639 = vmatpush1.bf16.msra.mxu0 %v10118_v20 }
 0x65d   :  { %2155 = vmatprep.subr.mxu0 %v10124_v27 }
 0x660   :  { %2156 = vmatpush1.msra.mxu0 %v10131_v32 }
 0x661   :  { %8649 = vmatprep.subr.bf16.mxu0 %v10092_v24 }
 0x72a   :  { %v1963_v21 = vpop.f32.mrb[10].mxu0 }
 0x72b   :  { %v1964_v48 = vadd.f32 %v1963_v21, %v1891_v7  ;;  %v1965_v56 = vpop.f32.mrb[11].mxu0  ;;  %v2219_v21 = vld [vmem:[#allocation3 + $0x18] sm:$0xff] }
 0x72c   :  { %v1966_v6 = vadd.f32 %v1965_v56, %v1893_v52 }
 0x72d   :  { %v1973_v19 = vadd.f32 %v1969_v14, %v1964_v48  ;;  %v2141_v14 = vld [vmem:[#allocation2 + $0x20] sm:$0xff] }
 0x72e   :  { %v1974_v43 = vadd.f32 %v1971_v13, %v1966_v6  ;;  %v2143_v48 = vcombine.high %v2141_v14, %v2141_v14 }
 0x72f   :  { %9380 = vtanh.f32 %v1973_v19  ;;  %v8345_v31 = vmul.f32 -1.442695, %v1973_v19  ;;  %v2221_v19 = vcombine.high %v2219_v21, %v2219_v21 }
 0x730   :  { %9382 = vtanh.f32 %v1974_v43 }
 0x731   :  { %9384 = vpow2.f32 %v8345_v31 }
 0x739   :  { %v9381_v23 = vpop.eup %9380 }
 0x73a   :  { %v9383_v28 = vpop.eup %9382  ;;  %1986 = vrot.lane.b32.xlu0 %v9381_v23, %s9680_s22 }
 0x73b   :  { %1988 = vrot.lane.b32.xlu1 %v9383_v28, %s9680_s22  ;;  %v9385_v29 = vpop.eup %9384 }
 0x73c   :  { %v1978_v63 = vadd.f32 1.0, %v9385_v29 }
 0x73e   :  { %9386 = vrcp.f32 %v1978_v63 }
 0x748   :  { %v9387_v39 = vpop.eup %9386 }
 0x749   :  { %v1983_v61 = vmul.f32 %v9387_v39, %v1872_v59 }
 0x7ac   :  { %v1987_v0 = vpop.permute.xlu0 %1986 }
 0x7ad   :  { %v1989_v35 = vpop.permute.xlu1 %1988 }
 0x7ae   :  { %v1990_v37 = vsel %vm1739_vm4, %v1987_v0, %v1989_v35 }
 0x7af   :  { %v1992_v5 = vmul.f32 %v9387_v39, %v1990_v37 }
 0x7b1   :  { %1994 = vrot.lane.b32.xlu0 %v1992_v5, %s9681_s23 }
 0x823   :  { %v1995_v62 = vpop.permute.xlu0 %1994 }
 0x824   :  { %v1997_v25 = vadd.f32 %v1995_v62, %v1983_v61 }
 0x826   :  { %9388 = vtanh.f32 %v1997_v25 }
 0x830   :  { %v9389_v33 = vpop.eup %9388 }
 0x831   :  { %2000 = vrot.lane.b32.xlu1 %v9389_v33, %s9681_s23 }
 0x8a3   :  { %v2001_v51 = vpop.permute.xlu1 %2000 }
 0x8a4   :  { %v10308_v41 = vmul.f32 %v9387_v39, %v2001_v51 }
 0x8a6   :  { %2005 = vrot.lane.b32.xlu0 %v10308_v41, %s9682_s24 }
 0x918   :  { %v2006_v17 = vpop.permute.xlu0 %2005 }
 0x919   :  { %2009 = vst.msk [vmem:[#allocation4 + $0x8] sm:$0xf] %vm1758_vm5, %v2006_v17  ;;  %8346 = vmatmul.mubr.msk.f32.vlgmr.msra.gmra.mrb[18].mxu1 %vm111_vm0, %v2006_v17 }
 0x91a   :  { %8643 = vmatpush1.bf16.msra.mxu1 %v10107_v44  ;;  %2336 = vmatprep.mubr.f32.mxu1 %v11825_v1 }
 0x91b   :  { %8645 = vmatprep.subr.bf16.mxu1 %v10110_v45 }
 0x91e   :  { %8647 = vmatpush1.bf16.msra.mxu1 %v10118_v20 }
 0x91f   :  { %2280 = vmatprep.subr.mxu1 %v10124_v27 }
 0x922   :  { %2281 = vmatpush1.msra.mxu1 %v10131_v32 }
 0x923   :  { %8657 = vmatprep.subr.bf16.mxu1 %v10092_v24 }
 0x9ec   :  { %v2088_v11 = vpop.f32.mrb[18].mxu1 }
 0x9ed   :  { %v2089_v18 = vadd.f32 %v2088_v11, %v2016_v4  ;;  %v2090_v22 = vpop.f32.mrb[19].mxu1  ;;  %v2266_v11 = vld [vmem:[#allocation2 + $0x28] sm:$0xff] }
 0x9ee   :  { %v2091_v40 = vadd.f32 %v2090_v22, %v2018_v54  ;;  %v2344_v54 = vld [vmem:[#allocation3 + $0x10] sm:$0xff]  ;;  %v2268_v22 = vcombine.high %v2266_v11, %v2266_v11 }
 0x9ef   :  { %v2098_v34 = vadd.f32 %v2094_v47, %v2089_v18 }
 0x9f0   :  { %v2099_v10 = vadd.f32 %v2096_v50, %v2091_v40 }
 0x9f1   :  { %9390 = vtanh.f32 %v2098_v34  ;;  %v8347_v26 = vmul.f32 -1.442695, %v2098_v34 }
 0x9f2   :  { %9392 = vtanh.f32 %v2099_v10  ;;  %v2346_v10 = vcombine.high %v2344_v54, %v2344_v54 }
 0x9f3   :  { %9394 = vpow2.f32 %v8347_v26 }
 0x9fb   :  { %v9391_v8 = vpop.eup %9390 }
 0x9fc   :  { %v9393_v38 = vpop.eup %9392  ;;  %2111 = vrot.lane.b32.xlu1 %v9391_v8, %s9680_s22 }
 0x9fd   :  { %2113 = vrot.lane.b32.xlu0 %v9393_v38, %s9680_s22  ;;  %v9395_v24 = vpop.eup %9394 }
 0x9fe   :  { %v2103_v30 = vadd.f32 1.0, %v9395_v24 }
 0xa00   :  { %9396 = vrcp.f32 %v2103_v30 }
 0xa0a   :  { %v9397_v3 = vpop.eup %9396 }
 0xa0b   :  { %v2108_v42 = vmul.f32 %v9397_v3, %v1997_v25 }
 0xa6e   :  { %v2112_v9 = vpop.permute.xlu1 %2111 }
 0xa6f   :  { %v2114_v49 = vpop.permute.xlu0 %2113 }
 0xa70   :  { %v2115_v46 = vsel %vm1739_vm4, %v2112_v9, %v2114_v49 }
 0xa71   :  { %v2117_v58 = vmul.f32 %v9397_v3, %v2115_v46 }
 0xa73   :  { %2119 = vrot.lane.b32.xlu1 %v2117_v58, %s9681_s23 }
 0xae5   :  { %v2120_v57 = vpop.permute.xlu1 %2119 }
 0xae6   :  { %v2122_v59 = vadd.f32 %v2120_v57, %v2108_v42 }
 0xae8   :  { %9398 = vtanh.f32 %v2122_v59 }
 0xaf2   :  { %v9399_v60 = vpop.eup %9398 }
 0xaf3   :  { %2125 = vrot.lane.b32.xlu0 %v9399_v60, %s9681_s23 }
 0xb65   :  { %v2126_v12 = vpop.permute.xlu0 %2125 }
 0xb66   :  { %v10326_v2 = vmul.f32 %v9397_v3, %v2126_v12  ;;  %v2391_v12 = vld [vmem:[#allocation2 + $0x30] sm:$0xff] }
 0xb68   :  { %2130 = vrot.lane.b32.xlu1 %v10326_v2, %s9682_s24 }
 0xbda   :  { %v2131_v7 = vpop.permute.xlu1 %2130 }
 0xbdb   :  { %2134 = vst.msk [vmem:[#allocation4 + $0xc] sm:$0xf] %vm1758_vm5, %v2131_v7  ;;  %8348 = vmatmul.mubr.msk.f32.vlgmr.msra.gmra.mrb[12].mxu0 %vm111_vm0, %v2131_v7  ;;  %v2469_v7 = vld [vmem:[#allocation3 + $0x8] sm:$0xff] }
 0xbdc   :  { %8651 = vmatpush1.bf16.msra.mxu0 %v10107_v44  ;;  %2461 = vmatprep.mubr.f32.mxu0 %v11825_v1 }
 0xbdd   :  { %8653 = vmatprep.subr.bf16.mxu0 %v10110_v45 }
 0xbe0   :  { %8655 = vmatpush1.bf16.msra.mxu0 %v10118_v20 }
 0xbe1   :  { %2405 = vmatprep.subr.mxu0 %v10124_v27 }
 0xbe4   :  { %2406 = vmatpush1.msra.mxu0 %v10131_v32 }
 0xcae   :  { %v2213_v52 = vpop.f32.mrb[12].mxu0 }
 0xcaf   :  { %v2214_v56 = vadd.f32 %v2213_v52, %v2141_v14  ;;  %v2215_v6 = vpop.f32.mrb[13].mxu0 }
 0xcb0   :  { %v2216_v13 = vadd.f32 %v2215_v6, %v2143_v48  ;;  %v2471_v6 = vcombine.high %v2469_v7, %v2469_v7 }
 0xcb1   :  { %v2223_v43 = vadd.f32 %v2219_v21, %v2214_v56  ;;  %v2393_v21 = vcombine.high %v2391_v12, %v2391_v12 }
 0xcb2   :  { %v2224_v23 = vadd.f32 %v2221_v19, %v2216_v13 }
 0xcb3   :  { %9400 = vtanh.f32 %v2223_v43  ;;  %v8349_v29 = vmul.f32 -1.442695, %v2223_v43 }
 0xcb4   :  { %9402 = vtanh.f32 %v2224_v23 }
 0xcb5   :  { %9404 = vpow2.f32 %v8349_v29 }
 0xcbd   :  { %v9401_v28 = vpop.eup %9400 }
 0xcbe   :  { %v9403_v31 = vpop.eup %9402  ;;  %2236 = vrot.lane.b32.xlu0 %v9401_v28, %s9680_s22 }
 0xcbf   :  { %2238 = vrot.lane.b32.xlu1 %v9403_v31, %s9680_s22  ;;  %v9405_v63 = vpop.eup %9404 }
 0xcc0   :  { %v2228_v0 = vadd.f32 1.0, %v9405_v63 }
 0xcc2   :  { %9406 = vrcp.f32 %v2228_v0 }
 0xccc   :  { %v9407_v37 = vpop.eup %9406 }
 0xccd   :  { %v2233_v62 = vmul.f32 %v9407_v37, %v2122_v59 }
 0xd30   :  { %v2237_v35 = vpop.permute.xlu0 %2236 }
 0xd31   :  { %v2239_v39 = vpop.permute.xlu1 %2238 }
 0xd32   :  { %v2240_v5 = vsel %vm1739_vm4, %v2237_v35, %v2239_v39 }
 0xd33   :  { %v2242_v61 = vmul.f32 %v9407_v37, %v2240_v5 }
 0xd35   :  { %2244 = vrot.lane.b32.xlu0 %v2242_v61, %s9681_s23 }
 0xda7   :  { %v2245_v25 = vpop.permute.xlu0 %2244 }
 0xda8   :  { %v2247_v33 = vadd.f32 %v2245_v25, %v2233_v62 }
 0xdaa   :  { %9408 = vtanh.f32 %v2247_v33 }
 0xdb4   :  { %v9409_v51 = vpop.eup %9408 }
 0xdb5   :  { %2250 = vrot.lane.b32.xlu1 %v9409_v51, %s9681_s23 }
 0xe27   :  { %v2251_v17 = vpop.permute.xlu1 %2250 }
 0xe28   :  { %v10343_v4 = vmul.f32 %v9407_v37, %v2251_v17 }
 0xe2a   :  { %2255 = vrot.lane.b32.xlu0 %v10343_v4, %s9682_s24 }
 0xe9c   :  { %v2256_v47 = vpop.permute.xlu0 %2255 }
 0xe9d   :  { %2259 = vst.msk [vmem:[#allocation4 + $0x10] sm:$0xf] %vm1758_vm5, %v2256_v47  ;;  %8350 = vmatmul.mubr.msk.f32.vlgmr.msra.gmra.mrb[20].mxu1 %vm111_vm0, %v2256_v47  ;;  %v2516_v47 = vld [vmem:[#allocation2 + $0x38] sm:$0xff] }
 0xe9e   :  { %8659 = vmatpush1.bf16.msra.mxu1 %v10107_v44  ;;  %2586 = vmatprep.mubr.f32.mxu1 %v11825_v1 }
 0xe9f   :  { %8661 = vmatprep.subr.bf16.mxu1 %v10110_v45 }
 0xea2   :  { %8663 = vmatpush1.bf16.msra.mxu1 %v10118_v20 }
 0xea3   :  { %2530 = vmatprep.subr.mxu1 %v10124_v27 }
 0xea6   :  { %2531 = vmatpush1.msra.mxu1 %v10131_v32 }
 0xf70   :  { %v2338_v18 = vpop.f32.mrb[20].mxu1 }
 0xf71   :  { %v2339_v40 = vadd.f32 %v2338_v18, %v2266_v11  ;;  %v2340_v50 = vpop.f32.mrb[21].mxu1  ;;  %v2593_v11 = vld [vmem:[#allocation3] sm:$0xff]  ;;  %v2518_v18 = vcombine.high %v2516_v47, %v2516_v47 }
 0xf72   :  { %v2341_v34 = vadd.f32 %v2340_v50, %v2268_v22 }
 0xf73   :  { %v2348_v8 = vadd.f32 %v2344_v54, %v2339_v40 }
 0xf74   :  { %v2349_v44 = vadd.f32 %v2346_v10, %v2341_v34  ;;  %v2595_v34 = vcombine.high %v2593_v11, %v2593_v11 }
 0xf75   :  { %9410 = vtanh.f32 %v2348_v8  ;;  %v8351_v20 = vmul.f32 -1.442695, %v2348_v8 }
 0xf76   :  { %9412 = vtanh.f32 %v2349_v44 }
 0xf77   :  { %9414 = vpow2.f32 %v8351_v20 }
 0xf7f   :  { %v9411_v38 = vpop.eup %9410 }
 0xf80   :  { %v9413_v45 = vpop.eup %9412  ;;  %2361 = vrot.lane.b32.xlu1 %v9411_v38, %s9680_s22 }
 0xf81   :  { %2363 = vrot.lane.b32.xlu0 %v9413_v45, %s9680_s22  ;;  %v9415_v27 = vpop.eup %9414 }
 0xf82   :  { %v2353_v32 = vadd.f32 1.0, %v9415_v27 }
 0xf84   :  { %9416 = vrcp.f32 %v2353_v32 }
 0xf8e   :  { %v9417_v30 = vpop.eup %9416 }
 0xf8f   :  { %v2358_v3 = vmul.f32 %v9417_v30, %v2247_v33 }
 0xff2   :  { %v2362_v26 = vpop.permute.xlu1 %2361 }
 0xff3   :  { %v2364_v24 = vpop.permute.xlu0 %2363 }
 0xff4   :  { %v2365_v9 = vsel %vm1739_vm4, %v2362_v26, %v2364_v24 }
 0xff5   :  { %v2367_v49 = vmul.f32 %v9417_v30, %v2365_v9 }
 0xff7   :  { %2369 = vrot.lane.b32.xlu1 %v2367_v49, %s9681_s23 }
0x1069   :  { %v2370_v46 = vpop.permute.xlu1 %2369 }
0x106a   :  { %v2372_v58 = vadd.f32 %v2370_v46, %v2358_v3 }
0x106c   :  { %9418 = vtanh.f32 %v2372_v58 }
0x1076   :  { %v9419_v42 = vpop.eup %9418 }
0x1077   :  { %2375 = vrot.lane.b32.xlu0 %v9419_v42, %s9681_s23 }
0x10e9   :  { %v2376_v57 = vpop.permute.xlu0 %2375 }
0x10ea   :  { %v10360_v59 = vmul.f32 %v9417_v30, %v2376_v57 }
0x10ec   :  { %2380 = vrot.lane.b32.xlu1 %v10360_v59, %s9682_s24 }
0x115e   :  { %v2381_v60 = vpop.permute.xlu1 %2380 }
0x115f   :  { %2384 = vst.msk [vmem:[#allocation4 + $0x14] sm:$0xf] %vm1758_vm5, %v2381_v60  ;;  %8352 = vmatmul.mubr.msk.f32.vlgmr.msra.gmra.mrb[14].mxu0 %vm111_vm0, %v2381_v60 }
0x1160   :  { %2813 = vmatprep.mubr.f32.mxu0 %v11825_v1 }
0x1232   :  { %v2463_v14 = vpop.f32.mrb[14].mxu0 }
0x1233   :  { %v2464_v52 = vadd.f32 %v2463_v14, %v2391_v12  ;;  %v2465_v48 = vpop.f32.mrb[15].mxu0  ;;  %v10403_v14 = vld [vmem:[#allocation7 + $0x68] sm:$0xff] }
0x1234   :  { %v2466_v56 = vadd.f32 %v2465_v48, %v2393_v21  ;;  %v3457_v21 = vld [vmem:[#allocation9 + $0x58] sm:$0xff]  ;;  %v2743_v48 = vand.u32 4294901760, %v10403_v14 }
0x1235   :  { %v2473_v13 = vadd.f32 %v2469_v7, %v2464_v52  ;;  %v10401_v7 = vld [vmem:[#allocation7 + $0x58] sm:$0xff] }
0x1236   :  { %v2474_v19 = vadd.f32 %v2471_v6, %v2466_v56  ;;  %v2739_v52 = vand.u32 4294901760, %v10401_v7  ;;  %v3466_v56 = vand.u32 4294901760, %v3457_v21  ;;  %v2696_v6 = vld [vmem:[#allocation7 + $0x50] sm:$0xff] }
0x1237   :  { %9420 = vtanh.f32 %v2473_v13  ;;  %v8353_v28 = vmul.f32 -1.442695, %v2473_v13 }
0x1238   :  { %9422 = vtanh.f32 %v2474_v19  ;;  %v2741_v19 = vand.u32 4294901760, %v2696_v6 }
0x1239   :  { %9424 = vpow2.f32 %v8353_v28  ;;  %v10407_v28 = vpack.c.bf16 %v2743_v48, %v2739_v52 }
0x123b   :  { %8665 = vmatprep.subr.bf16.mxu0 %v10407_v28 }
0x1241   :  { %v9421_v43 = vpop.eup %9420 }
0x1242   :  { %v9423_v23 = vpop.eup %9422  ;;  %2486 = vrot.lane.b32.xlu0 %v9421_v43, %s9680_s22  ;;  %v3456_v43 = vld [vmem:[#allocation9 + $0x50] sm:$0xff] }
0x1243   :  { %2488 = vrot.lane.b32.xlu1 %v9423_v23, %s9680_s22  ;;  %v9425_v31 = vpop.eup %9424  ;;  %v3458_v23 = vld [vmem:[#allocation9 + $0x60] sm:$0xff] }
0x1244   :  { %v2478_v29 = vadd.f32 1.0, %v9425_v31  ;;  %v3468_v31 = vand.u32 4294901760, %v3456_v43 }
0x1246   :  { %9426 = vrcp.f32 %v2478_v29  ;;  %v3472_v29 = vand.u32 4294901760, %v3458_v23 }
0x1250   :  { %v9427_v35 = vpop.eup %9426 }
0x1251   :  { %v2483_v5 = vmul.f32 %v9427_v35, %v2372_v58 }
0x12b4   :  { %v2487_v63 = vpop.permute.xlu0 %2486 }
0x12b5   :  { %v2489_v0 = vpop.permute.xlu1 %2488 }
0x12b6   :  { %v2490_v39 = vsel %vm1739_vm4, %v2487_v63, %v2489_v0 }
0x12b7   :  { %v2492_v37 = vmul.f32 %v9427_v35, %v2490_v39 }
0x12b9   :  { %2494 = vrot.lane.b32.xlu0 %v2492_v37, %s9681_s23  ;;  %v2701_v37 = vld [vmem:[#allocation7 + $0x78] sm:$0xff] }
0x132b   :  { %v2495_v61 = vpop.permute.xlu0 %2494 }
0x132c   :  { %v2497_v62 = vadd.f32 %v2495_v61, %v2483_v5  ;;  %v2703_v5 = vld [vmem:[#allocation7 + $0x88] sm:$0xff] }
0x132d   :  { %v3461_v61 = vld [vmem:[#allocation9 + $0x78] sm:$0xff] }
0x132e   :  { %9428 = vtanh.f32 %v2497_v62 }
0x1338   :  { %v9429_v25 = vpop.eup %9428 }
0x1339   :  { %2500 = vrot.lane.b32.xlu1 %v9429_v25, %s9681_s23  ;;  %v2747_v25 = vand.u32 4294901760, %v2701_v37 }
0x13ab   :  { %v2501_v33 = vpop.permute.xlu1 %2500 }
0x13ac   :  { %v2503_v51 = vmul.f32 %v9427_v35, %v2501_v33  ;;  %v2751_v33 = vand.u32 4294901760, %v2703_v5 }
0x13ae   :  { %2505 = vrot.lane.b32.xlu0 %v2503_v51, %s9682_s24 }
0x1420   :  { %v2506_v17 = vpop.permute.xlu0 %2505 }
0x1421   :  { %2509 = vst.msk [vmem:[#allocation4 + $0x18] sm:$0xf] %vm1758_vm5, %v2506_v17  ;;  %8354 = vmatmul.mubr.msk.f32.vlgmr.msra.gmra.mrb[22].mxu1 %vm111_vm0, %v2506_v17  ;;  %v3474_v17 = vand.u32 4294901760, %v3461_v61 }
0x1422   :  { %3540 = vmatprep.mubr.f32.mxu1 %v11825_v1 }
0x14f4   :  { %v2588_v54 = vpop.f32.mrb[22].mxu1 }
0x14f5   :  { %v2589_v22 = vadd.f32 %v2588_v54, %v2516_v47  ;;  %v2590_v40 = vpop.f32.mrb[23].mxu1  ;;  %v2700_v47 = vld [vmem:[#allocation7 + $0x70] sm:$0xff] }
0x14f6   :  { %v2591_v50 = vadd.f32 %v2590_v40, %v2518_v18  ;;  %v2749_v18 = vand.u32 4294901760, %v2700_v47  ;;  %v3460_v40 = vld [vmem:[#allocation9 + $0x70] sm:$0xff] }
0x14f7   :  { %v2597_v10 = vadd.f32 %v2593_v11, %v2589_v22  ;;  %v2702_v11 = vld [vmem:[#allocation7 + $0x80] sm:$0xff] }
0x14f8   :  { %v2598_v8 = vadd.f32 %v2595_v34, %v2591_v50  ;;  %v2753_v22 = vand.u32 4294901760, %v2702_v11  ;;  %v3462_v50 = vld [vmem:[#allocation9 + $0x80] sm:$0xff]  ;;  %v10421_v34 = vpack.c.bf16 %v2751_v33, %v2747_v25 }
0x14f9   :  { %9430 = vtanh.f32 %v2597_v10  ;;  %v8355_v45 = vmul.f32 -1.442695, %v2597_v10  ;;  %v3476_v10 = vand.u32 4294901760, %v3460_v40 }
0x14fa   :  { %9432 = vtanh.f32 %v2598_v8  ;;  %v3480_v8 = vand.u32 4294901760, %v3462_v50 }
0x14fb   :  { %9434 = vpow2.f32 %v8355_v45  ;;  %v10425_v45 = vpack.c.bf16 %v2753_v22, %v2749_v18 }
0x1503   :  { %v9431_v44 = vpop.eup %9430 }
0x1504   :  { %v9433_v38 = vpop.eup %9432  ;;  %2610 = vrot.lane.b32.xlu1 %v9431_v44, %s9680_s22 }
0x1505   :  { %2612 = vrot.lane.b32.xlu0 %v9433_v38, %s9680_s22  ;;  %v9435_v20 = vpop.eup %9434 }
0x1506   :  { %v2602_v27 = vadd.f32 1.0, %v9435_v20  ;;  %v10429_v20 = vpack.c.bf16 %v3480_v8, %v3476_v10 }
0x1508   :  { %9436 = vrcp.f32 %v2602_v27  ;;  %v10431_v27 = vsub.f32 %v3457_v21, %v3466_v56 }
0x1512   :  { %v9437_v24 = vpop.eup %9436 }
0x1513   :  { %v2607_v49 = vmul.f32 %v9437_v24, %v2497_v62  ;;  %v10416_v62 = vpack.c.bf16 %v3472_v29, %v3468_v31 }
0x1576   :  { %v2611_v32 = vpop.permute.xlu1 %2610 }
0x1577   :  { %v2613_v26 = vpop.permute.xlu0 %2612 }
0x1578   :  { %v2614_v30 = vsel %vm1739_vm4, %v2611_v32, %v2613_v26  ;;  %v10436_v26 = vld [vmem:[#allocation7 + $0x98] sm:$0xff] }
0x1579   :  { %v2616_v9 = vmul.f32 %v9437_v24, %v2614_v30  ;;  %v10440_v30 = vsub.f32 %v2696_v6, %v2741_v19  ;;  %v10485_v6 = vsub.f32 %v2700_v47, %v2749_v18 }
0x157b   :  { %2618 = vrot.lane.b32.xlu1 %v2616_v9, %s9681_s23 }
0x157f   :  { %2510 = vrot.lane.b32.xlu1 %v2503_v51, %s9683_s25  ;;  %v3463_v51 = vld [vmem:[#allocation9 + $0x88] sm:$0xff] }
0x1580   :  { %v3478_v54 = vand.u32 4294901760, %v3463_v51 }
0x1582   :  { %v10423_v38 = vpack.c.bf16 %v3478_v54, %v3474_v17 }
0x1583   :  { %2260 = vrot.lane.b32.xlu1 %v10343_v4, %s9683_s25 }
0x1587   :  { %2010 = vrot.lane.b32.xlu1 %v10308_v41, %s9683_s25 }
0x158b   :  { %1760 = vrot.lane.b32.xlu1 %v10272_v36, %s9683_s25 }
0x15ed   :  { %v2619_v3 = vpop.permute.xlu1 %2618 }
0x15ee   :  { %v2621_v46 = vadd.f32 %v2619_v3, %v2607_v49  ;;  %v10444_v49 = vsub.f32 %v3456_v43, %v3468_v31  ;;  %v10446_v3 = vsub.f32 %v3458_v23, %v3472_v29 }
0x15f0   :  { %9438 = vtanh.f32 %v2621_v46  ;;  %v10449_v46 = vld [vmem:[#allocation7 + $0x90] sm:$0xff] }
0x15f1   :  { %v2511_v58 = vpop.permute.xlu1 %2510 }
0x15f2   :  { %2514 = vst.msk [vmem:[#allocation5 + $0x4] sm:$0xf] %vm1758_vm5, %v2511_v58  ;;  %v10451_v58 = vld [vmem:[#allocation9 + $0x90] sm:$0xff] }
0x15f5   :  { %v2261_v42 = vpop.permute.xlu1 %2260 }
0x15f6   :  { %2264 = vst.msk [vmem:[#allocation5 + $0xc] sm:$0xf] %vm1758_vm5, %v2261_v42 }
0x15f9   :  { %v2011_v57 = vpop.permute.xlu1 %2010  ;;  %v2647_v12 = vld [vmem:[#allocation5 + $0x4] sm:$0xf] }
0x15fa   :  { %v9439_v60 = vpop.eup %9438  ;;  %2014 = vst.msk [vmem:[#allocation5 + $0x14] sm:$0xf] %vm1758_vm5, %v2011_v57 }
0x15fb   :  { %2624 = vrot.lane.b32.xlu0 %v9439_v60, %s9681_s23  ;;  %v10454_v60 = vsub.f32 %v10401_v7, %v2739_v52  ;;  %v10472_v7 = vand.u32 4294901760, %v10451_v58  ;;  %v10476_v52 = vsub.f32 %v2701_v37, %v2747_v25 }
0x15fd   :  { %v1761_v41 = vpop.permute.xlu1 %1760  ;;  %v2649_v43 = vld [vmem:[#allocation5 + $0xc] sm:$0xf]  ;;  %v11830_v37 = vand.u32 4294901760, %v10454_v60 }
0x15fe   :  { %1764 = vst.msk [vmem:[#allocation5 + $0x1c] sm:$0xf] %vm1758_vm5, %v1761_v41  ;;  %v10457_v41 = vsub.f32 %v10403_v14, %v2743_v48  ;;  %v3587_v14 = vand.u32 4294901760, %v10431_v27  ;;  %v10478_v48 = vsub.f32 %v2703_v5, %v2751_v33 }
0x1600   :  { %v3588_v31 = vsub.f32 %v10431_v27, %v3587_v14  ;;  %v11829_v5 = vand.u32 4294901760, %v10457_v41 }
0x1601   :  { %v2651_v18 = vld [vmem:[#allocation5 + $0x14] sm:$0xf] }
0x1602   :  { %v3589_v33 = vand.u32 4294901760, %v3588_v31 }
0x166d   :  { %v2625_v36 = vpop.permute.xlu0 %2624 }
0x166e   :  { %v2627_v4 = vmul.f32 %v9437_v24, %v2625_v36  ;;  %v10438_v24 = vld [vmem:[#allocation9 + $0x98] sm:$0xff]  ;;  %v10461_v36 = vand.u32 4294901760, %v10436_v26 }
0x1670   :  { %2629 = vrot.lane.b32.xlu1 %v2627_v4, %s9682_s24  ;;  %2634 = vrot.lane.b32.xlu0 %v2627_v4, %s9683_s25  ;;  %v10464_v4 = vand.u32 4294901760, %v10438_v24 }
0x1674   :  { %2385 = vrot.lane.b32.xlu0 %v10360_v59, %s9683_s25  ;;  %v3459_v59 = vld [vmem:[#allocation9 + $0x68] sm:$0xff] }
0x1675   :  { %v3470_v13 = vand.u32 4294901760, %v3459_v59 }
0x1677   :  { %v10409_v35 = vpack.c.bf16 %v3470_v13, %v3466_v56  ;;  %v10433_v32 = vsub.f32 %v3459_v59, %v3470_v13  ;;  %v10480_v59 = vsub.f32 %v3461_v61, %v3474_v17  ;;  %v10482_v56 = vsub.f32 %v3463_v51, %v3478_v54 }
0x1678   :  { %2135 = vrot.lane.b32.xlu0 %v10326_v2, %s9683_s25  ;;  %v2698_v2 = vld [vmem:[#allocation7 + $0x60] sm:$0xff]  ;;  %v10489_v13 = vsub.f32 %v3460_v40, %v3476_v10  ;;  %v2873_v54 = vsub.f32 %v10457_v41, %v11829_v5 }
0x1679   :  { %8713 = vmatprep.subr.bf16.mxu1 %v10409_v35  ;;  %v11833_v21 = vand.u32 4294901760, %v10433_v32  ;;  %v11828_v61 = vand.u32 4294901760, %v10480_v59  ;;  %v11827_v25 = vand.u32 4294901760, %v10482_v56 }
0x167a   :  { %8715 = vmatpush1.bf16.msra.mxu1 %v10416_v62 }
0x167b   :  { %8717 = vmatprep.subr.bf16.mxu1 %v10423_v38  ;;  %v3600_v29 = vsub.f32 %v10433_v32, %v11833_v21  ;;  %v3624_v10 = vsub.f32 %v10482_v56, %v11827_v25 }
0x167c   :  { %1885 = vrot.lane.b32.xlu0 %v10290_v55, %s9683_s25  ;;  %v2745_v55 = vand.u32 4294901760, %v2698_v2 }
0x167d   :  { %v3601_v51 = vand.u32 4294901760, %v3600_v29 }
0x167e   :  { %v10411_v39 = vpack.c.bf16 %v2745_v55, %v2741_v19  ;;  %v10442_v9 = vsub.f32 %v2698_v2, %v2745_v55  ;;  %8719 = vmatpush1.bf16.msra.mxu1 %v10429_v20  ;;  %v10487_v2 = vsub.f32 %v2702_v11, %v2753_v22  ;;  %v10491_v19 = vsub.f32 %v3462_v50, %v3480_v8 }
0x167f   :  { %3483 = vmatprep.subr.mxu1 %v10464_v4  ;;  %v2861_v11 = vsub.f32 %v10454_v60, %v11830_v37  ;;  %v8720_v40 = vpack.c.bf16 %v3601_v51, %v3589_v33  ;;  %v3612_v50 = vsub.f32 %v10480_v59, %v11828_v61  ;;  %v2866_v8 = vand.u32 4294901760, %v10440_v30 }
0x1680   :  { %2664 = vrot.lane.b32.xlu0 %v2647_v12, %s9684_s2  ;;  %8667 = vmatpush1.bf16.msra.mxu0 %v10411_v39  ;;  %v10469_v12 = vand.u32 4294901760, %v10449_v46  ;;  %v2878_v33 = vand.u32 4294901760, %v10442_v9  ;;  %v3617_v51 = vand.u32 4294901760, %v10489_v13  ;;  %v3629_v1 = vand.u32 4294901760, %v10491_v19 }
0x1681   :  { %8669 = vmatprep.subr.bf16.mxu0 %v10421_v34  ;;  %v2867_v31 = vsub.f32 %v10440_v30, %v2866_v8 }
0x1682   :  { %3485 = vmatpush1.msra.mxu1 %v10472_v7 }
0x1683   :  { %8721 = vmatprep.subr.bf16.mxu1 %v8720_v40  ;;  %v3618_v40 = vsub.f32 %v10489_v13, %v3617_v51 }
0x1684   :  { %8671 = vmatpush1.bf16.msra.mxu0 %v10425_v45 }
0x1685   :  { %2756 = vmatprep.subr.mxu0 %v10461_v36 }
0x1688   :  { %2758 = vmatpush1.msra.mxu0 %v10469_v12 }
0x16e2   :  { %v2630_v63 = vpop.permute.xlu1 %2629  ;;  %v2635_v0 = vpop.permute.xlu0 %2634 }
0x16e3   :  { %2633 = vst.msk [vmem:[#allocation4 + $0x1c] sm:$0xf] %vm1758_vm5, %v2630_v63  ;;  %2637 = vst.msk [vmem:[#allocation5] sm:$0xf] %vm1758_vm5, %v2635_v0  ;;  %v11832_v63 = vand.u32 4294901760, %v10444_v49  ;;  %v11831_v0 = vand.u32 4294901760, %v10446_v3 }
0x16e5   :  { %v3594_v17 = vsub.f32 %v10444_v49, %v11832_v63  ;;  %v3606_v47 = vsub.f32 %v10446_v3, %v11831_v0 }
0x16e6   :  { %v2386_v44 = vpop.permute.xlu0 %2385 }
0x16e7   :  { %2389 = vst.msk [vmem:[#allocation5 + $0x8] sm:$0xf] %vm1758_vm5, %v2386_v44  ;;  %v3595_v44 = vand.u32 4294901760, %v3594_v17 }
0x16ea   :  { %v2136_v42 = vpop.permute.xlu0 %2135  ;;  %v2646_v57 = vld [vmem:[#allocation5] sm:$0xf] }
0x16eb   :  { %2139 = vst.msk [vmem:[#allocation5 + $0x10] sm:$0xf] %vm1758_vm5, %v2136_v42  ;;  %2662 = vrot.lane.b32.xlu1 %v2646_v57, %s9684_s2  ;;  %v3607_v42 = vand.u32 4294901760, %v3606_v47  ;;  %v2862_v57 = vand.u32 4294901760, %v2861_v11  ;;  %v2868_v47 = vand.u32 4294901760, %v2867_v31  ;;  %v2884_v11 = vand.u32 4294901760, %v10476_v52 }
0x16ed   :  { %v10533_v29 = vpack.c.bf16 %v3607_v42, %v3595_v44  ;;  %v2885_v44 = vsub.f32 %v10476_v52, %v2884_v11  ;;  %v2890_v42 = vand.u32 4294901760, %v10485_v6 }
0x16ee   :  { %v1886_v55 = vpop.permute.xlu0 %1885  ;;  %v2648_v23 = vld [vmem:[#allocation5 + $0x8] sm:$0xf] }
0x16ef   :  { %1889 = vst.msk [vmem:[#allocation5 + $0x18] sm:$0xf] %vm1758_vm5, %v1886_v55  ;;  %2668 = vrot.lane.b32.xlu1 %v2649_v43, %s9684_s2  ;;  %2666 = vrot.lane.b32.xlu0 %v2648_v23, %s9684_s2  ;;  %v2874_v55 = vand.u32 4294901760, %v2873_v54  ;;  %v3613_v43 = vand.u32 4294901760, %v3612_v50  ;;  %v3625_v23 = vand.u32 4294901760, %v3624_v10  ;;  %v2879_v54 = vsub.f32 %v10442_v9, %v2878_v33 }
0x16f0   :  { %v3630_v50 = vsub.f32 %v10491_v19, %v3629_v1  ;;  %v2896_v10 = vand.u32 4294901760, %v10478_v48  ;;  %v2886_v31 = vand.u32 4294901760, %v2885_v44  ;;  %v2639_v44 = vld [vmem:[#allocation4 + $0x4] sm:$0xf] }
0x16f1   :  { %v10538_v17 = vpack.c.bf16 %v3625_v23, %v3613_v43  ;;  %v3619_v43 = vand.u32 4294901760, %v3618_v40 }
0x16f2   :  { %v2650_v22 = vld [vmem:[#allocation5 + $0x10] sm:$0xf]  ;;  %v3631_v23 = vand.u32 4294901760, %v3630_v50  ;;  %v10605_v50 = vpack.c.bf16 %v2896_v10, %v2884_v11 }
0x16f3   :  { %2672 = vrot.lane.b32.xlu1 %v2651_v18, %s9684_s2  ;;  %2670 = vrot.lane.b32.xlu0 %v2650_v22, %s9684_s2  ;;  %v2653_v18 = vld [vmem:[#allocation5 + $0x1c] sm:$0xf]  ;;  %v8672_v22 = vpack.c.bf16 %v2874_v55, %v2862_v57  ;;  %v2902_v57 = vand.u32 4294901760, %v10487_v2  ;;  %v2880_v55 = vand.u32 4294901760, %v2879_v54  ;;  %v2638_v54 = vld [vmem:[#allocation4] sm:$0xf] }
0x16f4   :  { %v10555_v37 = vpack.c.bf16 %v3631_v23, %v3619_v43  ;;  %11866 = vst [vmem:[#allocation18_spill] sm:$0xff] %v10605_v50 }
0x16f5   :  { %8673 = vmatprep.subr.bf16.mxu0 %v8672_v22  ;;  %v2903_v61 = vsub.f32 %v10487_v2, %v2902_v57  ;;  %v10553_v5 = vpack.c.bf16 %v2880_v55, %v2868_v47  ;;  %v11864_v55 = vand.u32 4294901760, %v10482_v56 }
0x16f6   :  { %v2652_v25 = vld [vmem:[#allocation5 + $0x18] sm:$0xf] }
0x16f7   :  { %2676 = vrot.lane.b32.xlu1 %v2653_v18, %s9684_s2  ;;  %2674 = vrot.lane.b32.xlu0 %v2652_v25, %s9684_s2  ;;  %v2897_v25 = vsub.f32 %v10478_v48, %v2896_v10  ;;  %v2891_v18 = vsub.f32 %v10485_v6, %v2890_v42  ;;  %v2904_v63 = vand.u32 4294901760, %v2903_v61  ;;  %v11862_v61 = vand.u32 4294901760, %v10457_v41 }
0x16f9   :  { %v2898_v22 = vand.u32 4294901760, %v2897_v25  ;;  %v2892_v0 = vand.u32 4294901760, %v2891_v18  ;;  %v11859_v25 = vand.u32 4294901760, %v10444_v49 }
0x16fb   :  { %v10557_v21 = vpack.c.bf16 %v2898_v22, %v2886_v31  ;;  %v10561_v40 = vpack.c.bf16 %v2904_v63, %v2892_v0  ;;  %v11858_v0 = vand.u32 4294901760, %v10433_v32  ;;  %v11860_v31 = vand.u32 4294901760, %v10446_v3 }
0x16fc   :  { %v11861_v22 = vand.u32 4294901760, %v10454_v60  ;;  %v11863_v63 = vand.u32 4294901760, %v10480_v59 }
0x16fd   :  { %v10581_v23 = vpack.c.bf16 %v11858_v0, %v3587_v14  ;;  %v10587_v18 = vpack.c.bf16 %v11860_v31, %v11859_v25  ;;  %v10601_v14 = vpack.c.bf16 %v2878_v33, %v2866_v8  ;;  %v10603_v0 = vpack.c.bf16 %v3629_v1, %v3617_v51  ;;  %v2665_v31 = vpop.permute.xlu0 %2664  ;;  %v2641_v8 = vld [vmem:[#allocation4 + $0xc] sm:$0xf]  ;;  %v2640_v1 = vld [vmem:[#allocation4 + $0x8] sm:$0xf] }
0x16fe   :  { %v10593_v43 = vpack.c.bf16 %v11862_v61, %v11861_v22  ;;  %v10599_v47 = vpack.c.bf16 %v11864_v55, %v11863_v63  ;;  %v10607_v25 = vpack.c.bf16 %v2902_v57, %v2890_v42  ;;  %v2688_v22 = vsel %vm2686_vm6, %v2639_v44, %v2665_v31  ;;  %v2643_v44 = vld [vmem:[#allocation4 + $0x14] sm:$0xf] }
0x16ff   :  { %11865 = vst [vmem:[#allocation17_spill] sm:$0xff] %v10603_v0 }
0x1700   :  { %11867 = vst [vmem:[#allocation19_spill] sm:$0xff] %v10607_v25 }
0x175d   :  { %v2663_v61 = vpop.permute.xlu1 %2662 }
0x175e   :  { %v2687_v16 = vsel %vm2686_vm6, %v2638_v54, %v2663_v61  ;;  %v10621_v54 = vsub.f32 %v10438_v24, %v10464_v4  ;;  %v2642_v61 = vld [vmem:[#allocation4 + $0x10] sm:$0xf] }
0x175f   :  { %v2727_v53 = vcombine.low %v2687_v16, %v2688_v22 }
0x1760   :  { %v11868_v0 = vand.u32 4294901760, %v10621_v54 }
0x1761   :  { %v2731_v55 = vsel %vm111_vm0, %v2727_v53, 0  ;;  %v2669_v33 = vpop.permute.xlu1 %2668  ;;  %v2667_v51 = vpop.permute.xlu0 %2666  ;;  %v10625_v53 = vsub.f32 %v10436_v26, %v10461_v36  ;;  %v10637_v26 = vsub.f32 %v10449_v46, %v10469_v12 }
0x1762   :  { %v10612_v11 = vand.u32 4294901760, %v2731_v55  ;;  %v2690_v10 = vsel %vm2686_vm6, %v2641_v8, %v2669_v33  ;;  %v2689_v42 = vsel %vm2686_vm6, %v2640_v1, %v2667_v51  ;;  %v10641_v51 = vsub.f32 %v10451_v58, %v10472_v7 }
0x1763   :  { %v2728_v57 = vcombine.low %v2689_v42, %v2690_v10 }
0x1764   :  { %v10617_v63 = vsub.f32 %v2731_v55, %v10612_v11 }
0x1765   :  { %v2733_v16 = vsel %vm111_vm0, %v2728_v57, 0  ;;  %v2673_v31 = vpop.permute.xlu1 %2672  ;;  %v2671_v22 = vpop.permute.xlu0 %2670  ;;  %v11840_v57 = vand.u32 4294901760, %v10641_v51 }
0x1766   :  { %v10628_v8 = vand.u32 4294901760, %v2733_v16  ;;  %v2692_v33 = vsel %vm2686_vm6, %v2643_v44, %v2673_v31  ;;  %v2691_v55 = vsel %vm2686_vm6, %v2642_v61, %v2671_v22  ;;  %v10633_v1 = vand.u32 4294901760, %v10617_v63  ;;  %v2645_v61 = vld [vmem:[#allocation4 + $0x1c] sm:$0xf] }
0x1767   :  { %v2729_v24 = vcombine.low %v2691_v55, %v2692_v33  ;;  %v2644_v33 = vld [vmem:[#allocation4 + $0x18] sm:$0xf]  ;;  %v11841_v44 = vand.u32 4294901760, %v10637_v26 }
0x1768   :  { %v10644_v10 = vsub.f32 %v2733_v16, %v10628_v8  ;;  %v2817_v42 = vsub.f32 %v10617_v63, %v10633_v1 }
0x1769   :  { %v2735_v31 = vsel %vm111_vm0, %v2729_v24, 0  ;;  %v2677_v22 = vpop.permute.xlu1 %2676  ;;  %v2675_v46 = vpop.permute.xlu0 %2674 }
0x176a   :  { %v10651_v55 = vand.u32 4294901760, %v2735_v31  ;;  %v2694_v58 = vsel %vm2686_vm6, %v2645_v61, %v2677_v22  ;;  %v2693_v16 = vsel %vm2686_vm6, %v2644_v33, %v2675_v46  ;;  %v2818_v15 = vand.u32 4294901760, %v2817_v42 }
0x176b   :  { %v2730_v25 = vcombine.low %v2693_v16, %v2694_v58  ;;  %v10656_v50 = vand.u32 4294901760, %v10644_v10  ;;  %v3636_v61 = vsub.f32 %v10621_v54, %v11868_v0  ;;  %v11869_v22 = vand.u32 4294901760, %v10625_v53 }
0x176c   :  { %v10661_v24 = vsub.f32 %v2735_v31, %v10651_v55  ;;  %2819 = vmatmul.mubr.f32.vlgmr.msra.gmra.mrb[16].mxu0 %v2818_v15  ;;  %3546 = vmatmul.mubr.f32.vlgmr.msra.gmra.mrb[24].mxu1 %v2818_v15  ;;  %v11870_v33 = vmov 0.0  }
0x176d   :  { %v2909_v42 = vsub.f32 %v10625_v53, %v11869_v22  ;;  %v2737_v46 = vsel %vm111_vm0, %v2730_v25, 0  ;;  %8723 = vmatpush1.bf16.msra.mxu1 %v10533_v29  ;;  %2824 = vmatprep.mubr.f32.mxu0 %v11870_v33  ;;  %v2828_v31 = vsub.f32 %v10644_v10, %v10656_v50  ;;  %v3642_v29 = vsub.f32 %v10641_v51, %v11840_v57 }
0x176e   :  { %v10674_v58 = vand.u32 4294901760, %v2737_v46  ;;  %3551 = vmatprep.mubr.f32.mxu1 %v11870_v33  ;;  %8725 = vmatprep.subr.bf16.mxu1 %v10538_v17  ;;  %v10679_v15 = vand.u32 4294901760, %v10661_v24  ;;  %v2915_v25 = vsub.f32 %v10637_v26, %v11841_v44  ;;  %v3637_v22 = vand.u32 4294901760, %v3636_v61 }
0x176f   :  { %v2829_v0 = vand.u32 4294901760, %v2828_v31  ;;  %8675 = vmatpush1.bf16.msra.mxu0 %v10553_v5  ;;  %v2910_v31 = vand.u32 4294901760, %v2909_v42 }
0x1770   :  { %v10689_v16 = vsub.f32 %v2737_v46, %v10674_v58  ;;  %v2839_v17 = vsub.f32 %v10661_v24, %v10679_v15  ;;  %8677 = vmatprep.subr.bf16.mxu0 %v10557_v21  ;;  %v3643_v46 = vand.u32 4294901760, %v3642_v29  ;;  %v2916_v44 = vand.u32 4294901760, %v2915_v25 }
0x1771   :  { %2830 = vmatmul.mubr.f32.gmra.mrb[18].mxu0 %v2829_v0  ;;  %3557 = vmatmul.mubr.f32.gmra.mrb[26].mxu1 %v2829_v0 }
0x1772   :  { %2835 = vmatprep.mubr.f32.mxu0 %v11870_v33  ;;  %3562 = vmatprep.mubr.f32.mxu1 %v11870_v33  ;;  %v2840_v5 = vand.u32 4294901760, %v2839_v17  ;;  %v10697_v57 = vand.u32 4294901760, %v10689_v16 }
0x1773   :  { %8727 = vmatpush1.bf16.msra.mxu1 %v10555_v37  ;;  %8679 = vmatpush1.bf16.msra.mxu0 %v10561_v40  ;;  %v11871_v37 = vpack.c.bf16 %v10433_v32, %v10431_v27  ;;  %v11872_v40 = vpack.c.bf16 %v10457_v41, %v10454_v60  ;;  %v11874_v27 = vpack.c.bf16 %v10482_v56, %v10480_v59  ;;  %v11880_v60 = vld [vmem:[#allocation18_spill] sm:$0xff]  ;;  %v11881_v41 = vld [vmem:[#allocation19_spill] sm:$0xff]  ;;  %v11884_v59 = vand.u32 4294901760, %v10625_v53 }
0x1774   :  { %3638 = vmatprep.subr.mxu1 %v3637_v22  ;;  %v2850_v21 = vsub.f32 %v10689_v16, %v10697_v57  ;;  %2911 = vmatprep.subr.mxu0 %v2910_v31  ;;  %v11875_v32 = vpack.c.bf16 %v10442_v9, %v10440_v30  ;;  %v11878_v30 = vpack.c.bf16 %v10487_v2, %v10485_v6  ;;  %v11879_v9 = vld [vmem:[#allocation17_spill] sm:$0xff]  ;;  %v11885_v56 = vand.u32 4294901760, %v10637_v26  ;;  %v10859_v6 = vld [vmem:[#allocation11 + $0x98] sm:$0xff]  ;;  %v10866_v2 = vld [vmem:[#allocation11 + $0x90] sm:$0xff] }
0x1775   :  { %2841 = vmatmul.mubr.f32.gmra.mrb[20].mxu0 %v2840_v5  ;;  %3568 = vmatmul.mubr.f32.gmra.mrb[28].mxu1 %v2840_v5 }
0x1776   :  { %2846 = vmatprep.mubr.f32.mxu0 %v11870_v33  ;;  %3573 = vmatprep.mubr.f32.mxu1 %v11870_v33  ;;  %v2851_v61 = vand.u32 4294901760, %v2850_v21 }
0x1777   :  { %3644 = vmatpush1.msra.mxu1 %v3643_v46  ;;  %2917 = vmatpush1.msra.mxu0 %v2916_v44  ;;  %v11873_v44 = vpack.c.bf16 %v10446_v3, %v10444_v49  ;;  %v11876_v49 = vpack.c.bf16 %v10491_v19, %v10489_v13  ;;  %v11877_v3 = vpack.c.bf16 %v10478_v48, %v10476_v52  ;;  %v11882_v52 = vand.u32 4294901760, %v10621_v54  ;;  %v8356_v13 = vld [vmem:[%s11820_s4 + $0x2] sm:$0x3]  ;;  %v11886_v19 = vld [vmem:[#allocation14_spill] sm:$0xff] }
0x1778   :  { %8729 = vmatprep.subr.bf16.mxu1 %v11871_v37  ;;  %8681 = vmatprep.subr.bf16.mxu0 %v11872_v40  ;;  %v11883_v48 = vand.u32 4294901760, %v10641_v51 }
0x1779   :  { %2852 = vmatmul.mubr.f32.gmra.mrb[22].mxu0 %v2851_v61  ;;  %3579 = vmatmul.mubr.f32.gmra.mrb[30].mxu1 %v2851_v61 }
0x177a   :  { %2972 = vmatprep.mubr.f32.mxu0 %v11870_v33  ;;  %3699 = vmatprep.mubr.f32.mxu1 %v11870_v33 }
0x177d   :  { %2974 = vmatmul.mubr.f32.vlgmr.msra.gmra.mrb[16].mxu0 %v10612_v11  ;;  %3701 = vmatmul.mubr.f32.vlgmr.msra.gmra.mrb[24].mxu1 %v10612_v11 }
0x177e   :  { %8731 = vmatpush1.bf16.msra.mxu1 %v11873_v44  ;;  %2979 = vmatprep.mubr.f32.mxu0 %v11870_v33 }
0x177f   :  { %3706 = vmatprep.mubr.f32.mxu1 %v11870_v33  ;;  %8733 = vmatprep.subr.bf16.mxu1 %v11874_v27 }
0x1780   :  { %8683 = vmatpush1.bf16.msra.mxu0 %v11875_v32 }
0x1781   :  { %2981 = vmatmul.mubr.f32.gmra.mrb[18].mxu0 %v10628_v8  ;;  %3708 = vmatmul.mubr.f32.gmra.mrb[26].mxu1 %v10628_v8 }
0x1782   :  { %2986 = vmatprep.mubr.f32.mxu0 %v11870_v33  ;;  %3713 = vmatprep.mubr.f32.mxu1 %v11870_v33 }
0x1783   :  { %8735 = vmatpush1.bf16.msra.mxu1 %v11876_v49  ;;  %8685 = vmatprep.subr.bf16.mxu0 %v11877_v3 }
0x1784   :  { %8687 = vmatpush1.bf16.msra.mxu0 %v11878_v30  ;;  %3754 = vmatprep.subr.mxu1 %v10621_v54 }
0x1785   :  { %2988 = vmatmul.mubr.f32.gmra.mrb[20].mxu0 %v10651_v55  ;;  %3715 = vmatmul.mubr.f32.gmra.mrb[28].mxu1 %v10651_v55 }
0x1786   :  { %2993 = vmatprep.mubr.f32.mxu0 %v11870_v33  ;;  %3720 = vmatprep.mubr.f32.mxu1 %v11870_v33 }
0x1787   :  { %3757 = vmatpush1.msra.mxu1 %v10641_v51  ;;  %3027 = vmatprep.subr.mxu0 %v10625_v53 }
0x1788   :  { %3030 = vmatpush1.msra.mxu0 %v10637_v26  ;;  %8737 = vmatprep.subr.bf16.mxu1 %v10409_v35 }
0x1789   :  { %2995 = vmatmul.mubr.f32.gmra.mrb[22].mxu0 %v10674_v58  ;;  %3722 = vmatmul.mubr.f32.gmra.mrb[30].mxu1 %v10674_v58 }
0x178a   :  { %3085 = vmatprep.mubr.f32.mxu0 %v11870_v33  ;;  %3812 = vmatprep.mubr.f32.mxu1 %v11870_v33 }
0x178b   :  { %8689 = vmatprep.subr.bf16.mxu0 %v10407_v28 }
0x178d   :  { %3088 = vmatmul.mubr.f32.vlgmr.msra.gmra.mrb[16].mxu0 %v10617_v63  ;;  %3815 = vmatmul.mubr.f32.vlgmr.msra.gmra.mrb[24].mxu1 %v10617_v63 }
0x178e   :  { %8739 = vmatpush1.bf16.msra.mxu1 %v10416_v62  ;;  %3093 = vmatprep.mubr.f32.mxu0 %v11870_v33 }
0x178f   :  { %3820 = vmatprep.mubr.f32.mxu1 %v11870_v33  ;;  %8741 = vmatprep.subr.bf16.mxu1 %v10423_v38 }
0x1790   :  { %8691 = vmatpush1.bf16.msra.mxu0 %v10411_v39 }
0x1791   :  { %3096 = vmatmul.mubr.f32.gmra.mrb[18].mxu0 %v10644_v10  ;;  %3823 = vmatmul.mubr.f32.gmra.mrb[26].mxu1 %v10644_v10 }
0x1792   :  { %3101 = vmatprep.mubr.f32.mxu0 %v11870_v33  ;;  %3828 = vmatprep.mubr.f32.mxu1 %v11870_v33 }
0x1793   :  { %8743 = vmatpush1.bf16.msra.mxu1 %v10429_v20  ;;  %8693 = vmatprep.subr.bf16.mxu0 %v10421_v34 }
0x1794   :  { %8695 = vmatpush1.bf16.msra.mxu0 %v10425_v45  ;;  %3862 = vmatprep.subr.mxu1 %v10464_v4 }
0x1795   :  { %3104 = vmatmul.mubr.f32.gmra.mrb[20].mxu0 %v10661_v24  ;;  %3831 = vmatmul.mubr.f32.gmra.mrb[28].mxu1 %v10661_v24 }
0x1796   :  { %3109 = vmatprep.mubr.f32.mxu0 %v11870_v33  ;;  %3836 = vmatprep.mubr.f32.mxu1 %v11870_v33 }
0x1797   :  { %3864 = vmatpush1.msra.mxu1 %v10472_v7  ;;  %3135 = vmatprep.subr.mxu0 %v10461_v36 }
0x1798   :  { %3137 = vmatpush1.msra.mxu0 %v10469_v12  ;;  %8745 = vmatprep.subr.bf16.mxu1 %v10581_v23 }
0x1799   :  { %3112 = vmatmul.mubr.f32.gmra.mrb[22].mxu0 %v10689_v16  ;;  %3839 = vmatmul.mubr.f32.gmra.mrb[30].mxu1 %v10689_v16 }
0x179a   :  { %3192 = vmatprep.mubr.f32.mxu0 %v11870_v33  ;;  %3919 = vmatprep.mubr.f32.mxu1 %v11870_v33 }
0x179b   :  { %8697 = vmatprep.subr.bf16.mxu0 %v10593_v43 }
0x179d   :  { %3196 = vmatmul.mubr.f32.vlgmr.msra.gmra.mrb[16].mxu0 %v10633_v1  ;;  %3923 = vmatmul.mubr.f32.vlgmr.msra.gmra.mrb[24].mxu1 %v10633_v1 }
0x179e   :  { %8747 = vmatpush1.bf16.msra.mxu1 %v10587_v18  ;;  %3201 = vmatprep.mubr.f32.mxu0 %v11870_v33 }
0x179f   :  { %3928 = vmatprep.mubr.f32.mxu1 %v11870_v33  ;;  %8749 = vmatprep.subr.bf16.mxu1 %v10599_v47  ;;  %v11887_v47 = vld [vmem:[#allocation15_spill] sm:$0xff] }
0x17a0   :  { %8699 = vmatpush1.bf16.msra.mxu0 %v10601_v14  ;;  %v2716_v43 = vrot.slane %v8356_v13, %v11887_v47 }
0x17a1   :  { %3205 = vmatmul.mubr.f32.gmra.mrb[18].mxu0 %v10656_v50  ;;  %3932 = vmatmul.mubr.f32.gmra.mrb[26].mxu1 %v10656_v50  ;;  %v2712_v50 = vrot.slane %v8356_v13, %v11886_v19 }
0x17a2   :  { %3210 = vmatprep.mubr.f32.mxu0 %v11870_v33  ;;  %3937 = vmatprep.mubr.f32.mxu1 %v11870_v33 }
0x17a3   :  { %8751 = vmatpush1.bf16.msra.mxu1 %v11879_v9  ;;  %8701 = vmatprep.subr.bf16.mxu0 %v11880_v60 }
0x17a4   :  { %8703 = vmatpush1.bf16.msra.mxu0 %v11881_v41  ;;  %3991 = vmatprep.subr.mxu1 %v11882_v52 }
0x17a5   :  { %3214 = vmatmul.mubr.f32.gmra.mrb[20].mxu0 %v10679_v15  ;;  %3941 = vmatmul.mubr.f32.gmra.mrb[28].mxu1 %v10679_v15 }
0x17a6   :  { %3219 = vmatprep.mubr.f32.mxu0 %v11870_v33  ;;  %3946 = vmatprep.mubr.f32.mxu1 %v11870_v33 }
0x17a7   :  { %3995 = vmatpush1.msra.mxu1 %v11883_v48  ;;  %3264 = vmatprep.subr.mxu0 %v11884_v59 }
0x17a8   :  { %3268 = vmatpush1.msra.mxu0 %v11885_v56  ;;  %8753 = vmatprep.subr.bf16.mxu1 %v10409_v35  ;;  %v4250_v35 = vld [vmem:[#allocation11 + $0x68] sm:$0xff] }
0x17a9   :  { %3223 = vmatmul.mubr.f32.gmra.mrb[22].mxu0 %v10697_v57  ;;  %3950 = vmatmul.mubr.f32.gmra.mrb[30].mxu1 %v10697_v57 }
0x17aa   :  { %3323 = vmatprep.mubr.f32.mxu0 %v11870_v33  ;;  %4050 = vmatprep.mubr.f32.mxu1 %v11870_v33 }
0x17ab   :  { %8705 = vmatprep.subr.bf16.mxu0 %v10407_v28  ;;  %v4248_v28 = vld [vmem:[#allocation11 + $0x58] sm:$0xff] }
0x17ad   :  { %3325 = vmatmul.mubr.f32.vlgmr.msra.gmra.mrb[16].mxu0 %v10612_v11  ;;  %4052 = vmatmul.mubr.f32.vlgmr.msra.gmra.mrb[24].mxu1 %v10612_v11 }
0x17ae   :  { %8755 = vmatpush1.bf16.msra.mxu1 %v10416_v62  ;;  %3330 = vmatprep.mubr.f32.mxu0 %v11870_v33  ;;  %v4247_v62 = vld [vmem:[#allocation11 + $0x50] sm:$0xff] }
0x17af   :  { %4057 = vmatprep.mubr.f32.mxu1 %v11870_v33  ;;  %8757 = vmatprep.subr.bf16.mxu1 %v10423_v38  ;;  %v4252_v38 = vld [vmem:[#allocation11 + $0x78] sm:$0xff] }
0x17b0   :  { %8707 = vmatpush1.bf16.msra.mxu0 %v10411_v39  ;;  %v10832_v39 = vpack.c.bf16 %v4250_v35, %v4248_v28 }
0x17b1   :  { %3332 = vmatmul.mubr.f32.gmra.mrb[18].mxu0 %v10628_v8  ;;  %4059 = vmatmul.mubr.f32.gmra.mrb[26].mxu1 %v10628_v8 }
0x17b2   :  { %3337 = vmatprep.mubr.f32.mxu0 %v11870_v33  ;;  %4064 = vmatprep.mubr.f32.mxu1 %v11870_v33 }
0x17b3   :  { %8759 = vmatpush1.bf16.msra.mxu1 %v10429_v20  ;;  %8709 = vmatprep.subr.bf16.mxu0 %v10421_v34  ;;  %v4249_v34 = vld [vmem:[#allocation11 + $0x60] sm:$0xff] }
0x17b4   :  { %8711 = vmatpush1.bf16.msra.mxu0 %v10425_v45  ;;  %4096 = vmatprep.subr.mxu1 %v10464_v4  ;;  %v4254_v45 = vld [vmem:[#allocation11 + $0x88] sm:$0xff]  ;;  %v10843_v20 = vpack.c.bf16 %v4249_v34, %v4247_v62  ;;  %v4251_v4 = vld [vmem:[#allocation11 + $0x70] sm:$0xff] }
0x17b5   :  { %3339 = vmatmul.mubr.f32.gmra.mrb[20].mxu0 %v10651_v55  ;;  %4066 = vmatmul.mubr.f32.gmra.mrb[28].mxu1 %v10651_v55 }
0x17b6   :  { %3344 = vmatprep.mubr.f32.mxu0 %v11870_v33  ;;  %4071 = vmatprep.mubr.f32.mxu1 %v11870_v33 }
0x17b7   :  { %4098 = vmatpush1.msra.mxu1 %v10472_v7  ;;  %3369 = vmatprep.subr.mxu0 %v10461_v36  ;;  %v10845_v36 = vpack.c.bf16 %v4254_v45, %v4252_v38 }
0x17b8   :  { %3371 = vmatpush1.msra.mxu0 %v10469_v12  ;;  %8769 = vmatprep.subr.bf16.mxu1 %v10832_v39  ;;  %v4253_v12 = vld [vmem:[#allocation11 + $0x80] sm:$0xff] }
0x17b9   :  { %3346 = vmatmul.mubr.f32.gmra.mrb[22].mxu0 %v10674_v58  ;;  %4073 = vmatmul.mubr.f32.gmra.mrb[30].mxu1 %v10674_v58  ;;  %v10852_v7 = vpack.c.bf16 %v4253_v12, %v4251_v4 }
0x17ba   :  { %3426 = vmatprep.mubr.f32.mxu0 %v11870_v33  ;;  %4153 = vmatprep.mubr.f32.mxu1 %v11870_v33 }
0x17bb   :  { %8761 = vmatprep.subr.bf16.mxu0 %v10832_v39 }
0x17bd   :  { %3428 = vmatmul.mubr.f32.vlgmr.msra.gmra.mrb[16].mxu0 %v10612_v11  ;;  %4155 = vmatmul.mubr.f32.vlgmr.msra.gmra.mrb[24].mxu1 %v10612_v11 }
0x17be   :  { %3433 = vmatprep.mubr.f32.mxu0 %v11870_v33  ;;  %4160 = vmatprep.mubr.f32.mxu1 %v11870_v33 }
0x17bf   :  { %8763 = vmatpush1.bf16.msra.mxu0 %v10843_v20  ;;  %8771 = vmatpush1.bf16.msra.mxu1 %v10843_v20 }
0x17c0   :  { %8765 = vmatprep.subr.bf16.mxu0 %v10845_v36  ;;  %8773 = vmatprep.subr.bf16.mxu1 %v10845_v36 }
0x17c1   :  { %3435 = vmatmul.mubr.f32.gmra.mrb[18].mxu0 %v10628_v8  ;;  %4162 = vmatmul.mubr.f32.gmra.mrb[26].mxu1 %v10628_v8 }
0x17c2   :  { %3440 = vmatprep.mubr.f32.mxu0 %v11870_v33  ;;  %4167 = vmatprep.mubr.f32.mxu1 %v11870_v33 }
0x17c3   :  { %8767 = vmatpush1.bf16.msra.mxu0 %v10852_v7  ;;  %8775 = vmatpush1.bf16.msra.mxu1 %v10852_v7 }
0x17c4   :  { %4269 = vmatprep.subr.mxu0 %v10859_v6  ;;  %4390 = vmatprep.subr.mxu1 %v10859_v6 }
0x17c5   :  { %3442 = vmatmul.mubr.f32.gmra.mrb[20].mxu0 %v10651_v55  ;;  %4169 = vmatmul.mubr.f32.gmra.mrb[28].mxu1 %v10651_v55 }
0x17c6   :  { %3447 = vmatprep.mubr.f32.mxu0 %v11870_v33  ;;  %4174 = vmatprep.mubr.f32.mxu1 %v11870_v33 }
0x17c7   :  { %4270 = vmatpush1.msra.mxu0 %v10866_v2  ;;  %4391 = vmatpush1.msra.mxu1 %v10866_v2 }
0x17c8   :  { %8777 = vmatprep.subr.bf16.mxu0 %v10832_v39  ;;  %8785 = vmatprep.subr.bf16.mxu1 %v10832_v39 }
0x17c9   :  { %3449 = vmatmul.mubr.f32.gmra.mrb[22].mxu0 %v10674_v58  ;;  %4176 = vmatmul.mubr.f32.gmra.mrb[30].mxu1 %v10674_v58 }
0x17ca   :  { %4325 = vmatprep.mubr.f32.mxu0 %v11870_v33  ;;  %4446 = vmatprep.mubr.f32.mxu1 %v11870_v33 }
0x17cd   :  { %4326 = vmatmul.mubr.f32.vlgmr.msra.gmra.mrb[24].mxu0 %v11870_v33 }
0x17ce   :  { %8779 = vmatpush1.bf16.msra.mxu0 %v10843_v20  ;;  %4567 = vmatprep.mubr.f32.mxu0 %v11870_v33 }
0x17cf   :  { %8781 = vmatprep.subr.bf16.mxu0 %v10845_v36 }
0x17d2   :  { %8783 = vmatpush1.bf16.msra.mxu0 %v10852_v7 }
0x17d3   :  { %4511 = vmatprep.subr.mxu0 %v10859_v6 }
0x17d6   :  { %4512 = vmatpush1.msra.mxu0 %v10866_v2 }
0x17d7   :  { %8793 = vmatprep.subr.bf16.mxu0 %v10832_v39 }
0x1890   :  { %v3429_v23 = vpop.f32.mrb[16].mxu0  ;;  %v4156_v18 = vpop.f32.mrb[24].mxu1 }
0x1891   :  { %v9036_v14 = vadd.f32 %v3429_v23, %v2712_v50  ;;  %v3431_v11 = vpop.f32.mrb[17].mxu0  ;;  %v4158_v63 = vpop.f32.mrb[25].mxu1 }
0x1892   :  { %v9037_v54 = vadd.f32 %v3431_v11, %v2716_v43  ;;  %v4222_v53 = vcombine.low %v4156_v18, %v4158_v63  ;;  %v4223_v8 = vcombine.high %v4156_v18, %v4158_v63 }
0x1894   :  { %v4190_v1 = vcombine.low %v9036_v14, %v9037_v54  ;;  %v4191_v26 = vcombine.high %v9036_v14, %v9037_v54  ;;  %4238 = vst.msk [vmem:[#allocation3] sm:$0xff] %vm10231_vm3, %v4222_v53  ;;  %4239 = vst.msk [vmem:[#allocation3 + $0x8] sm:$0xff] %vm10231_vm3, %v4223_v8  ;;  %v3436_v10 = vpop.f32.mrb[18].mxu0  ;;  %v4163_v57 = vpop.f32.mrb[26].mxu1 }
0x1895   :  { %v9038_v55 = vadd.f32 %v3436_v10, %v2712_v50  ;;  %v3438_v24 = vpop.f32.mrb[19].mxu0  ;;  %v4165_v42 = vpop.f32.mrb[27].mxu1 }
0x1896   :  { %4206 = vst.msk [vmem:[#allocation2] sm:$0xff] %vm10231_vm3, %v4190_v1  ;;  %4207 = vst.msk [vmem:[#allocation2 + $0x8] sm:$0xff] %vm10231_vm3, %v4191_v26  ;;  %v9039_v58 = vadd.f32 %v3438_v24, %v2716_v43  ;;  %v4224_v15 = vcombine.low %v4163_v57, %v4165_v42  ;;  %v4225_v0 = vcombine.high %v4163_v57, %v4165_v42 }
0x1898   :  { %v4192_v29 = vcombine.low %v9038_v55, %v9039_v58  ;;  %v4193_v25 = vcombine.high %v9038_v55, %v9039_v58  ;;  %4240 = vst.msk [vmem:[#allocation3 + $0x10] sm:$0xff] %vm10231_vm3, %v4224_v15  ;;  %4241 = vst.msk [vmem:[#allocation3 + $0x18] sm:$0xff] %vm10231_vm3, %v4225_v0  ;;  %v3443_v16 = vpop.f32.mrb[20].mxu0  ;;  %v4170_v17 = vpop.f32.mrb[28].mxu1 }
0x1899   :  { %v9040_v22 = vadd.f32 %v3443_v16, %v2712_v50  ;;  %v3445_v31 = vpop.f32.mrb[21].mxu0  ;;  %v4172_v5 = vpop.f32.mrb[29].mxu1 }
0x189a   :  { %4208 = vst.msk [vmem:[#allocation2 + $0x10] sm:$0xff] %vm10231_vm3, %v4192_v29  ;;  %4209 = vst.msk [vmem:[#allocation2 + $0x18] sm:$0xff] %vm10231_vm3, %v4193_v25  ;;  %v9041_v46 = vadd.f32 %v3445_v31, %v2716_v43  ;;  %v4226_v21 = vcombine.low %v4170_v17, %v4172_v5  ;;  %v4227_v61 = vcombine.high %v4170_v17, %v4172_v5 }
0x189c   :  { %v4194_v37 = vcombine.low %v9040_v22, %v9041_v46  ;;  %v4195_v40 = vcombine.high %v9040_v22, %v9041_v46  ;;  %4242 = vst.msk [vmem:[#allocation3 + $0x20] sm:$0xff] %vm10231_vm3, %v4226_v21  ;;  %4243 = vst.msk [vmem:[#allocation3 + $0x28] sm:$0xff] %vm10231_vm3, %v4227_v61  ;;  %v3450_v44 = vpop.f32.mrb[22].mxu0  ;;  %v4177_v27 = vpop.f32.mrb[30].mxu1 }
0x189d   :  { %v9042_v32 = vadd.f32 %v3450_v44, %v2712_v50  ;;  %v3452_v49 = vpop.f32.mrb[23].mxu0  ;;  %v4179_v3 = vpop.f32.mrb[31].mxu1  ;;  %v4257_v56 = vld [vmem:[#allocation2] sm:$0xff]  ;;  %v4376_v24 = vld [vmem:[#allocation2 + $0x8] sm:$0xff] }
0x189e   :  { %4210 = vst.msk [vmem:[#allocation2 + $0x20] sm:$0xff] %vm10231_vm3, %v4194_v37  ;;  %4211 = vst.msk [vmem:[#allocation2 + $0x28] sm:$0xff] %vm10231_vm3, %v4195_v40  ;;  %v9043_v30 = vadd.f32 %v3452_v49, %v2716_v43  ;;  %v4228_v9 = vcombine.low %v4177_v27, %v4179_v3  ;;  %v4229_v60 = vcombine.high %v4177_v27, %v4179_v3 }
0x189f   :  { %v4259_v35 = vcombine.high %v4257_v56, %v4257_v56  ;;  %v4378_v15 = vcombine.high %v4376_v24, %v4376_v24 }
0x18a0   :  { %v4196_v41 = vcombine.low %v9042_v32, %v9043_v30  ;;  %v4197_v52 = vcombine.high %v9042_v32, %v9043_v30  ;;  %4244 = vst.msk [vmem:[#allocation3 + $0x30] sm:$0xff] %vm10231_vm3, %v4228_v9  ;;  %4245 = vst.msk [vmem:[#allocation3 + $0x38] sm:$0xff] %vm10231_vm3, %v4229_v60  ;;  %v4327_v48 = vpop.f32.mrb[24].mxu0 }
0x18a1   :  { %v4329_v59 = vpop.f32.mrb[25].mxu0  ;;  %v4328_v28 = vadd.f32 %v4327_v48, %v4257_v56  ;;  %v4497_v48 = vld [vmem:[#allocation2 + $0x10] sm:$0xff] }
0x18a2   :  { %4212 = vst.msk [vmem:[#allocation2 + $0x30] sm:$0xff] %vm10231_vm3, %v4196_v41  ;;  %4213 = vst.msk [vmem:[#allocation2 + $0x38] sm:$0xff] %vm10231_vm3, %v4197_v52  ;;  %v4330_v38 = vadd.f32 %v4329_v59, %v4259_v35 }
0x18a3   :  { %v4574_v59 = vld [vmem:[#allocation3 + $0x28] sm:$0xff] }
0x18a7   :  { %v4332_v62 = vld [vmem:[#allocation3 + $0x38] sm:$0xff]  ;;  %v4453_v42 = vld [vmem:[#allocation3 + $0x30] sm:$0xff] }
0x18a8   :  { %v4336_v34 = vadd.f32 %v4332_v62, %v4328_v28  ;;  %v4334_v45 = vcombine.high %v4332_v62, %v4332_v62  ;;  %v4455_v16 = vcombine.high %v4453_v42, %v4453_v42  ;;  %v4499_v28 = vcombine.high %v4497_v48, %v4497_v48 }
0x18aa   :  { %9440 = vtanh.f32 %v4336_v34  ;;  %v4337_v4 = vadd.f32 %v4334_v45, %v4330_v38  ;;  %v8357_v50 = vmul.f32 -1.442695, %v4336_v34  ;;  %v4576_v38 = vcombine.high %v4574_v59, %v4574_v59 }
0x18ac   :  { %9442 = vtanh.f32 %v4337_v4 }
0x18ad   :  { %9444 = vpow2.f32 %v8357_v50 }
0x18b4   :  { %v9441_v12 = vpop.eup %9440 }
0x18b5   :  { %4349 = vrot.lane.b32.xlu0 %v9441_v12, %s9680_s22 }
0x18b6   :  { %v9443_v13 = vpop.eup %9442 }
0x18b7   :  { %4351 = vrot.lane.b32.xlu1 %v9443_v13, %s9680_s22  ;;  %v9445_v43 = vpop.eup %9444 }
0x18b8   :  { %v4341_v23 = vadd.f32 1.0, %v9445_v43 }
0x18ba   :  { %9446 = vrcp.f32 %v4341_v23 }
0x18c4   :  { %v9447_v11 = vpop.eup %9446 }
0x18c5   :  { %v4346_v53 = vmul.f32 0.0, %v9447_v11 }
0x1927   :  { %v4350_v18 = vpop.permute.xlu0 %4349 }
0x1929   :  { %v4352_v14 = vpop.permute.xlu1 %4351 }
0x192a   :  { %v4353_v63 = vsel %vm1739_vm4, %v4350_v18, %v4352_v14 }
0x192b   :  { %v4355_v54 = vmul.f32 %v9447_v11, %v4353_v63 }
0x192d   :  { %4357 = vrot.lane.b32.xlu0 %v4355_v54, %s9681_s23 }
0x199f   :  { %v4358_v8 = vpop.permute.xlu0 %4357 }
0x19a0   :  { %v4360_v1 = vadd.f32 %v4358_v8, %v4346_v53 }
0x19a2   :  { %9448 = vtanh.f32 %v4360_v1 }
0x19ac   :  { %v9449_v26 = vpop.eup %9448 }
0x19ad   :  { %4363 = vrot.lane.b32.xlu1 %v9449_v26, %s9681_s23 }
0x1a1f   :  { %v4364_v10 = vpop.permute.xlu1 %4363 }
0x1a20   :  { %v10931_v57 = vmul.f32 %v9447_v11, %v4364_v10 }
0x1a22   :  { %4368 = vrot.lane.b32.xlu0 %v10931_v57, %s9682_s24 }
0x1a94   :  { %v4369_v55 = vpop.permute.xlu0 %4368 }
0x1a95   :  { %4371 = vst.msk [vmem:[#allocation4] sm:$0xf] %vm1758_vm5, %v4369_v55  ;;  %8358 = vmatmul.mubr.msk.f32.vlgmr.msra.gmra.mrb[32].mxu1 %vm111_vm0, %v4369_v55 }
0x1a96   :  { %8787 = vmatpush1.bf16.msra.mxu1 %v10843_v20  ;;  %4688 = vmatprep.mubr.f32.mxu1 %v11870_v33 }
0x1a97   :  { %8789 = vmatprep.subr.bf16.mxu1 %v10845_v36 }
0x1a9a   :  { %8791 = vmatpush1.bf16.msra.mxu1 %v10852_v7 }
0x1a9b   :  { %4632 = vmatprep.subr.mxu1 %v10859_v6 }
0x1a9c   :  { %v5223_v47 = vld [vmem:[#allocation4] sm:$0xf] }
0x1a9e   :  { %4633 = vmatpush1.msra.mxu1 %v10866_v2 }
0x1a9f   :  { %8801 = vmatprep.subr.bf16.mxu1 %v10832_v39 }
0x1b68   :  { %v4448_v58 = vpop.f32.mrb[32].mxu1 }
0x1b69   :  { %v4449_v0 = vadd.f32 %v4448_v58, %v4376_v24  ;;  %v4450_v29 = vpop.f32.mrb[33].mxu1  ;;  %v4695_v58 = vld [vmem:[#allocation3 + $0x20] sm:$0xff] }
0x1b6a   :  { %v4451_v25 = vadd.f32 %v4450_v29, %v4378_v15 }
0x1b6b   :  { %v4457_v17 = vadd.f32 %v4453_v42, %v4449_v0  ;;  %v4618_v42 = vld [vmem:[#allocation2 + $0x18] sm:$0xff] }
0x1b6c   :  { %v4458_v22 = vadd.f32 %v4455_v16, %v4451_v25  ;;  %v4620_v0 = vcombine.high %v4618_v42, %v4618_v42 }
0x1b6d   :  { %9450 = vtanh.f32 %v4457_v17  ;;  %v8359_v46 = vmul.f32 -1.442695, %v4457_v17  ;;  %v4697_v17 = vcombine.high %v4695_v58, %v4695_v58 }
0x1b6e   :  { %9452 = vtanh.f32 %v4458_v22 }
0x1b6f   :  { %9454 = vpow2.f32 %v8359_v46 }
0x1b77   :  { %v9451_v31 = vpop.eup %9450 }
0x1b78   :  { %v9453_v5 = vpop.eup %9452  ;;  %4470 = vrot.lane.b32.xlu1 %v9451_v31, %s9680_s22 }
0x1b79   :  { %4472 = vrot.lane.b32.xlu0 %v9453_v5, %s9680_s22  ;;  %v9455_v21 = vpop.eup %9454 }
0x1b7a   :  { %v4462_v61 = vadd.f32 1.0, %v9455_v21 }
0x1b7c   :  { %9456 = vrcp.f32 %v4462_v61 }
0x1b86   :  { %v9457_v44 = vpop.eup %9456 }
0x1b87   :  { %v4467_v49 = vmul.f32 %v9457_v44, %v4360_v1 }
0x1bea   :  { %v4471_v37 = vpop.permute.xlu1 %4470 }
0x1beb   :  { %v4473_v40 = vpop.permute.xlu0 %4472 }
0x1bec   :  { %v4474_v27 = vsel %vm1739_vm4, %v4471_v37, %v4473_v40 }
0x1bed   :  { %v4476_v32 = vmul.f32 %v9457_v44, %v4474_v27 }
0x1bef   :  { %4478 = vrot.lane.b32.xlu1 %v4476_v32, %s9681_s23 }
0x1c61   :  { %v4479_v3 = vpop.permute.xlu1 %4478 }
0x1c62   :  { %v4481_v30 = vadd.f32 %v4479_v3, %v4467_v49 }
0x1c64   :  { %9458 = vtanh.f32 %v4481_v30 }
0x1c6e   :  { %v9459_v9 = vpop.eup %9458 }
0x1c6f   :  { %4484 = vrot.lane.b32.xlu0 %v9459_v9, %s9681_s23 }
0x1ce1   :  { %v4485_v60 = vpop.permute.xlu0 %4484 }
0x1ce2   :  { %v10949_v41 = vmul.f32 %v9457_v44, %v4485_v60 }
0x1ce4   :  { %4489 = vrot.lane.b32.xlu1 %v10949_v41, %s9682_s24 }
0x1d56   :  { %v4490_v52 = vpop.permute.xlu1 %4489 }
0x1d57   :  { %4492 = vst.msk [vmem:[#allocation4 + $0x4] sm:$0xf] %vm1758_vm5, %v4490_v52  ;;  %8360 = vmatmul.mubr.msk.f32.vlgmr.msra.gmra.mrb[26].mxu0 %vm111_vm0, %v4490_v52 }
0x1d58   :  { %8795 = vmatpush1.bf16.msra.mxu0 %v10843_v20  ;;  %4809 = vmatprep.mubr.f32.mxu0 %v11870_v33 }
0x1d59   :  { %8797 = vmatprep.subr.bf16.mxu0 %v10845_v36 }
0x1d5c   :  { %8799 = vmatpush1.bf16.msra.mxu0 %v10852_v7 }
0x1d5d   :  { %4753 = vmatprep.subr.mxu0 %v10859_v6 }
0x1d60   :  { %4754 = vmatpush1.msra.mxu0 %v10866_v2 }
0x1d61   :  { %8809 = vmatprep.subr.bf16.mxu0 %v10832_v39 }
0x1e2a   :  { %v4569_v56 = vpop.f32.mrb[26].mxu0 }
0x1e2b   :  { %v4570_v35 = vadd.f32 %v4569_v56, %v4497_v48  ;;  %v4571_v62 = vpop.f32.mrb[27].mxu0  ;;  %v4816_v56 = vld [vmem:[#allocation3 + $0x18] sm:$0xff] }
0x1e2c   :  { %v4572_v34 = vadd.f32 %v4571_v62, %v4499_v28 }
0x1e2d   :  { %v4578_v45 = vadd.f32 %v4574_v59, %v4570_v35  ;;  %v4739_v59 = vld [vmem:[#allocation2 + $0x20] sm:$0xff] }
0x1e2e   :  { %v4579_v4 = vadd.f32 %v4576_v38, %v4572_v34  ;;  %v4741_v35 = vcombine.high %v4739_v59, %v4739_v59 }
0x1e2f   :  { %9460 = vtanh.f32 %v4578_v45  ;;  %v8361_v50 = vmul.f32 -1.442695, %v4578_v45  ;;  %v4818_v45 = vcombine.high %v4816_v56, %v4816_v56 }
0x1e30   :  { %9462 = vtanh.f32 %v4579_v4 }
0x1e31   :  { %9464 = vpow2.f32 %v8361_v50 }
0x1e39   :  { %v9461_v12 = vpop.eup %9460 }
0x1e3a   :  { %v9463_v13 = vpop.eup %9462  ;;  %4591 = vrot.lane.b32.xlu0 %v9461_v12, %s9680_s22 }
0x1e3b   :  { %4593 = vrot.lane.b32.xlu1 %v9463_v13, %s9680_s22  ;;  %v9465_v43 = vpop.eup %9464 }
0x1e3c   :  { %v4583_v23 = vadd.f32 1.0, %v9465_v43 }
0x1e3e   :  { %9466 = vrcp.f32 %v4583_v23 }
0x1e48   :  { %v9467_v11 = vpop.eup %9466 }
0x1e49   :  { %v4588_v53 = vmul.f32 %v9467_v11, %v4481_v30 }
0x1eac   :  { %v4592_v18 = vpop.permute.xlu0 %4591 }
0x1ead   :  { %v4594_v14 = vpop.permute.xlu1 %4593 }
0x1eae   :  { %v4595_v63 = vsel %vm1739_vm4, %v4592_v18, %v4594_v14 }
0x1eaf   :  { %v4597_v54 = vmul.f32 %v9467_v11, %v4595_v63 }
0x1eb1   :  { %4599 = vrot.lane.b32.xlu0 %v4597_v54, %s9681_s23 }
0x1f23   :  { %v4600_v8 = vpop.permute.xlu0 %4599 }
0x1f24   :  { %v4602_v1 = vadd.f32 %v4600_v8, %v4588_v53 }
0x1f26   :  { %9468 = vtanh.f32 %v4602_v1 }
0x1f30   :  { %v9469_v26 = vpop.eup %9468 }
0x1f31   :  { %4605 = vrot.lane.b32.xlu1 %v9469_v26, %s9681_s23 }
0x1fa3   :  { %v4606_v10 = vpop.permute.xlu1 %4605 }
0x1fa4   :  { %v10967_v55 = vmul.f32 %v9467_v11, %v4606_v10 }
0x1fa6   :  { %4610 = vrot.lane.b32.xlu0 %v10967_v55, %s9682_s24 }
0x2018   :  { %v4611_v24 = vpop.permute.xlu0 %4610 }
0x2019   :  { %4613 = vst.msk [vmem:[#allocation4 + $0x8] sm:$0xf] %vm1758_vm5, %v4611_v24  ;;  %8362 = vmatmul.mubr.msk.f32.vlgmr.msra.gmra.mrb[34].mxu1 %vm111_vm0, %v4611_v24 }
0x201a   :  { %8803 = vmatpush1.bf16.msra.mxu1 %v10843_v20  ;;  %4930 = vmatprep.mubr.f32.mxu1 %v11870_v33 }
0x201b   :  { %8805 = vmatprep.subr.bf16.mxu1 %v10845_v36 }
0x201e   :  { %8807 = vmatpush1.bf16.msra.mxu1 %v10852_v7 }
0x201f   :  { %4874 = vmatprep.subr.mxu1 %v10859_v6 }
0x2022   :  { %4875 = vmatpush1.msra.mxu1 %v10866_v2 }
0x2023   :  { %8817 = vmatprep.subr.bf16.mxu1 %v10832_v39 }
0x20ec   :  { %v4690_v15 = vpop.f32.mrb[34].mxu1 }
0x20ed   :  { %v4691_v29 = vadd.f32 %v4690_v15, %v4618_v42  ;;  %v4692_v25 = vpop.f32.mrb[35].mxu1  ;;  %v4860_v15 = vld [vmem:[#allocation2 + $0x28] sm:$0xff] }
0x20ee   :  { %v4693_v16 = vadd.f32 %v4692_v25, %v4620_v0  ;;  %v4937_v0 = vld [vmem:[#allocation3 + $0x10] sm:$0xff]  ;;  %v4862_v25 = vcombine.high %v4860_v15, %v4860_v15 }
0x20ef   :  { %v4699_v22 = vadd.f32 %v4695_v58, %v4691_v29 }
0x20f0   :  { %v4700_v31 = vadd.f32 %v4697_v17, %v4693_v16 }
0x20f1   :  { %9470 = vtanh.f32 %v4699_v22  ;;  %v8363_v21 = vmul.f32 -1.442695, %v4699_v22 }
0x20f2   :  { %9472 = vtanh.f32 %v4700_v31  ;;  %v4939_v31 = vcombine.high %v4937_v0, %v4937_v0 }
0x20f3   :  { %9474 = vpow2.f32 %v8363_v21 }
0x20fb   :  { %v9471_v5 = vpop.eup %9470 }
0x20fc   :  { %v9473_v46 = vpop.eup %9472  ;;  %4712 = vrot.lane.b32.xlu1 %v9471_v5, %s9680_s22 }
0x20fd   :  { %4714 = vrot.lane.b32.xlu0 %v9473_v46, %s9680_s22  ;;  %v9475_v39 = vpop.eup %9474 }
0x20fe   :  { %v4704_v61 = vadd.f32 1.0, %v9475_v39 }
0x2100   :  { %9476 = vrcp.f32 %v4704_v61 }
0x210a   :  { %v9477_v44 = vpop.eup %9476 }
0x210b   :  { %v4709_v49 = vmul.f32 %v9477_v44, %v4602_v1 }
0x216e   :  { %v4713_v37 = vpop.permute.xlu1 %4712 }
0x216f   :  { %v4715_v40 = vpop.permute.xlu0 %4714 }
0x2170   :  { %v4716_v27 = vsel %vm1739_vm4, %v4713_v37, %v4715_v40 }
0x2171   :  { %v4718_v32 = vmul.f32 %v9477_v44, %v4716_v27 }
0x2173   :  { %4720 = vrot.lane.b32.xlu1 %v4718_v32, %s9681_s23 }
0x21e5   :  { %v4721_v3 = vpop.permute.xlu1 %4720 }
0x21e6   :  { %v4723_v30 = vadd.f32 %v4721_v3, %v4709_v49 }
0x21e8   :  { %9478 = vtanh.f32 %v4723_v30 }
0x21f2   :  { %v9479_v9 = vpop.eup %9478 }
0x21f3   :  { %4726 = vrot.lane.b32.xlu0 %v9479_v9, %s9681_s23 }
0x2265   :  { %v4727_v60 = vpop.permute.xlu0 %4726 }
0x2266   :  { %v10985_v52 = vmul.f32 %v9477_v44, %v4727_v60  ;;  %v4981_v60 = vld [vmem:[#allocation2 + $0x30] sm:$0xff] }
0x2268   :  { %4731 = vrot.lane.b32.xlu1 %v10985_v52, %s9682_s24 }
0x22da   :  { %v4732_v48 = vpop.permute.xlu1 %4731 }
0x22db   :  { %4734 = vst.msk [vmem:[#allocation4 + $0xc] sm:$0xf] %vm1758_vm5, %v4732_v48  ;;  %8364 = vmatmul.mubr.msk.f32.vlgmr.msra.gmra.mrb[28].mxu0 %vm111_vm0, %v4732_v48  ;;  %v5058_v48 = vld [vmem:[#allocation3 + $0x8] sm:$0xff] }
0x22dc   :  { %8811 = vmatpush1.bf16.msra.mxu0 %v10843_v20  ;;  %5051 = vmatprep.mubr.f32.mxu0 %v11870_v33 }
0x22dd   :  { %8813 = vmatprep.subr.bf16.mxu0 %v10845_v36 }
0x22e0   :  { %8815 = vmatpush1.bf16.msra.mxu0 %v10852_v7 }
0x22e1   :  { %4995 = vmatprep.subr.mxu0 %v10859_v6 }
0x22e4   :  { %4996 = vmatpush1.msra.mxu0 %v10866_v2 }
0x23ae   :  { %v4811_v28 = vpop.f32.mrb[28].mxu0 }
0x23af   :  { %v4812_v62 = vadd.f32 %v4811_v28, %v4739_v59  ;;  %v4813_v34 = vpop.f32.mrb[29].mxu0 }
0x23b0   :  { %v4814_v38 = vadd.f32 %v4813_v34, %v4741_v35  ;;  %v5060_v34 = vcombine.high %v5058_v48, %v5058_v48 }
0x23b1   :  { %v4820_v4 = vadd.f32 %v4816_v56, %v4812_v62  ;;  %v4983_v56 = vcombine.high %v4981_v60, %v4981_v60 }
0x23b2   :  { %v4821_v12 = vadd.f32 %v4818_v45, %v4814_v38 }
0x23b3   :  { %9480 = vtanh.f32 %v4820_v4  ;;  %v8365_v43 = vmul.f32 -1.442695, %v4820_v4 }
0x23b4   :  { %9482 = vtanh.f32 %v4821_v12 }
0x23b5   :  { %9484 = vpow2.f32 %v8365_v43 }
0x23bd   :  { %v9481_v13 = vpop.eup %9480 }
0x23be   :  { %v9483_v50 = vpop.eup %9482  ;;  %4833 = vrot.lane.b32.xlu0 %v9481_v13, %s9680_s22 }
0x23bf   :  { %4835 = vrot.lane.b32.xlu1 %v9483_v50, %s9680_s22  ;;  %v9485_v23 = vpop.eup %9484 }
0x23c0   :  { %v4825_v18 = vadd.f32 1.0, %v9485_v23 }
0x23c2   :  { %9486 = vrcp.f32 %v4825_v18 }
0x23cc   :  { %v9487_v63 = vpop.eup %9486 }
0x23cd   :  { %v4830_v8 = vmul.f32 %v9487_v63, %v4723_v30 }
0x2430   :  { %v4834_v14 = vpop.permute.xlu0 %4833 }
0x2431   :  { %v4836_v11 = vpop.permute.xlu1 %4835 }
0x2432   :  { %v4837_v54 = vsel %vm1739_vm4, %v4834_v14, %v4836_v11 }
0x2433   :  { %v4839_v53 = vmul.f32 %v9487_v63, %v4837_v54 }
0x2435   :  { %4841 = vrot.lane.b32.xlu0 %v4839_v53, %s9681_s23 }
0x24a7   :  { %v4842_v1 = vpop.permute.xlu0 %4841 }
0x24a8   :  { %v4844_v26 = vadd.f32 %v4842_v1, %v4830_v8 }
0x24aa   :  { %9488 = vtanh.f32 %v4844_v26 }
0x24b4   :  { %v9489_v10 = vpop.eup %9488 }
0x24b5   :  { %4847 = vrot.lane.b32.xlu1 %v9489_v10, %s9681_s23 }
0x2527   :  { %v4848_v24 = vpop.permute.xlu1 %4847 }
0x2528   :  { %v11002_v42 = vmul.f32 %v9487_v63, %v4848_v24 }
0x252a   :  { %4852 = vrot.lane.b32.xlu0 %v11002_v42, %s9682_s24 }
0x259c   :  { %v4853_v58 = vpop.permute.xlu0 %4852 }
0x259d   :  { %4855 = vst.msk [vmem:[#allocation4 + $0x10] sm:$0xf] %vm1758_vm5, %v4853_v58  ;;  %8366 = vmatmul.mubr.msk.f32.vlgmr.msra.gmra.mrb[36].mxu1 %vm111_vm0, %v4853_v58  ;;  %v5102_v58 = vld [vmem:[#allocation2 + $0x38] sm:$0xff] }
0x259e   :  { %8819 = vmatpush1.bf16.msra.mxu1 %v10843_v20  ;;  %5172 = vmatprep.mubr.f32.mxu1 %v11870_v33 }
0x259f   :  { %8821 = vmatprep.subr.bf16.mxu1 %v10845_v36 }
0x25a2   :  { %8823 = vmatpush1.bf16.msra.mxu1 %v10852_v7 }
0x25a3   :  { %5116 = vmatprep.subr.mxu1 %v10859_v6 }
0x25a6   :  { %5117 = vmatpush1.msra.mxu1 %v10866_v2 }
0x2670   :  { %v4932_v29 = vpop.f32.mrb[36].mxu1 }
0x2671   :  { %v4933_v16 = vadd.f32 %v4932_v29, %v4860_v15  ;;  %v4934_v17 = vpop.f32.mrb[37].mxu1  ;;  %v5179_v15 = vld [vmem:[#allocation3] sm:$0xff]  ;;  %v5104_v29 = vcombine.high %v5102_v58, %v5102_v58 }
0x2672   :  { %v4935_v22 = vadd.f32 %v4934_v17, %v4862_v25 }
0x2673   :  { %v4941_v5 = vadd.f32 %v4937_v0, %v4933_v16 }
0x2674   :  { %v4942_v20 = vadd.f32 %v4939_v31, %v4935_v22  ;;  %v5181_v22 = vcombine.high %v5179_v15, %v5179_v15 }
0x2675   :  { %9490 = vtanh.f32 %v4941_v5  ;;  %v8367_v7 = vmul.f32 -1.442695, %v4941_v5 }
0x2676   :  { %9492 = vtanh.f32 %v4942_v20 }
0x2677   :  { %9494 = vpow2.f32 %v8367_v7 }
0x267f   :  { %v9491_v46 = vpop.eup %9490 }
0x2680   :  { %v9493_v36 = vpop.eup %9492  ;;  %4954 = vrot.lane.b32.xlu1 %v9491_v46, %s9680_s22 }
0x2681   :  { %4956 = vrot.lane.b32.xlu0 %v9493_v36, %s9680_s22  ;;  %v9495_v6 = vpop.eup %9494 }
0x2682   :  { %v4946_v2 = vadd.f32 1.0, %v9495_v6 }
0x2684   :  { %9496 = vrcp.f32 %v4946_v2 }
0x268e   :  { %v9497_v61 = vpop.eup %9496 }
0x268f   :  { %v4951_v44 = vmul.f32 %v9497_v61, %v4844_v26 }
0x26f2   :  { %v4955_v21 = vpop.permute.xlu1 %4954 }
0x26f3   :  { %v4957_v39 = vpop.permute.xlu0 %4956 }
0x26f4   :  { %v4958_v37 = vsel %vm1739_vm4, %v4955_v21, %v4957_v39 }
0x26f5   :  { %v4960_v40 = vmul.f32 %v9497_v61, %v4958_v37 }
0x26f7   :  { %4962 = vrot.lane.b32.xlu1 %v4960_v40, %s9681_s23 }
0x2769   :  { %v4963_v27 = vpop.permute.xlu1 %4962 }
0x276a   :  { %v4965_v32 = vadd.f32 %v4963_v27, %v4951_v44 }
0x276c   :  { %9498 = vtanh.f32 %v4965_v32 }
0x2776   :  { %v9499_v49 = vpop.eup %9498 }
0x2777   :  { %4968 = vrot.lane.b32.xlu0 %v9499_v49, %s9681_s23 }
0x27e9   :  { %v4969_v3 = vpop.permute.xlu0 %4968 }
0x27ea   :  { %v11019_v30 = vmul.f32 %v9497_v61, %v4969_v3 }
0x27ec   :  { %4973 = vrot.lane.b32.xlu1 %v11019_v30, %s9682_s24 }
0x285e   :  { %v4974_v9 = vpop.permute.xlu1 %4973 }
0x285f   :  { %4976 = vst.msk [vmem:[#allocation4 + $0x14] sm:$0xf] %vm1758_vm5, %v4974_v9  ;;  %8368 = vmatmul.mubr.msk.f32.vlgmr.msra.gmra.mrb[30].mxu0 %vm111_vm0, %v4974_v9 }
0x2860   :  { %5397 = vmatprep.mubr.f32.mxu0 %v11870_v33 }
0x2932   :  { %v5053_v59 = vpop.f32.mrb[30].mxu0 }
0x2933   :  { %v5054_v28 = vadd.f32 %v5053_v59, %v4981_v60  ;;  %v5055_v35 = vpop.f32.mrb[31].mxu0  ;;  %v11062_v59 = vld [vmem:[#allocation7 + $0xb8] sm:$0xff] }
0x2934   :  { %v5056_v62 = vadd.f32 %v5055_v35, %v4983_v56  ;;  %v6041_v56 = vld [vmem:[#allocation9 + $0xa8] sm:$0xff]  ;;  %v5327_v35 = vand.u32 4294901760, %v11062_v59 }
0x2935   :  { %v5062_v38 = vadd.f32 %v5058_v48, %v5054_v28  ;;  %v11060_v48 = vld [vmem:[#allocation7 + $0xa8] sm:$0xff] }
0x2936   :  { %v5063_v45 = vadd.f32 %v5060_v34, %v5056_v62  ;;  %v5323_v28 = vand.u32 4294901760, %v11060_v48  ;;  %v6043_v62 = vld [vmem:[#allocation9 + $0xb8] sm:$0xff]  ;;  %v5280_v34 = vld [vmem:[#allocation7 + $0xa0] sm:$0xff] }
0x2937   :  { %9500 = vtanh.f32 %v5062_v38  ;;  %v8369_v13 = vmul.f32 -1.442695, %v5062_v38  ;;  %v5282_v38 = vld [vmem:[#allocation7 + $0xb0] sm:$0xff] }
0x2938   :  { %9502 = vtanh.f32 %v5063_v45  ;;  %v5325_v45 = vand.u32 4294901760, %v5280_v34 }
0x2939   :  { %9504 = vpow2.f32 %v8369_v13  ;;  %v11070_v13 = vpack.c.bf16 %v5327_v35, %v5323_v28 }
0x293b   :  { %8825 = vmatprep.subr.bf16.mxu0 %v11070_v13 }
0x2941   :  { %v9501_v4 = vpop.eup %9500 }
0x2942   :  { %v9503_v12 = vpop.eup %9502  ;;  %5075 = vrot.lane.b32.xlu0 %v9501_v4, %s9680_s22  ;;  %v5329_v4 = vand.u32 4294901760, %v5282_v38 }
0x2943   :  { %5077 = vrot.lane.b32.xlu1 %v9503_v12, %s9680_s22  ;;  %v9505_v50 = vpop.eup %9504  ;;  %v6042_v12 = vld [vmem:[#allocation9 + $0xb0] sm:$0xff] }
0x2944   :  { %v5067_v43 = vadd.f32 1.0, %v9505_v50 }
0x2946   :  { %9506 = vrcp.f32 %v5067_v43  ;;  %v6056_v43 = vand.u32 4294901760, %v6042_v12 }
0x2950   :  { %v9507_v14 = vpop.eup %9506 }
0x2951   :  { %v5072_v54 = vmul.f32 %v9507_v14, %v4965_v32 }
0x29b4   :  { %v5076_v23 = vpop.permute.xlu0 %5075 }
0x29b5   :  { %v5078_v18 = vpop.permute.xlu1 %5077 }
0x29b6   :  { %v5079_v11 = vsel %vm1739_vm4, %v5076_v23, %v5078_v18  ;;  %v11074_v18 = vpack.c.bf16 %v5329_v4, %v5325_v45 }
0x29b7   :  { %v5081_v63 = vmul.f32 %v9507_v14, %v5079_v11  ;;  %v5287_v11 = vld [vmem:[#allocation7 + $0xd8] sm:$0xff] }
0x29b8   :  { %8827 = vmatpush1.bf16.msra.mxu0 %v11074_v18 }
0x29b9   :  { %5083 = vrot.lane.b32.xlu0 %v5081_v63, %s9681_s23  ;;  %v6045_v63 = vld [vmem:[#allocation9 + $0xc8] sm:$0xff] }
0x2a2b   :  { %v5084_v53 = vpop.permute.xlu0 %5083 }
0x2a2c   :  { %v5086_v8 = vadd.f32 %v5084_v53, %v5072_v54 }
0x2a2e   :  { %9508 = vtanh.f32 %v5086_v8 }
0x2a38   :  { %v9509_v1 = vpop.eup %9508 }
0x2a39   :  { %5089 = vrot.lane.b32.xlu1 %v9509_v1, %s9681_s23 }
0x2aab   :  { %v5090_v26 = vpop.permute.xlu1 %5089 }
0x2aac   :  { %v5092_v10 = vmul.f32 %v9507_v14, %v5090_v26  ;;  %v5285_v14 = vld [vmem:[#allocation7 + $0xc8] sm:$0xff]  ;;  %v5335_v26 = vand.u32 4294901760, %v5287_v11 }
0x2aad   :  { %v5331_v1 = vand.u32 4294901760, %v5285_v14 }
0x2aae   :  { %5094 = vrot.lane.b32.xlu0 %v5092_v10, %s9682_s24 }
0x2b20   :  { %v5095_v24 = vpop.permute.xlu0 %5094 }
0x2b21   :  { %5097 = vst.msk [vmem:[#allocation4 + $0x18] sm:$0xf] %vm1758_vm5, %v5095_v24  ;;  %8370 = vmatmul.mubr.msk.f32.vlgmr.msra.gmra.mrb[38].mxu1 %vm111_vm0, %v5095_v24  ;;  %v6058_v24 = vand.u32 4294901760, %v6045_v63 }
0x2b22   :  { %6124 = vmatprep.mubr.f32.mxu1 %v11870_v33 }
0x2bf4   :  { %v5174_v0 = vpop.f32.mrb[38].mxu1 }
0x2bf5   :  { %v5175_v25 = vadd.f32 %v5174_v0, %v5102_v58  ;;  %v5176_v16 = vpop.f32.mrb[39].mxu1  ;;  %v5284_v58 = vld [vmem:[#allocation7 + $0xc0] sm:$0xff] }
0x2bf6   :  { %v5177_v17 = vadd.f32 %v5176_v16, %v5104_v29  ;;  %v5333_v29 = vand.u32 4294901760, %v5284_v58  ;;  %v6044_v16 = vld [vmem:[#allocation9 + $0xc0] sm:$0xff] }
0x2bf7   :  { %v5183_v31 = vadd.f32 %v5179_v15, %v5175_v25  ;;  %v5286_v15 = vld [vmem:[#allocation7 + $0xd0] sm:$0xff] }
0x2bf8   :  { %v5184_v5 = vadd.f32 %v5181_v22, %v5177_v17  ;;  %v5337_v25 = vand.u32 4294901760, %v5286_v15  ;;  %v6046_v17 = vld [vmem:[#allocation9 + $0xd0] sm:$0xff]  ;;  %v11084_v22 = vpack.c.bf16 %v5335_v26, %v5331_v1 }
0x2bf9   :  { %9510 = vtanh.f32 %v5183_v31  ;;  %v8371_v36 = vmul.f32 -1.442695, %v5183_v31  ;;  %v6060_v31 = vand.u32 4294901760, %v6044_v16 }
0x2bfa   :  { %9512 = vtanh.f32 %v5184_v5  ;;  %v6064_v5 = vand.u32 4294901760, %v6046_v17  ;;  %8829 = vmatprep.subr.bf16.mxu0 %v11084_v22 }
0x2bfb   :  { %9514 = vpow2.f32 %v8371_v36 }
0x2c03   :  { %v9511_v20 = vpop.eup %9510 }
0x2c04   :  { %v9513_v46 = vpop.eup %9512  ;;  %5196 = vrot.lane.b32.xlu1 %v9511_v20, %s9680_s22 }
0x2c05   :  { %5198 = vrot.lane.b32.xlu0 %v9513_v46, %s9680_s22  ;;  %v9515_v7 = vpop.eup %9514  ;;  %v11088_v46 = vpack.c.bf16 %v5337_v25, %v5333_v29 }
0x2c06   :  { %v5188_v6 = vadd.f32 1.0, %v9515_v7  ;;  %v11091_v7 = vpack.c.bf16 %v6064_v5, %v6060_v31 }
0x2c07   :  { %8831 = vmatpush1.bf16.msra.mxu0 %v11088_v46 }
0x2c08   :  { %9516 = vrcp.f32 %v5188_v6  ;;  %v11096_v6 = vld [vmem:[#allocation7 + $0xe8] sm:$0xff] }
0x2c12   :  { %v9517_v39 = vpop.eup %9516 }
0x2c13   :  { %v5193_v40 = vmul.f32 %v9517_v39, %v5086_v8 }
0x2c76   :  { %v5197_v2 = vpop.permute.xlu1 %5196 }
0x2c77   :  { %v5199_v21 = vpop.permute.xlu0 %5198 }
0x2c78   :  { %v5200_v61 = vsel %vm1739_vm4, %v5197_v2, %v5199_v21  ;;  %v11098_v2 = vld [vmem:[#allocation9 + $0xe8] sm:$0xff] }
0x2c79   :  { %v5202_v37 = vmul.f32 %v9517_v39, %v5200_v61  ;;  %v11105_v61 = vld [vmem:[#allocation7 + $0xe0] sm:$0xff] }
0x2c7b   :  { %5204 = vrot.lane.b32.xlu1 %v5202_v37, %s9681_s23  ;;  %v11107_v37 = vld [vmem:[#allocation9 + $0xe0] sm:$0xff] }
0x2c7f   :  { %5098 = vrot.lane.b32.xlu1 %v5092_v10, %s9683_s25  ;;  %v6047_v10 = vld [vmem:[#allocation9 + $0xd8] sm:$0xff] }
0x2c80   :  { %v6062_v0 = vand.u32 4294901760, %v6047_v10 }
0x2c82   :  { %v11086_v20 = vpack.c.bf16 %v6062_v0, %v6058_v24 }
0x2c83   :  { %4856 = vrot.lane.b32.xlu1 %v11002_v42, %s9683_s25 }
0x2c87   :  { %4614 = vrot.lane.b32.xlu1 %v10967_v55, %s9683_s25 }
0x2c8b   :  { %4372 = vrot.lane.b32.xlu1 %v10931_v57, %s9683_s25 }
0x2ced   :  { %v5205_v44 = vpop.permute.xlu1 %5204 }
0x2cee   :  { %v5207_v27 = vadd.f32 %v5205_v44, %v5193_v40  ;;  %v11109_v40 = vsub.f32 %v5280_v34, %v5325_v45  ;;  %v11111_v44 = vsub.f32 %v5282_v38, %v5329_v4  ;;  %v11152_v34 = vsub.f32 %v5284_v58, %v5333_v29 }
0x2cef   :  { %v11154_v38 = vsub.f32 %v5286_v15, %v5337_v25  ;;  %v11158_v45 = vsub.f32 %v6046_v17, %v6064_v5 }
0x2cf0   :  { %9518 = vtanh.f32 %v5207_v27  ;;  %v5450_v5 = vand.u32 4294901760, %v11109_v40 }
0x2cf1   :  { %v5099_v32 = vpop.permute.xlu1 %5098 }
0x2cf2   :  { %5101 = vst.msk [vmem:[#allocation5 + $0x4] sm:$0xf] %vm1758_vm5, %v5099_v32  ;;  %v11115_v32 = vsub.f32 %v6042_v12, %v6056_v43 }
0x2cf5   :  { %v4857_v49 = vpop.permute.xlu1 %4856 }
0x2cf6   :  { %4859 = vst.msk [vmem:[#allocation5 + $0xc] sm:$0xf] %vm1758_vm5, %v4857_v49 }
0x2cf9   :  { %v4615_v3 = vpop.permute.xlu1 %4614  ;;  %v5232_v60 = vld [vmem:[#allocation5 + $0x4] sm:$0xf] }
0x2cfa   :  { %v9519_v9 = vpop.eup %9518  ;;  %4617 = vst.msk [vmem:[#allocation5 + $0x14] sm:$0xf] %vm1758_vm5, %v4615_v3 }
0x2cfb   :  { %5210 = vrot.lane.b32.xlu0 %v9519_v9, %s9681_s23  ;;  %v11120_v9 = vsub.f32 %v11060_v48, %v5323_v28  ;;  %v11139_v48 = vand.u32 4294901760, %v11107_v37  ;;  %v11143_v28 = vsub.f32 %v5285_v14, %v5331_v1 }
0x2cfd   :  { %v4373_v55 = vpop.permute.xlu1 %4372 }
0x2cfe   :  { %4375 = vst.msk [vmem:[#allocation5 + $0x1c] sm:$0xf] %vm1758_vm5, %v4373_v55  ;;  %v11125_v55 = vsub.f32 %v11062_v59, %v5327_v35  ;;  %v11145_v35 = vsub.f32 %v5287_v11, %v5335_v26  ;;  %v11846_v11 = vand.u32 4294901760, %v11115_v32 }
0x2d00   :  { %v6190_v58 = vsub.f32 %v11115_v32, %v11846_v11 }
0x2d01   :  { %v5236_v29 = vld [vmem:[#allocation5 + $0x14] sm:$0xf] }
0x2d6d   :  { %v5211_v57 = vpop.permute.xlu0 %5210 }
0x2d6e   :  { %v5213_v42 = vmul.f32 %v9517_v39, %v5211_v57  ;;  %v11128_v57 = vand.u32 4294901760, %v11096_v6 }
0x2d70   :  { %5215 = vrot.lane.b32.xlu1 %v5213_v42, %s9682_s24  ;;  %5219 = vrot.lane.b32.xlu0 %v5213_v42, %s9683_s25  ;;  %v11131_v42 = vand.u32 4294901760, %v11098_v2 }
0x2d71   :  { %5340 = vmatprep.subr.mxu0 %v11128_v57 }
0x2d74   :  { %4977 = vrot.lane.b32.xlu0 %v11019_v30, %s9683_s25  ;;  %v6050_v30 = vand.u32 4294901760, %v6041_v56 }
0x2d76   :  { %v11100_v21 = vsub.f32 %v6041_v56, %v6050_v30 }
0x2d78   :  { %4735 = vrot.lane.b32.xlu0 %v10985_v52, %s9683_s25  ;;  %v6054_v52 = vand.u32 4294901760, %v6043_v62  ;;  %v11849_v56 = vand.u32 4294901760, %v11100_v21 }
0x2d7a   :  { %v11072_v23 = vpack.c.bf16 %v6054_v52, %v6050_v30  ;;  %v11102_v39 = vsub.f32 %v6043_v62, %v6054_v52  ;;  %v11147_v62 = vsub.f32 %v6045_v63, %v6058_v24  ;;  %v11149_v30 = vsub.f32 %v6047_v10, %v6062_v0 }
0x2d7b   :  { %v11156_v52 = vsub.f32 %v6044_v16, %v6060_v31  ;;  %v11845_v63 = vand.u32 4294901760, %v11120_v9 }
0x2d7c   :  { %4493 = vrot.lane.b32.xlu0 %v10949_v41, %s9683_s25  ;;  %v6040_v41 = vld [vmem:[#allocation9 + $0xa0] sm:$0xff]  ;;  %8873 = vmatprep.subr.bf16.mxu1 %v11072_v23  ;;  %v11848_v59 = vand.u32 4294901760, %v11102_v39  ;;  %v11842_v1 = vand.u32 4294901760, %v11149_v30 }
0x2d7d   :  { %v6052_v50 = vand.u32 4294901760, %v6040_v41  ;;  %v5445_v15 = vsub.f32 %v11120_v9, %v11845_v63 }
0x2d7e   :  { %v6208_v31 = vsub.f32 %v11149_v30, %v11842_v1  ;;  %v6213_v1 = vand.u32 4294901760, %v11158_v45 }
0x2d7f   :  { %v11077_v8 = vpack.c.bf16 %v6056_v43, %v6052_v50  ;;  %v11113_v27 = vsub.f32 %v6040_v41, %v6052_v50  ;;  %v5234_v41 = vld [vmem:[#allocation5 + $0xc] sm:$0xf]  ;;  %v6172_v50 = vsub.f32 %v11100_v21, %v11849_v56  ;;  %v6184_v43 = vsub.f32 %v11102_v39, %v11848_v59 }
0x2d80   :  { %5249 = vrot.lane.b32.xlu0 %v5232_v60, %s9684_s2  ;;  %v11136_v60 = vand.u32 4294901760, %v11105_v61 }
0x2d81   :  { %8875 = vmatpush1.bf16.msra.mxu1 %v11077_v8  ;;  %v11847_v14 = vand.u32 4294901760, %v11113_v27  ;;  %v6173_v26 = vand.u32 4294901760, %v6172_v50  ;;  %v6185_v10 = vand.u32 4294901760, %v6184_v43  ;;  %v5451_v50 = vsub.f32 %v11109_v40, %v5450_v5 }
0x2d82   :  { %8877 = vmatprep.subr.bf16.mxu1 %v11086_v20  ;;  %5342 = vmatpush1.msra.mxu0 %v11136_v60 }
0x2d83   :  { %v6178_v24 = vsub.f32 %v11113_v27, %v11847_v14  ;;  %v8880_v16 = vpack.c.bf16 %v6185_v10, %v6173_v26  ;;  %v5462_v26 = vand.u32 4294901760, %v11111_v44  ;;  %v6201_v10 = vand.u32 4294901760, %v11156_v52 }
0x2d85   :  { %8879 = vmatpush1.bf16.msra.mxu1 %v11091_v7 }
0x2d86   :  { %6067 = vmatprep.subr.mxu1 %v11131_v42 }
0x2d89   :  { %6069 = vmatpush1.msra.mxu1 %v11139_v48 }
0x2d8a   :  { %8881 = vmatprep.subr.bf16.mxu1 %v8880_v16  ;;  %v6202_v16 = vsub.f32 %v11156_v52, %v6201_v10 }
0x2de2   :  { %v5216_v54 = vpop.permute.xlu1 %5215  ;;  %v5220_v53 = vpop.permute.xlu0 %5219 }
0x2de3   :  { %5218 = vst.msk [vmem:[#allocation4 + $0x1c] sm:$0xf] %vm1758_vm5, %v5216_v54  ;;  %5222 = vst.msk [vmem:[#allocation5] sm:$0xf] %vm1758_vm5, %v5220_v53  ;;  %v11844_v54 = vand.u32 4294901760, %v11125_v55  ;;  %v11843_v53 = vand.u32 4294901760, %v11147_v62 }
0x2de5   :  { %v5457_v0 = vsub.f32 %v11125_v55, %v11844_v54  ;;  %v6196_v17 = vsub.f32 %v11147_v62, %v11843_v53 }
0x2de6   :  { %v4978_v36 = vpop.permute.xlu0 %4977 }
0x2de7   :  { %4980 = vst.msk [vmem:[#allocation5 + $0x8] sm:$0xf] %vm1758_vm5, %v4978_v36  ;;  %v6179_v36 = vand.u32 4294901760, %v6178_v24 }
0x2dea   :  { %v4736_v49 = vpop.permute.xlu0 %4735  ;;  %v5231_v3 = vld [vmem:[#allocation5] sm:$0xf] }
0x2deb   :  { %4738 = vst.msk [vmem:[#allocation5 + $0x10] sm:$0xf] %vm1758_vm5, %v4736_v49  ;;  %5247 = vrot.lane.b32.xlu1 %v5231_v3, %s9684_s2  ;;  %v6191_v49 = vand.u32 4294901760, %v6190_v58  ;;  %v5446_v3 = vand.u32 4294901760, %v5445_v15  ;;  %v5452_v58 = vand.u32 4294901760, %v5451_v50  ;;  %v5468_v15 = vand.u32 4294901760, %v11143_v28 }
0x2ded   :  { %v11200_v43 = vpack.c.bf16 %v6191_v49, %v6179_v36  ;;  %v5469_v36 = vsub.f32 %v11143_v28, %v5468_v15  ;;  %v5474_v49 = vand.u32 4294901760, %v11152_v34 }
0x2dee   :  { %v4494_v4 = vpop.permute.xlu0 %4493  ;;  %v5233_v12 = vld [vmem:[#allocation5 + $0x8] sm:$0xf] }
0x2def   :  { %4496 = vst.msk [vmem:[#allocation5 + $0x18] sm:$0xf] %vm1758_vm5, %v4494_v4  ;;  %5253 = vrot.lane.b32.xlu1 %v5234_v41, %s9684_s2  ;;  %5251 = vrot.lane.b32.xlu0 %v5233_v12, %s9684_s2  ;;  %v5458_v4 = vand.u32 4294901760, %v5457_v0  ;;  %v6197_v41 = vand.u32 4294901760, %v6196_v17  ;;  %v6209_v12 = vand.u32 4294901760, %v6208_v31  ;;  %v5463_v0 = vsub.f32 %v11111_v44, %v5462_v26 }
0x2df0   :  { %v6214_v17 = vsub.f32 %v11158_v45, %v6213_v1  ;;  %v5480_v31 = vand.u32 4294901760, %v11145_v35  ;;  %v5470_v50 = vand.u32 4294901760, %v5469_v36 }
0x2df1   :  { %v11205_v24 = vpack.c.bf16 %v6209_v12, %v6197_v41  ;;  %v6203_v41 = vand.u32 4294901760, %v6202_v16 }
0x2df2   :  { %v5235_v25 = vld [vmem:[#allocation5 + $0x10] sm:$0xf]  ;;  %v6215_v12 = vand.u32 4294901760, %v6214_v17  ;;  %v11272_v36 = vpack.c.bf16 %v5480_v31, %v5468_v15 }
0x2df3   :  { %5257 = vrot.lane.b32.xlu1 %v5236_v29, %s9684_s2  ;;  %5255 = vrot.lane.b32.xlu0 %v5235_v25, %s9684_s2  ;;  %v5238_v29 = vld [vmem:[#allocation5 + $0x1c] sm:$0xf]  ;;  %v8832_v25 = vpack.c.bf16 %v5458_v4, %v5446_v3  ;;  %v5486_v3 = vand.u32 4294901760, %v11154_v38  ;;  %v5464_v4 = vand.u32 4294901760, %v5463_v0  ;;  %v5224_v0 = vld [vmem:[#allocation4 + $0x4] sm:$0xf] }
0x2df4   :  { %v11222_v11 = vpack.c.bf16 %v6215_v12, %v6203_v41  ;;  %v11890_v12 = vand.u32 4294901760, %v11102_v39  ;;  %11899 = vst [vmem:[#allocation19_spill] sm:$0xff] %v11272_v36 }
0x2df5   :  { %8833 = vmatprep.subr.bf16.mxu0 %v8832_v25  ;;  %v5487_v54 = vsub.f32 %v11154_v38, %v5486_v3  ;;  %v11220_v63 = vpack.c.bf16 %v5464_v4, %v5452_v58  ;;  %v11894_v4 = vand.u32 4294901760, %v11125_v55  ;;  %v11896_v58 = vand.u32 4294901760, %v11149_v30 }
0x2df6   :  { %v5237_v53 = vld [vmem:[#allocation5 + $0x18] sm:$0xf] }
0x2df7   :  { %5261 = vrot.lane.b32.xlu1 %v5238_v29, %s9684_s2  ;;  %5259 = vrot.lane.b32.xlu0 %v5237_v53, %s9684_s2  ;;  %v5481_v53 = vsub.f32 %v11145_v35, %v5480_v31  ;;  %v5475_v29 = vsub.f32 %v11152_v34, %v5474_v49  ;;  %v5488_v59 = vand.u32 4294901760, %v5487_v54  ;;  %v11893_v54 = vand.u32 4294901760, %v11120_v9 }
0x2df9   :  { %v5482_v25 = vand.u32 4294901760, %v5481_v53  ;;  %v5476_v14 = vand.u32 4294901760, %v5475_v29  ;;  %v11892_v29 = vand.u32 4294901760, %v11115_v32  ;;  %v11260_v41 = vpack.c.bf16 %v11894_v4, %v11893_v54 }
0x2dfb   :  { %v11224_v56 = vpack.c.bf16 %v5482_v25, %v5470_v50  ;;  %v11228_v16 = vpack.c.bf16 %v5488_v59, %v5476_v14  ;;  %v11889_v14 = vand.u32 4294901760, %v11100_v21  ;;  %v11891_v50 = vand.u32 4294901760, %v11113_v27 }
0x2dfc   :  { %v11895_v59 = vand.u32 4294901760, %v11147_v62 }
0x2dfd   :  { %v11248_v53 = vpack.c.bf16 %v11890_v12, %v11889_v14  ;;  %v11254_v25 = vpack.c.bf16 %v11892_v29, %v11891_v50  ;;  %v11268_v14 = vpack.c.bf16 %v5462_v26, %v5450_v5  ;;  %v11270_v12 = vpack.c.bf16 %v6213_v1, %v6201_v10  ;;  %v5250_v29 = vpop.permute.xlu0 %5249  ;;  %v5226_v5 = vld [vmem:[#allocation4 + $0xc] sm:$0xf]  ;;  %v5225_v1 = vld [vmem:[#allocation4 + $0x8] sm:$0xf] }
0x2dfe   :  { %v11266_v17 = vpack.c.bf16 %v11896_v58, %v11895_v59  ;;  %v11274_v50 = vpack.c.bf16 %v5486_v3, %v5474_v49  ;;  %v5272_v4 = vsel %vm2686_vm6, %v5224_v0, %v5250_v29  ;;  %v5228_v29 = vld [vmem:[#allocation4 + $0x14] sm:$0xf] }
0x2dff   :  { %11897 = vst [vmem:[#allocation17_spill] sm:$0xff] %v11268_v14  ;;  %11898 = vst [vmem:[#allocation18_spill] sm:$0xff] %v11270_v12 }
0x2e00   :  { %11900 = vst [vmem:[#allocation20_spill] sm:$0xff] %v11274_v50 }
0x2e5d   :  { %v5248_v51 = vpop.permute.xlu1 %5247 }
0x2e5e   :  { %v5271_v54 = vsel %vm2686_vm6, %v5223_v47, %v5248_v51  ;;  %v11288_v47 = vsub.f32 %v11098_v2, %v11131_v42 }
0x2e5f   :  { %v5311_v19 = vcombine.low %v5271_v54, %v5272_v4  ;;  %v5227_v54 = vld [vmem:[#allocation4 + $0x10] sm:$0xf] }
0x2e60   :  { %v11901_v14 = vand.u32 4294901760, %v11288_v47 }
0x2e61   :  { %v5315_v58 = vsel %vm111_vm0, %v5311_v19, 0  ;;  %v5254_v59 = vpop.permute.xlu1 %5253  ;;  %v5252_v26 = vpop.permute.xlu0 %5251  ;;  %v11292_v19 = vsub.f32 %v11096_v6, %v11128_v57  ;;  %v11304_v6 = vsub.f32 %v11105_v61, %v11136_v60 }
0x2e62   :  { %v11279_v10 = vand.u32 4294901760, %v5315_v58  ;;  %v5274_v15 = vsel %vm2686_vm6, %v5226_v5, %v5254_v59  ;;  %v5273_v31 = vsel %vm2686_vm6, %v5225_v1, %v5252_v26  ;;  %v11308_v1 = vsub.f32 %v11107_v37, %v11139_v48 }
0x2e63   :  { %v5312_v49 = vcombine.low %v5273_v31, %v5274_v15 }
0x2e64   :  { %v11284_v3 = vsub.f32 %v5315_v58, %v11279_v10 }
0x2e65   :  { %v5317_v51 = vsel %vm111_vm0, %v5312_v49, 0  ;;  %v5258_v0 = vpop.permute.xlu1 %5257  ;;  %v5256_v4 = vpop.permute.xlu0 %5255  ;;  %v6225_v49 = vand.u32 4294901760, %v11308_v1 }
0x2e66   :  { %v11295_v59 = vand.u32 4294901760, %v5317_v51  ;;  %v5276_v5 = vsel %vm2686_vm6, %v5228_v29, %v5258_v0  ;;  %v5275_v58 = vsel %vm2686_vm6, %v5227_v54, %v5256_v4  ;;  %v11300_v26 = vand.u32 4294901760, %v11284_v3  ;;  %v5230_v4 = vld [vmem:[#allocation4 + $0x1c] sm:$0xf] }
0x2e67   :  { %v5313_v2 = vcombine.low %v5275_v58, %v5276_v5  ;;  %v5229_v5 = vld [vmem:[#allocation4 + $0x18] sm:$0xf]  ;;  %v11851_v0 = vand.u32 4294901760, %v11304_v6 }
0x2e68   :  { %v11311_v15 = vsub.f32 %v5317_v51, %v11295_v59  ;;  %v5401_v31 = vsub.f32 %v11284_v3, %v11300_v26 }
0x2e69   :  { %v5319_v29 = vsel %vm111_vm0, %v5313_v2, 0  ;;  %v5262_v54 = vpop.permute.xlu1 %5261  ;;  %v5260_v61 = vpop.permute.xlu0 %5259 }
0x2e6a   :  { %v11318_v58 = vand.u32 4294901760, %v5319_v29  ;;  %v5278_v37 = vsel %vm2686_vm6, %v5230_v4, %v5262_v54  ;;  %v5277_v51 = vsel %vm2686_vm6, %v5229_v5, %v5260_v61  ;;  %v5402_v50 = vand.u32 4294901760, %v5401_v31 }
0x2e6b   :  { %v5314_v36 = vcombine.low %v5277_v51, %v5278_v37  ;;  %v11323_v12 = vand.u32 4294901760, %v11311_v15  ;;  %v6220_v4 = vsub.f32 %v11288_v47, %v11901_v14  ;;  %v11902_v54 = vand.u32 4294901760, %v11292_v19 }
0x2e6c   :  { %v11328_v2 = vsub.f32 %v5319_v29, %v11318_v58  ;;  %5403 = vmatmul.mubr.f32.vlgmr.msra.gmra.mrb[32].mxu0 %v5402_v50  ;;  %6130 = vmatmul.mubr.f32.vlgmr.msra.gmra.mrb[40].mxu1 %v5402_v50 }
0x2e6d   :  { %v5493_v31 = vsub.f32 %v11292_v19, %v11902_v54  ;;  %v5321_v61 = vsel %vm111_vm0, %v5314_v36, 0  ;;  %8883 = vmatpush1.bf16.msra.mxu1 %v11200_v43  ;;  %5408 = vmatprep.mubr.f32.mxu0 %v11870_v33  ;;  %v5412_v29 = vsub.f32 %v11311_v15, %v11323_v12  ;;  %v6226_v43 = vsub.f32 %v11308_v1, %v6225_v49 }
0x2e6e   :  { %v11341_v5 = vand.u32 4294901760, %v5321_v61  ;;  %6135 = vmatprep.mubr.f32.mxu1 %v11870_v33  ;;  %8885 = vmatprep.subr.bf16.mxu1 %v11205_v24  ;;  %v11346_v14 = vand.u32 4294901760, %v11328_v2  ;;  %v5499_v36 = vsub.f32 %v11304_v6, %v11851_v0  ;;  %v6221_v51 = vand.u32 4294901760, %v6220_v4 }
0x2e6f   :  { %v5413_v50 = vand.u32 4294901760, %v5412_v29  ;;  %8835 = vmatpush1.bf16.msra.mxu0 %v11220_v63  ;;  %v5494_v54 = vand.u32 4294901760, %v5493_v31 }
0x2e70   :  { %v11356_v37 = vsub.f32 %v5321_v61, %v11341_v5  ;;  %v5423_v24 = vsub.f32 %v11328_v2, %v11346_v14  ;;  %8837 = vmatprep.subr.bf16.mxu0 %v11224_v56  ;;  %v6227_v61 = vand.u32 4294901760, %v6226_v43  ;;  %v5500_v0 = vand.u32 4294901760, %v5499_v36 }
0x2e71   :  { %5414 = vmatmul.mubr.f32.gmra.mrb[34].mxu0 %v5413_v50  ;;  %6141 = vmatmul.mubr.f32.gmra.mrb[42].mxu1 %v5413_v50 }
0x2e72   :  { %5419 = vmatprep.mubr.f32.mxu0 %v11870_v33  ;;  %6146 = vmatprep.mubr.f32.mxu1 %v11870_v33  ;;  %v5424_v63 = vand.u32 4294901760, %v5423_v24  ;;  %v11364_v29 = vand.u32 4294901760, %v11356_v37 }
0x2e73   :  { %8887 = vmatpush1.bf16.msra.mxu1 %v11222_v11  ;;  %8839 = vmatpush1.bf16.msra.mxu0 %v11228_v16  ;;  %v11903_v11 = vpack.c.bf16 %v11102_v39, %v11100_v21  ;;  %v11904_v16 = vpack.c.bf16 %v11125_v55, %v11120_v9  ;;  %v11906_v21 = vpack.c.bf16 %v11149_v30, %v11147_v62  ;;  %v11912_v9 = vld [vmem:[#allocation18_spill] sm:$0xff]  ;;  %v11913_v55 = vld [vmem:[#allocation19_spill] sm:$0xff]  ;;  %v11916_v62 = vand.u32 4294901760, %v11292_v19 }
0x2e74   :  { %6222 = vmatprep.subr.mxu1 %v6221_v51  ;;  %v5434_v56 = vsub.f32 %v11356_v37, %v11364_v29  ;;  %5495 = vmatprep.subr.mxu0 %v5494_v54  ;;  %v11907_v39 = vpack.c.bf16 %v11111_v44, %v11109_v40  ;;  %v11910_v40 = vpack.c.bf16 %v11154_v38, %v11152_v34  ;;  %v11911_v44 = vld [vmem:[#allocation17_spill] sm:$0xff]  ;;  %v11917_v30 = vand.u32 4294901760, %v11304_v6  ;;  %v11533_v38 = vld [vmem:[#allocation11 + $0xe0] sm:$0xff] }
0x2e75   :  { %5425 = vmatmul.mubr.f32.gmra.mrb[36].mxu0 %v5424_v63  ;;  %6152 = vmatmul.mubr.f32.gmra.mrb[44].mxu1 %v5424_v63  ;;  %v11526_v34 = vld [vmem:[#allocation11 + $0xe8] sm:$0xff] }
0x2e76   :  { %5430 = vmatprep.mubr.f32.mxu0 %v11870_v33  ;;  %6157 = vmatprep.mubr.f32.mxu1 %v11870_v33  ;;  %v5435_v4 = vand.u32 4294901760, %v5434_v56 }
0x2e77   :  { %6228 = vmatpush1.msra.mxu1 %v6227_v61  ;;  %5501 = vmatpush1.msra.mxu0 %v5500_v0  ;;  %v11905_v0 = vpack.c.bf16 %v11115_v32, %v11113_v27  ;;  %v11908_v27 = vpack.c.bf16 %v11158_v45, %v11156_v52  ;;  %v11909_v32 = vpack.c.bf16 %v11145_v35, %v11143_v28  ;;  %v11914_v28 = vld [vmem:[#allocation20_spill] sm:$0xff]  ;;  %v11915_v35 = vand.u32 4294901760, %v11288_v47  ;;  %v11918_v45 = vld [vmem:[#allocation14_spill] sm:$0xff] }
0x2e78   :  { %8889 = vmatprep.subr.bf16.mxu1 %v11903_v11  ;;  %8841 = vmatprep.subr.bf16.mxu0 %v11904_v16  ;;  %v8372_v52 = vld [vmem:[%s11820_s4 + $0x4] sm:$0x3] }
0x2e79   :  { %5436 = vmatmul.mubr.f32.gmra.mrb[38].mxu0 %v5435_v4  ;;  %6163 = vmatmul.mubr.f32.gmra.mrb[46].mxu1 %v5435_v4 }
0x2e7a   :  { %5556 = vmatprep.mubr.f32.mxu0 %v11870_v33  ;;  %6283 = vmatprep.mubr.f32.mxu1 %v11870_v33 }
0x2e7d   :  { %5558 = vmatmul.mubr.f32.vlgmr.msra.gmra.mrb[32].mxu0 %v11279_v10  ;;  %6285 = vmatmul.mubr.f32.vlgmr.msra.gmra.mrb[40].mxu1 %v11279_v10 }
0x2e7e   :  { %8891 = vmatpush1.bf16.msra.mxu1 %v11905_v0  ;;  %5563 = vmatprep.mubr.f32.mxu0 %v11870_v33 }
0x2e7f   :  { %6290 = vmatprep.mubr.f32.mxu1 %v11870_v33  ;;  %8893 = vmatprep.subr.bf16.mxu1 %v11906_v21 }
0x2e80   :  { %8843 = vmatpush1.bf16.msra.mxu0 %v11907_v39 }
0x2e81   :  { %5565 = vmatmul.mubr.f32.gmra.mrb[34].mxu0 %v11295_v59  ;;  %6292 = vmatmul.mubr.f32.gmra.mrb[42].mxu1 %v11295_v59 }
0x2e82   :  { %5570 = vmatprep.mubr.f32.mxu0 %v11870_v33  ;;  %6297 = vmatprep.mubr.f32.mxu1 %v11870_v33 }
0x2e83   :  { %8895 = vmatpush1.bf16.msra.mxu1 %v11908_v27  ;;  %8845 = vmatprep.subr.bf16.mxu0 %v11909_v32 }
0x2e84   :  { %8847 = vmatpush1.bf16.msra.mxu0 %v11910_v40  ;;  %6338 = vmatprep.subr.mxu1 %v11288_v47 }
0x2e85   :  { %5572 = vmatmul.mubr.f32.gmra.mrb[36].mxu0 %v11318_v58  ;;  %6299 = vmatmul.mubr.f32.gmra.mrb[44].mxu1 %v11318_v58 }
0x2e86   :  { %5577 = vmatprep.mubr.f32.mxu0 %v11870_v33  ;;  %6304 = vmatprep.mubr.f32.mxu1 %v11870_v33 }
0x2e87   :  { %6341 = vmatpush1.msra.mxu1 %v11308_v1  ;;  %5611 = vmatprep.subr.mxu0 %v11292_v19 }
0x2e88   :  { %5614 = vmatpush1.msra.mxu0 %v11304_v6  ;;  %8897 = vmatprep.subr.bf16.mxu1 %v11072_v23 }
0x2e89   :  { %5579 = vmatmul.mubr.f32.gmra.mrb[38].mxu0 %v11341_v5  ;;  %6306 = vmatmul.mubr.f32.gmra.mrb[46].mxu1 %v11341_v5 }
0x2e8a   :  { %5669 = vmatprep.mubr.f32.mxu0 %v11870_v33  ;;  %6396 = vmatprep.mubr.f32.mxu1 %v11870_v33 }
0x2e8b   :  { %8849 = vmatprep.subr.bf16.mxu0 %v11070_v13 }
0x2e8d   :  { %5672 = vmatmul.mubr.f32.vlgmr.msra.gmra.mrb[32].mxu0 %v11284_v3  ;;  %6399 = vmatmul.mubr.f32.vlgmr.msra.gmra.mrb[40].mxu1 %v11284_v3 }
0x2e8e   :  { %8899 = vmatpush1.bf16.msra.mxu1 %v11077_v8  ;;  %5677 = vmatprep.mubr.f32.mxu0 %v11870_v33 }
0x2e8f   :  { %6404 = vmatprep.mubr.f32.mxu1 %v11870_v33  ;;  %8901 = vmatprep.subr.bf16.mxu1 %v11086_v20 }
0x2e90   :  { %8851 = vmatpush1.bf16.msra.mxu0 %v11074_v18 }
0x2e91   :  { %5680 = vmatmul.mubr.f32.gmra.mrb[34].mxu0 %v11311_v15  ;;  %6407 = vmatmul.mubr.f32.gmra.mrb[42].mxu1 %v11311_v15 }
0x2e92   :  { %5685 = vmatprep.mubr.f32.mxu0 %v11870_v33  ;;  %6412 = vmatprep.mubr.f32.mxu1 %v11870_v33 }
0x2e93   :  { %8903 = vmatpush1.bf16.msra.mxu1 %v11091_v7  ;;  %8853 = vmatprep.subr.bf16.mxu0 %v11084_v22 }
0x2e94   :  { %8855 = vmatpush1.bf16.msra.mxu0 %v11088_v46  ;;  %6446 = vmatprep.subr.mxu1 %v11131_v42 }
0x2e95   :  { %5688 = vmatmul.mubr.f32.gmra.mrb[36].mxu0 %v11328_v2  ;;  %6415 = vmatmul.mubr.f32.gmra.mrb[44].mxu1 %v11328_v2 }
0x2e96   :  { %5693 = vmatprep.mubr.f32.mxu0 %v11870_v33  ;;  %6420 = vmatprep.mubr.f32.mxu1 %v11870_v33 }
0x2e97   :  { %6448 = vmatpush1.msra.mxu1 %v11139_v48  ;;  %5719 = vmatprep.subr.mxu0 %v11128_v57 }
0x2e98   :  { %5721 = vmatpush1.msra.mxu0 %v11136_v60  ;;  %8905 = vmatprep.subr.bf16.mxu1 %v11248_v53 }
0x2e99   :  { %5696 = vmatmul.mubr.f32.gmra.mrb[38].mxu0 %v11356_v37  ;;  %6423 = vmatmul.mubr.f32.gmra.mrb[46].mxu1 %v11356_v37 }
0x2e9a   :  { %5776 = vmatprep.mubr.f32.mxu0 %v11870_v33  ;;  %6503 = vmatprep.mubr.f32.mxu1 %v11870_v33 }
0x2e9b   :  { %8857 = vmatprep.subr.bf16.mxu0 %v11260_v41  ;;  %v11919_v41 = vld [vmem:[#allocation15_spill] sm:$0xff] }
0x2e9c   :  { %v5300_v53 = vrot.slane %v8372_v52, %v11919_v41 }
0x2e9d   :  { %5780 = vmatmul.mubr.f32.vlgmr.msra.gmra.mrb[32].mxu0 %v11300_v26  ;;  %6507 = vmatmul.mubr.f32.vlgmr.msra.gmra.mrb[40].mxu1 %v11300_v26 }
0x2e9e   :  { %8907 = vmatpush1.bf16.msra.mxu1 %v11254_v25  ;;  %5785 = vmatprep.mubr.f32.mxu0 %v11870_v33 }
0x2e9f   :  { %6512 = vmatprep.mubr.f32.mxu1 %v11870_v33  ;;  %8909 = vmatprep.subr.bf16.mxu1 %v11266_v17  ;;  %v5296_v17 = vrot.slane %v8372_v52, %v11918_v45 }
0x2ea0   :  { %8859 = vmatpush1.bf16.msra.mxu0 %v11911_v44 }
0x2ea1   :  { %5789 = vmatmul.mubr.f32.gmra.mrb[34].mxu0 %v11323_v12  ;;  %6516 = vmatmul.mubr.f32.gmra.mrb[42].mxu1 %v11323_v12 }
0x2ea2   :  { %5794 = vmatprep.mubr.f32.mxu0 %v11870_v33  ;;  %6521 = vmatprep.mubr.f32.mxu1 %v11870_v33 }
0x2ea3   :  { %8911 = vmatpush1.bf16.msra.mxu1 %v11912_v9  ;;  %8861 = vmatprep.subr.bf16.mxu0 %v11913_v55 }
0x2ea4   :  { %8863 = vmatpush1.bf16.msra.mxu0 %v11914_v28  ;;  %6575 = vmatprep.subr.mxu1 %v11915_v35 }
0x2ea5   :  { %5798 = vmatmul.mubr.f32.gmra.mrb[36].mxu0 %v11346_v14  ;;  %6525 = vmatmul.mubr.f32.gmra.mrb[44].mxu1 %v11346_v14 }
0x2ea6   :  { %5803 = vmatprep.mubr.f32.mxu0 %v11870_v33  ;;  %6530 = vmatprep.mubr.f32.mxu1 %v11870_v33 }
0x2ea7   :  { %6579 = vmatpush1.msra.mxu1 %v6225_v49  ;;  %5848 = vmatprep.subr.mxu0 %v11916_v62 }
0x2ea8   :  { %5852 = vmatpush1.msra.mxu0 %v11917_v30  ;;  %8913 = vmatprep.subr.bf16.mxu1 %v11072_v23  ;;  %v6834_v23 = vld [vmem:[#allocation11 + $0xb8] sm:$0xff] }
0x2ea9   :  { %5807 = vmatmul.mubr.f32.gmra.mrb[38].mxu0 %v11364_v29  ;;  %6534 = vmatmul.mubr.f32.gmra.mrb[46].mxu1 %v11364_v29 }
0x2eaa   :  { %5907 = vmatprep.mubr.f32.mxu0 %v11870_v33  ;;  %6634 = vmatprep.mubr.f32.mxu1 %v11870_v33 }
0x2eab   :  { %8865 = vmatprep.subr.bf16.mxu0 %v11070_v13  ;;  %v6832_v13 = vld [vmem:[#allocation11 + $0xa8] sm:$0xff] }
0x2ead   :  { %5909 = vmatmul.mubr.f32.vlgmr.msra.gmra.mrb[32].mxu0 %v11279_v10  ;;  %6636 = vmatmul.mubr.f32.vlgmr.msra.gmra.mrb[40].mxu1 %v11279_v10 }
0x2eae   :  { %8915 = vmatpush1.bf16.msra.mxu1 %v11077_v8  ;;  %5914 = vmatprep.mubr.f32.mxu0 %v11870_v33  ;;  %v6831_v8 = vld [vmem:[#allocation11 + $0xa0] sm:$0xff] }
0x2eaf   :  { %6641 = vmatprep.mubr.f32.mxu1 %v11870_v33  ;;  %8917 = vmatprep.subr.bf16.mxu1 %v11086_v20  ;;  %v6836_v20 = vld [vmem:[#allocation11 + $0xc8] sm:$0xff] }
0x2eb0   :  { %8867 = vmatpush1.bf16.msra.mxu0 %v11074_v18  ;;  %v11499_v18 = vpack.c.bf16 %v6834_v23, %v6832_v13 }
0x2eb1   :  { %5916 = vmatmul.mubr.f32.gmra.mrb[34].mxu0 %v11295_v59  ;;  %6643 = vmatmul.mubr.f32.gmra.mrb[42].mxu1 %v11295_v59 }
0x2eb2   :  { %5921 = vmatprep.mubr.f32.mxu0 %v11870_v33  ;;  %6648 = vmatprep.mubr.f32.mxu1 %v11870_v33 }
0x2eb3   :  { %8919 = vmatpush1.bf16.msra.mxu1 %v11091_v7  ;;  %8869 = vmatprep.subr.bf16.mxu0 %v11084_v22  ;;  %v6833_v22 = vld [vmem:[#allocation11 + $0xb0] sm:$0xff] }
0x2eb4   :  { %8871 = vmatpush1.bf16.msra.mxu0 %v11088_v46  ;;  %6680 = vmatprep.subr.mxu1 %v11131_v42  ;;  %v6838_v46 = vld [vmem:[#allocation11 + $0xd8] sm:$0xff]  ;;  %v11510_v7 = vpack.c.bf16 %v6833_v22, %v6831_v8  ;;  %v6835_v42 = vld [vmem:[#allocation11 + $0xc0] sm:$0xff] }
0x2eb5   :  { %5923 = vmatmul.mubr.f32.gmra.mrb[36].mxu0 %v11318_v58  ;;  %6650 = vmatmul.mubr.f32.gmra.mrb[44].mxu1 %v11318_v58 }
0x2eb6   :  { %5928 = vmatprep.mubr.f32.mxu0 %v11870_v33  ;;  %6655 = vmatprep.mubr.f32.mxu1 %v11870_v33 }
0x2eb7   :  { %6682 = vmatpush1.msra.mxu1 %v11139_v48  ;;  %5953 = vmatprep.subr.mxu0 %v11128_v57  ;;  %v11512_v57 = vpack.c.bf16 %v6838_v46, %v6836_v20 }
0x2eb8   :  { %5955 = vmatpush1.msra.mxu0 %v11136_v60  ;;  %8929 = vmatprep.subr.bf16.mxu1 %v11499_v18  ;;  %v6837_v60 = vld [vmem:[#allocation11 + $0xd0] sm:$0xff] }
0x2eb9   :  { %5930 = vmatmul.mubr.f32.gmra.mrb[38].mxu0 %v11341_v5  ;;  %6657 = vmatmul.mubr.f32.gmra.mrb[46].mxu1 %v11341_v5  ;;  %v11519_v48 = vpack.c.bf16 %v6837_v60, %v6835_v42 }
0x2eba   :  { %6010 = vmatprep.mubr.f32.mxu0 %v11870_v33  ;;  %6737 = vmatprep.mubr.f32.mxu1 %v11870_v33 }
0x2ebb   :  { %8921 = vmatprep.subr.bf16.mxu0 %v11499_v18 }
0x2ebd   :  { %6012 = vmatmul.mubr.f32.vlgmr.msra.gmra.mrb[32].mxu0 %v11279_v10  ;;  %6739 = vmatmul.mubr.f32.vlgmr.msra.gmra.mrb[40].mxu1 %v11279_v10 }
0x2ebe   :  { %6017 = vmatprep.mubr.f32.mxu0 %v11870_v33  ;;  %6744 = vmatprep.mubr.f32.mxu1 %v11870_v33 }
0x2ebf   :  { %8923 = vmatpush1.bf16.msra.mxu0 %v11510_v7  ;;  %8931 = vmatpush1.bf16.msra.mxu1 %v11510_v7 }
0x2ec0   :  { %8925 = vmatprep.subr.bf16.mxu0 %v11512_v57  ;;  %8933 = vmatprep.subr.bf16.mxu1 %v11512_v57 }
0x2ec1   :  { %6019 = vmatmul.mubr.f32.gmra.mrb[34].mxu0 %v11295_v59  ;;  %6746 = vmatmul.mubr.f32.gmra.mrb[42].mxu1 %v11295_v59 }
0x2ec2   :  { %6024 = vmatprep.mubr.f32.mxu0 %v11870_v33  ;;  %6751 = vmatprep.mubr.f32.mxu1 %v11870_v33 }
0x2ec3   :  { %8927 = vmatpush1.bf16.msra.mxu0 %v11519_v48  ;;  %8935 = vmatpush1.bf16.msra.mxu1 %v11519_v48 }
0x2ec4   :  { %6853 = vmatprep.subr.mxu0 %v11526_v34  ;;  %6974 = vmatprep.subr.mxu1 %v11526_v34 }
0x2ec5   :  { %6026 = vmatmul.mubr.f32.gmra.mrb[36].mxu0 %v11318_v58  ;;  %6753 = vmatmul.mubr.f32.gmra.mrb[44].mxu1 %v11318_v58 }
0x2ec6   :  { %6031 = vmatprep.mubr.f32.mxu0 %v11870_v33  ;;  %6758 = vmatprep.mubr.f32.mxu1 %v11870_v33 }
0x2ec7   :  { %6854 = vmatpush1.msra.mxu0 %v11533_v38  ;;  %6975 = vmatpush1.msra.mxu1 %v11533_v38 }
0x2ec8   :  { %8937 = vmatprep.subr.bf16.mxu0 %v11499_v18  ;;  %8945 = vmatprep.subr.bf16.mxu1 %v11499_v18 }
0x2ec9   :  { %6033 = vmatmul.mubr.f32.gmra.mrb[38].mxu0 %v11341_v5  ;;  %6760 = vmatmul.mubr.f32.gmra.mrb[46].mxu1 %v11341_v5 }
0x2eca   :  { %6909 = vmatprep.mubr.f32.mxu0 %v11870_v33  ;;  %7030 = vmatprep.mubr.f32.mxu1 %v11870_v33 }
0x2ecd   :  { %6910 = vmatmul.mubr.f32.vlgmr.msra.gmra.mrb[40].mxu0 %v11870_v33 }
0x2ece   :  { %8939 = vmatpush1.bf16.msra.mxu0 %v11510_v7  ;;  %7151 = vmatprep.mubr.f32.mxu0 %v11870_v33 }
0x2ecf   :  { %8941 = vmatprep.subr.bf16.mxu0 %v11512_v57 }
0x2ed2   :  { %8943 = vmatpush1.bf16.msra.mxu0 %v11519_v48 }
0x2ed3   :  { %7095 = vmatprep.subr.mxu0 %v11526_v34 }
0x2ed6   :  { %7096 = vmatpush1.msra.mxu0 %v11533_v38 }
0x2ed7   :  { %8953 = vmatprep.subr.bf16.mxu0 %v11499_v18 }
0x2f90   :  { %v6013_v25 = vpop.f32.mrb[32].mxu0  ;;  %v6740_v12 = vpop.f32.mrb[40].mxu1 }
0x2f91   :  { %v9044_v10 = vadd.f32 %v6013_v25, %v5296_v17  ;;  %v6015_v3 = vpop.f32.mrb[33].mxu0  ;;  %v6742_v47 = vpop.f32.mrb[41].mxu1 }
0x2f92   :  { %v9045_v19 = vadd.f32 %v6015_v3, %v5300_v53  ;;  %v6806_v59 = vcombine.low %v6740_v12, %v6742_v47  ;;  %v6807_v26 = vcombine.high %v6740_v12, %v6742_v47 }
0x2f94   :  { %v6774_v6 = vcombine.low %v9044_v10, %v9045_v19  ;;  %v6775_v1 = vcombine.high %v9044_v10, %v9045_v19  ;;  %6822 = vst.msk [vmem:[#allocation3] sm:$0xff] %vm10231_vm3, %v6806_v59  ;;  %6823 = vst.msk [vmem:[#allocation3 + $0x8] sm:$0xff] %vm10231_vm3, %v6807_v26  ;;  %v6020_v49 = vpop.f32.mrb[34].mxu0  ;;  %v6747_v58 = vpop.f32.mrb[42].mxu1 }
0x2f95   :  { %v9046_v2 = vadd.f32 %v6020_v49, %v5296_v17  ;;  %v6022_v31 = vpop.f32.mrb[35].mxu0  ;;  %v6749_v5 = vpop.f32.mrb[43].mxu1 }
0x2f96   :  { %6790 = vst.msk [vmem:[#allocation2] sm:$0xff] %vm10231_vm3, %v6774_v6  ;;  %6791 = vst.msk [vmem:[#allocation2 + $0x8] sm:$0xff] %vm10231_vm3, %v6775_v1  ;;  %v9047_v14 = vadd.f32 %v6022_v31, %v5300_v53  ;;  %v6808_v50 = vcombine.low %v6747_v58, %v6749_v5  ;;  %v6809_v43 = vcombine.high %v6747_v58, %v6749_v5 }
0x2f98   :  { %v6776_v36 = vcombine.low %v9046_v2, %v9047_v14  ;;  %v6777_v37 = vcombine.high %v9046_v2, %v9047_v14  ;;  %6824 = vst.msk [vmem:[#allocation3 + $0x10] sm:$0xff] %vm10231_vm3, %v6808_v50  ;;  %6825 = vst.msk [vmem:[#allocation3 + $0x18] sm:$0xff] %vm10231_vm3, %v6809_v43  ;;  %v6027_v24 = vpop.f32.mrb[36].mxu0  ;;  %v6754_v51 = vpop.f32.mrb[44].mxu1 }
0x2f99   :  { %v9048_v54 = vadd.f32 %v6027_v24, %v5296_v17  ;;  %v6029_v63 = vpop.f32.mrb[37].mxu0  ;;  %v6756_v29 = vpop.f32.mrb[45].mxu1 }
0x2f9a   :  { %6792 = vst.msk [vmem:[#allocation2 + $0x10] sm:$0xff] %vm10231_vm3, %v6776_v36  ;;  %6793 = vst.msk [vmem:[#allocation2 + $0x18] sm:$0xff] %vm10231_vm3, %v6777_v37  ;;  %v9049_v61 = vadd.f32 %v6029_v63, %v5300_v53  ;;  %v6810_v56 = vcombine.low %v6754_v51, %v6756_v29  ;;  %v6811_v4 = vcombine.high %v6754_v51, %v6756_v29 }
0x2f9c   :  { %v6778_v11 = vcombine.low %v9048_v54, %v9049_v61  ;;  %v6779_v16 = vcombine.high %v9048_v54, %v9049_v61  ;;  %6826 = vst.msk [vmem:[#allocation3 + $0x20] sm:$0xff] %vm10231_vm3, %v6810_v56  ;;  %6827 = vst.msk [vmem:[#allocation3 + $0x28] sm:$0xff] %vm10231_vm3, %v6811_v4  ;;  %v6034_v0 = vpop.f32.mrb[38].mxu0  ;;  %v6761_v21 = vpop.f32.mrb[46].mxu1 }
0x2f9d   :  { %v9050_v39 = vadd.f32 %v6034_v0, %v5296_v17  ;;  %v6036_v27 = vpop.f32.mrb[39].mxu0  ;;  %v6763_v32 = vpop.f32.mrb[47].mxu1  ;;  %v6841_v30 = vld [vmem:[#allocation2] sm:$0xff]  ;;  %v6960_v49 = vld [vmem:[#allocation2 + $0x8] sm:$0xff] }
0x2f9e   :  { %6794 = vst.msk [vmem:[#allocation2 + $0x20] sm:$0xff] %vm10231_vm3, %v6778_v11  ;;  %6795 = vst.msk [vmem:[#allocation2 + $0x28] sm:$0xff] %vm10231_vm3, %v6779_v16  ;;  %v9051_v40 = vadd.f32 %v6036_v27, %v5300_v53  ;;  %v6812_v44 = vcombine.low %v6761_v21, %v6763_v32  ;;  %v6813_v9 = vcombine.high %v6761_v21, %v6763_v32 }
0x2f9f   :  { %v6843_v23 = vcombine.high %v6841_v30, %v6841_v30  ;;  %v6962_v31 = vcombine.high %v6960_v49, %v6960_v49 }
0x2fa0   :  { %v6780_v55 = vcombine.low %v9050_v39, %v9051_v40  ;;  %v6781_v28 = vcombine.high %v9050_v39, %v9051_v40  ;;  %6828 = vst.msk [vmem:[#allocation3 + $0x30] sm:$0xff] %vm10231_vm3, %v6812_v44  ;;  %6829 = vst.msk [vmem:[#allocation3 + $0x38] sm:$0xff] %vm10231_vm3, %v6813_v9  ;;  %v6911_v35 = vpop.f32.mrb[40].mxu0 }
0x2fa1   :  { %v6913_v62 = vpop.f32.mrb[41].mxu0  ;;  %v6912_v13 = vadd.f32 %v6911_v35, %v6841_v30  ;;  %v7081_v9 = vld [vmem:[#allocation2 + $0x10] sm:$0xff] }
0x2fa2   :  { %6796 = vst.msk [vmem:[#allocation2 + $0x30] sm:$0xff] %vm10231_vm3, %v6780_v55  ;;  %6797 = vst.msk [vmem:[#allocation2 + $0x38] sm:$0xff] %vm10231_vm3, %v6781_v28  ;;  %v6914_v20 = vadd.f32 %v6913_v62, %v6843_v23  ;;  %v7083_v35 = vcombine.high %v7081_v9, %v7081_v9 }
0x2fa3   :  { %v7158_v55 = vld [vmem:[#allocation3 + $0x28] sm:$0xff] }
0x2fa4   :  { %v7160_v23 = vcombine.high %v7158_v55, %v7158_v55 }
0x2fa7   :  { %v6916_v8 = vld [vmem:[#allocation3 + $0x38] sm:$0xff]  ;;  %v7037_v58 = vld [vmem:[#allocation3 + $0x30] sm:$0xff] }
0x2fa8   :  { %v6920_v22 = vadd.f32 %v6916_v8, %v6912_v13  ;;  %v6918_v46 = vcombine.high %v6916_v8, %v6916_v8  ;;  %v7039_v43 = vcombine.high %v7037_v58, %v7037_v58 }
0x2faa   :  { %9520 = vtanh.f32 %v6920_v22  ;;  %v6921_v42 = vadd.f32 %v6918_v46, %v6914_v20  ;;  %v8373_v45 = vmul.f32 -1.442695, %v6920_v22 }
0x2fac   :  { %9522 = vtanh.f32 %v6921_v42 }
0x2fad   :  { %9524 = vpow2.f32 %v8373_v45 }
0x2fb4   :  { %v9521_v60 = vpop.eup %9520 }
0x2fb5   :  { %6933 = vrot.lane.b32.xlu0 %v9521_v60, %s9680_s22 }
0x2fb6   :  { %v9523_v52 = vpop.eup %9522 }
0x2fb7   :  { %6935 = vrot.lane.b32.xlu1 %v9523_v52, %s9680_s22  ;;  %v9525_v17 = vpop.eup %9524 }
0x2fb8   :  { %v6925_v41 = vadd.f32 1.0, %v9525_v17 }
0x2fba   :  { %9526 = vrcp.f32 %v6925_v41 }
0x2fc4   :  { %v9527_v12 = vpop.eup %9526 }
0x2fc5   :  { %v6930_v47 = vmul.f32 0.0, %v9527_v12 }
0x3027   :  { %v6934_v53 = vpop.permute.xlu0 %6933 }
0x3029   :  { %v6936_v25 = vpop.permute.xlu1 %6935 }
0x302a   :  { %v6937_v10 = vsel %vm1739_vm4, %v6934_v53, %v6936_v25 }
0x302b   :  { %v6939_v3 = vmul.f32 %v9527_v12, %v6937_v10 }
0x302d   :  { %6941 = vrot.lane.b32.xlu0 %v6939_v3, %s9681_s23 }
0x309f   :  { %v6942_v19 = vpop.permute.xlu0 %6941 }
0x30a0   :  { %v6944_v59 = vadd.f32 %v6942_v19, %v6930_v47 }
0x30a2   :  { %9528 = vtanh.f32 %v6944_v59 }
0x30ac   :  { %v9529_v26 = vpop.eup %9528 }
0x30ad   :  { %6947 = vrot.lane.b32.xlu1 %v9529_v26, %s9681_s23 }
0x311f   :  { %v6948_v6 = vpop.permute.xlu1 %6947 }
0x3120   :  { %v11598_v1 = vmul.f32 %v9527_v12, %v6948_v6  ;;  %v7202_v6 = vld [vmem:[#allocation2 + $0x18] sm:$0xff] }
0x3122   :  { %6952 = vrot.lane.b32.xlu0 %v11598_v1, %s9682_s24 }
0x3194   :  { %v6953_v15 = vpop.permute.xlu0 %6952 }
0x3195   :  { %6955 = vst.msk [vmem:[#allocation4] sm:$0xf] %vm1758_vm5, %v6953_v15  ;;  %8374 = vmatmul.mubr.msk.f32.vlgmr.msra.gmra.mrb[48].mxu1 %vm111_vm0, %v6953_v15  ;;  %v7279_v15 = vld [vmem:[#allocation3 + $0x20] sm:$0xff] }
0x3196   :  { %8947 = vmatpush1.bf16.msra.mxu1 %v11510_v7  ;;  %7272 = vmatprep.mubr.f32.mxu1 %v11870_v33 }
0x3197   :  { %8949 = vmatprep.subr.bf16.mxu1 %v11512_v57 }
0x319a   :  { %8951 = vmatpush1.bf16.msra.mxu1 %v11519_v48 }
0x319b   :  { %7216 = vmatprep.subr.mxu1 %v11526_v34 }
0x319e   :  { %7217 = vmatpush1.msra.mxu1 %v11533_v38 }
0x319f   :  { %8961 = vmatprep.subr.bf16.mxu1 %v11499_v18 }
0x3268   :  { %v7032_v2 = vpop.f32.mrb[48].mxu1 }
0x3269   :  { %v7033_v5 = vadd.f32 %v7032_v2, %v6960_v49  ;;  %v7034_v14 = vpop.f32.mrb[49].mxu1 }
0x326a   :  { %v7035_v50 = vadd.f32 %v7034_v14, %v6962_v31  ;;  %v7281_v14 = vcombine.high %v7279_v15, %v7279_v15 }
0x326b   :  { %v7041_v36 = vadd.f32 %v7037_v58, %v7033_v5  ;;  %v7204_v58 = vcombine.high %v7202_v6, %v7202_v6 }
0x326c   :  { %v7042_v37 = vadd.f32 %v7039_v43, %v7035_v50 }
0x326d   :  { %9530 = vtanh.f32 %v7041_v36  ;;  %v8375_v54 = vmul.f32 -1.442695, %v7041_v36 }
0x326e   :  { %9532 = vtanh.f32 %v7042_v37 }
0x326f   :  { %9534 = vpow2.f32 %v8375_v54 }
0x3277   :  { %v9531_v24 = vpop.eup %9530 }
0x3278   :  { %v9533_v51 = vpop.eup %9532  ;;  %7054 = vrot.lane.b32.xlu1 %v9531_v24, %s9680_s22 }
0x3279   :  { %7056 = vrot.lane.b32.xlu0 %v9533_v51, %s9680_s22  ;;  %v9535_v63 = vpop.eup %9534 }
0x327a   :  { %v7046_v29 = vadd.f32 1.0, %v9535_v63 }
0x327c   :  { %9536 = vrcp.f32 %v7046_v29 }
0x3286   :  { %v9537_v4 = vpop.eup %9536 }
0x3287   :  { %v7051_v0 = vmul.f32 %v9537_v4, %v6944_v59 }
0x32ea   :  { %v7055_v61 = vpop.permute.xlu1 %7054 }
0x32eb   :  { %v7057_v56 = vpop.permute.xlu0 %7056 }
0x32ec   :  { %v7058_v11 = vsel %vm1739_vm4, %v7055_v61, %v7057_v56 }
0x32ed   :  { %v7060_v16 = vmul.f32 %v9537_v4, %v7058_v11 }
0x32ef   :  { %7062 = vrot.lane.b32.xlu1 %v7060_v16, %s9681_s23 }
0x3361   :  { %v7063_v21 = vpop.permute.xlu1 %7062 }
0x3362   :  { %v7065_v39 = vadd.f32 %v7063_v21, %v7051_v0 }
0x3364   :  { %9538 = vtanh.f32 %v7065_v39 }
0x336e   :  { %v9539_v27 = vpop.eup %9538 }
0x336f   :  { %7068 = vrot.lane.b32.xlu0 %v9539_v27, %s9681_s23 }
0x33e1   :  { %v7069_v32 = vpop.permute.xlu0 %7068 }
0x33e2   :  { %v11616_v40 = vmul.f32 %v9537_v4, %v7069_v32  ;;  %v7323_v32 = vld [vmem:[#allocation2 + $0x20] sm:$0xff] }
0x33e4   :  { %7073 = vrot.lane.b32.xlu1 %v11616_v40, %s9682_s24 }
0x3456   :  { %v7074_v44 = vpop.permute.xlu1 %7073 }
0x3457   :  { %7076 = vst.msk [vmem:[#allocation4 + $0x4] sm:$0xf] %vm1758_vm5, %v7074_v44  ;;  %8376 = vmatmul.mubr.msk.f32.vlgmr.msra.gmra.mrb[42].mxu0 %vm111_vm0, %v7074_v44  ;;  %v7400_v44 = vld [vmem:[#allocation3 + $0x18] sm:$0xff] }
0x3458   :  { %8955 = vmatpush1.bf16.msra.mxu0 %v11510_v7  ;;  %7393 = vmatprep.mubr.f32.mxu0 %v11870_v33 }
0x3459   :  { %8957 = vmatprep.subr.bf16.mxu0 %v11512_v57 }
0x345c   :  { %8959 = vmatpush1.bf16.msra.mxu0 %v11519_v48 }
0x345d   :  { %7337 = vmatprep.subr.mxu0 %v11526_v34 }
0x3460   :  { %7338 = vmatpush1.msra.mxu0 %v11533_v38 }
0x3461   :  { %8969 = vmatprep.subr.bf16.mxu0 %v11499_v18 }
0x352a   :  { %v7153_v28 = vpop.f32.mrb[42].mxu0 }
0x352b   :  { %v7154_v62 = vadd.f32 %v7153_v28, %v7081_v9  ;;  %v7155_v30 = vpop.f32.mrb[43].mxu0 }
0x352c   :  { %v7156_v13 = vadd.f32 %v7155_v30, %v7083_v35  ;;  %v7402_v30 = vcombine.high %v7400_v44, %v7400_v44 }
0x352d   :  { %v7162_v8 = vadd.f32 %v7158_v55, %v7154_v62  ;;  %v7325_v55 = vcombine.high %v7323_v32, %v7323_v32 }
0x352e   :  { %v7163_v22 = vadd.f32 %v7160_v23, %v7156_v13 }
0x352f   :  { %9540 = vtanh.f32 %v7162_v8  ;;  %v8377_v42 = vmul.f32 -1.442695, %v7162_v8 }
0x3530   :  { %9542 = vtanh.f32 %v7163_v22 }
0x3531   :  { %9544 = vpow2.f32 %v8377_v42 }
0x3539   :  { %v9541_v20 = vpop.eup %9540 }
0x353a   :  { %v9543_v46 = vpop.eup %9542  ;;  %7175 = vrot.lane.b32.xlu0 %v9541_v20, %s9680_s22 }
0x353b   :  { %7177 = vrot.lane.b32.xlu1 %v9543_v46, %s9680_s22  ;;  %v9545_v60 = vpop.eup %9544 }
0x353c   :  { %v7167_v52 = vadd.f32 1.0, %v9545_v60 }
0x353e   :  { %9546 = vrcp.f32 %v7167_v52 }
0x3548   :  { %v9547_v41 = vpop.eup %9546 }
0x3549   :  { %v7172_v12 = vmul.f32 %v9547_v41, %v7065_v39 }
0x35ac   :  { %v7176_v45 = vpop.permute.xlu0 %7175 }
0x35ad   :  { %v7178_v17 = vpop.permute.xlu1 %7177 }
0x35ae   :  { %v7179_v53 = vsel %vm1739_vm4, %v7176_v45, %v7178_v17 }
0x35af   :  { %v7181_v25 = vmul.f32 %v9547_v41, %v7179_v53 }
0x35b1   :  { %7183 = vrot.lane.b32.xlu0 %v7181_v25, %s9681_s23 }
0x3623   :  { %v7184_v10 = vpop.permute.xlu0 %7183 }
0x3624   :  { %v7186_v3 = vadd.f32 %v7184_v10, %v7172_v12 }
0x3626   :  { %9548 = vtanh.f32 %v7186_v3 }
0x3630   :  { %v9549_v47 = vpop.eup %9548 }
0x3631   :  { %7189 = vrot.lane.b32.xlu1 %v9549_v47, %s9681_s23 }
0x36a3   :  { %v7190_v19 = vpop.permute.xlu1 %7189 }
0x36a4   :  { %v11634_v59 = vmul.f32 %v9547_v41, %v7190_v19 }
0x36a6   :  { %7194 = vrot.lane.b32.xlu0 %v11634_v59, %s9682_s24 }
0x3718   :  { %v7195_v26 = vpop.permute.xlu0 %7194 }
0x3719   :  { %7197 = vst.msk [vmem:[#allocation4 + $0x8] sm:$0xf] %vm1758_vm5, %v7195_v26  ;;  %8378 = vmatmul.mubr.msk.f32.vlgmr.msra.gmra.mrb[50].mxu1 %vm111_vm0, %v7195_v26  ;;  %v7444_v26 = vld [vmem:[#allocation2 + $0x28] sm:$0xff] }
0x371a   :  { %8963 = vmatpush1.bf16.msra.mxu1 %v11510_v7  ;;  %7514 = vmatprep.mubr.f32.mxu1 %v11870_v33 }
0x371b   :  { %8965 = vmatprep.subr.bf16.mxu1 %v11512_v57 }
0x371e   :  { %8967 = vmatpush1.bf16.msra.mxu1 %v11519_v48 }
0x371f   :  { %7458 = vmatprep.subr.mxu1 %v11526_v34 }
0x3722   :  { %7459 = vmatpush1.msra.mxu1 %v11533_v38 }
0x3723   :  { %8977 = vmatprep.subr.bf16.mxu1 %v11499_v18 }
0x37ec   :  { %v7274_v49 = vpop.f32.mrb[50].mxu1 }
0x37ed   :  { %v7275_v2 = vadd.f32 %v7274_v49, %v7202_v6  ;;  %v7276_v31 = vpop.f32.mrb[51].mxu1  ;;  %v7521_v6 = vld [vmem:[#allocation3 + $0x10] sm:$0xff]  ;;  %v7446_v49 = vcombine.high %v7444_v26, %v7444_v26 }
0x37ee   :  { %v7277_v5 = vadd.f32 %v7276_v31, %v7204_v58 }
0x37ef   :  { %v7283_v50 = vadd.f32 %v7279_v15, %v7275_v2 }
0x37f0   :  { %v7284_v43 = vadd.f32 %v7281_v14, %v7277_v5  ;;  %v7523_v5 = vcombine.high %v7521_v6, %v7521_v6 }
0x37f1   :  { %9550 = vtanh.f32 %v7283_v50  ;;  %v8379_v24 = vmul.f32 -1.442695, %v7283_v50 }
0x37f2   :  { %9552 = vtanh.f32 %v7284_v43 }
0x37f3   :  { %9554 = vpow2.f32 %v8379_v24 }
0x37fb   :  { %v9551_v36 = vpop.eup %9550 }
0x37fc   :  { %v9553_v37 = vpop.eup %9552  ;;  %7296 = vrot.lane.b32.xlu1 %v9551_v36, %s9680_s22 }
0x37fd   :  { %7298 = vrot.lane.b32.xlu0 %v9553_v37, %s9680_s22  ;;  %v9555_v18 = vpop.eup %9554 }
0x37fe   :  { %v7288_v51 = vadd.f32 1.0, %v9555_v18 }
0x3800   :  { %9556 = vrcp.f32 %v7288_v51 }
0x380a   :  { %v9557_v29 = vpop.eup %9556 }
0x380b   :  { %v7293_v4 = vmul.f32 %v9557_v29, %v7186_v3 }
0x386e   :  { %v7297_v54 = vpop.permute.xlu1 %7296 }
0x386f   :  { %v7299_v63 = vpop.permute.xlu0 %7298 }
0x3870   :  { %v7300_v61 = vsel %vm1739_vm4, %v7297_v54, %v7299_v63 }
0x3871   :  { %v7302_v56 = vmul.f32 %v9557_v29, %v7300_v61 }
0x3873   :  { %7304 = vrot.lane.b32.xlu1 %v7302_v56, %s9681_s23 }
0x38e5   :  { %v7305_v11 = vpop.permute.xlu1 %7304 }
0x38e6   :  { %v7307_v16 = vadd.f32 %v7305_v11, %v7293_v4  ;;  %v7565_v11 = vld [vmem:[#allocation2 + $0x30] sm:$0xff] }
0x38e8   :  { %9558 = vtanh.f32 %v7307_v16 }
0x38f2   :  { %v9559_v0 = vpop.eup %9558 }
0x38f3   :  { %7310 = vrot.lane.b32.xlu0 %v9559_v0, %s9681_s23 }
0x3965   :  { %v7311_v21 = vpop.permute.xlu0 %7310 }
0x3966   :  { %v11652_v39 = vmul.f32 %v9557_v29, %v7311_v21  ;;  %v7567_v21 = vcombine.high %v7565_v11, %v7565_v11 }
0x3968   :  { %7315 = vrot.lane.b32.xlu1 %v11652_v39, %s9682_s24 }
0x39da   :  { %v7316_v27 = vpop.permute.xlu1 %7315 }
0x39db   :  { %7318 = vst.msk [vmem:[#allocation4 + $0xc] sm:$0xf] %vm1758_vm5, %v7316_v27  ;;  %8380 = vmatmul.mubr.msk.f32.vlgmr.msra.gmra.mrb[44].mxu0 %vm111_vm0, %v7316_v27 }
0x39dc   :  { %8971 = vmatpush1.bf16.msra.mxu0 %v11510_v7  ;;  %7635 = vmatprep.mubr.f32.mxu0 %v11870_v33 }
0x39dd   :  { %8973 = vmatprep.subr.bf16.mxu0 %v11512_v57 }
0x39e0   :  { %8975 = vmatpush1.bf16.msra.mxu0 %v11519_v48 }
0x39e1   :  { %7579 = vmatprep.subr.mxu0 %v11526_v34 }
0x39e4   :  { %7580 = vmatpush1.msra.mxu0 %v11533_v38 }
0x3aae   :  { %v7395_v9 = vpop.f32.mrb[44].mxu0 }
0x3aaf   :  { %v7396_v28 = vadd.f32 %v7395_v9, %v7323_v32  ;;  %v7397_v35 = vpop.f32.mrb[45].mxu0 }
0x3ab0   :  { %v7398_v62 = vadd.f32 %v7397_v35, %v7325_v55 }
0x3ab1   :  { %v7404_v13 = vadd.f32 %v7400_v44, %v7396_v28 }
0x3ab2   :  { %v7405_v23 = vadd.f32 %v7402_v30, %v7398_v62 }
0x3ab3   :  { %9560 = vtanh.f32 %v7404_v13  ;;  %v8381_v20 = vmul.f32 -1.442695, %v7404_v13 }
0x3ab4   :  { %9562 = vtanh.f32 %v7405_v23 }
0x3ab5   :  { %9564 = vpow2.f32 %v8381_v20 }
0x3abd   :  { %v9561_v8 = vpop.eup %9560 }
0x3abe   :  { %v9563_v22 = vpop.eup %9562  ;;  %7417 = vrot.lane.b32.xlu0 %v9561_v8, %s9680_s22 }
0x3abf   :  { %7419 = vrot.lane.b32.xlu1 %v9563_v22, %s9680_s22  ;;  %v9565_v46 = vpop.eup %9564 }
0x3ac0   :  { %v7409_v42 = vadd.f32 1.0, %v9565_v46 }
0x3ac2   :  { %9566 = vrcp.f32 %v7409_v42 }
0x3acc   :  { %v9567_v45 = vpop.eup %9566 }
0x3acd   :  { %v7414_v53 = vmul.f32 %v9567_v45, %v7307_v16  ;;  %v7642_v16 = vld [vmem:[#allocation3 + $0x8] sm:$0xff] }
0x3ace   :  { %v7644_v9 = vcombine.high %v7642_v16, %v7642_v16 }
0x3b30   :  { %v7418_v60 = vpop.permute.xlu0 %7417 }
0x3b31   :  { %v7420_v52 = vpop.permute.xlu1 %7419 }
0x3b32   :  { %v7421_v17 = vsel %vm1739_vm4, %v7418_v60, %v7420_v52 }
0x3b33   :  { %v7423_v41 = vmul.f32 %v9567_v45, %v7421_v17 }
0x3b35   :  { %7425 = vrot.lane.b32.xlu0 %v7423_v41, %s9681_s23 }
0x3ba7   :  { %v7426_v25 = vpop.permute.xlu0 %7425 }
0x3ba8   :  { %v7428_v12 = vadd.f32 %v7426_v25, %v7414_v53 }
0x3baa   :  { %9568 = vtanh.f32 %v7428_v12 }
0x3bb4   :  { %v9569_v10 = vpop.eup %9568 }
0x3bb5   :  { %7431 = vrot.lane.b32.xlu1 %v9569_v10, %s9681_s23  ;;  %v7763_v10 = vld [vmem:[#allocation3] sm:$0xff] }
0x3c27   :  { %v7432_v3 = vpop.permute.xlu1 %7431 }
0x3c28   :  { %v11669_v47 = vmul.f32 %v9567_v45, %v7432_v3 }
0x3c2a   :  { %7436 = vrot.lane.b32.xlu0 %v11669_v47, %s9682_s24 }
0x3c9c   :  { %v7437_v19 = vpop.permute.xlu0 %7436 }
0x3c9d   :  { %7439 = vst.msk [vmem:[#allocation4 + $0x10] sm:$0xf] %vm1758_vm5, %v7437_v19  ;;  %8382 = vmatmul.mubr.msk.f32.vlgmr.msra.gmra.mrb[52].mxu1 %vm111_vm0, %v7437_v19 }
0x3c9e   :  { %8979 = vmatpush1.bf16.msra.mxu1 %v11510_v7  ;;  %7756 = vmatprep.mubr.f32.mxu1 %v11870_v33 }
0x3c9f   :  { %8981 = vmatprep.subr.bf16.mxu1 %v11512_v57 }
0x3ca2   :  { %8983 = vmatpush1.bf16.msra.mxu1 %v11519_v48 }
0x3ca3   :  { %7700 = vmatprep.subr.mxu1 %v11526_v34 }
0x3ca6   :  { %7701 = vmatpush1.msra.mxu1 %v11533_v38 }
0x3d70   :  { %v7516_v15 = vpop.f32.mrb[52].mxu1 }
0x3d71   :  { %v7517_v58 = vadd.f32 %v7516_v15, %v7444_v26  ;;  %v7518_v2 = vpop.f32.mrb[53].mxu1 }
0x3d72   :  { %v7519_v31 = vadd.f32 %v7518_v2, %v7446_v49  ;;  %v7765_v49 = vcombine.high %v7763_v10, %v7763_v10 }
0x3d73   :  { %v7525_v14 = vadd.f32 %v7521_v6, %v7517_v58 }
0x3d74   :  { %v7526_v7 = vadd.f32 %v7523_v5, %v7519_v31 }
0x3d75   :  { %9570 = vtanh.f32 %v7525_v14  ;;  %v8383_v48 = vmul.f32 -1.442695, %v7525_v14 }
0x3d76   :  { %9572 = vtanh.f32 %v7526_v7 }
0x3d77   :  { %9574 = vpow2.f32 %v8383_v48 }
0x3d7f   :  { %v9571_v50 = vpop.eup %9570 }
0x3d80   :  { %v9573_v57 = vpop.eup %9572  ;;  %7538 = vrot.lane.b32.xlu1 %v9571_v50, %s9680_s22 }
0x3d81   :  { %7540 = vrot.lane.b32.xlu0 %v9573_v57, %s9680_s22  ;;  %v9575_v34 = vpop.eup %9574 }
0x3d82   :  { %v7530_v38 = vadd.f32 1.0, %v9575_v34 }
0x3d84   :  { %9576 = vrcp.f32 %v7530_v38 }
0x3d8e   :  { %v9577_v37 = vpop.eup %9576 }
0x3d8f   :  { %v7535_v51 = vmul.f32 %v9577_v37, %v7428_v12  ;;  %v7686_v12 = vld [vmem:[#allocation2 + $0x38] sm:$0xff] }
0x3d90   :  { %v7688_v19 = vcombine.high %v7686_v12, %v7686_v12 }
0x3df2   :  { %v7539_v43 = vpop.permute.xlu1 %7538 }
0x3df3   :  { %v7541_v36 = vpop.permute.xlu0 %7540 }
0x3df4   :  { %v7542_v24 = vsel %vm1739_vm4, %v7539_v43, %v7541_v36 }
0x3df5   :  { %v7544_v18 = vmul.f32 %v9577_v37, %v7542_v24 }
0x3df7   :  { %7546 = vrot.lane.b32.xlu1 %v7544_v18, %s9681_s23 }
0x3e69   :  { %v7547_v54 = vpop.permute.xlu1 %7546 }
0x3e6a   :  { %v7549_v63 = vadd.f32 %v7547_v54, %v7535_v51 }
0x3e6c   :  { %9578 = vtanh.f32 %v7549_v63 }
0x3e76   :  { %v9579_v29 = vpop.eup %9578 }
0x3e77   :  { %7552 = vrot.lane.b32.xlu0 %v9579_v29, %s9681_s23 }
0x3ee9   :  { %v7553_v61 = vpop.permute.xlu0 %7552 }
0x3eea   :  { %v11686_v56 = vmul.f32 %v9577_v37, %v7553_v61 }
0x3eec   :  { %7557 = vrot.lane.b32.xlu1 %v11686_v56, %s9682_s24 }
0x3f5e   :  { %v7558_v4 = vpop.permute.xlu1 %7557 }
0x3f5f   :  { %7560 = vst.msk [vmem:[#allocation4 + $0x14] sm:$0xf] %vm1758_vm5, %v7558_v4  ;;  %8384 = vmatmul.mubr.msk.f32.vlgmr.msra.gmra.mrb[46].mxu0 %vm111_vm0, %v7558_v4 }
0x3f60   :  { %8436 = vmatprep.mubr.msk.f32.mxu0 %vm9686_vm7, %v11870_v33 }
0x4032   :  { %v7637_v0 = vpop.f32.mrb[46].mxu0 }
0x4033   :  { %v7638_v27 = vadd.f32 %v7637_v0, %v7565_v11  ;;  %v7639_v32 = vpop.f32.mrb[47].mxu0  ;;  %v7816_v0 = vld [vmem:[%s11821_s5 + $0x10] sm:$0xff] }
0x4034   :  { %v7640_v44 = vadd.f32 %v7639_v32, %v7567_v21  ;;  %v7817_v21 = vld [vmem:[%s11821_s5 + $0x18] sm:$0xff]  ;;  %v7836_v32 = vand.u32 4294901760, %v7816_v0 }
0x4035   :  { %v7646_v55 = vadd.f32 %v7642_v16, %v7638_v27 }
0x4036   :  { %v7647_v28 = vadd.f32 %v7644_v9, %v7640_v44  ;;  %v7839_v44 = vand.u32 4294901760, %v7817_v21 }
0x4037   :  { %9580 = vtanh.f32 %v7646_v55  ;;  %v8385_v30 = vmul.f32 -1.442695, %v7646_v55 }
0x4038   :  { %9582 = vtanh.f32 %v7647_v28  ;;  %v11735_v55 = vpack.c.bf16 %v7839_v44, %v7836_v32  ;;  %v11737_v28 = vsub.f32 %v7816_v0, %v7836_v32 }
0x4039   :  { %9584 = vpow2.f32 %v8385_v30 }
0x4041   :  { %v9581_v35 = vpop.eup %9580 }
0x4042   :  { %v9583_v62 = vpop.eup %9582  ;;  %7659 = vrot.lane.b32.xlu0 %v9581_v35, %s9680_s22  ;;  %v11739_v35 = vsub.f32 %v7817_v21, %v7839_v44 }
0x4043   :  { %7661 = vrot.lane.b32.xlu1 %v9583_v62, %s9680_s22  ;;  %v9585_v13 = vpop.eup %9584 }
0x4044   :  { %v7651_v23 = vadd.f32 1.0, %v9585_v13 }
0x4046   :  { %9586 = vrcp.f32 %v7651_v23 }
0x4050   :  { %v9587_v20 = vpop.eup %9586 }
0x4051   :  { %v7656_v60 = vmul.f32 %v9587_v20, %v7549_v63  ;;  %v7815_v63 = vld [vmem:[%s11821_s5 + $0x8] sm:$0xff] }
0x4052   :  { %v7833_v61 = vand.u32 4294901760, %v7815_v63 }
0x40b4   :  { %v7660_v8 = vpop.permute.xlu0 %7659 }
0x40b5   :  { %v7662_v22 = vpop.permute.xlu1 %7661 }
0x40b6   :  { %v7663_v46 = vsel %vm1739_vm4, %v7660_v8, %v7662_v22  ;;  %v7818_v8 = vld [vmem:[%s11821_s5 + $0x20] sm:$0xff] }
0x40b7   :  { %v7665_v42 = vmul.f32 %v9587_v20, %v7663_v46 }
0x40b9   :  { %7667 = vrot.lane.b32.xlu0 %v7665_v42, %s9681_s23 }
0x412b   :  { %v7668_v52 = vpop.permute.xlu0 %7667 }
0x412c   :  { %v7670_v45 = vadd.f32 %v7668_v52, %v7656_v60  ;;  %v7926_v52 = vand.u32 4294901760, %v11737_v28 }
0x412e   :  { %9588 = vtanh.f32 %v7670_v45 }
0x4138   :  { %v9589_v17 = vpop.eup %9588 }
0x4139   :  { %7673 = vrot.lane.b32.xlu1 %v9589_v17, %s9681_s23 }
0x41ab   :  { %v7674_v41 = vpop.permute.xlu1 %7673 }
0x41ac   :  { %v7676_v53 = vmul.f32 %v9587_v20, %v7674_v41  ;;  %v11752_v20 = vand.u32 4294901760, %v7818_v8  ;;  %v7927_v41 = vsub.f32 %v11737_v28, %v7926_v52 }
0x41ae   :  { %7678 = vrot.lane.b32.xlu0 %v7676_v53, %s9682_s24 }
0x4220   :  { %v7679_v25 = vpop.permute.xlu0 %7678 }
0x4221   :  { %7681 = vst.msk [vmem:[#allocation4 + $0x18] sm:$0xf] %vm1758_vm5, %v7679_v25  ;;  %8386 = vmatmul.mubr.msk.f32.vlgmr.msra.gmra.mrb[54].mxu1 %vm111_vm0, %v7679_v25  ;;  %v7928_v25 = vand.u32 4294901760, %v7927_v41 }
0x42f4   :  { %v7758_v3 = vpop.f32.mrb[54].mxu1 }
0x42f5   :  { %v7759_v26 = vadd.f32 %v7758_v3, %v7686_v12  ;;  %v7760_v6 = vpop.f32.mrb[55].mxu1 }
0x42f6   :  { %v7761_v15 = vadd.f32 %v7760_v6, %v7688_v19  ;;  %v9000_v19 = vpack.c.bf16 %v11739_v35, %v11737_v28 }
0x42f7   :  { %v7767_v58 = vadd.f32 %v7763_v10, %v7759_v26 }
0x42f8   :  { %v7768_v2 = vadd.f32 %v7765_v49, %v7761_v15 }
0x42f9   :  { %9590 = vtanh.f32 %v7767_v58  ;;  %v8387_v14 = vmul.f32 -1.442695, %v7767_v58 }
0x42fa   :  { %9592 = vtanh.f32 %v7768_v2 }
0x42fb   :  { %9594 = vpow2.f32 %v8387_v14 }
0x4303   :  { %v9591_v31 = vpop.eup %9590 }
0x4304   :  { %v9593_v5 = vpop.eup %9592  ;;  %7780 = vrot.lane.b32.xlu1 %v9591_v31, %s9680_s22 }
0x4305   :  { %7782 = vrot.lane.b32.xlu0 %v9593_v5, %s9680_s22  ;;  %v9595_v7 = vpop.eup %9594 }
0x4306   :  { %v7772_v50 = vadd.f32 1.0, %v9595_v7  ;;  %v7939_v7 = vsub.f32 %v7818_v8, %v11752_v20 }
0x4308   :  { %9596 = vrcp.f32 %v7772_v50 }
0x4312   :  { %v9597_v34 = vpop.eup %9596 }
0x4313   :  { %v7777_v36 = vmul.f32 %v9597_v34, %v7670_v45  ;;  %v7933_v45 = vand.u32 4294901760, %v11739_v35 }
0x4315   :  { %v9012_v6 = vpack.c.bf16 %v7933_v45, %v7926_v52 }
0x4376   :  { %v7781_v57 = vpop.permute.xlu1 %7780 }
0x4377   :  { %v7783_v48 = vpop.permute.xlu0 %7782 }
0x4378   :  { %v7784_v38 = vsel %vm1739_vm4, %v7781_v57, %v7783_v48 }
0x4379   :  { %v7786_v43 = vmul.f32 %v9597_v34, %v7784_v38 }
0x437b   :  { %7788 = vrot.lane.b32.xlu1 %v7786_v43, %s9681_s23 }
0x437f   :  { %6956 = vrot.lane.b32.xlu1 %v11598_v1, %s9683_s25  ;;  %v7814_v1 = vld [vmem:[%s11821_s5] sm:$0xff] }
0x4380   :  { %v7830_v29 = vand.u32 4294901760, %v7814_v1 }
0x4382   :  { %v11720_v4 = vpack.c.bf16 %v7833_v61, %v7830_v29  ;;  %v11722_v11 = vsub.f32 %v7814_v1, %v7830_v29 }
0x4384   :  { %v7912_v62 = vand.u32 4294901760, %v11722_v11 }
0x4386   :  { %v7913_v23 = vsub.f32 %v11722_v11, %v7912_v62 }
0x4388   :  { %v7914_v46 = vand.u32 4294901760, %v7913_v23 }
0x43ed   :  { %v7789_v37 = vpop.permute.xlu1 %7788 }
0x43ee   :  { %v7791_v24 = vadd.f32 %v7789_v37, %v7777_v36  ;;  %v8388_v37 = vld [vmem:[#allocation6] ss:$0 sm:$0xff] }
0x43f0   :  { %9598 = vtanh.f32 %v7791_v24 }
0x43f1   :  { %v6957_v18 = vpop.permute.xlu1 %6956 }
0x43f2   :  { %6959 = vst.msk [vmem:[#allocation5 + $0x1c] sm:$0xf] %vm1758_vm5, %v6957_v18 }
0x43f9   :  { %v7808_v51 = vld [vmem:[#allocation5 + $0x1c] sm:$0xf] }
0x43fa   :  { %v9599_v54 = vpop.eup %9598  ;;  %7810 = vrot.lane.b32.xlu1 %v7808_v51, %s9684_s2 }
0x43fb   :  { %7794 = vrot.lane.b32.xlu0 %v9599_v54, %s9681_s23 }
0x43fe   :  { %7198 = vrot.lane.b32.xlu1 %v11634_v59, %s9683_s25  ;;  %v11724_v59 = vsub.f32 %v7815_v63, %v7833_v61 }
0x4400   :  { %v7919_v13 = vand.u32 4294901760, %v11724_v59  ;;  %v8997_v3 = vpack.c.bf16 %v11724_v59, %v11722_v11 }
0x4402   :  { %7440 = vrot.lane.b32.xlu1 %v11669_v47, %s9683_s25  ;;  %v9685_v47 = vmov 0.0|0.0   ;;  %v7920_v22 = vsub.f32 %v11724_v59, %v7919_v13  ;;  %v9009_v26 = vpack.c.bf16 %v7919_v13, %v7912_v62 }
0x4403   :  { %8984 = vmatprep.subr.bf16.mxu0 %v9685_v47 }
0x4404   :  { %8986 = vmatpush3.bf16.msra.mxu0 %v11720_v4  ;;  %v7921_v60 = vand.u32 4294901760, %v7920_v22 }
0x4405   :  { %8987 = vmatprep.subr.bf16.mxu0 %v9685_v47 }
0x4406   :  { %7682 = vrot.lane.b32.xlu1 %v7676_v53, %s9683_s25  ;;  %v8991_v17 = vpack.c.bf16 %v7921_v60, %v7914_v46 }
0x4408   :  { %8989 = vmatpush3.bf16.msra.mxu0 %v11735_v55 }
0x4409   :  { %8434 = vmatprep.subr.mxu0 %v11870_v33 }
0x440c   :  { %8435 = vmatpush3.msra.mxu0 %v11752_v20 }
0x440d   :  { %8990 = vmatprep.subr.bf16.mxu0 %v9685_v47 }
0x446c   :  { %v7811_v16 = vpop.permute.xlu1 %7810 }
0x446d   :  { %v7795_v27 = vpop.permute.xlu0 %7794 }
0x446e   :  { %v7797_v9 = vmul.f32 %v9597_v34, %v7795_v27  ;;  %v7940_v34 = vand.u32 4294901760, %v7939_v7 }
0x4470   :  { %v7199_v30 = vpop.permute.xlu1 %7198  ;;  %7799 = vrot.lane.b32.xlu0 %v7797_v9, %s9682_s24  ;;  %v7941_v43 = vsub.f32 %v7939_v7, %v7940_v34 }
0x4471   :  { %7201 = vst.msk [vmem:[#allocation5 + $0x14] sm:$0xf] %vm1758_vm5, %v7199_v30 }
0x4472   :  { %v7942_v36 = vand.u32 4294901760, %v7941_v43 }
0x4474   :  { %v7441_v42 = vpop.permute.xlu1 %7440  ;;  %7077 = vrot.lane.b32.xlu0 %v11616_v40, %s9683_s25  ;;  %v7934_v40 = vsub.f32 %v11739_v35, %v7933_v45 }
0x4475   :  { %7443 = vst.msk [vmem:[#allocation5 + $0xc] sm:$0xf] %vm1758_vm5, %v7441_v42 }
0x4476   :  { %v7935_v12 = vand.u32 4294901760, %v7934_v40 }
0x4478   :  { %v7683_v53 = vpop.permute.xlu1 %7682  ;;  %7319 = vrot.lane.b32.xlu0 %v11652_v39, %s9683_s25  ;;  %v8994_v10 = vpack.c.bf16 %v7935_v12, %v7928_v25 }
0x4479   :  { %7685 = vst.msk [vmem:[#allocation5 + $0x4] sm:$0xf] %vm1758_vm5, %v7683_v53 }
0x447c   :  { %7561 = vrot.lane.b32.xlu0 %v11686_v56, %s9683_s25 }
0x4480   :  { %7803 = vrot.lane.b32.xlu0 %v7797_v9, %s9683_s25 }
0x44e2   :  { %v7800_v15 = vpop.permute.xlu0 %7799 }
0x44e3   :  { %7802 = vst.msk [vmem:[#allocation4 + $0x1c] sm:$0xf] %vm1758_vm5, %v7800_v15 }
0x44e6   :  { %v7078_v39 = vpop.permute.xlu0 %7077 }
0x44e7   :  { %7080 = vst.msk [vmem:[#allocation5 + $0x18] sm:$0xf] %vm1758_vm5, %v7078_v39 }
0x44ea   :  { %v7320_v49 = vpop.permute.xlu0 %7319  ;;  %v7807_v58 = vld [vmem:[#allocation4 + $0x1c] sm:$0xf] }
0x44eb   :  { %7322 = vst.msk [vmem:[#allocation5 + $0x10] sm:$0xf] %vm1758_vm5, %v7320_v49  ;;  %v7813_v56 = vsel %vm2686_vm6, %v7807_v58, %v7811_v16 }
0x44ec   :  { %v7827_v2 = vsel %vm111_vm0, %v7813_v56, 0 }
0x44ed   :  { %v7899_v31 = vand.u32 4294901760, %v7827_v2 }
0x44ee   :  { %v7562_v5 = vpop.permute.xlu0 %7561 }
0x44ef   :  { %7564 = vst.msk [vmem:[#allocation5 + $0x8] sm:$0xf] %vm1758_vm5, %v7562_v5  ;;  %v7900_v14 = vsub.f32 %v7827_v2, %v7899_v31 }
0x44f1   :  { %v7901_v50 = vand.u32 4294901760, %v7900_v14 }
0x44f2   :  { %v7804_v57 = vpop.permute.xlu0 %7803 }
0x44f3   :  { %7806 = vst.msk [vmem:[#allocation5] sm:$0xf] %vm1758_vm5, %v7804_v57  ;;  %v7902_v48 = vsub.f32 %v7900_v14, %v7901_v50 }
0x44f5   :  { %v7903_v38 = vand.u32 4294901760, %v7902_v48 }
0x44f7   :  { %8437 = vmatmul.mubr.f32.vlgmr.msra.gmra.mrb[48].mxu0 %v7903_v38 }
0x44f8   :  { %8992 = vmatpush3.bf16.msra.mxu0 %v8991_v17  ;;  %8449 = vmatprep.mubr.msk.f32.mxu0 %vm9686_vm7, %v11870_v33 }
0x44f9   :  { %8993 = vmatprep.subr.bf16.mxu0 %v9685_v47 }
0x44fc   :  { %8995 = vmatpush3.bf16.msra.mxu0 %v8994_v10 }
0x44fd   :  { %8447 = vmatprep.subr.mxu0 %v11870_v33 }
0x4500   :  { %8448 = vmatpush3.msra.mxu0 %v7942_v36 }
0x4501   :  { %8450 = vmatmul.mubr.f32.vlgmr.msra.gmra.mrb[48].mxu0 %v7899_v31  ;;  %8996 = vmatprep.subr.bf16.mxu0 %v9685_v47 }
0x4502   :  { %8998 = vmatpush3.bf16.msra.mxu0 %v8997_v3  ;;  %8462 = vmatprep.mubr.msk.f32.mxu0 %vm9686_vm7, %v11870_v33 }
0x4503   :  { %8999 = vmatprep.subr.bf16.mxu0 %v9685_v47 }
0x4506   :  { %9001 = vmatpush3.bf16.msra.mxu0 %v9000_v19 }
0x4507   :  { %8460 = vmatprep.subr.mxu0 %v11870_v33 }
0x450a   :  { %8461 = vmatpush3.msra.mxu0 %v7939_v7 }
0x450b   :  { %8463 = vmatmul.mubr.f32.vlgmr.msra.gmra.mrb[48].mxu0 %v7900_v14  ;;  %9002 = vmatprep.subr.bf16.mxu0 %v9685_v47 }
0x450c   :  { %9004 = vmatpush3.bf16.msra.mxu0 %v11720_v4  ;;  %8475 = vmatprep.mubr.msk.f32.mxu0 %vm9686_vm7, %v11870_v33 }
0x450d   :  { %9005 = vmatprep.subr.bf16.mxu0 %v9685_v47 }
0x4510   :  { %9007 = vmatpush3.bf16.msra.mxu0 %v11735_v55 }
0x4511   :  { %8473 = vmatprep.subr.mxu0 %v11870_v33 }
0x4514   :  { %8474 = vmatpush3.msra.mxu0 %v11752_v20 }
0x4515   :  { %8476 = vmatmul.mubr.f32.vlgmr.msra.gmra.mrb[48].mxu0 %v7901_v50  ;;  %9008 = vmatprep.subr.bf16.mxu0 %v9685_v47 }
0x4516   :  { %9010 = vmatpush3.bf16.msra.mxu0 %v9009_v26  ;;  %8488 = vmatprep.mubr.msk.f32.mxu0 %vm9686_vm7, %v11870_v33 }
0x4517   :  { %9011 = vmatprep.subr.bf16.mxu0 %v9685_v47 }
0x451a   :  { %9013 = vmatpush3.bf16.msra.mxu0 %v9012_v6 }
0x451b   :  { %8486 = vmatprep.subr.mxu0 %v11870_v33 }
0x451e   :  { %8487 = vmatpush3.msra.mxu0 %v7940_v34 }
0x451f   :  { %8489 = vmatmul.mubr.f32.vlgmr.msra.gmra.mrb[48].mxu0 %v7899_v31  ;;  %9014 = vmatprep.subr.bf16.mxu0 %v9685_v47 }
0x4520   :  { %9016 = vmatpush3.bf16.msra.mxu0 %v11720_v4  ;;  %8501 = vmatprep.mubr.msk.f32.mxu0 %vm9686_vm7, %v11870_v33 }
0x4521   :  { %9017 = vmatprep.subr.bf16.mxu0 %v9685_v47 }
0x4524   :  { %9019 = vmatpush3.bf16.msra.mxu0 %v11735_v55 }
0x4525   :  { %8499 = vmatprep.subr.mxu0 %v11870_v33 }
0x4528   :  { %8500 = vmatpush3.msra.mxu0 %v11752_v20 }
0x4529   :  { %8502 = vmatmul.mubr.f32.vlgmr.msra.gmra.mrb[48].mxu0 %v7899_v31 }
0x45fc   :  { %v8323_v24 = vpop.f32.mrb[48].mxu0 }
0x45fd   :  { %v9052_v18 = vadd.f32 %v8388_v37, %v8323_v24  ;;  %v8503_v51 = vpop.f32.mrb[49].mxu0 }
0x45ff   :  { %v8389_v54 = vmul.f32 -1.442695, %v9052_v18 }
0x4601   :  { %9600 = vpow2.f32 %v8389_v54 }
0x460b   :  { %v9601_v1 = vpop.eup %9600 }
0x460c   :  { %v8330_v63 = vadd.f32 1.0, %v9601_v1 }
0x460e   :  { %9602 = vrcp.f32 %v8330_v63 }
0x4618   :  { %v9603_v29 = vpop.eup %9602 }
0x4619   :  { %8334 = vst.msk [vmem:[%s11823_s7] sm:$0xf] %vm8333_vm8, %v9603_v29 }
0x461a   :  { %8339 = vsyncpa [#allocation8], 1 }
0x461b   :  { %8340 = vsyncpa [#allocation10], 1 }

</bundles_post_ra>
